<compile_context>
chip_gen: v7x
topology: tpu7x:2x2x1
jax: 0.10.0
libtpu: 0.0.40
codegen_flags: <defaults>
</compile_context>

<pallas_src>
import jax
import jax.numpy as jnp
import numpy as np
from jax.experimental import pallas as pl
from jax.experimental.pallas import tpu as pltpu

GEM_EPS = 1e-6     # GeM eps
BN_EPS = 1e-3      # nn.BatchNorm1d(embedding_size, eps=0.001)
L2_EPS = 1e-12     # F.normalize default eps


# ---------------------------------------------------------------------------
# Kernel 1: backbone stand-in -> GeM (S-tiled accumulation) -> neck -> L2 norm
# ---------------------------------------------------------------------------
def embed_kernel(p_ref,                       # SMEM (1,)  GeM exponent
                 x_ref,                       # [b_tile, C, s_tile]  f32 (NCHW slab)
                 wbb_ref, bbb_ref,            # backbone stand-in [F,C] bf16, [F,1] f32
                 wneck_ref, bnbias_ref,       # BN-folded neck    [E,F] bf16, [1,E] f32
                 emb_ref,                     # out: embeddings   [b_tile,E] f32
                 embn_ref,                    # out: normalized   [b_tile,E] bf16
                 pow_sum_ref):                # scratch: GeM power sums [b_tile,F] f32
    si = pl.program_id(1)
    ns = pl.num_programs(1)
    b_tile, _, s_tile = x_ref.shape

    @pl.when(si == 0)
    def _():
        pow_sum_ref[...] = jnp.zeros_like(pow_sum_ref)

    p = p_ref[0]
    is_cube = jnp.abs(p - 3.0) < 1e-6

    wbb = wbb_ref[...]                                    # [F, C] bf16 (pre-cast)
    bbb = bbb_ref[...]                                    # [F, 1] f32

    def accum(pow_fn):
        # TODO(synk): the real FaceNet2 backbone (InceptionResnetV1 /
        # EfficientNet-b3 / SEResNeXt101) is a large pretrained CNN with no
        # clean in-kernel equivalent; a deterministic pointwise (1x1 conv +
        # ReLU) projection stands in so the rest of the forward is exact.
        ones_row = jnp.ones((1, s_tile), jnp.float32)     # lane-sum via MXU
        rows = []
        for b in range(b_tile):                           # static unroll, B small
            x_b = x_ref[b].astype(jnp.bfloat16)           # [C, s_tile], lane-dense
            feat = jax.lax.dot_general(                   # canonical [F,C]x[C,S]
                wbb, x_b, dimension_numbers=(((1,), (0,)), ((), ())),
                preferred_element_type=jnp.float32)       # [F, s_tile]
            feat = jnp.maximum(feat + bbb, 0.0)           # bias + ReLU
            clamped = jnp.maximum(feat, GEM_EPS)
            powed = pow_fn(clamped)                       # [F, s_tile]
            # sum over spatial lanes, delivered as a [1, F] row (no transpose)
            rows.append(jax.lax.dot_general(
                ones_row, powed, dimension_numbers=(((1,), (1,)), ((), ())),
                preferred_element_type=jnp.float32))
        pow_sum_ref[...] += jnp.concatenate(rows, axis=0)  # [b_tile, F]

    @pl.when(is_cube)
    def _():                                              # VALU fast path, no EUP
        accum(lambda c: c * c * c)

    @pl.when(jnp.logical_not(is_cube))
    def _():                                              # general exponent
        # (kept f32 so it is safe on v5e; bf16 EUP would be faster on v6e/v7x)
        accum(lambda c: jnp.exp(p * jnp.log(c)))

    @pl.when(si == ns - 1)
    def _():
        s_total = ns * s_tile
        pooled = pow_sum_ref[...] * (1.0 / s_total)       # mean over spatial
        pooled = jnp.exp(jnp.log(pooled) * (1.0 / p))     # ^(1/p); >= eps^p > 0

        # dropout(p=0.0) is identity; the [:, :, 0, 0] squeeze is implicit.
        # neck Linear + BatchNorm1d(eval): BN is folded into wneck/bnbias.
        lin = jax.lax.dot_general(
            pooled.astype(jnp.bfloat16), wneck_ref[...],
            dimension_numbers=(((1,), (1,)), ((), ())),
            preferred_element_type=jnp.float32)           # [b_tile, E]
        emb = lin + bnbias_ref[...]

        # F.normalize(embeddings) for the ArcMargin head
        norm = jnp.sqrt(jnp.sum(emb * emb, axis=-1, keepdims=True))
        emb_n = emb / jnp.maximum(norm, L2_EPS)

        emb_ref[...] = emb.astype(emb_ref.dtype)
        embn_ref[...] = emb_n.astype(embn_ref.dtype)


# ---------------------------------------------------------------------------
# Kernel 2: ArcMarginProduct cosine logits with an int8 streamed head weight
# ---------------------------------------------------------------------------
def head_kernel(embn_ref, wq_ref, scale_ref, logits_ref):
    # cosine = normalize(emb) @ normalize(W)^T.  W arrives pre-normalized,
    # int8-quantized per class row; dequant scale is applied to the f32
    # accumulator.  int8 -> bf16 is exact, so the MXU sees bf16 on every
    # generation (portable to v7x, which has no integer MXU paths).
    w = wq_ref[...].astype(jnp.bfloat16)                          # [tile_nc, E]
    acc = jax.lax.dot_general(
        embn_ref[...], w, dimension_numbers=(((1,), (1,)), ((), ())),
        preferred_element_type=jnp.float32)                       # [B, tile_nc]
    logits_ref[...] = (acc * scale_ref[...]).astype(logits_ref.dtype)


# ---------------------------------------------------------------------------
# One-time inference weight prep
# ---------------------------------------------------------------------------
def prepare_params(params):
    """Bake inference-constant transforms into the stored weights:
      * ArcMargin weight: L2-normalize rows, quantize to int8 with a per-class
        scale (halves the dominant HBM stream of the head).
      * neck: fold BatchNorm1d eval statistics into the Linear weight/bias.
      * backbone / neck weights pre-cast to bf16 (halves their DMA)."""
    wh = params['whead'].astype(jnp.float32)
    norm = jnp.maximum(jnp.linalg.norm(wh, axis=-1, keepdims=True), L2_EPS)
    wh_n = wh / norm
    scale = jnp.maximum(jnp.max(jnp.abs(wh_n), axis=-1, keepdims=True), 1e-12) / 127.0
    wq = jnp.clip(jnp.round(wh_n / scale), -127, 127).astype(jnp.int8)

    s = params['gamma'] * jax.lax.rsqrt(params['rvar'] + BN_EPS)          # [1, E]
    wneck_eff = (params['wneck'] * s[0][:, None]).astype(jnp.bfloat16)    # [E, F]
    bnbias_eff = (params['bneck'] - params['rmean']) * s + params['beta']  # [1, E]

    return {
        'p': params['p'],
        'wbb': params['wbb'].astype(jnp.bfloat16),     # [F, C]
        'bbb': params['bbb'].astype(jnp.float32),      # [F, 1]
        'wneck_eff': wneck_eff,                        # [E, F] bf16 (BN-scaled)
        'bnbias_eff': bnbias_eff.astype(jnp.float32),  # [1, E]
        'whead_q': wq,                                 # [NC, E] int8
        'whead_scale': scale.reshape(1, -1).astype(jnp.float32),  # [1, NC]
    }


# ---------------------------------------------------------------------------
# Forward wrapper
# ---------------------------------------------------------------------------
def facenet2_forward(x_nchw, params, *, tile_nc=1024, s_tile=128, b_tile=8):
    """Inference forward; `params` must come from prepare_params.

    tile_nc: head-weight rows per grid step (1024-4096 recommended; the head
             is HBM-bound and large lane-dense blocks reach ~85% of roofline).
    s_tile:  spatial positions per embed grid step (input double-buffered).
    """
    B, C, H, W = x_nchw.shape
    S = H * W
    F = params['wbb'].shape[0]
    E = params['wneck_eff'].shape[0]
    NC = params['whead_q'].shape[0]

    if S % s_tile != 0:
        s_tile = S
    if B % b_tile != 0:
        b_tile = B

    # Free view of NCHW: [B, C, S].  No wrapper-side transpose / HBM round
    # trip; the tiny channel dim lands on sublanes, S (lane-dense) is tiled.
    x3 = x_nchw.reshape(B, C, S)

    smem = pl.BlockSpec(memory_space=pltpu.MemorySpace.SMEM)
    const2 = lambda bi, si: (0, 0)

    emb, emb_n = pl.pallas_call(
        embed_kernel,
        out_shape=(jax.ShapeDtypeStruct((B, E), jnp.float32),
                   jax.ShapeDtypeStruct((B, E), jnp.bfloat16)),
        grid=(B // b_tile, S // s_tile),
        in_specs=[smem,
                  pl.BlockSpec((b_tile, C, s_tile), lambda bi, si: (bi, 0, si)),
                  pl.BlockSpec((F, C), const2),
                  pl.BlockSpec((F, 1), const2),
                  pl.BlockSpec((E, F), const2),
                  pl.BlockSpec((1, E), const2)],
        out_specs=(pl.BlockSpec((b_tile, E), lambda bi, si: (bi, 0)),
                   pl.BlockSpec((b_tile, E), lambda bi, si: (bi, 0))),
        scratch_shapes=[pltpu.VMEM((b_tile, F), jnp.float32)],
        compiler_params=pltpu.CompilerParams(
            dimension_semantics=("parallel", "arbitrary"),
            vmem_limit_bytes=32 * 1024 * 1024),     # explicit: v5e default is 16 MiB
    )(params['p'], x3, params['wbb'], params['bbb'],
      params['wneck_eff'], params['bnbias_eff'])

    # Head: stream whead_q (int8) HBM->VMEM in large double-buffered blocks;
    # the NC axis is "parallel" so megacore parts (v7x) split it across cores.
    tile_nc = min(tile_nc, NC)
    while NC % tile_nc != 0:
        tile_nc //= 2
    logits = pl.pallas_call(
        head_kernel,
        out_shape=jax.ShapeDtypeStruct((B, NC), jnp.float32),
        grid=(NC // tile_nc,),
        in_specs=[pl.BlockSpec((B, E), lambda j: (0, 0)),
                  pl.BlockSpec((tile_nc, E), lambda j: (j, 0)),
                  pl.BlockSpec((1, tile_nc), lambda j: (0, j))],
        out_specs=pl.BlockSpec((B, tile_nc), lambda j: (0, j)),
        compiler_params=pltpu.CompilerParams(
            dimension_semantics=("parallel",),
            vmem_limit_bytes=32 * 1024 * 1024),
    )(emb_n, params['whead_q'], params['whead_scale'])

    return {'logits': logits, 'embeddings': emb}


# ---------------------------------------------------------------------------
# Pure-JAX f32 reference mirroring the PyTorch forward semantics
# ---------------------------------------------------------------------------
def facenet2_reference(x_nchw, params):
    B, C, H, W = x_nchw.shape
    x = x_nchw.reshape(B, C, H * W).astype(jnp.float32)
    feat = jnp.einsum('fc,bcs->bfs', params['wbb'], x) \
        + params['bbb'][:, 0][None, :, None]
    feat = jnp.maximum(feat, 0.0)
    p = params['p'][0]
    pooled = jnp.mean(jnp.maximum(feat, GEM_EPS) ** p, axis=-1) ** (1.0 / p)
    lin = pooled @ params['wneck'].T + params['bneck'][0]
    inv_std = 1.0 / jnp.sqrt(params['rvar'][0] + BN_EPS)
    emb = (lin - params['rmean'][0]) * inv_std * params['gamma'][0] + params['beta'][0]
    emb_n = emb / jnp.maximum(jnp.linalg.norm(emb, axis=-1, keepdims=True), L2_EPS)
    wh = params['whead']
    wh_n = wh / jnp.maximum(jnp.linalg.norm(wh, axis=-1, keepdims=True), L2_EPS)
    logits = emb_n @ wh_n.T
    return logits, emb


def init_params(key, c_in, feat, emb, num_classes):
    ks = jax.random.split(key, 9)
    lim_bb = 1.0 / np.sqrt(c_in)
    lim_neck = 1.0 / np.sqrt(feat)                    # torch Linear default
    lim_head = np.sqrt(6.0 / (emb + num_classes))     # xavier_uniform_
    return {
        'p': jnp.array([3.0], jnp.float32),           # GeM p (trainable, init 3)
        'wbb': jax.random.uniform(ks[0], (feat, c_in), jnp.float32, -lim_bb, lim_bb),
        'bbb': jax.random.uniform(ks[1], (feat, 1), jnp.float32, -lim_bb, lim_bb),
        'wneck': jax.random.uniform(ks[2], (emb, feat), jnp.float32, -lim_neck, lim_neck),
        'bneck': jax.random.uniform(ks[3], (1, emb), jnp.float32, -lim_neck, lim_neck),
        'gamma': jax.random.uniform(ks[4], (1, emb), jnp.float32, 0.8, 1.2),
        'beta': 0.1 * jax.random.normal(ks[5], (1, emb), jnp.float32),
        'rmean': 0.1 * jax.random.normal(ks[6], (1, emb), jnp.float32),
        'rvar': jax.random.uniform(ks[7], (1, emb), jnp.float32, 0.5, 1.5),
        'whead': jax.random.uniform(ks[8], (num_classes, emb), jnp.float32,
                                    -lim_head, lim_head),
    }


if __name__ == "__main__":
    # Small but TPU-friendly demo shapes: batch fills the 8 sublanes, S=256
    # exercises the S-tiled GeM accumulation (2 steps at s_tile=128), and
    # NUM_CLASSES=2048 exercises the streamed multi-block head (2 steps).
    B, C_IN, H, W = 8, 4, 16, 16       # input images (NCHW)
    F_FEAT = 256                       # backbone stand-in feature channels
    EMB = 128                          # embedding_size
    NUM_CLASSES = 2048

    key = jax.random.PRNGKey(0)
    k_x, k_p = jax.random.split(key)
    x = jax.random.normal(k_x, (B, C_IN, H, W), jnp.float32)
    params = init_params(k_p, C_IN, F_FEAT, EMB, NUM_CLASSES)
    infer_params = prepare_params(params)

    out = facenet2_forward(x, infer_params)
    logits = jax.block_until_ready(out['logits'])
    embeddings = jax.block_until_ready(out['embeddings'])
    assert logits.shape == (B, NUM_CLASSES) and embeddings.shape == (B, EMB)

    ref_logits, ref_emb = facenet2_reference(x, params)
    np.testing.assert_allclose(np.asarray(logits), np.asarray(ref_logits),
                               rtol=2e-2, atol=2e-2)
    np.testing.assert_allclose(np.asarray(embeddings), np.asarray(ref_emb),
                               rtol=2e-2, atol=2e-2)

    # Also exercise the general (p != 3) GeM branch.
    params_g = dict(params, p=jnp.array([2.5], jnp.float32))
    out_g = facenet2_forward(x, prepare_params(params_g))
    logits_g = jax.block_until_ready(out_g['logits'])
    ref_logits_g, ref_emb_g = facenet2_reference(x, params_g)
    np.testing.assert_allclose(np.asarray(logits_g), np.asarray(ref_logits_g),
                               rtol=2e-2, atol=2e-2)
    np.testing.assert_allclose(np.asarray(out_g['embeddings']),
                               np.asarray(ref_emb_g), rtol=2e-2, atol=2e-2)

    print("KERNEL_OK")
</pallas_src>

<mosaic_0001>
module attributes {stable_mosaic.version = 11 : i64} {
  func.func @embed_kernel(%arg0: i32, %arg1: i32, %arg2: memref<1xf32, #tpu.memory_space<smem>>, %arg3: memref<8x4x128xf32, #tpu.memory_space<vmem>>, %arg4: memref<256x4xbf16, #tpu.memory_space<vmem>>, %arg5: memref<256x1xf32, #tpu.memory_space<vmem>>, %arg6: memref<128x256xbf16, #tpu.memory_space<vmem>>, %arg7: memref<1x128xf32, #tpu.memory_space<vmem>>, %arg8: memref<8x128xf32, #tpu.memory_space<vmem>>, %arg9: memref<8x128xbf16, #tpu.memory_space<vmem>>, %arg10: memref<8x256xf32, #tpu.memory_space<vmem>>) attributes {dimension_semantics = [#tpu.dimension_semantics<parallel>, #tpu.dimension_semantics<arbitrary>], iteration_bounds = array<i64: 1, 2>, scalar_prefetch = 0 : i64, scratch_operands = 1 : i64, tpu.core_type = #tpu.core_type<tc>, window_params = [{transform_indices = @transform_0, window_bounds = array<i64: 1>}, {transform_indices = @transform_1, window_bounds = array<i64: 8, 4, 128>}, {pipeline_mode = #tpu.pipeline_mode<synchronous>, transform_indices = @transform_2, window_bounds = array<i64: 256, 4>}, {pipeline_mode = #tpu.pipeline_mode<synchronous>, transform_indices = @transform_3, window_bounds = array<i64: 256, 1>}, {pipeline_mode = #tpu.pipeline_mode<synchronous>, transform_indices = @transform_4, window_bounds = array<i64: 128, 256>}, {pipeline_mode = #tpu.pipeline_mode<synchronous>, transform_indices = @transform_5, window_bounds = array<i64: 1, 128>}, {transform_indices = @transform_6, window_bounds = array<i64: 8, 128>}, {transform_indices = @transform_7, window_bounds = array<i64: 8, 128>}]} {
    %c0_i32 = arith.constant 0 : i32
    %0 = arith.cmpi eq, %arg1, %c0_i32 : i32
    %1 = arith.extui %0 : i1 to i32
    %c0_i32_0 = arith.constant 0 : i32
    %2 = arith.cmpi ne, %1, %c0_i32_0 : i32
    scf.if %2 {
      %cst_9 = arith.constant 0.000000e+00 : f32
      %17 = vector.broadcast %cst_9 : f32 to vector<8x256xf32>
      %c0_10 = arith.constant 0 : index
      %c0_11 = arith.constant 0 : index
      %18 = vector.load %arg10[%c0_10, %c0_11] : memref<8x256xf32, #tpu.memory_space<vmem>>, vector<8x256xf32>
      tpu.vector_store %arg10[%c0_10, %c0_11], %17 {strides = array<i32>} : memref<8x256xf32, #tpu.memory_space<vmem>>, vector<8x256xf32>,
    } else {
    }
    %c0 = arith.constant 0 : index
    %3 = memref.load %arg2[%c0] : memref<1xf32, #tpu.memory_space<smem>>
    %cst = arith.constant 3.000000e+00 : f32
    %4 = arith.subf %3, %cst : f32
    %5 = math.absf %4 : f32
    %cst_1 = arith.constant 9.99999997E-7 : f32
    %6 = arith.cmpf olt, %5, %cst_1 : f32
    %c0_2 = arith.constant 0 : index
    %c0_3 = arith.constant 0 : index
    %7 = vector.load %arg4[%c0_2, %c0_3] : memref<256x4xbf16, #tpu.memory_space<vmem>>, vector<256x4xbf16>
    %c0_4 = arith.constant 0 : index
    %c0_5 = arith.constant 0 : index
    %8 = vector.load %arg5[%c0_4, %c0_5] : memref<256x1xf32, #tpu.memory_space<vmem>>, vector<256x1xf32>
    %9 = arith.extui %6 : i1 to i32
    %c0_i32_6 = arith.constant 0 : i32
    %10 = arith.cmpi ne, %9, %c0_i32_6 : i32
    scf.if %10 {
      %cst_9 = arith.constant 1.000000e+00 : f32
      %17 = vector.broadcast %cst_9 : f32 to vector<1x128xf32>
      %c0_10 = arith.constant 0 : index
      %c0_11 = arith.constant 0 : index
      %c0_12 = arith.constant 0 : index
      %18 = vector.load %arg3[%c0_10, %c0_11, %c0_12] : memref<8x4x128xf32, #tpu.memory_space<vmem>>, vector<1x4x128xf32>
      %19 = vector.shape_cast %18 : vector<1x4x128xf32> to vector<4x128xf32>
      %20 = arith.truncf %19 : vector<4x128xf32> to vector<4x128xbf16>
      %cst_13 = arith.constant dense<0.000000e+00> : vector<256x128xf32>
      %21 = tpu.matmul %7, %20, %cst_13 {dimension_numbers = #tpu.dot_dimension_numbers<[1], [0], [0], [1], [0, 0, 1, 1], [], []>} : vector<256x4xbf16>, vector<4x128xbf16>, vector<256x128xf32> -> vector<256x128xf32>
      %22 = vector.broadcast %8 : vector<256x1xf32> to vector<256x128xf32>
      %23 = arith.addf %21, %22 : vector<256x128xf32>
      %cst_14 = arith.constant 0.000000e+00 : f32
      %24 = vector.broadcast %cst_14 : f32 to vector<256x128xf32>
      %25 = arith.maximumf %23, %24 : vector<256x128xf32>
      %cst_15 = arith.constant 9.99999997E-7 : f32
      %26 = vector.broadcast %cst_15 : f32 to vector<256x128xf32>
      %27 = arith.maximumf %25, %26 : vector<256x128xf32>
      %28 = arith.mulf %27, %27 : vector<256x128xf32>
      %29 = arith.mulf %28, %27 : vector<256x128xf32>
      %cst_16 = arith.constant dense<0.000000e+00> : vector<1x256xf32>
      %30 = tpu.matmul %17, %29, %cst_16 {dimension_numbers = #tpu.dot_dimension_numbers<[1], [1], [0], [0], [0, 0, 1, 0], [], []>} : vector<1x128xf32>, vector<256x128xf32>, vector<1x256xf32> -> vector<1x256xf32>
      %c1 = arith.constant 1 : index
      %c0_17 = arith.constant 0 : index
      %c0_18 = arith.constant 0 : index
      %31 = vector.load %arg3[%c1, %c0_17, %c0_18] : memref<8x4x128xf32, #tpu.memory_space<vmem>>, vector<1x4x128xf32>
      %32 = vector.shape_cast %31 : vector<1x4x128xf32> to vector<4x128xf32>
      %33 = arith.truncf %32 : vector<4x128xf32> to vector<4x128xbf16>
      %cst_19 = arith.constant dense<0.000000e+00> : vector<256x128xf32>
      %34 = tpu.matmul %7, %33, %cst_19 {dimension_numbers = #tpu.dot_dimension_numbers<[1], [0], [0], [1], [0, 0, 1, 1], [], []>} : vector<256x4xbf16>, vector<4x128xbf16>, vector<256x128xf32> -> vector<256x128xf32>
      %35 = vector.broadcast %8 : vector<256x1xf32> to vector<256x128xf32>
      %36 = arith.addf %34, %35 : vector<256x128xf32>
      %cst_20 = arith.constant 0.000000e+00 : f32
      %37 = vector.broadcast %cst_20 : f32 to vector<256x128xf32>
      %38 = arith.maximumf %36, %37 : vector<256x128xf32>
      %cst_21 = arith.constant 9.99999997E-7 : f32
      %39 = vector.broadcast %cst_21 : f32 to vector<256x128xf32>
      %40 = arith.maximumf %38, %39 : vector<256x128xf32>
      %41 = arith.mulf %40, %40 : vector<256x128xf32>
      %42 = arith.mulf %41, %40 : vector<256x128xf32>
      %cst_22 = arith.constant dense<0.000000e+00> : vector<1x256xf32>
      %43 = tpu.matmul %17, %42, %cst_22 {dimension_numbers = #tpu.dot_dimension_numbers<[1], [1], [0], [0], [0, 0, 1, 0], [], []>} : vector<1x128xf32>, vector<256x128xf32>, vector<1x256xf32> -> vector<1x256xf32>
      %c2 = arith.constant 2 : index
      %c0_23 = arith.constant 0 : index
      %c0_24 = arith.constant 0 : index
      %44 = vector.load %arg3[%c2, %c0_23, %c0_24] : memref<8x4x128xf32, #tpu.memory_space<vmem>>, vector<1x4x128xf32>
      %45 = vector.shape_cast %44 : vector<1x4x128xf32> to vector<4x128xf32>
      %46 = arith.truncf %45 : vector<4x128xf32> to vector<4x128xbf16>
      %cst_25 = arith.constant dense<0.000000e+00> : vector<256x128xf32>
      %47 = tpu.matmul %7, %46, %cst_25 {dimension_numbers = #tpu.dot_dimension_numbers<[1], [0], [0], [1], [0, 0, 1, 1], [], []>} : vector<256x4xbf16>, vector<4x128xbf16>, vector<256x128xf32> -> vector<256x128xf32>
      %48 = vector.broadcast %8 : vector<256x1xf32> to vector<256x128xf32>
      %49 = arith.addf %47, %48 : vector<256x128xf32>
      %cst_26 = arith.constant 0.000000e+00 : f32
      %50 = vector.broadcast %cst_26 : f32 to vector<256x128xf32>
      %51 = arith.maximumf %49, %50 : vector<256x128xf32>
      %cst_27 = arith.constant 9.99999997E-7 : f32
      %52 = vector.broadcast %cst_27 : f32 to vector<256x128xf32>
      %53 = arith.maximumf %51, %52 : vector<256x128xf32>
      %54 = arith.mulf %53, %53 : vector<256x128xf32>
      %55 = arith.mulf %54, %53 : vector<256x128xf32>
      %cst_28 = arith.constant dense<0.000000e+00> : vector<1x256xf32>
      %56 = tpu.matmul %17, %55, %cst_28 {dimension_numbers = #tpu.dot_dimension_numbers<[1], [1], [0], [0], [0, 0, 1, 0], [], []>} : vector<1x128xf32>, vector<256x128xf32>, vector<1x256xf32> -> vector<1x256xf32>
      %c3 = arith.constant 3 : index
      %c0_29 = arith.constant 0 : index
      %c0_30 = arith.constant 0 : index
      %57 = vector.load %arg3[%c3, %c0_29, %c0_30] : memref<8x4x128xf32, #tpu.memory_space<vmem>>, vector<1x4x128xf32>
      %58 = vector.shape_cast %57 : vector<1x4x128xf32> to vector<4x128xf32>
      %59 = arith.truncf %58 : vector<4x128xf32> to vector<4x128xbf16>
      %cst_31 = arith.constant dense<0.000000e+00> : vector<256x128xf32>
      %60 = tpu.matmul %7, %59, %cst_31 {dimension_numbers = #tpu.dot_dimension_numbers<[1], [0], [0], [1], [0, 0, 1, 1], [], []>} : vector<256x4xbf16>, vector<4x128xbf16>, vector<256x128xf32> -> vector<256x128xf32>
      %61 = vector.broadcast %8 : vector<256x1xf32> to vector<256x128xf32>
      %62 = arith.addf %60, %61 : vector<256x128xf32>
      %cst_32 = arith.constant 0.000000e+00 : f32
      %63 = vector.broadcast %cst_32 : f32 to vector<256x128xf32>
      %64 = arith.maximumf %62, %63 : vector<256x128xf32>
      %cst_33 = arith.constant 9.99999997E-7 : f32
      %65 = vector.broadcast %cst_33 : f32 to vector<256x128xf32>
      %66 = arith.maximumf %64, %65 : vector<256x128xf32>
      %67 = arith.mulf %66, %66 : vector<256x128xf32>
      %68 = arith.mulf %67, %66 : vector<256x128xf32>
      %cst_34 = arith.constant dense<0.000000e+00> : vector<1x256xf32>
      %69 = tpu.matmul %17, %68, %cst_34 {dimension_numbers = #tpu.dot_dimension_numbers<[1], [1], [0], [0], [0, 0, 1, 0], [], []>} : vector<1x128xf32>, vector<256x128xf32>, vector<1x256xf32> -> vector<1x256xf32>
      %c4 = arith.constant 4 : index
      %c0_35 = arith.constant 0 : index
      %c0_36 = arith.constant 0 : index
      %70 = vector.load %arg3[%c4, %c0_35, %c0_36] : memref<8x4x128xf32, #tpu.memory_space<vmem>>, vector<1x4x128xf32>
      %71 = vector.shape_cast %70 : vector<1x4x128xf32> to vector<4x128xf32>
      %72 = arith.truncf %71 : vector<4x128xf32> to vector<4x128xbf16>
      %cst_37 = arith.constant dense<0.000000e+00> : vector<256x128xf32>
      %73 = tpu.matmul %7, %72, %cst_37 {dimension_numbers = #tpu.dot_dimension_numbers<[1], [0], [0], [1], [0, 0, 1, 1], [], []>} : vector<256x4xbf16>, vector<4x128xbf16>, vector<256x128xf32> -> vector<256x128xf32>
      %74 = vector.broadcast %8 : vector<256x1xf32> to vector<256x128xf32>
      %75 = arith.addf %73, %74 : vector<256x128xf32>
      %cst_38 = arith.constant 0.000000e+00 : f32
      %76 = vector.broadcast %cst_38 : f32 to vector<256x128xf32>
      %77 = arith.maximumf %75, %76 : vector<256x128xf32>
      %cst_39 = arith.constant 9.99999997E-7 : f32
      %78 = vector.broadcast %cst_39 : f32 to vector<256x128xf32>
      %79 = arith.maximumf %77, %78 : vector<256x128xf32>
      %80 = arith.mulf %79, %79 : vector<256x128xf32>
      %81 = arith.mulf %80, %79 : vector<256x128xf32>
      %cst_40 = arith.constant dense<0.000000e+00> : vector<1x256xf32>
      %82 = tpu.matmul %17, %81, %cst_40 {dimension_numbers = #tpu.dot_dimension_numbers<[1], [1], [0], [0], [0, 0, 1, 0], [], []>} : vector<1x128xf32>, vector<256x128xf32>, vector<1x256xf32> -> vector<1x256xf32>
      %c5 = arith.constant 5 : index
      %c0_41 = arith.constant 0 : index
      %c0_42 = arith.constant 0 : index
      %83 = vector.load %arg3[%c5, %c0_41, %c0_42] : memref<8x4x128xf32, #tpu.memory_space<vmem>>, vector<1x4x128xf32>
      %84 = vector.shape_cast %83 : vector<1x4x128xf32> to vector<4x128xf32>
      %85 = arith.truncf %84 : vector<4x128xf32> to vector<4x128xbf16>
      %cst_43 = arith.constant dense<0.000000e+00> : vector<256x128xf32>
      %86 = tpu.matmul %7, %85, %cst_43 {dimension_numbers = #tpu.dot_dimension_numbers<[1], [0], [0], [1], [0, 0, 1, 1], [], []>} : vector<256x4xbf16>, vector<4x128xbf16>, vector<256x128xf32> -> vector<256x128xf32>
      %87 = vector.broadcast %8 : vector<256x1xf32> to vector<256x128xf32>
      %88 = arith.addf %86, %87 : vector<256x128xf32>
      %cst_44 = arith.constant 0.000000e+00 : f32
      %89 = vector.broadcast %cst_44 : f32 to vector<256x128xf32>
      %90 = arith.maximumf %88, %89 : vector<256x128xf32>
      %cst_45 = arith.constant 9.99999997E-7 : f32
      %91 = vector.broadcast %cst_45 : f32 to vector<256x128xf32>
      %92 = arith.maximumf %90, %91 : vector<256x128xf32>
      %93 = arith.mulf %92, %92 : vector<256x128xf32>
      %94 = arith.mulf %93, %92 : vector<256x128xf32>
      %cst_46 = arith.constant dense<0.000000e+00> : vector<1x256xf32>
      %95 = tpu.matmul %17, %94, %cst_46 {dimension_numbers = #tpu.dot_dimension_numbers<[1], [1], [0], [0], [0, 0, 1, 0], [], []>} : vector<1x128xf32>, vector<256x128xf32>, vector<1x256xf32> -> vector<1x256xf32>
      %c6 = arith.constant 6 : index
      %c0_47 = arith.constant 0 : index
      %c0_48 = arith.constant 0 : index
      %96 = vector.load %arg3[%c6, %c0_47, %c0_48] : memref<8x4x128xf32, #tpu.memory_space<vmem>>, vector<1x4x128xf32>
      %97 = vector.shape_cast %96 : vector<1x4x128xf32> to vector<4x128xf32>
      %98 = arith.truncf %97 : vector<4x128xf32> to vector<4x128xbf16>
      %cst_49 = arith.constant dense<0.000000e+00> : vector<256x128xf32>
      %99 = tpu.matmul %7, %98, %cst_49 {dimension_numbers = #tpu.dot_dimension_numbers<[1], [0], [0], [1], [0, 0, 1, 1], [], []>} : vector<256x4xbf16>, vector<4x128xbf16>, vector<256x128xf32> -> vector<256x128xf32>
      %100 = vector.broadcast %8 : vector<256x1xf32> to vector<256x128xf32>
      %101 = arith.addf %99, %100 : vector<256x128xf32>
      %cst_50 = arith.constant 0.000000e+00 : f32
      %102 = vector.broadcast %cst_50 : f32 to vector<256x128xf32>
      %103 = arith.maximumf %101, %102 : vector<256x128xf32>
      %cst_51 = arith.constant 9.99999997E-7 : f32
      %104 = vector.broadcast %cst_51 : f32 to vector<256x128xf32>
      %105 = arith.maximumf %103, %104 : vector<256x128xf32>
      %106 = arith.mulf %105, %105 : vector<256x128xf32>
      %107 = arith.mulf %106, %105 : vector<256x128xf32>
      %cst_52 = arith.constant dense<0.000000e+00> : vector<1x256xf32>
      %108 = tpu.matmul %17, %107, %cst_52 {dimension_numbers = #tpu.dot_dimension_numbers<[1], [1], [0], [0], [0, 0, 1, 0], [], []>} : vector<1x128xf32>, vector<256x128xf32>, vector<1x256xf32> -> vector<1x256xf32>
      %c7 = arith.constant 7 : index
      %c0_53 = arith.constant 0 : index
      %c0_54 = arith.constant 0 : index
      %109 = vector.load %arg3[%c7, %c0_53, %c0_54] : memref<8x4x128xf32, #tpu.memory_space<vmem>>, vector<1x4x128xf32>
      %110 = vector.shape_cast %109 : vector<1x4x128xf32> to vector<4x128xf32>
      %111 = arith.truncf %110 : vector<4x128xf32> to vector<4x128xbf16>
      %cst_55 = arith.constant dense<0.000000e+00> : vector<256x128xf32>
      %112 = tpu.matmul %7, %111, %cst_55 {dimension_numbers = #tpu.dot_dimension_numbers<[1], [0], [0], [1], [0, 0, 1, 1], [], []>} : vector<256x4xbf16>, vector<4x128xbf16>, vector<256x128xf32> -> vector<256x128xf32>
      %113 = vector.broadcast %8 : vector<256x1xf32> to vector<256x128xf32>
      %114 = arith.addf %112, %113 : vector<256x128xf32>
      %cst_56 = arith.constant 0.000000e+00 : f32
      %115 = vector.broadcast %cst_56 : f32 to vector<256x128xf32>
      %116 = arith.maximumf %114, %115 : vector<256x128xf32>
      %cst_57 = arith.constant 9.99999997E-7 : f32
      %117 = vector.broadcast %cst_57 : f32 to vector<256x128xf32>
      %118 = arith.maximumf %116, %117 : vector<256x128xf32>
      %119 = arith.mulf %118, %118 : vector<256x128xf32>
      %120 = arith.mulf %119, %118 : vector<256x128xf32>
      %cst_58 = arith.constant dense<0.000000e+00> : vector<1x256xf32>
      %121 = tpu.matmul %17, %120, %cst_58 {dimension_numbers = #tpu.dot_dimension_numbers<[1], [1], [0], [0], [0, 0, 1, 0], [], []>} : vector<1x128xf32>, vector<256x128xf32>, vector<1x256xf32> -> vector<1x256xf32>
      %c0_59 = arith.constant 0 : index
      %c0_60 = arith.constant 0 : index
      %122 = vector.load %arg10[%c0_59, %c0_60] : memref<8x256xf32, #tpu.memory_space<vmem>>, vector<8x256xf32>
      %123 = tpu.concatenate %30, %43, %56, %69, %82, %95, %108, %121 in 0 : vector<1x256xf32>, vector<1x256xf32>, vector<1x256xf32>, vector<1x256xf32>, vector<1x256xf32>, vector<1x256xf32>, vector<1x256xf32>, vector<1x256xf32> -> vector<8x256xf32>
      %124 = arith.addf %122, %123 : vector<8x256xf32>
      %c0_61 = arith.constant 0 : index
      %c0_62 = arith.constant 0 : index
      %125 = vector.load %arg10[%c0_61, %c0_62] : memref<8x256xf32, #tpu.memory_space<vmem>>, vector<8x256xf32>
      tpu.vector_store %arg10[%c0_61, %c0_62], %124 {strides = array<i32>} : memref<8x256xf32, #tpu.memory_space<vmem>>, vector<8x256xf32>,
    } else {
    }
    %true = arith.constant true
    %11 = arith.xori %6, %true : i1
    %12 = arith.extui %11 : i1 to i32
    %c0_i32_7 = arith.constant 0 : i32
    %13 = arith.cmpi ne, %12, %c0_i32_7 : i32
    scf.if %13 {
      %cst_9 = arith.constant 1.000000e+00 : f32
      %17 = vector.broadcast %cst_9 : f32 to vector<1x128xf32>
      %c0_10 = arith.constant 0 : index
      %c0_11 = arith.constant 0 : index
      %c0_12 = arith.constant 0 : index
      %18 = vector.load %arg3[%c0_10, %c0_11, %c0_12] : memref<8x4x128xf32, #tpu.memory_space<vmem>>, vector<1x4x128xf32>
      %19 = vector.shape_cast %18 : vector<1x4x128xf32> to vector<4x128xf32>
      %20 = arith.truncf %19 : vector<4x128xf32> to vector<4x128xbf16>
      %cst_13 = arith.constant dense<0.000000e+00> : vector<256x128xf32>
      %21 = tpu.matmul %7, %20, %cst_13 {dimension_numbers = #tpu.dot_dimension_numbers<[1], [0], [0], [1], [0, 0, 1, 1], [], []>} : vector<256x4xbf16>, vector<4x128xbf16>, vector<256x128xf32> -> vector<256x128xf32>
      %22 = vector.broadcast %8 : vector<256x1xf32> to vector<256x128xf32>
      %23 = arith.addf %21, %22 : vector<256x128xf32>
      %cst_14 = arith.constant 0.000000e+00 : f32
      %24 = vector.broadcast %cst_14 : f32 to vector<256x128xf32>
      %25 = arith.maximumf %23, %24 : vector<256x128xf32>
      %cst_15 = arith.constant 9.99999997E-7 : f32
      %26 = vector.broadcast %cst_15 : f32 to vector<256x128xf32>
      %27 = arith.maximumf %25, %26 : vector<256x128xf32>
      %28 = math.log %27 : vector<256x128xf32>
      %29 = vector.broadcast %3 : f32 to vector<256x128xf32>
      %30 = arith.mulf %29, %28 : vector<256x128xf32>
      %31 = math.exp %30 : vector<256x128xf32>
      %cst_16 = arith.constant dense<0.000000e+00> : vector<1x256xf32>
      %32 = tpu.matmul %17, %31, %cst_16 {dimension_numbers = #tpu.dot_dimension_numbers<[1], [1], [0], [0], [0, 0, 1, 0], [], []>} : vector<1x128xf32>, vector<256x128xf32>, vector<1x256xf32> -> vector<1x256xf32>
      %c1 = arith.constant 1 : index
      %c0_17 = arith.constant 0 : index
      %c0_18 = arith.constant 0 : index
      %33 = vector.load %arg3[%c1, %c0_17, %c0_18] : memref<8x4x128xf32, #tpu.memory_space<vmem>>, vector<1x4x128xf32>
      %34 = vector.shape_cast %33 : vector<1x4x128xf32> to vector<4x128xf32>
      %35 = arith.truncf %34 : vector<4x128xf32> to vector<4x128xbf16>
      %cst_19 = arith.constant dense<0.000000e+00> : vector<256x128xf32>
      %36 = tpu.matmul %7, %35, %cst_19 {dimension_numbers = #tpu.dot_dimension_numbers<[1], [0], [0], [1], [0, 0, 1, 1], [], []>} : vector<256x4xbf16>, vector<4x128xbf16>, vector<256x128xf32> -> vector<256x128xf32>
      %37 = vector.broadcast %8 : vector<256x1xf32> to vector<256x128xf32>
      %38 = arith.addf %36, %37 : vector<256x128xf32>
      %cst_20 = arith.constant 0.000000e+00 : f32
      %39 = vector.broadcast %cst_20 : f32 to vector<256x128xf32>
      %40 = arith.maximumf %38, %39 : vector<256x128xf32>
      %cst_21 = arith.constant 9.99999997E-7 : f32
      %41 = vector.broadcast %cst_21 : f32 to vector<256x128xf32>
      %42 = arith.maximumf %40, %41 : vector<256x128xf32>
      %43 = math.log %42 : vector<256x128xf32>
      %44 = vector.broadcast %3 : f32 to vector<256x128xf32>
      %45 = arith.mulf %44, %43 : vector<256x128xf32>
      %46 = math.exp %45 : vector<256x128xf32>
      %cst_22 = arith.constant dense<0.000000e+00> : vector<1x256xf32>
      %47 = tpu.matmul %17, %46, %cst_22 {dimension_numbers = #tpu.dot_dimension_numbers<[1], [1], [0], [0], [0, 0, 1, 0], [], []>} : vector<1x128xf32>, vector<256x128xf32>, vector<1x256xf32> -> vector<1x256xf32>
      %c2 = arith.constant 2 : index
      %c0_23 = arith.constant 0 : index
      %c0_24 = arith.constant 0 : index
      %48 = vector.load %arg3[%c2, %c0_23, %c0_24] : memref<8x4x128xf32, #tpu.memory_space<vmem>>, vector<1x4x128xf32>
      %49 = vector.shape_cast %48 : vector<1x4x128xf32> to vector<4x128xf32>
      %50 = arith.truncf %49 : vector<4x128xf32> to vector<4x128xbf16>
      %cst_25 = arith.constant dense<0.000000e+00> : vector<256x128xf32>
      %51 = tpu.matmul %7, %50, %cst_25 {dimension_numbers = #tpu.dot_dimension_numbers<[1], [0], [0], [1], [0, 0, 1, 1], [], []>} : vector<256x4xbf16>, vector<4x128xbf16>, vector<256x128xf32> -> vector<256x128xf32>
      %52 = vector.broadcast %8 : vector<256x1xf32> to vector<256x128xf32>
      %53 = arith.addf %51, %52 : vector<256x128xf32>
      %cst_26 = arith.constant 0.000000e+00 : f32
      %54 = vector.broadcast %cst_26 : f32 to vector<256x128xf32>
      %55 = arith.maximumf %53, %54 : vector<256x128xf32>
      %cst_27 = arith.constant 9.99999997E-7 : f32
      %56 = vector.broadcast %cst_27 : f32 to vector<256x128xf32>
      %57 = arith.maximumf %55, %56 : vector<256x128xf32>
      %58 = math.log %57 : vector<256x128xf32>
      %59 = vector.broadcast %3 : f32 to vector<256x128xf32>
      %60 = arith.mulf %59, %58 : vector<256x128xf32>
      %61 = math.exp %60 : vector<256x128xf32>
      %cst_28 = arith.constant dense<0.000000e+00> : vector<1x256xf32>
      %62 = tpu.matmul %17, %61, %cst_28 {dimension_numbers = #tpu.dot_dimension_numbers<[1], [1], [0], [0], [0, 0, 1, 0], [], []>} : vector<1x128xf32>, vector<256x128xf32>, vector<1x256xf32> -> vector<1x256xf32>
      %c3 = arith.constant 3 : index
      %c0_29 = arith.constant 0 : index
      %c0_30 = arith.constant 0 : index
      %63 = vector.load %arg3[%c3, %c0_29, %c0_30] : memref<8x4x128xf32, #tpu.memory_space<vmem>>, vector<1x4x128xf32>
      %64 = vector.shape_cast %63 : vector<1x4x128xf32> to vector<4x128xf32>
      %65 = arith.truncf %64 : vector<4x128xf32> to vector<4x128xbf16>
      %cst_31 = arith.constant dense<0.000000e+00> : vector<256x128xf32>
      %66 = tpu.matmul %7, %65, %cst_31 {dimension_numbers = #tpu.dot_dimension_numbers<[1], [0], [0], [1], [0, 0, 1, 1], [], []>} : vector<256x4xbf16>, vector<4x128xbf16>, vector<256x128xf32> -> vector<256x128xf32>
      %67 = vector.broadcast %8 : vector<256x1xf32> to vector<256x128xf32>
      %68 = arith.addf %66, %67 : vector<256x128xf32>
      %cst_32 = arith.constant 0.000000e+00 : f32
      %69 = vector.broadcast %cst_32 : f32 to vector<256x128xf32>
      %70 = arith.maximumf %68, %69 : vector<256x128xf32>
      %cst_33 = arith.constant 9.99999997E-7 : f32
      %71 = vector.broadcast %cst_33 : f32 to vector<256x128xf32>
      %72 = arith.maximumf %70, %71 : vector<256x128xf32>
      %73 = math.log %72 : vector<256x128xf32>
      %74 = vector.broadcast %3 : f32 to vector<256x128xf32>
      %75 = arith.mulf %74, %73 : vector<256x128xf32>
      %76 = math.exp %75 : vector<256x128xf32>
      %cst_34 = arith.constant dense<0.000000e+00> : vector<1x256xf32>
      %77 = tpu.matmul %17, %76, %cst_34 {dimension_numbers = #tpu.dot_dimension_numbers<[1], [1], [0], [0], [0, 0, 1, 0], [], []>} : vector<1x128xf32>, vector<256x128xf32>, vector<1x256xf32> -> vector<1x256xf32>
      %c4 = arith.constant 4 : index
      %c0_35 = arith.constant 0 : index
      %c0_36 = arith.constant 0 : index
      %78 = vector.load %arg3[%c4, %c0_35, %c0_36] : memref<8x4x128xf32, #tpu.memory_space<vmem>>, vector<1x4x128xf32>
      %79 = vector.shape_cast %78 : vector<1x4x128xf32> to vector<4x128xf32>
      %80 = arith.truncf %79 : vector<4x128xf32> to vector<4x128xbf16>
      %cst_37 = arith.constant dense<0.000000e+00> : vector<256x128xf32>
      %81 = tpu.matmul %7, %80, %cst_37 {dimension_numbers = #tpu.dot_dimension_numbers<[1], [0], [0], [1], [0, 0, 1, 1], [], []>} : vector<256x4xbf16>, vector<4x128xbf16>, vector<256x128xf32> -> vector<256x128xf32>
      %82 = vector.broadcast %8 : vector<256x1xf32> to vector<256x128xf32>
      %83 = arith.addf %81, %82 : vector<256x128xf32>
      %cst_38 = arith.constant 0.000000e+00 : f32
      %84 = vector.broadcast %cst_38 : f32 to vector<256x128xf32>
      %85 = arith.maximumf %83, %84 : vector<256x128xf32>
      %cst_39 = arith.constant 9.99999997E-7 : f32
      %86 = vector.broadcast %cst_39 : f32 to vector<256x128xf32>
      %87 = arith.maximumf %85, %86 : vector<256x128xf32>
      %88 = math.log %87 : vector<256x128xf32>
      %89 = vector.broadcast %3 : f32 to vector<256x128xf32>
      %90 = arith.mulf %89, %88 : vector<256x128xf32>
      %91 = math.exp %90 : vector<256x128xf32>
      %cst_40 = arith.constant dense<0.000000e+00> : vector<1x256xf32>
      %92 = tpu.matmul %17, %91, %cst_40 {dimension_numbers = #tpu.dot_dimension_numbers<[1], [1], [0], [0], [0, 0, 1, 0], [], []>} : vector<1x128xf32>, vector<256x128xf32>, vector<1x256xf32> -> vector<1x256xf32>
      %c5 = arith.constant 5 : index
      %c0_41 = arith.constant 0 : index
      %c0_42 = arith.constant 0 : index
      %93 = vector.load %arg3[%c5, %c0_41, %c0_42] : memref<8x4x128xf32, #tpu.memory_space<vmem>>, vector<1x4x128xf32>
      %94 = vector.shape_cast %93 : vector<1x4x128xf32> to vector<4x128xf32>
      %95 = arith.truncf %94 : vector<4x128xf32> to vector<4x128xbf16>
      %cst_43 = arith.constant dense<0.000000e+00> : vector<256x128xf32>
      %96 = tpu.matmul %7, %95, %cst_43 {dimension_numbers = #tpu.dot_dimension_numbers<[1], [0], [0], [1], [0, 0, 1, 1], [], []>} : vector<256x4xbf16>, vector<4x128xbf16>, vector<256x128xf32> -> vector<256x128xf32>
      %97 = vector.broadcast %8 : vector<256x1xf32> to vector<256x128xf32>
      %98 = arith.addf %96, %97 : vector<256x128xf32>
      %cst_44 = arith.constant 0.000000e+00 : f32
      %99 = vector.broadcast %cst_44 : f32 to vector<256x128xf32>
      %100 = arith.maximumf %98, %99 : vector<256x128xf32>
      %cst_45 = arith.constant 9.99999997E-7 : f32
      %101 = vector.broadcast %cst_45 : f32 to vector<256x128xf32>
      %102 = arith.maximumf %100, %101 : vector<256x128xf32>
      %103 = math.log %102 : vector<256x128xf32>
      %104 = vector.broadcast %3 : f32 to vector<256x128xf32>
      %105 = arith.mulf %104, %103 : vector<256x128xf32>
      %106 = math.exp %105 : vector<256x128xf32>
      %cst_46 = arith.constant dense<0.000000e+00> : vector<1x256xf32>
      %107 = tpu.matmul %17, %106, %cst_46 {dimension_numbers = #tpu.dot_dimension_numbers<[1], [1], [0], [0], [0, 0, 1, 0], [], []>} : vector<1x128xf32>, vector<256x128xf32>, vector<1x256xf32> -> vector<1x256xf32>
      %c6 = arith.constant 6 : index
      %c0_47 = arith.constant 0 : index
      %c0_48 = arith.constant 0 : index
      %108 = vector.load %arg3[%c6, %c0_47, %c0_48] : memref<8x4x128xf32, #tpu.memory_space<vmem>>, vector<1x4x128xf32>
      %109 = vector.shape_cast %108 : vector<1x4x128xf32> to vector<4x128xf32>
      %110 = arith.truncf %109 : vector<4x128xf32> to vector<4x128xbf16>
      %cst_49 = arith.constant dense<0.000000e+00> : vector<256x128xf32>
      %111 = tpu.matmul %7, %110, %cst_49 {dimension_numbers = #tpu.dot_dimension_numbers<[1], [0], [0], [1], [0, 0, 1, 1], [], []>} : vector<256x4xbf16>, vector<4x128xbf16>, vector<256x128xf32> -> vector<256x128xf32>
      %112 = vector.broadcast %8 : vector<256x1xf32> to vector<256x128xf32>
      %113 = arith.addf %111, %112 : vector<256x128xf32>
      %cst_50 = arith.constant 0.000000e+00 : f32
      %114 = vector.broadcast %cst_50 : f32 to vector<256x128xf32>
      %115 = arith.maximumf %113, %114 : vector<256x128xf32>
      %cst_51 = arith.constant 9.99999997E-7 : f32
      %116 = vector.broadcast %cst_51 : f32 to vector<256x128xf32>
      %117 = arith.maximumf %115, %116 : vector<256x128xf32>
      %118 = math.log %117 : vector<256x128xf32>
      %119 = vector.broadcast %3 : f32 to vector<256x128xf32>
      %120 = arith.mulf %119, %118 : vector<256x128xf32>
      %121 = math.exp %120 : vector<256x128xf32>
      %cst_52 = arith.constant dense<0.000000e+00> : vector<1x256xf32>
      %122 = tpu.matmul %17, %121, %cst_52 {dimension_numbers = #tpu.dot_dimension_numbers<[1], [1], [0], [0], [0, 0, 1, 0], [], []>} : vector<1x128xf32>, vector<256x128xf32>, vector<1x256xf32> -> vector<1x256xf32>
      %c7 = arith.constant 7 : index
      %c0_53 = arith.constant 0 : index
      %c0_54 = arith.constant 0 : index
      %123 = vector.load %arg3[%c7, %c0_53, %c0_54] : memref<8x4x128xf32, #tpu.memory_space<vmem>>, vector<1x4x128xf32>
      %124 = vector.shape_cast %123 : vector<1x4x128xf32> to vector<4x128xf32>
      %125 = arith.truncf %124 : vector<4x128xf32> to vector<4x128xbf16>
      %cst_55 = arith.constant dense<0.000000e+00> : vector<256x128xf32>
      %126 = tpu.matmul %7, %125, %cst_55 {dimension_numbers = #tpu.dot_dimension_numbers<[1], [0], [0], [1], [0, 0, 1, 1], [], []>} : vector<256x4xbf16>, vector<4x128xbf16>, vector<256x128xf32> -> vector<256x128xf32>
      %127 = vector.broadcast %8 : vector<256x1xf32> to vector<256x128xf32>
      %128 = arith.addf %126, %127 : vector<256x128xf32>
      %cst_56 = arith.constant 0.000000e+00 : f32
      %129 = vector.broadcast %cst_56 : f32 to vector<256x128xf32>
      %130 = arith.maximumf %128, %129 : vector<256x128xf32>
      %cst_57 = arith.constant 9.99999997E-7 : f32
      %131 = vector.broadcast %cst_57 : f32 to vector<256x128xf32>
      %132 = arith.maximumf %130, %131 : vector<256x128xf32>
      %133 = math.log %132 : vector<256x128xf32>
      %134 = vector.broadcast %3 : f32 to vector<256x128xf32>
      %135 = arith.mulf %134, %133 : vector<256x128xf32>
      %136 = math.exp %135 : vector<256x128xf32>
      %cst_58 = arith.constant dense<0.000000e+00> : vector<1x256xf32>
      %137 = tpu.matmul %17, %136, %cst_58 {dimension_numbers = #tpu.dot_dimension_numbers<[1], [1], [0], [0], [0, 0, 1, 0], [], []>} : vector<1x128xf32>, vector<256x128xf32>, vector<1x256xf32> -> vector<1x256xf32>
      %c0_59 = arith.constant 0 : index
      %c0_60 = arith.constant 0 : index
      %138 = vector.load %arg10[%c0_59, %c0_60] : memref<8x256xf32, #tpu.memory_space<vmem>>, vector<8x256xf32>
      %139 = tpu.concatenate %32, %47, %62, %77, %92, %107, %122, %137 in 0 : vector<1x256xf32>, vector<1x256xf32>, vector<1x256xf32>, vector<1x256xf32>, vector<1x256xf32>, vector<1x256xf32>, vector<1x256xf32>, vector<1x256xf32> -> vector<8x256xf32>
      %140 = arith.addf %138, %139 : vector<8x256xf32>
      %c0_61 = arith.constant 0 : index
      %c0_62 = arith.constant 0 : index
      %141 = vector.load %arg10[%c0_61, %c0_62] : memref<8x256xf32, #tpu.memory_space<vmem>>, vector<8x256xf32>
      tpu.vector_store %arg10[%c0_61, %c0_62], %140 {strides = array<i32>} : memref<8x256xf32, #tpu.memory_space<vmem>>, vector<8x256xf32>,
    } else {
    }
    %c1_i32 = arith.constant 1 : i32
    %14 = arith.cmpi eq, %arg1, %c1_i32 : i32
    %15 = arith.extui %14 : i1 to i32
    %c0_i32_8 = arith.constant 0 : i32
    %16 = arith.cmpi ne, %15, %c0_i32_8 : i32
    scf.if %16 {
      %c0_9 = arith.constant 0 : index
      %c0_10 = arith.constant 0 : index
      %17 = vector.load %arg10[%c0_9, %c0_10] : memref<8x256xf32, #tpu.memory_space<vmem>>, vector<8x256xf32>
      %cst_11 = arith.constant 3.906250e-03 : f32
      %18 = vector.broadcast %cst_11 : f32 to vector<8x256xf32>
      %19 = arith.mulf %17, %18 : vector<8x256xf32>
      %20 = math.log %19 : vector<8x256xf32>
      %cst_12 = arith.constant 1.000000e+00 : f32
      %21 = arith.divf %cst_12, %3 : f32
      %22 = vector.broadcast %21 : f32 to vector<8x256xf32>
      %23 = arith.mulf %20, %22 : vector<8x256xf32>
      %24 = math.exp %23 : vector<8x256xf32>
      %25 = arith.truncf %24 : vector<8x256xf32> to vector<8x256xbf16>
      %c0_13 = arith.constant 0 : index
      %c0_14 = arith.constant 0 : index
      %26 = vector.load %arg6[%c0_13, %c0_14] : memref<128x256xbf16, #tpu.memory_space<vmem>>, vector<128x256xbf16>
      %cst_15 = arith.constant dense<0.000000e+00> : vector<8x128xf32>
      %27 = tpu.matmul %25, %26, %cst_15 {dimension_numbers = #tpu.dot_dimension_numbers<[1], [1], [0], [0], [0, 0, 1, 0], [], []>} : vector<8x256xbf16>, vector<128x256xbf16>, vector<8x128xf32> -> vector<8x128xf32>
      %c0_16 = arith.constant 0 : index
      %c0_17 = arith.constant 0 : index
      %28 = vector.load %arg7[%c0_16, %c0_17] : memref<1x128xf32, #tpu.memory_space<vmem>>, vector<1x128xf32>
      %29 = vector.broadcast %28 : vector<1x128xf32> to vector<8x128xf32>
      %30 = arith.addf %27, %29 : vector<8x128xf32>
      %31 = arith.mulf %30, %30 : vector<8x128xf32>
      %cst_18 = arith.constant dense<0.000000e+00> : vector<8xf32>
      %32 = vector.multi_reduction <add>, %31, %cst_18 [1] : vector<8x128xf32> to vector<8xf32>
      %33 = vector.shape_cast %32 : vector<8xf32> to vector<8x1xf32>
      %34 = math.sqrt %33 : vector<8x1xf32>
      %cst_19 = arith.constant 9.99999996E-13 : f32
      %35 = vector.broadcast %cst_19 : f32 to vector<8x1xf32>
      %36 = arith.maximumf %34, %35 : vector<8x1xf32>
      %37 = vector.broadcast %36 : vector<8x1xf32> to vector<8x128xf32>
      %38 = arith.divf %30, %37 : vector<8x128xf32>
      %c0_20 = arith.constant 0 : index
      %c0_21 = arith.constant 0 : index
      %39 = vector.load %arg8[%c0_20, %c0_21] : memref<8x128xf32, #tpu.memory_space<vmem>>, vector<8x128xf32>
      tpu.vector_store %arg8[%c0_20, %c0_21], %30 {strides = array<i32>} : memref<8x128xf32, #tpu.memory_space<vmem>>, vector<8x128xf32>,
      %40 = arith.truncf %38 : vector<8x128xf32> to vector<8x128xbf16>
      %c0_22 = arith.constant 0 : index
      %c0_23 = arith.constant 0 : index
      %41 = vector.load %arg9[%c0_22, %c0_23] : memref<8x128xbf16, #tpu.memory_space<vmem>>, vector<8x128xbf16>
      tpu.vector_store %arg9[%c0_22, %c0_23], %40 {strides = array<i32>} : memref<8x128xbf16, #tpu.memory_space<vmem>>, vector<8x128xbf16>,
    } else {
    }
    return
  }
  func.func @transform_0(%arg0: i32, %arg1: i32) -> i32 {
    %c0_i32 = arith.constant 0 : i32
    %c0_i32_0 = arith.constant 0 : i32
    return %c0_i32 : i32
  }
  func.func @transform_1(%arg0: i32, %arg1: i32) -> (i32, i32, i32) {
    %c0_i32 = arith.constant 0 : i32
    %c0_i32_0 = arith.constant 0 : i32
    return %arg0, %c0_i32, %arg1 : i32, i32, i32
  }
  func.func @transform_2(%arg0: i32, %arg1: i32) -> (i32, i32) {
    %c0_i32 = arith.constant 0 : i32
    %c0_i32_0 = arith.constant 0 : i32
    %c0_i32_1 = arith.constant 0 : i32
    return %c0_i32, %c0_i32_0 : i32, i32
  }
  func.func @transform_3(%arg0: i32, %arg1: i32) -> (i32, i32) {
    %c0_i32 = arith.constant 0 : i32
    %c0_i32_0 = arith.constant 0 : i32
    %c0_i32_1 = arith.constant 0 : i32
    return %c0_i32, %c0_i32_0 : i32, i32
  }
  func.func @transform_4(%arg0: i32, %arg1: i32) -> (i32, i32) {
    %c0_i32 = arith.constant 0 : i32
    %c0_i32_0 = arith.constant 0 : i32
    %c0_i32_1 = arith.constant 0 : i32
    return %c0_i32, %c0_i32_0 : i32, i32
  }
  func.func @transform_5(%arg0: i32, %arg1: i32) -> (i32, i32) {
    %c0_i32 = arith.constant 0 : i32
    %c0_i32_0 = arith.constant 0 : i32
    %c0_i32_1 = arith.constant 0 : i32
    return %c0_i32, %c0_i32_0 : i32, i32
  }
  func.func @transform_6(%arg0: i32, %arg1: i32) -> (i32, i32) {
    %c0_i32 = arith.constant 0 : i32
    %c0_i32_0 = arith.constant 0 : i32
    return %arg0, %c0_i32 : i32, i32
  }
  func.func @transform_7(%arg0: i32, %arg1: i32) -> (i32, i32) {
    %c0_i32 = arith.constant 0 : i32
    %c0_i32_0 = arith.constant 0 : i32
    return %arg0, %c0_i32 : i32, i32
  }
}

</mosaic_0001>

<bundles_post_ra>
// kernel: tpu_custom_call.1
= control target key start
LH: loop header
LB: loop body
LE: loop exit
PB: predicated region body
PF: predicated region fallthrough
CT: control target
= control target key end

     0   :  { %s15879_s0 = inlined_call_operand.<no memory space> [shape: f32[1], index: 0, kind: input, shape index: {}]   ;;  %s15880_s1 = inlined_call_operand.vmem [shape: f32[8,4,256], index: 1, kind: input, shape index: {}]   ;;  %s15881_s2 = inlined_call_operand.vmem [shape: bf16[256,4], index: 2, kind: input, shape index: {}]   ;;  %s15882_s3 = inlined_call_operand.vmem [shape: f32[256,1], index: 3, kind: input, shape index: {}]   ;;  %s15883_s4 = inlined_call_operand.vmem [shape: bf16[128,256], index: 4, kind: input, shape index: {}]   ;;  %s15884_s5 = inlined_call_operand.vmem [shape: f32[1,128], index: 5, kind: input, shape index: {}]   ;;  %s15885_s6 = inlined_call_operand.hbm [shape: f32[8,128], index: 6, kind: output, shape index: {0}]   ;;  %s15886_s7 = inlined_call_operand.hbm [shape: bf16[8,128], index: 7, kind: output, shape index: {1}]  }
   0x1   :  { %13 = sst [smem:[#allocation3]] %s15879_s0 }
   0x2   :  { %14 = vsyncpa [#allocation6], 0 }
   0x3   :  { %15 = vsyncpa [#allocation8], 0  ;;  %s11558_s26 = smov 0   ;;  %s11560_s27 = smov 0  }
   0x4   :  { %s11562_s28 = smov 0   ;;  %s11564_s29 = smov 0  }
   0x5   :  { %s11566_s30 = smov 0  }
   0x6 LB: > { %s8058_s0 = sadd.s32 4294967295, %s11506_s30   ;;  %s30_s8 = sadd.s32 1, %s11502_s29  ;;  %s11506_s30 = sphi %s11566_s30, %s21_s30   ;;  %s11502_s29 = sphi %s11564_s29, %s16877_s29   ;;  %s11498_s28 = sphi %s11562_s28, %s16876_s28   ;;  %s11494_s27 = sphi %s11560_s27, %s16875_s27   ;;  %s11490_s26 = sphi %s11558_s26, %s16874_s26  }
   0x7   : > { %p31_p0 = scmp.ge.s32.totalorder %s30_s8, 2  ;;  %p70_p1 = scmp.ne.s32.totalorder %s11494_s27, %s11490_s26 }
   0x8   : > { %p71_p2 = scmp.eq.s32.totalorder %s11506_s30, 0  ;;  %s63_s10 = sadd.s32 1, %s11494_s27 }
   0x9   : > { %s16879_s8 = smov (%p31_p0, %s30_s8), 0  ;;  %p8060_p5 = scmp.ge.s32.totalorder %s11506_s30, 2 }
   0xa   : > { %p72_p3 = por %p71_p2, %p70_p1  ;;  %s59_s9 = ssub.s32 %s11502_s29, %s16879_s8 }
   0xb   : > { %p61_p4 = scmp.eq.s32.totalorder %s59_s9, 0  ;;  %247 = sbr.rel (%p8060_p5) target bundleno = 27 (0x1b), region = 36 }
   0xd   : > { %s11594_s11 = scalar_select %p61_p4, %s11494_s27, %s63_s10  }
  0x12   : > { %250 = sbr.rel (!%p72_p3) target bundleno = 27 (0x1b), region = 40  ;;  %s252_s12 = sand.u32 (%p72_p3), 1, %s11494_s27  }
  0x13   : > { %s8062_s13 = sshll.u32 (%p72_p3), %s11502_s29, 2  ;;  %s8061_s14 = sshll.u32 (%p72_p3), %s252_s12, 5 }
  0x14   : > { %s259_s17 = scalar_lea.vmem (%p72_p3), %s15880_s1, %s8062_s13  ;;  %s254_s18 = scalar_lea.vmem (%p72_p3), [#allocation4], %s8061_s14 }
  0x15   : > { %v275_v0 = vld [vmem:[%s259_s17] sm:$0xf] (%p72_p3)  ;;  %v277_v1 = vld [vmem:[%s259_s17 + $0x8] sm:$0xf] (%p72_p3)  ;;  %v279_v2 = vld [vmem:[%s259_s17 + $0x10] sm:$0xf] (%p72_p3) }
  0x16   : > { %276 = vst [vmem:[%s254_s18] sm:$0xf] (%p72_p3), %v275_v0  ;;  %278 = vst [vmem:[%s254_s18 + $0x4] sm:$0xf] (%p72_p3), %v277_v1  ;;  %v281_v3 = vld [vmem:[%s259_s17 + $0x18] sm:$0xf] (%p72_p3) }
  0x17   : > { %v283_v4 = vld [vmem:[%s259_s17 + $0x20] sm:$0xf] (%p72_p3)  ;;  %280 = vst [vmem:[%s254_s18 + $0x8] sm:$0xf] (%p72_p3), %v279_v2  ;;  %282 = vst [vmem:[%s254_s18 + $0xc] sm:$0xf] (%p72_p3), %v281_v3 }
  0x18   : > { %284 = vst [vmem:[%s254_s18 + $0x10] sm:$0xf] (%p72_p3), %v283_v4  ;;  %v285_v5 = vld [vmem:[%s259_s17 + $0x28] sm:$0xf] (%p72_p3)  ;;  %v287_v6 = vld [vmem:[%s259_s17 + $0x30] sm:$0xf] (%p72_p3) }
  0x19   : > { %v289_v7 = vld [vmem:[%s259_s17 + $0x38] sm:$0xf]  ;;  %286 = vst [vmem:[%s254_s18 + $0x14] sm:$0xf] %v285_v5  ;;  %288 = vst [vmem:[%s254_s18 + $0x18] sm:$0xf] %v287_v6 }
  0x1a   : > { %290 = vst [vmem:[%s254_s18 + $0x1c] sm:$0xf] %v289_v7 }
  0x1b PF: > { %p8063_p6 = scmp.ge.s32.totalorder %s11506_s30, 1  ;;  %p328_p7 = scmp.lt.s32.totalorder %s11506_s30, 3 }
  0x1d   : > { %p329_p8 = pnand %p8063_p6, %p328_p7 }
  0x1f   : > { %332 = sbr.rel (%p329_p8) target bundleno = 2670 (0xa6e), region = 81 }
  0x26   : > { %s335_s19 = sand.u32 1, %s11490_s26   ;;  %p8065_p9 = scmp.ne.s32.totalorder %s11498_s28, 0 }
  0x27   : > { %s8064_s20 = sshll.u32 %s335_s19, 5  ;;  %v11508_v8 = vmov (!%p8065_p9), 0.0  }
  0x28   : > { %s11605_s21 = scalar_lea.vmem [#allocation4], %s8064_s20  ;;  %366 = sbr.rel (%p8065_p9) target bundleno = 47 (0x2f), region = 89  ;;  %367 = vst [vmem:[#allocation2] sm:$0xff] (!%p8065_p9), %v11508_v8  ;;  %368 = vst [vmem:[#allocation2 + $0x8] sm:$0xff] (!%p8065_p9), %v11508_v8 }
  0x2f PF: > { %s11608_s22 = sld [smem:[#allocation3]]  ;;  %v11613_v9 = vld [vmem:[%s15881_s2] sm:$0xf]  ;;  %v11618_v10 = vld [vmem:[%s15881_s2 + $0x4] sm:$0xf]  ;;  %v11782_v42 = vld [vmem:[%s15882_s3 + $0x8] sm:$0xff] }
  0x30   : > { %16151 = vst [vmem:[#allocation11_spill] sm:$0xff] %v11613_v9  ;;  %16152 = vst [vmem:[#allocation12_spill] sm:$0xff] %v11618_v10  ;;  %v11623_v11 = vld [vmem:[%s15881_s2 + $0x8] sm:$0xf]  ;;  %v11628_v12 = vld [vmem:[%s15881_s2 + $0xc] sm:$0xf] }
  0x31   : > { %16153 = vst [vmem:[#allocation13_spill] sm:$0xff] %v11623_v11  ;;  %16154 = vst [vmem:[#allocation14_spill] sm:$0xff] %v11628_v12  ;;  %v11633_v13 = vld [vmem:[%s15881_s2 + $0x10] sm:$0xf]  ;;  %v11638_v14 = vld [vmem:[%s15881_s2 + $0x14] sm:$0xf] }
  0x32   : > { %16155 = vst [vmem:[#allocation15_spill] sm:$0xff] %v11633_v13  ;;  %16156 = vst [vmem:[#allocation16_spill] sm:$0xff] %v11638_v14  ;;  %v11643_v15 = vld [vmem:[%s15881_s2 + $0x18] sm:$0xf]  ;;  %v11648_v16 = vld [vmem:[%s15881_s2 + $0x1c] sm:$0xf] }
  0x33   : > { %16157 = vst [vmem:[#allocation17_spill] sm:$0xff] %v11643_v15  ;;  %16158 = vst [vmem:[#allocation18_spill] sm:$0xff] %v11648_v16  ;;  %v11653_v17 = vld [vmem:[%s15881_s2 + $0x20] sm:$0xf]  ;;  %v11658_v18 = vld [vmem:[%s15881_s2 + $0x24] sm:$0xf] }
  0x34   : > { %16159 = vst [vmem:[#allocation19_spill] sm:$0xff] %v11653_v17  ;;  %16160 = vst [vmem:[#allocation20_spill] sm:$0xff] %v11658_v18  ;;  %v11663_v19 = vld [vmem:[%s15881_s2 + $0x28] sm:$0xf]  ;;  %v11668_v20 = vld [vmem:[%s15881_s2 + $0x2c] sm:$0xf] }
  0x35   : > { %16161 = vst [vmem:[#allocation21_spill] sm:$0xff] %v11663_v19  ;;  %16162 = vst [vmem:[#allocation22_spill] sm:$0xff] %v11668_v20  ;;  %v11673_v21 = vld [vmem:[%s15881_s2 + $0x30] sm:$0xf]  ;;  %v11678_v22 = vld [vmem:[%s15881_s2 + $0x34] sm:$0xf] }
  0x36   : > { %16163 = vst [vmem:[#allocation23_spill] sm:$0xff] %v11673_v21  ;;  %16164 = vst [vmem:[#allocation24_spill] sm:$0xff] %v11678_v22  ;;  %v11683_v23 = vld [vmem:[%s15881_s2 + $0x38] sm:$0xf]  ;;  %v11688_v24 = vld [vmem:[%s15881_s2 + $0x3c] sm:$0xf] }
  0x37   : > { %16165 = vst [vmem:[#allocation25_spill] sm:$0xff] %v11683_v23  ;;  %16166 = vst [vmem:[#allocation26_spill] sm:$0xff] %v11688_v24  ;;  %v11693_v25 = vld [vmem:[%s15881_s2 + $0x40] sm:$0xf]  ;;  %s8066_s26 = sadd.f32 -3.0, %s11608_s22  ;;  %v11787_v43 = vld [vmem:[%s15882_s3 + $0x10] sm:$0xff] }
  0x38   : > { %16167 = vst [vmem:[#allocation27_spill] sm:$0xff] %v11693_v25  ;;  %v11699_v26 = vld [vmem:[%s15881_s2 + $0x44] sm:$0xf]  ;;  %v11704_v27 = vld [vmem:[%s15881_s2 + $0x48] sm:$0xf]  ;;  %16184 = vst [vmem:[#allocation44_spill] sm:$0xff] %v11782_v42 }
  0x39   : > { %16168 = vst [vmem:[#allocation28_spill] sm:$0xff] %v11699_v26  ;;  %16169 = vst [vmem:[#allocation29_spill] sm:$0xff] %v11704_v27  ;;  %v11709_v28 = vld [vmem:[%s15882_s3] sm:$0xff]  ;;  %v11714_v29 = vld [vmem:[%s15881_s2 + $0x4c] sm:$0xf] }
  0x3a   : > { %16170 = vst [vmem:[#allocation30_spill] sm:$0xff] %v11709_v28  ;;  %16171 = vst [vmem:[#allocation31_spill] sm:$0xff] %v11714_v29  ;;  %v11719_v30 = vld [vmem:[%s15881_s2 + $0x50] sm:$0xf]  ;;  %v11724_v31 = vld [vmem:[%s15881_s2 + $0x54] sm:$0xf] }
  0x3b   : > { %16172 = vst [vmem:[#allocation32_spill] sm:$0xff] %v11719_v30  ;;  %16173 = vst [vmem:[#allocation33_spill] sm:$0xff] %v11724_v31  ;;  %s11726_s25 = sand.u32 2147483647, %s8066_s26  ;;  %v11731_v32 = vld [vmem:[%s15881_s2 + $0x58] sm:$0xf] }
  0x3c   : > { %16174 = vst [vmem:[#allocation34_spill] sm:$0xff] %v11731_v32  ;;  %v11736_v33 = vld [vmem:[%s15881_s2 + $0x5c] sm:$0xf]  ;;  %p372_p10 = scmp.lt.f32.partialorder %s11726_s25, 1e-06  ;;  %16185 = vst [vmem:[#allocation45_spill] sm:$0xff] %v11787_v43 }
  0x3d   : > { %16175 = vst [vmem:[#allocation35_spill] sm:$0xff] %v11736_v33  ;;  %v11742_v34 = vld [vmem:[%s15881_s2 + $0x60] sm:$0xf]  ;;  %v11747_v35 = vld [vmem:[%s15881_s2 + $0x64] sm:$0xf]  ;;  %v11792_v44 = vld [vmem:[%s15882_s3 + $0x18] sm:$0xff] }
  0x3e   : > { %16176 = vst [vmem:[#allocation36_spill] sm:$0xff] %v11742_v34  ;;  %16177 = vst [vmem:[#allocation37_spill] sm:$0xff] %v11747_v35  ;;  %v11752_v36 = vld [vmem:[%s15881_s2 + $0x68] sm:$0xf]  ;;  %v11757_v37 = vld [vmem:[%s15881_s2 + $0x6c] sm:$0xf] }
  0x3f   : > { %16178 = vst [vmem:[#allocation38_spill] sm:$0xff] %v11752_v36  ;;  %16179 = vst [vmem:[#allocation39_spill] sm:$0xff] %v11757_v37  ;;  %v11762_v38 = vld [vmem:[%s15881_s2 + $0x70] sm:$0xf]  ;;  %v11767_v39 = vld [vmem:[%s15881_s2 + $0x74] sm:$0xf] }
  0x40   : > { %16180 = vst [vmem:[#allocation40_spill] sm:$0xff] %v11762_v38  ;;  %16181 = vst [vmem:[#allocation41_spill] sm:$0xff] %v11767_v39  ;;  %v11772_v40 = vld [vmem:[%s15881_s2 + $0x78] sm:$0xf]  ;;  %v11777_v41 = vld [vmem:[%s15881_s2 + $0x7c] sm:$0xf] }
  0x41   : > { %16182 = vst [vmem:[#allocation42_spill] sm:$0xff] %v11772_v40  ;;  %16183 = vst [vmem:[#allocation43_spill] sm:$0xff] %v11777_v41  ;;  %v11797_v45 = vld [vmem:[%s15882_s3 + $0x20] sm:$0xff]  ;;  %v11802_v46 = vld [vmem:[%s15882_s3 + $0x28] sm:$0xff] }
  0x42   : > { %16186 = vst [vmem:[#allocation46_spill] sm:$0xff] %v11792_v44  ;;  %16187 = vst [vmem:[#allocation47_spill] sm:$0xff] %v11797_v45  ;;  %v11807_v47 = vld [vmem:[%s15882_s3 + $0x30] sm:$0xff]  ;;  %v11812_v48 = vld [vmem:[%s15882_s3 + $0x38] sm:$0xff] }
  0x43   : > { %16188 = vst [vmem:[#allocation48_spill] sm:$0xff] %v11802_v46  ;;  %16189 = vst [vmem:[#allocation49_spill] sm:$0xff] %v11807_v47  ;;  %v11817_v49 = vld [vmem:[%s15882_s3 + $0x40] sm:$0xff]  ;;  %v11822_v50 = vld [vmem:[%s15882_s3 + $0x48] sm:$0xff] }
  0x44   : > { %16190 = vst [vmem:[#allocation50_spill] sm:$0xff] %v11812_v48  ;;  %16191 = vst [vmem:[#allocation51_spill] sm:$0xff] %v11817_v49  ;;  %v11827_v51 = vld [vmem:[%s15882_s3 + $0x50] sm:$0xff]  ;;  %v11832_v52 = vld [vmem:[%s15882_s3 + $0x58] sm:$0xff] }
  0x45   : > { %16192 = vst [vmem:[#allocation52_spill] sm:$0xff] %v11822_v50  ;;  %16193 = vst [vmem:[#allocation53_spill] sm:$0xff] %v11827_v51  ;;  %v11837_v53 = vld [vmem:[%s15882_s3 + $0x60] sm:$0xff]  ;;  %v11842_v54 = vld [vmem:[%s15882_s3 + $0x68] sm:$0xff] }
  0x46   : > { %16194 = vst [vmem:[#allocation54_spill] sm:$0xff] %v11832_v52  ;;  %16195 = vst [vmem:[#allocation55_spill] sm:$0xff] %v11837_v53  ;;  %v11847_v55 = vld [vmem:[%s15882_s3 + $0x70] sm:$0xff]  ;;  %v11852_v56 = vld [vmem:[%s15882_s3 + $0x78] sm:$0xff] }
  0x47   : > { %16196 = vst [vmem:[#allocation56_spill] sm:$0xff] %v11842_v54  ;;  %16197 = vst [vmem:[#allocation57_spill] sm:$0xff] %v11847_v55  ;;  %v11857_v57 = vld [vmem:[%s15882_s3 + $0x80] sm:$0xff]  ;;  %v11862_v58 = vld [vmem:[%s15882_s3 + $0x88] sm:$0xff] }
  0x48   : > { %16198 = vst [vmem:[#allocation58_spill] sm:$0xff] %v11852_v56  ;;  %16199 = vst [vmem:[#allocation59_spill] sm:$0xff] %v11857_v57  ;;  %v11867_v59 = vld [vmem:[%s15882_s3 + $0x90] sm:$0xff]  ;;  %v11872_v60 = vld [vmem:[%s15882_s3 + $0x98] sm:$0xff] }
  0x49   : > { %16200 = vst [vmem:[#allocation60_spill] sm:$0xff] %v11862_v58  ;;  %16201 = vst [vmem:[#allocation61_spill] sm:$0xff] %v11867_v59  ;;  %v11877_v61 = vld [vmem:[%s15882_s3 + $0xa0] sm:$0xff]  ;;  %v11882_v62 = vld [vmem:[%s15882_s3 + $0xa8] sm:$0xff] }
  0x4a   : > { %16202 = vst [vmem:[#allocation62_spill] sm:$0xff] %v11872_v60  ;;  %16203 = vst [vmem:[#allocation63_spill] sm:$0xff] %v11877_v61  ;;  %v11887_v63 = vld [vmem:[%s15882_s3 + $0xb0] sm:$0xff]  ;;  %v11892_v0 = vld [vmem:[%s15882_s3 + $0xb8] sm:$0xff]  ;;  %439 = sbr.rel (!%p372_p10) target bundleno = 1078 (0x436), region = 93 }
  0x4b   : > { %16204 = vst [vmem:[#allocation64_spill] sm:$0xff] %v11882_v62  ;;  %16205 = vst [vmem:[#allocation65_spill] sm:$0xff] %v11887_v63  ;;  %v11897_v1 = vld [vmem:[%s15882_s3 + $0xc0] sm:$0xff]  ;;  %v11902_v2 = vld [vmem:[%s15882_s3 + $0xc8] sm:$0xff] }
  0x4c   : > { %16206 = vst [vmem:[#allocation66_spill] sm:$0xff] %v11892_v0  ;;  %16207 = vst [vmem:[#allocation67_spill] sm:$0xff] %v11897_v1  ;;  %v11907_v3 = vld [vmem:[%s15882_s3 + $0xd0] sm:$0xff]  ;;  %v11912_v4 = vld [vmem:[%s15882_s3 + $0xd8] sm:$0xff] }
  0x4d   : > { %16208 = vst [vmem:[#allocation68_spill] sm:$0xff] %v11902_v2  ;;  %16209 = vst [vmem:[#allocation69_spill] sm:$0xff] %v11907_v3  ;;  %v11917_v5 = vld [vmem:[%s15882_s3 + $0xe0] sm:$0xff]  ;;  %v11922_v6 = vld [vmem:[%s15882_s3 + $0xe8] sm:$0xff] }
  0x4e   : > { %16210 = vst [vmem:[#allocation70_spill] sm:$0xff] %v11912_v4  ;;  %16211 = vst [vmem:[#allocation71_spill] sm:$0xff] %v11917_v5  ;;  %v11927_v7 = vld [vmem:[%s15882_s3 + $0xf0] sm:$0xff]  ;;  %v11932_v8 = vld [vmem:[%s15882_s3 + $0xf8] sm:$0xff] }
  0x4f   : > { %16212 = vst [vmem:[#allocation72_spill] sm:$0xff] %v11922_v6  ;;  %16213 = vst [vmem:[#allocation73_spill] sm:$0xff] %v11927_v7 }
  0x50   : > { %16214 = vst [vmem:[#allocation74_spill] sm:$0xff] %v11932_v8 }
  0x51   : > { %v440_v56 = vld [vmem:[%s11605_s21] sm:$0xf]  ;;  %vm731_vm0 = vcmask 1041408   ;;  %v11939_v55 = vcombine.low %v11613_v9, %v11618_v10  ;;  %vm682_vm1 = vcmask 31744   ;;  %v8099_v54 = vld [vmem:[%s11605_s21 + $0x4] sm:$0xf]  ;;  %v11948_v41 = vcombine.low %v11623_v11, %v11628_v12 }
  0x52   : > { %v441_v7 = vpack.c.bf16 %v440_v56, %v440_v56  ;;  %v1097_v40 = vpack.c.bf16 %v8099_v54, %v8099_v54  ;;  %v8116_v53 = vld [vmem:[%s11605_s21 + $0x8] sm:$0xf]  ;;  %v11953_v9 = vcombine.low %v11633_v13, %v11638_v14  ;;  %v11509_v56 = vmov 0  }
  0x53   : > { %16215 = vst [vmem:[#allocation75_spill] sm:$0xff] %v11939_v55  ;;  %9211 = vmatprep.mubr.msk.bf16.mxu0 %vm682_vm1, %v11939_v55  ;;  %10342 = vset.pattern.permute.xlu0 %v11509_v56  ;;  %vm3701_vm2 = vcmask 1040384   ;;  %vm3706_vm3 = vcmask 1042432   ;;  %vm3709_vm4 = vcmask 1043456   ;;  %vm3712_vm5 = vcmask 1044480  }
  0x54   : > { %10265 = vmatprep.subr.msk.bf16.mxu0 %vm731_vm0, %v441_v7  ;;  %v733_v8 = vsel %vm731_vm0, %v441_v7, 0  ;;  %v1099_v54 = vsel %vm731_vm0, %v1097_v40, 0  ;;  %524 = vperm.xlu0 %10342, %v11857_v57   ;;  %v11958_v7 = vpack.c.bf16 %v8116_v53, %v8116_v53  ;;  %v11975_v53 = vcombine.low %v11653_v17, %v11658_v18 }
  0x55   : > { %9210 = vmatpush3.bf16.msra.mxu0 %v733_v8  ;;  %10343 = vset.pattern.permute.xlu1 %v11509_v56  ;;  %v11986_v8 = vcombine.low %v11663_v19, %v11668_v20  ;;  %v12002_v56 = vcombine.low %v11683_v23, %v11688_v24  ;;  %v12018_v23 = vcombine.low %v11704_v27, %v11714_v29  ;;  %vm3715_vm6 = vcmask 1045504  }
  0x56   : > { %10266 = vmatprep.subr.msk.bf16.mxu0 %vm731_vm0, %v1097_v40  ;;  %444 = vperm.xlu1 %10343, %v11709_v28   ;;  %v11970_v40 = vcombine.low %v11643_v15, %v11648_v16  ;;  %v12034_v27 = vcombine.low %v11731_v32, %v11736_v33  ;;  %vm3718_vm7 = vcmask 1046528  }
  0x57   : > { %16216 = vst [vmem:[#allocation76_spill] sm:$0xff] %v12002_v56  ;;  %16218 = vst [vmem:[#allocation78_spill] sm:$0xff] %v12018_v23 }
  0x58   : > { %9212 = vmatmul.mubr.msk.bf16.vlgmr.msra.gmra.mrb[0].mxu0 %vm682_vm1, %v11948_v41  ;;  %529 = vperm.xlu0 %10342, %v11862_v58   ;;  %16220 = vst [vmem:[#allocation80_spill] sm:$0xff] %v12034_v27 }
  0x59   : > { %9244 = vmatpush3.bf16.msra.mxu0 %v1099_v54  ;;  %9215 = vmatprep.mubr.msk.bf16.mxu0 %vm682_vm1, %v11953_v9  ;;  %v11991_v54 = vcombine.low %v11673_v21, %v11678_v22  ;;  %v12007_v21 = vcombine.low %v11693_v25, %v11699_v26  ;;  %v12023_v25 = vcombine.low %v11719_v30, %v11724_v31  ;;  %v15919_v26 = vmov 1.0  }
  0x5a   : > { %10267 = vmatprep.subr.msk.bf16.mxu0 %vm731_vm0, %v11958_v7  ;;  %449 = vperm.xlu1 %10343, %v11782_v42   ;;  %v12039_v30 = vcombine.low %v11742_v34, %v11747_v35 }
  0x5b   : > { %16217 = vst [vmem:[#allocation77_spill] sm:$0xff] %v12007_v21  ;;  %16219 = vst [vmem:[#allocation79_spill] sm:$0xff] %v12023_v25  ;;  %8442 = vmatprep.mubr.f32.mxu1 %v15919_v26 }
  0x5c   : > { %534 = vperm.xlu0 %10342, %v11867_v59   ;;  %16221 = vst [vmem:[#allocation81_spill] sm:$0xff] %v12039_v30 }
  0x5e   : > { %539 = vperm.xlu1 %10343, %v11872_v60  }
  0x60   : > { %9216 = vmatmul.mubr.msk.bf16.gmra.mrb[4].mxu0 %vm682_vm1, %v11970_v40  ;;  %454 = vperm.xlu0 %10342, %v11787_v43  }
  0x61   : > { %9219 = vmatprep.mubr.msk.bf16.mxu0 %vm682_vm1, %v11975_v53 }
  0x62   : > { %459 = vperm.xlu1 %10343, %v11792_v44  }
  0x64   : > { %544 = vperm.xlu0 %10342, %v11877_v61  }
  0x66   : > { %549 = vperm.xlu1 %10343, %v11882_v62  }
  0x68   : > { %9220 = vmatmul.mubr.msk.bf16.gmra.mrb[8].mxu0 %vm682_vm1, %v11986_v8  ;;  %464 = vperm.xlu0 %10342, %v11797_v45  }
  0x69   : > { %9223 = vmatprep.mubr.msk.bf16.mxu0 %vm682_vm1, %v11991_v54 }
  0x6a   : > { %469 = vperm.xlu1 %10343, %v11802_v46  }
  0x6c   : > { %554 = vperm.xlu0 %10342, %v11887_v63  }
  0x6e   : > { %559 = vperm.xlu1 %10343, %v11892_v0  }
  0x70   : > { %9224 = vmatmul.mubr.msk.bf16.gmra.mrb[12].mxu0 %vm682_vm1, %v12002_v56  ;;  %474 = vperm.xlu0 %10342, %v11807_v47  }
  0x71   : > { %9227 = vmatprep.mubr.msk.bf16.mxu0 %vm682_vm1, %v12007_v21 }
  0x72   : > { %479 = vperm.xlu1 %10343, %v11812_v48   ;;  %v8167_v48 = vld [vmem:[%s11605_s21 + $0x14] sm:$0xf] }
  0x73   : > { %v12182_v47 = vpack.c.bf16 %v8167_v48, %v8167_v48 }
  0x74   : > { %564 = vperm.xlu0 %10342, %v11897_v1  }
  0x76   : > { %569 = vperm.xlu1 %10343, %v11902_v2  }
  0x78   : > { %9228 = vmatmul.mubr.msk.bf16.gmra.mrb[16].mxu0 %vm682_vm1, %v12018_v23  ;;  %484 = vperm.xlu0 %10342, %v11817_v49  }
  0x79   : > { %9231 = vmatprep.mubr.msk.bf16.mxu0 %vm682_vm1, %v12023_v25 }
  0x7a   : > { %489 = vperm.xlu1 %10343, %v11822_v50   ;;  %v12050_v50 = vcombine.low %v11752_v36, %v11757_v37  ;;  %v16225_v36 = vld [vmem:[#allocation43_spill] sm:$0xff]  ;;  %v16226_v37 = vld [vmem:[#allocation42_spill] sm:$0xff] }
  0x7c   : > { %574 = vperm.xlu0 %10342, %v11907_v3   ;;  %16222 = vst [vmem:[#allocation82_spill] sm:$0xff] %v12050_v50  ;;  %v12055_v3 = vcombine.low %v11762_v38, %v11767_v39  ;;  %v16229_v38 = vld [vmem:[#allocation73_spill] sm:$0xff]  ;;  %v8133_v39 = vld [vmem:[%s11605_s21 + $0xc] sm:$0xf] }
  0x7e   : > { %579 = vperm.xlu1 %10343, %v11912_v4   ;;  %16223 = vst [vmem:[#allocation83_spill] sm:$0xff] %v12055_v3  ;;  %v12066_v4 = vcombine.low %v16226_v37, %v16225_v36  ;;  %v1465_v36 = vsel %vm731_vm0, %v11958_v7, 0  ;;  %v1829_v37 = vpack.c.bf16 %v8133_v39, %v8133_v39 }
  0x80   : > { %9232 = vmatmul.mubr.msk.bf16.gmra.mrb[20].mxu0 %vm682_vm1, %v12034_v27  ;;  %494 = vperm.xlu0 %10342, %v11827_v51   ;;  %v16224_v51 = vld [vmem:[#allocation55_spill] sm:$0xff]  ;;  %16227 = vst [vmem:[#allocation84_spill] sm:$0xff] %v12066_v4  ;;  %v1831_v39 = vsel %vm731_vm0, %v1829_v37, 0 }
  0x81   : > { %9235 = vmatprep.mubr.msk.bf16.mxu0 %vm682_vm1, %v12039_v30 }
  0x82   : > { %499 = vperm.xlu1 %10343, %v11832_v52   ;;  %v16228_v52 = vld [vmem:[#allocation56_spill] sm:$0xff] }
  0x84   : > { %584 = vperm.xlu0 %10342, %v11917_v5   ;;  %v16230_v5 = vld [vmem:[#allocation74_spill] sm:$0xff] }
  0x86   : > { %589 = vperm.xlu1 %10343, %v11922_v6   ;;  %v16231_v6 = vld [vmem:[#allocation57_spill] sm:$0xff] }
  0x88   : > { %9236 = vmatmul.mubr.msk.bf16.gmra.mrb[24].mxu0 %vm682_vm1, %v12050_v50  ;;  %504 = vperm.xlu0 %10342, %v16224_v51   ;;  %v16232_v51 = vld [vmem:[#allocation58_spill] sm:$0xff] }
  0x89   : > { %9239 = vmatprep.mubr.msk.bf16.mxu0 %vm682_vm1, %v12055_v3 }
  0x8a   : > { %509 = vperm.xlu1 %10343, %v16228_v52  }
  0x8c   : > { %594 = vperm.xlu0 %10342, %v16229_v38   ;;  %v8150_v38 = vld [vmem:[%s11605_s21 + $0x10] sm:$0xf] }
  0x8d   : > { %v2195_v52 = vpack.c.bf16 %v8150_v38, %v8150_v38 }
  0x8e   : > { %599 = vperm.xlu1 %10343, %v16230_v5  }
  0x8f   : > { %v2197_v29 = vsel %vm731_vm0, %v2195_v52, 0 }
  0x90   : > { %9240 = vmatmul.mubr.msk.bf16.gmra.mrb[28].mxu0 %vm682_vm1, %v12066_v4  ;;  %514 = vperm.xlu0 %10342, %v16231_v6  }
  0x91   : > { %9245 = vmatprep.mubr.msk.bf16.mxu0 %vm682_vm1, %v11939_v55 }
  0x92   : > { %519 = vperm.xlu1 %10343, %v16232_v51  }
  0x98   : > { %9246 = vmatmul.mubr.msk.bf16.vlgmr.msra.gmra.mrb[32].mxu0 %vm682_vm1, %v11948_v41 }
  0x99   : > { %9278 = vmatpush3.bf16.msra.mxu0 %v1465_v36  ;;  %9249 = vmatprep.mubr.msk.bf16.mxu0 %vm682_vm1, %v11953_v9 }
  0x9a   : > { %10268 = vmatprep.subr.msk.bf16.mxu0 %vm731_vm0, %v1829_v37 }
  0xa0   : > { %9250 = vmatmul.mubr.msk.bf16.gmra.mrb[36].mxu0 %vm682_vm1, %v11970_v40 }
  0xa1   : > { %9253 = vmatprep.mubr.msk.bf16.mxu0 %vm682_vm1, %v11975_v53 }
  0xa8   : > { %9254 = vmatmul.mubr.msk.bf16.gmra.mrb[40].mxu0 %vm682_vm1, %v11986_v8 }
  0xa9   : > { %9257 = vmatprep.mubr.msk.bf16.mxu0 %vm682_vm1, %v11991_v54 }
  0xb0   : > { %9258 = vmatmul.mubr.msk.bf16.gmra.mrb[44].mxu0 %vm682_vm1, %v12002_v56 }
  0xb1   : > { %9261 = vmatprep.mubr.msk.bf16.mxu0 %vm682_vm1, %v12007_v21 }
  0xb8   : > { %9262 = vmatmul.mubr.msk.bf16.gmra.mrb[48].mxu0 %vm682_vm1, %v12018_v23 }
  0xb9   : > { %9265 = vmatprep.mubr.msk.bf16.mxu0 %vm682_vm1, %v12023_v25 }
  0xc0   : > { %9266 = vmatmul.mubr.msk.bf16.gmra.mrb[52].mxu0 %vm682_vm1, %v12034_v27 }
  0xc1   : > { %9269 = vmatprep.mubr.msk.bf16.mxu0 %vm682_vm1, %v12039_v30 }
  0xc8   : > { %9270 = vmatmul.mubr.msk.bf16.gmra.mrb[56].mxu0 %vm682_vm1, %v12050_v50 }
  0xc9   : > { %9273 = vmatprep.mubr.msk.bf16.mxu0 %vm682_vm1, %v12055_v3 }
  0xd0   : > { %9274 = vmatmul.mubr.msk.bf16.gmra.mrb[60].mxu0 %vm682_vm1, %v12066_v4 }
  0xd1   : > { %9279 = vmatprep.mubr.msk.bf16.mxu0 %vm682_vm1, %v11939_v55 }
  0xd3   : > { %v12124_v5 = vpop.permute.xlu0 %524 }
  0xd4   : > { %16233 = vst [vmem:[#allocation85_spill] sm:$0xff] %v12124_v5 }
  0xd5   : > { %v12130_v6 = vpop.permute.xlu1 %444 }
  0xd7   : > { %v12132_v7 = vpop.permute.xlu0 %529 }
  0xd8   : > { %9280 = vmatmul.mubr.msk.bf16.vlgmr.msra.gmra.mrb[64].mxu0 %vm682_vm1, %v11948_v41  ;;  %16234 = vst [vmem:[#allocation86_spill] sm:$0xff] %v12132_v7 }
  0xd9   : > { %9312 = vmatpush3.bf16.msra.mxu0 %v1831_v39  ;;  %9283 = vmatprep.mubr.msk.bf16.mxu0 %vm682_vm1, %v11953_v9  ;;  %v12134_v51 = vpop.permute.xlu1 %449 }
  0xda   : > { %10269 = vmatprep.subr.msk.bf16.mxu0 %vm731_vm0, %v2195_v52 }
  0xdb   : > { %v12140_v36 = vpop.permute.xlu0 %534 }
  0xdc   : > { %16235 = vst [vmem:[#allocation87_spill] sm:$0xff] %v12140_v36 }
  0xdd   : > { %v12142_v37 = vpop.permute.xlu1 %539 }
  0xde   : > { %16236 = vst [vmem:[#allocation88_spill] sm:$0xff] %v12142_v37 }
  0xdf   : > { %v12148_v38 = vpop.permute.xlu0 %454 }
  0xe0   : > { %9284 = vmatmul.mubr.msk.bf16.gmra.mrb[68].mxu0 %vm682_vm1, %v11970_v40 }
  0xe1   : > { %9287 = vmatprep.mubr.msk.bf16.mxu0 %vm682_vm1, %v11975_v53  ;;  %v12150_v39 = vpop.permute.xlu1 %459 }
  0xe3   : > { %v12152_v34 = vpop.permute.xlu0 %544 }
  0xe4   : > { %16237 = vst [vmem:[#allocation89_spill] sm:$0xff] %v12152_v34 }
  0xe5   : > { %v12158_v35 = vpop.permute.xlu1 %549 }
  0xe7   : > { %v12160_v32 = vpop.permute.xlu0 %464 }
  0xe8   : > { %9288 = vmatmul.mubr.msk.bf16.gmra.mrb[72].mxu0 %vm682_vm1, %v11986_v8  ;;  %16238 = vst [vmem:[#allocation90_spill] sm:$0xff] %v12160_v32 }
  0xe9   : > { %9291 = vmatprep.mubr.msk.bf16.mxu0 %vm682_vm1, %v11991_v54  ;;  %v12162_v33 = vpop.permute.xlu1 %469 }
  0xea   : > { %16239 = vst [vmem:[#allocation91_spill] sm:$0xff] %v12162_v33 }
  0xeb   : > { %v12168_v49 = vpop.permute.xlu0 %554 }
  0xec   : > { %16240 = vst [vmem:[#allocation92_spill] sm:$0xff] %v12168_v49 }
  0xed   : > { %v12170_v2 = vpop.permute.xlu1 %559 }
  0xef   : > { %v12176_v1 = vpop.permute.xlu0 %474 }
  0xf0   : > { %9292 = vmatmul.mubr.msk.bf16.gmra.mrb[76].mxu0 %vm682_vm1, %v12002_v56  ;;  %16241 = vst [vmem:[#allocation93_spill] sm:$0xff] %v12176_v1 }
  0xf1   : > { %9295 = vmatprep.mubr.msk.bf16.mxu0 %vm682_vm1, %v12007_v21  ;;  %v12178_v31 = vpop.permute.xlu1 %479 }
  0xf2   : > { %16242 = vst [vmem:[#allocation94_spill] sm:$0xff] %v12178_v31 }
  0xf3   : > { %v12184_v0 = vpop.permute.xlu0 %564 }
  0xf5   : > { %v12190_v63 = vpop.permute.xlu1 %569 }
  0xf7   : > { %v12195_v52 = vpop.permute.xlu0 %484 }
  0xf8   : > { %9296 = vmatmul.mubr.msk.bf16.gmra.mrb[80].mxu0 %vm682_vm1, %v12018_v23  ;;  %16243 = vst [vmem:[#allocation95_spill] sm:$0xff] %v12195_v52 }
  0xf9   : > { %9299 = vmatprep.mubr.msk.bf16.mxu0 %vm682_vm1, %v12023_v25  ;;  %v12197_v48 = vpop.permute.xlu1 %489 }
  0xfa   : > { %16244 = vst [vmem:[#allocation96_spill] sm:$0xff] %v12197_v48 }
  0xfd   : > { %v12205_v46 = vpop.permute.xlu1 %579 }
 0x100   : > { %9300 = vmatmul.mubr.msk.bf16.gmra.mrb[84].mxu0 %vm682_vm1, %v12034_v27 }
 0x101   : > { %9303 = vmatprep.mubr.msk.bf16.mxu0 %vm682_vm1, %v12039_v30  ;;  %v12213_v45 = vpop.permute.xlu1 %499 }
 0x102   : > { %16246 = vst [vmem:[#allocation98_spill] sm:$0xff] %v12213_v45 }
 0x108   : > { %9304 = vmatmul.mubr.msk.bf16.gmra.mrb[88].mxu0 %vm682_vm1, %v12050_v50 }
 0x109   : > { %9307 = vmatprep.mubr.msk.bf16.mxu0 %vm682_vm1, %v12055_v3 }
 0x110   : > { %9308 = vmatmul.mubr.msk.bf16.gmra.mrb[92].mxu0 %vm682_vm1, %v12066_v4 }
 0x111   : > { %9313 = vmatprep.mubr.msk.bf16.mxu0 %vm682_vm1, %v11939_v55 }
 0x118   : > { %9314 = vmatmul.mubr.msk.bf16.vlgmr.msra.gmra.mrb[96].mxu0 %vm682_vm1, %v11948_v41 }
 0x119   : > { %9346 = vmatpush3.bf16.msra.mxu0 %v2197_v29  ;;  %9317 = vmatprep.mubr.msk.bf16.mxu0 %vm682_vm1, %v11953_v9  ;;  %v12203_v29 = vpop.permute.xlu0 %574 }
 0x11a   : > { %10270 = vmatprep.subr.msk.bf16.mxu0 %vm731_vm0, %v12182_v47 }
 0x11d   : > { %v12211_v26 = vpop.permute.xlu0 %494 }
 0x11e   : > { %16245 = vst [vmem:[#allocation97_spill] sm:$0xff] %v12211_v26 }
 0x120   : > { %9318 = vmatmul.mubr.msk.bf16.gmra.mrb[100].mxu0 %vm682_vm1, %v11970_v40 }
 0x121   : > { %9321 = vmatprep.mubr.msk.bf16.mxu0 %vm682_vm1, %v11975_v53  ;;  %v12219_v17 = vpop.permute.xlu0 %584 }
 0x128   : > { %9322 = vmatmul.mubr.msk.bf16.gmra.mrb[104].mxu0 %vm682_vm1, %v11986_v8 }
 0x129   : > { %9325 = vmatprep.mubr.msk.bf16.mxu0 %vm682_vm1, %v11991_v54 }
 0x12b   : > { %v9213_v24 = vpop.f32.mrb[0].mxu0 }
 0x12c   : > { %v778_v62 = vadd.f32 %v9213_v24, %v12148_v38  ;;  %v769_v61 = vpop.f32.mrb[1].mxu0 }
 0x12d   : > { %v770_v22 = vadd.f32 %v769_v61, %v12130_v6  ;;  %v9214_v44 = vpop.f32.mrb[2].mxu0  ;;  %v12225_v61 = vpop.permute.xlu1 %589 }
 0x12e   : > { %v898_v19 = vmax.f32 %v778_v62, 0.0  ;;  %v781_v20 = vadd.f32 %v9214_v44, %v12150_v39  ;;  %v772_v43 = vpop.f32.mrb[3].mxu0 }
 0x12f   : > { %v896_v60 = vmax.f32 %v770_v22, 0.0  ;;  %v773_v59 = vadd.f32 %v772_v43, %v12134_v51 }
 0x130   : > { %v930_v18 = vmax.f32 %v898_v19, 1e-06  ;;  %v899_v42 = vmax.f32 %v781_v20, 0.0  ;;  %9326 = vmatmul.mubr.msk.bf16.gmra.mrb[108].mxu0 %vm682_vm1, %v12002_v56 }
 0x131   : > { %v928_v15 = vmax.f32 %v896_v60, 1e-06  ;;  %v897_v24 = vmax.f32 %v773_v59, 0.0  ;;  %9329 = vmatprep.mubr.msk.bf16.mxu0 %vm682_vm1, %v12007_v21  ;;  %v12229_v60 = vpop.permute.xlu0 %504  ;;  %v12237_v21 = vpop.permute.xlu1 %509 }
 0x132   : > { %v962_v62 = vmul.f32 %v930_v18, %v930_v18  ;;  %v931_v44 = vmax.f32 %v899_v42, 1e-06  ;;  %16247 = vst [vmem:[#allocation99_spill] sm:$0xff] %v12229_v60  ;;  %16248 = vst [vmem:[#allocation100_spill] sm:$0xff] %v12237_v21 }
 0x133   : > { %v960_v16 = vmul.f32 %v928_v15, %v928_v15  ;;  %v929_v22 = vmax.f32 %v897_v24, 1e-06  ;;  %v9217_v58 = vpop.f32.mrb[4].mxu0 }
 0x134   : > { %v963_v43 = vmul.f32 %v931_v44, %v931_v44  ;;  %v794_v28 = vadd.f32 %v9217_v58, %v12176_v1  ;;  %v785_v19 = vpop.f32.mrb[5].mxu0  ;;  %v12231_v59 = vmul.f32 %v962_v62, %v930_v18 }
 0x135   : > { %v961_v20 = vmul.f32 %v929_v22, %v929_v22  ;;  %v786_v57 = vadd.f32 %v785_v19, %v12160_v32  ;;  %v9218_v13 = vpop.f32.mrb[6].mxu0  ;;  %v12239_v58 = vmul.f32 %v960_v16, %v928_v15  ;;  %v12255_v18 = vpop.permute.xlu1 %599 }
 0x136   : > { %v12233_v14 = vmul.f32 %v963_v43, %v931_v44  ;;  %v902_v11 = vmax.f32 %v794_v28, 0.0  ;;  %v797_v42 = vadd.f32 %v9218_v13, %v12178_v31  ;;  %v788_v12 = vpop.f32.mrb[7].mxu0  ;;  %v12251_v44 = vpop.permute.xlu0 %594 }
 0x137   : > { %v900_v24 = vmax.f32 %v786_v57, 0.0  ;;  %v789_v10 = vadd.f32 %v788_v12, %v12162_v33  ;;  %v12241_v1 = vmul.f32 %v961_v20, %v929_v22 }
 0x138   : > { %v934_v19 = vmax.f32 %v902_v11, 1e-06  ;;  %v903_v32 = vmax.f32 %v797_v42, 0.0  ;;  %9330 = vmatmul.mubr.msk.bf16.gmra.mrb[112].mxu0 %vm682_vm1, %v12018_v23 }
 0x139   : > { %v932_v28 = vmax.f32 %v900_v24, 1e-06  ;;  %v901_v13 = vmax.f32 %v789_v10, 0.0  ;;  %9333 = vmatprep.mubr.msk.bf16.mxu0 %vm682_vm1, %v12023_v25 }
 0x13a   : > { %v966_v15 = vmul.f32 %v934_v19, %v934_v19  ;;  %v935_v16 = vmax.f32 %v903_v32, 1e-06 }
 0x13b   : > { %v964_v57 = vmul.f32 %v932_v28, %v932_v28  ;;  %v933_v62 = vmax.f32 %v901_v13, 1e-06  ;;  %v9221_v11 = vpop.f32.mrb[8].mxu0 }
 0x13c   : > { %v967_v22 = vmul.f32 %v935_v16, %v935_v16  ;;  %v810_v43 = vadd.f32 %v9221_v11, %v12211_v26  ;;  %v801_v20 = vpop.f32.mrb[9].mxu0  ;;  %v12257_v25 = vmul.f32 %v966_v15, %v934_v19 }
 0x13d   : > { %v965_v42 = vmul.f32 %v933_v62, %v933_v62  ;;  %v802_v10 = vadd.f32 %v801_v20, %v12195_v52  ;;  %v9222_v24 = vpop.f32.mrb[10].mxu0  ;;  %v12262_v33 = vmul.f32 %v964_v57, %v932_v28 }
 0x13e   : > { %16249 = vst [vmem:[#allocation101_spill] sm:$0xff] %v12257_v25  ;;  %v12259_v12 = vmul.f32 %v967_v22, %v935_v16  ;;  %v906_v32 = vmax.f32 %v810_v43, 0.0  ;;  %v813_v13 = vadd.f32 %v9222_v24, %v12213_v45  ;;  %v804_v23 = vpop.f32.mrb[11].mxu0  ;;  %v12271_v22 = vpop.permute.xlu0 %514 }
 0x13f   : > { %v12264_v31 = vmul.f32 %v965_v42, %v933_v62  ;;  %v904_v11 = vmax.f32 %v802_v10, 0.0  ;;  %v805_v26 = vadd.f32 %v804_v23, %v12197_v48  ;;  %16250 = vst [vmem:[#allocation102_spill] sm:$0xff] %v12271_v22  ;;  %v12277_v10 = vpop.permute.xlu1 %519 }
 0x140   : > { %v938_v56 = vmax.f32 %v906_v32, 1e-06  ;;  %v907_v20 = vmax.f32 %v813_v13, 0.0  ;;  %9334 = vmatmul.mubr.msk.bf16.gmra.mrb[116].mxu0 %vm682_vm1, %v12034_v27  ;;  %16251 = vst [vmem:[#allocation103_spill] sm:$0xff] %v12277_v10 }
 0x141   : > { %v936_v15 = vmax.f32 %v904_v11, 1e-06  ;;  %v905_v16 = vmax.f32 %v805_v26, 0.0  ;;  %9337 = vmatprep.mubr.msk.bf16.mxu0 %vm682_vm1, %v12039_v30 }
 0x142   : > { %v970_v57 = vmul.f32 %v938_v56, %v938_v56  ;;  %v939_v23 = vmax.f32 %v907_v20, 1e-06 }
 0x143   : > { %v968_v62 = vmul.f32 %v936_v15, %v936_v15  ;;  %v937_v43 = vmax.f32 %v905_v16, 1e-06  ;;  %v9225_v42 = vpop.f32.mrb[12].mxu0 }
 0x144   : > { %v971_v24 = vmul.f32 %v939_v23, %v939_v23  ;;  %v826_v32 = vadd.f32 %v9225_v42, %v12271_v22  ;;  %v817_v13 = vpop.f32.mrb[13].mxu0  ;;  %v12281_v27 = vmul.f32 %v970_v57, %v938_v56 }
 0x145   : > { %v969_v26 = vmul.f32 %v937_v43, %v937_v43  ;;  %v818_v11 = vadd.f32 %v817_v13, %v12229_v60  ;;  %v9226_v19 = vpop.f32.mrb[14].mxu0  ;;  %v12286_v16 = vmul.f32 %v968_v62, %v936_v15 }
 0x146   : > { %v12283_v30 = vmul.f32 %v971_v24, %v939_v23  ;;  %v910_v28 = vmax.f32 %v826_v32, 0.0  ;;  %v829_v20 = vadd.f32 %v9226_v19, %v12277_v10  ;;  %v820_v48 = vpop.f32.mrb[15].mxu0 }
 0x147   : > { %v12288_v45 = vmul.f32 %v969_v26, %v937_v43  ;;  %v908_v52 = vmax.f32 %v818_v11, 0.0  ;;  %v821_v42 = vadd.f32 %v820_v48, %v12237_v21 }
 0x148   : > { %v942_v22 = vmax.f32 %v910_v28, 1e-06  ;;  %v911_v25 = vmax.f32 %v829_v20, 0.0  ;;  %9338 = vmatmul.mubr.msk.bf16.gmra.mrb[120].mxu0 %vm682_vm1, %v12050_v50 }
 0x149   : > { %v940_v57 = vmax.f32 %v908_v52, 1e-06  ;;  %v909_v23 = vmax.f32 %v821_v42, 0.0  ;;  %9341 = vmatprep.mubr.msk.bf16.mxu0 %vm682_vm1, %v12055_v3 }
 0x14a   : > { %v974_v15 = vmul.f32 %v942_v22, %v942_v22  ;;  %v943_v62 = vmax.f32 %v911_v25, 1e-06 }
 0x14b   : > { %v972_v43 = vmul.f32 %v940_v57, %v940_v57  ;;  %v941_v48 = vmax.f32 %v909_v23, 1e-06  ;;  %v9229_v28 = vpop.f32.mrb[16].mxu0 }
 0x14c   : > { %v975_v24 = vmul.f32 %v943_v62, %v943_v62  ;;  %v842_v32 = vadd.f32 %v9229_v28, %v12140_v36  ;;  %v833_v13 = vpop.f32.mrb[17].mxu0  ;;  %v12301_v20 = vmul.f32 %v974_v15, %v942_v22 }
 0x14d   : > { %v973_v26 = vmul.f32 %v941_v48, %v941_v48  ;;  %v834_v11 = vadd.f32 %v833_v13, %v12124_v5  ;;  %v9230_v52 = vpop.f32.mrb[18].mxu0  ;;  %v12306_v3 = vmul.f32 %v972_v43, %v940_v57 }
 0x14e   : > { %16252 = vst [vmem:[#allocation104_spill] sm:$0xff] %v12301_v20  ;;  %v12303_v42 = vmul.f32 %v975_v24, %v943_v62  ;;  %v914_v56 = vmax.f32 %v842_v32, 0.0  ;;  %v845_v19 = vadd.f32 %v9230_v52, %v12142_v37  ;;  %v836_v25 = vpop.f32.mrb[19].mxu0  ;;  %v8184_v24 = vld [vmem:[%s11605_s21 + $0x18] sm:$0xf] }
 0x14f   : > { %v12308_v23 = vmul.f32 %v973_v26, %v941_v48  ;;  %v912_v50 = vmax.f32 %v834_v11, 0.0  ;;  %v837_v28 = vadd.f32 %v836_v25, %v12132_v7  ;;  %v12324_v22 = vpack.c.bf16 %v8184_v24, %v8184_v24 }
 0x150   : > { %16253 = vst [vmem:[#allocation105_spill] sm:$0xff] %v12303_v42  ;;  %v946_v36 = vmax.f32 %v914_v56, 1e-06  ;;  %v915_v21 = vmax.f32 %v845_v19, 0.0  ;;  %9342 = vmatmul.mubr.msk.bf16.gmra.mrb[124].mxu0 %vm682_vm1, %v12066_v4 }
 0x151   : > { %v944_v15 = vmax.f32 %v912_v50, 1e-06  ;;  %v913_v62 = vmax.f32 %v837_v28, 0.0  ;;  %9347 = vmatprep.mubr.msk.bf16.mxu0 %vm682_vm1, %v11939_v55  ;;  %v2563_v28 = vsel %vm731_vm0, %v12182_v47, 0 }
 0x152   : > { %v978_v43 = vmul.f32 %v946_v36, %v946_v36  ;;  %v947_v48 = vmax.f32 %v915_v21, 1e-06 }
 0x153   : > { %v976_v32 = vmul.f32 %v944_v15, %v944_v15  ;;  %v945_v56 = vmax.f32 %v913_v62, 1e-06  ;;  %v9233_v19 = vpop.f32.mrb[20].mxu0 }
 0x154   : > { %v979_v13 = vmul.f32 %v947_v48, %v947_v48  ;;  %v858_v26 = vadd.f32 %v9233_v19, %v12168_v49  ;;  %v849_v11 = vpop.f32.mrb[21].mxu0  ;;  %v1010_v57 = vmul.f32 %v978_v43, %v946_v36 }
 0x155   : > { %v977_v52 = vmul.f32 %v945_v56, %v945_v56  ;;  %v850_v50 = vadd.f32 %v849_v11, %v12152_v34  ;;  %v9234_v25 = vpop.f32.mrb[22].mxu0  ;;  %v1008_v19 = vmul.f32 %v976_v32, %v944_v15 }
 0x156   : > { %v1011_v20 = vmul.f32 %v979_v13, %v947_v48  ;;  %v918_v21 = vmax.f32 %v858_v26, 0.0  ;;  %v861_v42 = vadd.f32 %v9234_v25, %v12170_v2  ;;  %v852_v62 = vpop.f32.mrb[23].mxu0 }
 0x157   : > { %v916_v55 = vmax.f32 %v850_v50, 0.0  ;;  %v853_v4 = vadd.f32 %v852_v62, %v12158_v35  ;;  %v1009_v49 = vmul.f32 %v977_v52, %v945_v56 }
 0x158   : > { %v950_v7 = vmax.f32 %v918_v21, 1e-06  ;;  %v919_v37 = vmax.f32 %v861_v42, 0.0  ;;  %9348 = vmatmul.mubr.msk.bf16.vlgmr.msra.gmra.mrb[128].mxu0 %vm682_vm1, %v11948_v41  ;;  %v9757_v11 = vpack.c.bf16 %v1011_v20, %v1010_v57 }
 0x159   : > { %v948_v47 = vmax.f32 %v916_v55, 1e-06  ;;  %v917_v24 = vmax.f32 %v853_v4, 0.0  ;;  %9380 = vmatpush3.bf16.msra.mxu0 %v2563_v28  ;;  %v9753_v36 = vpack.c.bf16 %v1009_v49, %v1008_v19  ;;  %9351 = vmatprep.mubr.msk.bf16.mxu0 %vm682_vm1, %v11953_v9  ;;  %v16254_v55 = vpack.c.bf16 %v12241_v1, %v12239_v58 }
 0x15a   : > { %v982_v43 = vmul.f32 %v950_v7, %v950_v7  ;;  %v951_v48 = vmax.f32 %v919_v37, 1e-06  ;;  %10271 = vmatprep.subr.msk.bf16.mxu0 %vm731_vm0, %v12324_v22 }
 0x15b   : > { %v980_v15 = vmul.f32 %v948_v47, %v948_v47  ;;  %v949_v32 = vmax.f32 %v917_v24, 1e-06  ;;  %v9237_v56 = vpop.f32.mrb[24].mxu0  ;;  %9754 = vmatprep.subr.bf16.mxu1 %v9753_v36 }
 0x15c   : > { %v983_v42 = vmul.f32 %v951_v48, %v951_v48  ;;  %v874_v13 = vadd.f32 %v9237_v56, %v12203_v29  ;;  %v865_v20 = vpop.f32.mrb[25].mxu0  ;;  %9756 = vmatpush3.bf16.xpose.msra.mxu1 %v16254_v55  ;;  %v1014_v37 = vmul.f32 %v982_v43, %v950_v7 }
 0x15d   : > { %v981_v49 = vmul.f32 %v949_v32, %v949_v32  ;;  %v866_v4 = vadd.f32 %v865_v20, %v12184_v0  ;;  %v9238_v57 = vpop.f32.mrb[26].mxu0  ;;  %9758 = vmatprep.subr.bf16.mxu1 %v9757_v11  ;;  %v1012_v28 = vmul.f32 %v980_v15, %v948_v47  ;;  %v16255_v20 = vpack.c.bf16 %v12233_v14, %v12231_v59 }
 0x15e   : > { %v1015_v26 = vmul.f32 %v983_v42, %v951_v48  ;;  %v922_v52 = vmax.f32 %v874_v13, 0.0  ;;  %v877_v50 = vadd.f32 %v9238_v57, %v12205_v46  ;;  %v868_v25 = vpop.f32.mrb[27].mxu0 }
 0x15f   : > { %v1013_v21 = vmul.f32 %v981_v49, %v949_v32  ;;  %v920_v62 = vmax.f32 %v866_v4, 0.0  ;;  %v869_v19 = vadd.f32 %v868_v25, %v12190_v63 }
 0x160   : > { %v954_v24 = vmax.f32 %v922_v52, 1e-06  ;;  %v923_v36 = vmax.f32 %v877_v50, 0.0  ;;  %9352 = vmatmul.mubr.msk.bf16.gmra.mrb[132].mxu0 %vm682_vm1, %v11970_v40  ;;  %v9765_v1 = vpack.c.bf16 %v1015_v26, %v1014_v37 }
 0x161   : > { %v952_v58 = vmax.f32 %v920_v62, 1e-06  ;;  %v921_v56 = vmax.f32 %v869_v19, 0.0  ;;  %v9761_v11 = vpack.c.bf16 %v1013_v21, %v1012_v28  ;;  %9355 = vmatprep.mubr.msk.bf16.mxu0 %vm682_vm1, %v11975_v53 }
 0x162   : > { %v986_v7 = vmul.f32 %v954_v24, %v954_v24  ;;  %v955_v43 = vmax.f32 %v923_v36, 1e-06 }
 0x163   : > { %v984_v48 = vmul.f32 %v952_v58, %v952_v58  ;;  %v953_v47 = vmax.f32 %v921_v56, 1e-06  ;;  %v9241_v15 = vpop.f32.mrb[28].mxu0 }
 0x164   : > { %v987_v32 = vmul.f32 %v955_v43, %v955_v43  ;;  %v890_v42 = vadd.f32 %v9241_v15, %v12251_v44  ;;  %v881_v13 = vpop.f32.mrb[29].mxu0  ;;  %9760 = vmatpush3.bf16.xpose.msra.mxu1 %v16255_v20  ;;  %v12350_v57 = vmul.f32 %v986_v7, %v954_v24 }
 0x165   : > { %v985_v55 = vmul.f32 %v953_v47, %v953_v47  ;;  %v882_v49 = vadd.f32 %v881_v13, %v12219_v17  ;;  %v9242_v4 = vpop.f32.mrb[30].mxu0  ;;  %9762 = vmatprep.subr.bf16.mxu1 %v9761_v11  ;;  %v1016_v25 = vmul.f32 %v984_v48, %v952_v58 }
 0x166   : > { %v12352_v37 = vmul.f32 %v987_v32, %v955_v43  ;;  %v926_v26 = vmax.f32 %v890_v42, 0.0  ;;  %v893_v52 = vadd.f32 %v9242_v4, %v12255_v18  ;;  %v884_v50 = vpop.f32.mrb[31].mxu0  ;;  %v16256_v32 = vpack.c.bf16 %v12264_v31, %v12262_v33 }
 0x167   : > { %v1017_v28 = vmul.f32 %v985_v55, %v953_v47  ;;  %v924_v21 = vmax.f32 %v882_v49, 0.0  ;;  %v885_v62 = vadd.f32 %v884_v50, %v12225_v61 }
 0x168   : > { %v958_v14 = vmax.f32 %v926_v26, 1e-06  ;;  %v927_v59 = vmax.f32 %v893_v52, 0.0  ;;  %9356 = vmatmul.mubr.msk.bf16.gmra.mrb[136].mxu0 %vm682_vm1, %v11986_v8 }
 0x169   : > { %v956_v24 = vmax.f32 %v924_v21, 1e-06  ;;  %v925_v36 = vmax.f32 %v885_v62, 0.0  ;;  %9359 = vmatprep.mubr.msk.bf16.mxu0 %vm682_vm1, %v11991_v54  ;;  %v9769_v56 = vpack.c.bf16 %v1017_v28, %v1016_v25 }
 0x16a   : > { %v990_v11 = vmul.f32 %v958_v14, %v958_v14  ;;  %v959_v58 = vmax.f32 %v927_v59, 1e-06  ;;  %v16257_v59 = vld [vmem:[#allocation76_spill] sm:$0xff] }
 0x16b   : > { %v988_v7 = vmul.f32 %v956_v24, %v956_v24  ;;  %v957_v43 = vmax.f32 %v925_v36, 1e-06  ;;  %v9247_v48 = vpop.f32.mrb[32].mxu0 }
 0x16c   : > { %v991_v47 = vmul.f32 %v959_v58, %v959_v58  ;;  %v1144_v15 = vadd.f32 %v9247_v48, %v12148_v38  ;;  %9764 = vmatpush3.bf16.xpose.msra.mxu1 %v16256_v32  ;;  %v1135_v42 = vpop.f32.mrb[33].mxu0  ;;  %v12367_v49 = vmul.f32 %v990_v11, %v958_v14  ;;  %v16258_v11 = vld [vmem:[#allocation77_spill] sm:$0xff] }
 0x16d   : > { %v989_v13 = vmul.f32 %v957_v43, %v957_v43  ;;  %v1136_v20 = vadd.f32 %v1135_v42, %v12130_v6  ;;  %9766 = vmatprep.subr.bf16.mxu1 %v9765_v1  ;;  %v9248_v55 = vpop.f32.mrb[34].mxu0  ;;  %v12372_v25 = vmul.f32 %v988_v7, %v956_v24  ;;  %v16259_v32 = vld [vmem:[#allocation93_spill] sm:$0xff] }
 0x16e   : > { %v12369_v4 = vmul.f32 %v991_v47, %v959_v58  ;;  %v1264_v26 = vmax.f32 %v1144_v15, 0.0  ;;  %v1147_v52 = vadd.f32 %v9248_v55, %v12150_v39  ;;  %v1138_v50 = vpop.f32.mrb[35].mxu0 }
 0x16f   : > { %v12374_v28 = vmul.f32 %v989_v13, %v957_v43  ;;  %v1262_v31 = vmax.f32 %v1136_v20, 0.0  ;;  %v1139_v33 = vadd.f32 %v1138_v50, %v12134_v51  ;;  %v16260_v13 = vld [vmem:[#allocation101_spill] sm:$0xff] }
 0x170   : > { %v1296_v21 = vmax.f32 %v1264_v26, 1e-06  ;;  %v1265_v62 = vmax.f32 %v1147_v52, 0.0  ;;  %9360 = vmatmul.mubr.msk.bf16.gmra.mrb[140].mxu0 %vm682_vm1, %v16257_v59  ;;  %v16261_v20 = vpack.c.bf16 %v12259_v12, %v16260_v13  ;;  %v16262_v52 = vld [vmem:[#allocation90_spill] sm:$0xff]  ;;  %v16264_v13 = vld [vmem:[#allocation91_spill] sm:$0xff] }
 0x171   : > { %v1294_v14 = vmax.f32 %v1262_v31, 1e-06  ;;  %v1263_v36 = vmax.f32 %v1139_v33, 0.0  ;;  %9363 = vmatprep.mubr.msk.bf16.mxu0 %vm682_vm1, %v16258_v11 }
 0x172   : > { %v1328_v58 = vmul.f32 %v1296_v21, %v1296_v21  ;;  %v1297_v7 = vmax.f32 %v1265_v62, 1e-06 }
 0x173   : > { %v1326_v43 = vmul.f32 %v1294_v14, %v1294_v14  ;;  %v1295_v48 = vmax.f32 %v1263_v36, 1e-06  ;;  %v9251_v47 = vpop.f32.mrb[36].mxu0  ;;  %v16263_v36 = vld [vmem:[#allocation94_spill] sm:$0xff] }
 0x174   : > { %v1329_v15 = vmul.f32 %v1297_v7, %v1297_v7  ;;  %v1160_v42 = vadd.f32 %v9251_v47, %v16259_v32  ;;  %9768 = vmatpush3.bf16.xpose.msra.mxu1 %v16261_v20  ;;  %v1151_v55 = vpop.f32.mrb[37].mxu0  ;;  %v12390_v33 = vmul.f32 %v1328_v58, %v1296_v21  ;;  %v16265_v21 = vld [vmem:[#allocation78_spill] sm:$0xff]  ;;  %v16269_v58 = vld [vmem:[#allocation95_spill] sm:$0xff] }
 0x175   : > { %v1327_v26 = vmul.f32 %v1295_v48, %v1295_v48  ;;  %v1152_v50 = vadd.f32 %v1151_v55, %v16262_v52  ;;  %9770 = vmatprep.subr.bf16.mxu1 %v9769_v56  ;;  %v9252_v31 = vpop.f32.mrb[38].mxu0  ;;  %v12395_v11 = vmul.f32 %v1326_v43, %v1294_v14  ;;  %v16266_v14 = vld [vmem:[#allocation79_spill] sm:$0xff] }
 0x176   : > { %v12392_v1 = vmul.f32 %v1329_v15, %v1297_v7  ;;  %v1268_v62 = vmax.f32 %v1160_v42, 0.0  ;;  %v1163_v24 = vadd.f32 %v9252_v31, %v16263_v36  ;;  %v1154_v19 = vpop.f32.mrb[39].mxu0  ;;  %v16267_v31 = vld [vmem:[#allocation97_spill] sm:$0xff]  ;;  %v16271_v36 = vld [vmem:[#allocation98_spill] sm:$0xff] }
 0x177   : > { %v12397_v47 = vmul.f32 %v1327_v26, %v1295_v48  ;;  %v1266_v12 = vmax.f32 %v1152_v50, 0.0  ;;  %v1155_v20 = vadd.f32 %v1154_v19, %v16264_v13 }
 0x178   : > { %v1300_v56 = vmax.f32 %v1268_v62, 1e-06  ;;  %v1269_v52 = vmax.f32 %v1163_v24, 0.0  ;;  %9364 = vmatmul.mubr.msk.bf16.gmra.mrb[144].mxu0 %vm682_vm1, %v16265_v21  ;;  %v16268_v24 = vpack.c.bf16 %v12288_v45, %v12286_v16 }
 0x179   : > { %v1298_v7 = vmax.f32 %v1266_v12, 1e-06  ;;  %v1267_v15 = vmax.f32 %v1155_v20, 0.0  ;;  %9367 = vmatprep.mubr.msk.bf16.mxu0 %vm682_vm1, %v16266_v14  ;;  %v16270_v20 = vpack.c.bf16 %v12352_v37, %v12350_v57 }
 0x17a   : > { %v1332_v43 = vmul.f32 %v1300_v56, %v1300_v56  ;;  %v1301_v48 = vmax.f32 %v1269_v52, 1e-06 }
 0x17b   : > { %v1330_v42 = vmul.f32 %v1298_v7, %v1298_v7  ;;  %v1299_v19 = vmax.f32 %v1267_v15, 1e-06  ;;  %v9255_v26 = vpop.f32.mrb[40].mxu0 }
 0x17c   : > { %v1333_v50 = vmul.f32 %v1301_v48, %v1301_v48  ;;  %v1176_v62 = vadd.f32 %v9255_v26, %v16267_v31  ;;  %9772 = vmatpush3.bf16.xpose.msra.mxu1 %v16268_v24  ;;  %v1167_v55 = vpop.f32.mrb[41].mxu0  ;;  %v12416_v52 = vmul.f32 %v1332_v43, %v1300_v56  ;;  %v16272_v24 = vld [vmem:[#allocation96_spill] sm:$0xff] }
 0x17d   : > { %v1331_v21 = vmul.f32 %v1299_v19, %v1299_v19  ;;  %v1168_v12 = vadd.f32 %v1167_v55, %v16269_v58  ;;  %9774 = vmatprep.subr.bf16.mxu1 %v16270_v20  ;;  %v9256_v14 = vpop.f32.mrb[42].mxu0  ;;  %v12421_v32 = vmul.f32 %v1330_v42, %v1298_v7  ;;  %v16273_v56 = vld [vmem:[#allocation80_spill] sm:$0xff]  ;;  %v16274_v7 = vld [vmem:[#allocation81_spill] sm:$0xff] }
 0x17e   : > { %v12418_v15 = vmul.f32 %v1333_v50, %v1301_v48  ;;  %v1272_v13 = vmax.f32 %v1176_v62, 0.0  ;;  %v1179_v26 = vadd.f32 %v9256_v14, %v16271_v36  ;;  %v1170_v31 = vpop.f32.mrb[43].mxu0 }
 0x17f   : > { %v12423_v45 = vmul.f32 %v1331_v21, %v1299_v19  ;;  %v1270_v16 = vmax.f32 %v1168_v12, 0.0  ;;  %v1171_v55 = vadd.f32 %v1170_v31, %v16272_v24  ;;  %v16275_v12 = vld [vmem:[#allocation102_spill] sm:$0xff] }
 0x180   : > { %v1304_v37 = vmax.f32 %v1272_v13, 1e-06  ;;  %v1273_v20 = vmax.f32 %v1179_v26, 0.0  ;;  %9368 = vmatmul.mubr.msk.bf16.gmra.mrb[148].mxu0 %vm682_vm1, %v16273_v56  ;;  %v16276_v26 = vpack.c.bf16 %v12283_v30, %v12281_v27 }
 0x181   : > { %v1302_v14 = vmax.f32 %v1270_v16, 1e-06  ;;  %v1271_v48 = vmax.f32 %v1171_v55, 0.0  ;;  %9371 = vmatprep.mubr.msk.bf16.mxu0 %vm682_vm1, %v16274_v7  ;;  %v16277_v55 = vpack.c.bf16 %v12374_v28, %v12372_v25 }
 0x182   : > { %v1336_v21 = vmul.f32 %v1304_v37, %v1304_v37  ;;  %v1305_v42 = vmax.f32 %v1273_v20, 1e-06 }
 0x183   : > { %v1334_v19 = vmul.f32 %v1302_v14, %v1302_v14  ;;  %v1303_v50 = vmax.f32 %v1271_v48, 1e-06  ;;  %v9259_v31 = vpop.f32.mrb[44].mxu0 }
 0x184   : > { %v1337_v62 = vmul.f32 %v1305_v42, %v1305_v42  ;;  %v1192_v13 = vadd.f32 %v9259_v31, %v16275_v12  ;;  %9776 = vmatpush3.bf16.xpose.msra.mxu1 %v16276_v26  ;;  %v1183_v57 = vpop.f32.mrb[45].mxu0  ;;  %v12442_v20 = vmul.f32 %v1336_v21, %v1304_v37  ;;  %v16278_v26 = vld [vmem:[#allocation100_spill] sm:$0xff]  ;;  %v16279_v37 = vld [vmem:[#allocation82_spill] sm:$0xff] }
 0x185   : > { %v1335_v56 = vmul.f32 %v1303_v50, %v1303_v50  ;;  %v1184_v16 = vadd.f32 %v1183_v57, %v12229_v60  ;;  %9778 = vmatprep.subr.bf16.mxu1 %v16277_v55  ;;  %v9260_v43 = vpop.f32.mrb[46].mxu0  ;;  %v12447_v24 = vmul.f32 %v1334_v19, %v1302_v14  ;;  %v16280_v14 = vld [vmem:[#allocation83_spill] sm:$0xff] }
 0x186   : > { %v12444_v48 = vmul.f32 %v1337_v62, %v1305_v42  ;;  %v1276_v7 = vmax.f32 %v1192_v13, 0.0  ;;  %v1195_v31 = vadd.f32 %v9260_v43, %v12277_v10  ;;  %v1186_v12 = vpop.f32.mrb[47].mxu0 }
 0x187   : > { %v12449_v27 = vmul.f32 %v1335_v56, %v1303_v50  ;;  %v1274_v30 = vmax.f32 %v1184_v16, 0.0  ;;  %v1187_v57 = vadd.f32 %v1186_v12, %v16278_v26  ;;  %v16281_v16 = vld [vmem:[#allocation87_spill] sm:$0xff]  ;;  %v16286_v26 = vld [vmem:[#allocation88_spill] sm:$0xff] }
 0x188   : > { %v1308_v28 = vmax.f32 %v1276_v7, 1e-06  ;;  %v1277_v55 = vmax.f32 %v1195_v31, 0.0  ;;  %9372 = vmatmul.mubr.msk.bf16.gmra.mrb[152].mxu0 %vm682_vm1, %v16279_v37  ;;  %v16282_v31 = vpack.c.bf16 %v12308_v23, %v12306_v3 }
 0x189   : > { %v1306_v43 = vmax.f32 %v1274_v30, 1e-06  ;;  %v1275_v42 = vmax.f32 %v1187_v57, 0.0  ;;  %9375 = vmatprep.mubr.msk.bf16.mxu0 %vm682_vm1, %v16280_v14  ;;  %v16283_v57 = vpack.c.bf16 %v12369_v4, %v12367_v49  ;;  %v16293_v49 = vld [vmem:[#allocation105_spill] sm:$0xff] }
 0x18a   : > { %v1340_v56 = vmul.f32 %v1308_v28, %v1308_v28  ;;  %v1309_v19 = vmax.f32 %v1277_v55, 1e-06 }
 0x18b   : > { %v1338_v50 = vmul.f32 %v1306_v43, %v1306_v43  ;;  %v1307_v62 = vmax.f32 %v1275_v42, 1e-06  ;;  %v9263_v12 = vpop.f32.mrb[48].mxu0 }
 0x18c   : > { %v1341_v13 = vmul.f32 %v1309_v19, %v1309_v19  ;;  %v1208_v7 = vadd.f32 %v9263_v12, %v16281_v16  ;;  %9780 = vmatpush3.bf16.xpose.msra.mxu1 %v16282_v31  ;;  %v1199_v25 = vpop.f32.mrb[49].mxu0  ;;  %v12468_v55 = vmul.f32 %v1340_v56, %v1308_v28  ;;  %v16290_v56 = vld [vmem:[#allocation84_spill] sm:$0xff] }
 0x18d   : > { %v1339_v37 = vmul.f32 %v1307_v62, %v1307_v62  ;;  %v1200_v30 = vadd.f32 %v1199_v25, %v12124_v5  ;;  %9782 = vmatprep.subr.bf16.mxu1 %v16283_v57  ;;  %v9264_v21 = vpop.f32.mrb[50].mxu0  ;;  %v12473_v3 = vmul.f32 %v1338_v50, %v1306_v43  ;;  %v16289_v25 = vld [vmem:[#allocation86_spill] sm:$0xff]  ;;  %v16291_v43 = vld [vmem:[#allocation75_spill] sm:$0xff] }
 0x18e   : > { %16284 = vst [vmem:[#allocation76_spill] sm:$0xff] %v12468_v55  ;;  %v12470_v42 = vmul.f32 %v1341_v13, %v1309_v19  ;;  %v1280_v14 = vmax.f32 %v1208_v7, 0.0  ;;  %v1211_v12 = vadd.f32 %v9264_v21, %v16286_v26  ;;  %v1202_v16 = vpop.f32.mrb[51].mxu0  ;;  %v16294_v55 = vld [vmem:[#allocation104_spill] sm:$0xff] }
 0x18f   : > { %16287 = vst [vmem:[#allocation106_spill] sm:$0xff] %v12473_v3  ;;  %v12475_v23 = vmul.f32 %v1339_v37, %v1307_v62  ;;  %v1278_v31 = vmax.f32 %v1200_v30, 0.0  ;;  %v1203_v5 = vadd.f32 %v1202_v16, %v16289_v25  ;;  %v8201_v62 = vld [vmem:[%s11605_s21 + $0x1c] sm:$0xf] }
 0x190   : > { %16285 = vst [vmem:[#allocation101_spill] sm:$0xff] %v12470_v42  ;;  %v1312_v4 = vmax.f32 %v1280_v14, 1e-06  ;;  %v1281_v28 = vmax.f32 %v1211_v12, 0.0  ;;  %9376 = vmatmul.mubr.msk.bf16.gmra.mrb[156].mxu0 %vm682_vm1, %v16290_v56  ;;  %v16292_v14 = vld [vmem:[#allocation92_spill] sm:$0xff]  ;;  %v16295_v42 = vpack.c.bf16 %v16293_v49, %v16294_v55 }
 0x191   : > { %16288 = vst [vmem:[#allocation107_spill] sm:$0xff] %v12475_v23  ;;  %v1310_v19 = vmax.f32 %v1278_v31, 1e-06  ;;  %v1279_v13 = vmax.f32 %v1203_v5, 0.0  ;;  %9381 = vmatprep.mubr.msk.bf16.mxu0 %vm682_vm1, %v16291_v43  ;;  %v2929_v43 = vsel %vm731_vm0, %v12324_v22, 0 }
 0x192   : > { %v1344_v37 = vmul.f32 %v1312_v4, %v1312_v4  ;;  %v1313_v50 = vmax.f32 %v1281_v28, 1e-06  ;;  %v12494_v28 = vpack.c.bf16 %v8201_v62, %v8201_v62 }
 0x193   : > { %v1342_v16 = vmul.f32 %v1310_v19, %v1310_v19  ;;  %v1311_v7 = vmax.f32 %v1279_v13, 1e-06  ;;  %v9267_v30 = vpop.f32.mrb[52].mxu0 }
 0x194   : > { %v1345_v57 = vmul.f32 %v1313_v50, %v1313_v50  ;;  %v1224_v12 = vadd.f32 %v9267_v30, %v16292_v14  ;;  %9784 = vmatpush3.bf16.xpose.msra.mxu1 %v16295_v42  ;;  %v1215_v56 = vpop.f32.mrb[53].mxu0  ;;  %v1376_v25 = vmul.f32 %v1344_v37, %v1312_v4 }
 0x195   : > { %v1343_v21 = vmul.f32 %v1311_v7, %v1311_v7  ;;  %v1216_v5 = vadd.f32 %v1215_v56, %v12152_v34  ;;  %v9268_v31 = vpop.f32.mrb[54].mxu0  ;;  %v1374_v14 = vmul.f32 %v1342_v16, %v1310_v19 }
 0x196   : > { %v1377_v13 = vmul.f32 %v1345_v57, %v1313_v50  ;;  %v1284_v26 = vmax.f32 %v1224_v12, 0.0  ;;  %v1227_v3 = vadd.f32 %v9268_v31, %v12170_v2  ;;  %v1218_v30 = vpop.f32.mrb[55].mxu0 }
 0x197   : > { %v1375_v23 = vmul.f32 %v1343_v21, %v1311_v7  ;;  %v1282_v55 = vmax.f32 %v1216_v5, 0.0  ;;  %v1219_v42 = vadd.f32 %v1218_v30, %v12158_v35 }
 0x198   : > { %v1316_v49 = vmax.f32 %v1284_v26, 1e-06  ;;  %v1285_v10 = vmax.f32 %v1227_v3, 0.0  ;;  %9382 = vmatmul.mubr.msk.bf16.vlgmr.msra.gmra.mrb[160].mxu0 %vm682_vm1, %v11948_v41  ;;  %v9789_v56 = vpack.c.bf16 %v1377_v13, %v1376_v25  ;;  %v16296_v3 = vmov 1.0  }
 0x199   : > { %v1314_v22 = vmax.f32 %v1282_v55, 1e-06  ;;  %v1283_v62 = vmax.f32 %v1219_v42, 0.0  ;;  %9414 = vmatpush3.bf16.msra.mxu0 %v2929_v43  ;;  %v9785_v4 = vpack.c.bf16 %v1375_v23, %v1374_v14  ;;  %9385 = vmatprep.mubr.msk.bf16.mxu0 %vm682_vm1, %v11953_v9  ;;  %v16297_v23 = vpack.c.bf16 %v12397_v47, %v12395_v11 }
 0x19a   : > { %v1348_v37 = vmul.f32 %v1316_v49, %v1316_v49  ;;  %v1317_v50 = vmax.f32 %v1285_v10, 1e-06  ;;  %10272 = vmatprep.subr.msk.bf16.mxu0 %vm731_vm0, %v12494_v28 }
 0x19b   : > { %v1346_v21 = vmul.f32 %v1314_v22, %v1314_v22  ;;  %v1315_v19 = vmax.f32 %v1283_v62, 1e-06  ;;  %v9271_v26 = vpop.f32.mrb[56].mxu0  ;;  %9786 = vmatprep.subr.bf16.mxu1 %v9785_v4  ;;  %8443 = vmatmul.mubr.f32.vlgmr.msra.gmra.mrb[0].mxu1 %v16296_v3 }
 0x19c   : > { %v1349_v16 = vmul.f32 %v1317_v50, %v1317_v50  ;;  %v1240_v25 = vadd.f32 %v9271_v26, %v12203_v29  ;;  %v1231_v7 = vpop.f32.mrb[57].mxu0  ;;  %9788 = vmatpush3.bf16.xpose.msra.mxu1 %v16297_v23  ;;  %8493 = vmatprep.mubr.f32.mxu1 %v16296_v3  ;;  %v1380_v14 = vmul.f32 %v1348_v37, %v1316_v49 }
 0x19d   : > { %v1347_v10 = vmul.f32 %v1315_v19, %v1315_v19  ;;  %v1232_v43 = vadd.f32 %v1231_v7, %v12184_v0  ;;  %v9272_v57 = vpop.f32.mrb[58].mxu0  ;;  %9790 = vmatprep.subr.bf16.mxu1 %v9789_v56  ;;  %v1378_v30 = vmul.f32 %v1346_v21, %v1314_v22  ;;  %v16298_v23 = vpack.c.bf16 %v12392_v1, %v12390_v33 }
 0x19e   : > { %v1381_v12 = vmul.f32 %v1349_v16, %v1317_v50  ;;  %v1288_v5 = vmax.f32 %v1240_v25, 0.0  ;;  %v1243_v31 = vadd.f32 %v9272_v57, %v12205_v46  ;;  %v1234_v13 = vpop.f32.mrb[59].mxu0 }
 0x19f   : > { %v1379_v55 = vmul.f32 %v1347_v10, %v1315_v19  ;;  %v1286_v42 = vmax.f32 %v1232_v43, 0.0  ;;  %v1235_v62 = vadd.f32 %v1234_v13, %v12190_v63 }
 0x1a0   : > { %v1320_v11 = vmax.f32 %v1288_v5, 1e-06  ;;  %v1289_v47 = vmax.f32 %v1243_v31, 0.0  ;;  %9386 = vmatmul.mubr.msk.bf16.gmra.mrb[164].mxu0 %vm682_vm1, %v11970_v40  ;;  %v9797_v4 = vpack.c.bf16 %v1381_v12, %v1380_v14 }
 0x1a1   : > { %v1318_v26 = vmax.f32 %v1286_v42, 1e-06  ;;  %v1287_v7 = vmax.f32 %v1235_v62, 0.0  ;;  %v9793_v56 = vpack.c.bf16 %v1379_v55, %v1378_v30  ;;  %9389 = vmatprep.mubr.msk.bf16.mxu0 %vm682_vm1, %v11975_v53 }
 0x1a2   : > { %v1352_v49 = vmul.f32 %v1320_v11, %v1320_v11  ;;  %v1321_v37 = vmax.f32 %v1289_v47, 1e-06 }
 0x1a3   : > { %v1350_v50 = vmul.f32 %v1318_v26, %v1318_v26  ;;  %v1319_v22 = vmax.f32 %v1287_v7, 1e-06  ;;  %v9275_v21 = vpop.f32.mrb[60].mxu0 }
 0x1a4   : > { %v1353_v19 = vmul.f32 %v1321_v37, %v1321_v37  ;;  %v1256_v16 = vadd.f32 %v9275_v21, %v12251_v44  ;;  %v1247_v25 = vpop.f32.mrb[61].mxu0  ;;  %9792 = vmatpush3.bf16.xpose.msra.mxu1 %v16298_v23  ;;  %v12522_v14 = vmul.f32 %v1352_v49, %v1320_v11 }
 0x1a5   : > { %v1351_v10 = vmul.f32 %v1319_v22, %v1319_v22  ;;  %v1248_v43 = vadd.f32 %v1247_v25, %v12219_v17  ;;  %v9276_v57 = vpop.f32.mrb[62].mxu0  ;;  %9794 = vmatprep.subr.bf16.mxu1 %v9793_v56  ;;  %v1382_v30 = vmul.f32 %v1350_v50, %v1318_v26 }
 0x1a6   : > { %v12524_v12 = vmul.f32 %v1353_v19, %v1321_v37  ;;  %v1292_v5 = vmax.f32 %v1256_v16, 0.0  ;;  %v1259_v31 = vadd.f32 %v9276_v57, %v12255_v18  ;;  %v1250_v13 = vpop.f32.mrb[63].mxu0  ;;  %v16299_v16 = vpack.c.bf16 %v12423_v45, %v12421_v32 }
 0x1a7   : > { %v1383_v55 = vmul.f32 %v1351_v10, %v1319_v22  ;;  %v1290_v42 = vmax.f32 %v1248_v43, 0.0  ;;  %v1251_v62 = vadd.f32 %v1250_v13, %v12225_v61 }
 0x1a8   : > { %v1324_v1 = vmax.f32 %v1292_v5, 1e-06  ;;  %v1293_v33 = vmax.f32 %v1259_v31, 0.0  ;;  %9390 = vmatmul.mubr.msk.bf16.gmra.mrb[168].mxu0 %vm682_vm1, %v11986_v8 }
 0x1a9   : > { %v1322_v47 = vmax.f32 %v1290_v42, 1e-06  ;;  %v1291_v7 = vmax.f32 %v1251_v62, 0.0  ;;  %9393 = vmatprep.mubr.msk.bf16.mxu0 %vm682_vm1, %v11991_v54  ;;  %v9801_v56 = vpack.c.bf16 %v1383_v55, %v1382_v30 }
 0x1aa   : > { %v1356_v49 = vmul.f32 %v1324_v1, %v1324_v1  ;;  %v1325_v26 = vmax.f32 %v1293_v33, 1e-06 }
 0x1ab   : > { %v1354_v37 = vmul.f32 %v1322_v47, %v1322_v47  ;;  %v1323_v50 = vmax.f32 %v1291_v7, 1e-06  ;;  %v9281_v22 = vpop.f32.mrb[64].mxu0 }
 0x1ac   : > { %v1357_v21 = vmul.f32 %v1325_v26, %v1325_v26  ;;  %v1510_v19 = vadd.f32 %v9281_v22, %v12148_v38  ;;  %9796 = vmatpush3.bf16.xpose.msra.mxu1 %v16299_v16  ;;  %v1501_v25 = vpop.f32.mrb[65].mxu0  ;;  %v12539_v57 = vmul.f32 %v1356_v49, %v1324_v1  ;;  %v16300_v49 = vld [vmem:[#allocation77_spill] sm:$0xff] }
 0x1ad   : > { %v1355_v23 = vmul.f32 %v1323_v50, %v1323_v50  ;;  %v1502_v10 = vadd.f32 %v1501_v25, %v12130_v6  ;;  %9798 = vmatprep.subr.bf16.mxu1 %v9797_v4  ;;  %v9282_v43 = vpop.f32.mrb[66].mxu0  ;;  %v12544_v55 = vmul.f32 %v1354_v37, %v1322_v47  ;;  %v16301_v16 = vld [vmem:[#allocation93_spill] sm:$0xff] }
 0x1ae   : > { %v12541_v5 = vmul.f32 %v1357_v21, %v1325_v26  ;;  %v1630_v31 = vmax.f32 %v1510_v19, 0.0  ;;  %v1513_v13 = vadd.f32 %v9282_v43, %v12150_v39  ;;  %v1504_v30 = vpop.f32.mrb[67].mxu0 }
 0x1af   : > { %v12546_v42 = vmul.f32 %v1355_v23, %v1323_v50  ;;  %v1628_v32 = vmax.f32 %v1502_v10, 0.0  ;;  %v1505_v45 = vadd.f32 %v1504_v30, %v12134_v51  ;;  %v16302_v23 = vpack.c.bf16 %v12418_v15, %v12416_v52  ;;  %v16305_v15 = vld [vmem:[#allocation91_spill] sm:$0xff] }
 0x1b0   : > { %v1662_v62 = vmax.f32 %v1630_v31, 1e-06  ;;  %v1631_v33 = vmax.f32 %v1513_v13, 0.0  ;;  %9394 = vmatmul.mubr.msk.bf16.gmra.mrb[172].mxu0 %vm682_vm1, %v16257_v59  ;;  %v16303_v31 = vld [vmem:[#allocation90_spill] sm:$0xff] }
 0x1b1   : > { %v1660_v1 = vmax.f32 %v1628_v32, 1e-06  ;;  %v1629_v7 = vmax.f32 %v1505_v45, 0.0  ;;  %9397 = vmatprep.mubr.msk.bf16.mxu0 %vm682_vm1, %v16300_v49 }
 0x1b2   : > { %v1694_v26 = vmul.f32 %v1662_v62, %v1662_v62  ;;  %v1663_v37 = vmax.f32 %v1631_v33, 1e-06 }
 0x1b3   : > { %v1692_v50 = vmul.f32 %v1660_v1, %v1660_v1  ;;  %v1661_v22 = vmax.f32 %v1629_v7, 1e-06  ;;  %v9285_v21 = vpop.f32.mrb[68].mxu0  ;;  %v16304_v7 = vld [vmem:[#allocation94_spill] sm:$0xff] }
 0x1b4   : > { %v1695_v19 = vmul.f32 %v1663_v37, %v1663_v37  ;;  %v1526_v25 = vadd.f32 %v9285_v21, %v16301_v16  ;;  %9800 = vmatpush3.bf16.xpose.msra.mxu1 %v16302_v23  ;;  %v1517_v10 = vpop.f32.mrb[69].mxu0  ;;  %v12562_v32 = vmul.f32 %v1694_v26, %v1662_v62  ;;  %v16306_v62 = vld [vmem:[#allocation78_spill] sm:$0xff] }
 0x1b5   : > { %v1693_v43 = vmul.f32 %v1661_v22, %v1661_v22  ;;  %v1518_v13 = vadd.f32 %v1517_v10, %v16303_v31  ;;  %9802 = vmatprep.subr.bf16.mxu1 %v9801_v56  ;;  %v9286_v30 = vpop.f32.mrb[70].mxu0  ;;  %v12567_v11 = vmul.f32 %v1692_v50, %v1660_v1  ;;  %v16307_v1 = vld [vmem:[#allocation79_spill] sm:$0xff] }
 0x1b6   : > { %v12564_v45 = vmul.f32 %v1695_v19, %v1663_v37  ;;  %v1634_v33 = vmax.f32 %v1526_v25, 0.0  ;;  %v1529_v4 = vadd.f32 %v9286_v30, %v16304_v7  ;;  %v1520_v47 = vpop.f32.mrb[71].mxu0  ;;  %v16308_v30 = vld [vmem:[#allocation97_spill] sm:$0xff] }
 0x1b7   : > { %v12569_v21 = vmul.f32 %v1693_v43, %v1661_v22  ;;  %v1632_v52 = vmax.f32 %v1518_v13, 0.0  ;;  %v1521_v23 = vadd.f32 %v1520_v47, %v16305_v15 }
 0x1b8   : > { %v1666_v56 = vmax.f32 %v1634_v33, 1e-06  ;;  %v1635_v31 = vmax.f32 %v1529_v4, 0.0  ;;  %9398 = vmatmul.mubr.msk.bf16.gmra.mrb[176].mxu0 %vm682_vm1, %v16306_v62  ;;  %v16309_v4 = vpack.c.bf16 %v12449_v27, %v12447_v24 }
 0x1b9   : > { %v1664_v37 = vmax.f32 %v1632_v52, 1e-06  ;;  %v1633_v19 = vmax.f32 %v1521_v23, 0.0  ;;  %9401 = vmatprep.mubr.msk.bf16.mxu0 %vm682_vm1, %v16307_v1  ;;  %v16310_v23 = vpack.c.bf16 %v12524_v12, %v12522_v14 }
 0x1ba   : > { %v1698_v50 = vmul.f32 %v1666_v56, %v1666_v56  ;;  %v1667_v22 = vmax.f32 %v1635_v31, 1e-06 }
 0x1bb   : > { %v1696_v25 = vmul.f32 %v1664_v37, %v1664_v37  ;;  %v1665_v47 = vmax.f32 %v1633_v19, 1e-06  ;;  %v9289_v43 = vpop.f32.mrb[72].mxu0 }
 0x1bc   : > { %v1699_v13 = vmul.f32 %v1667_v22, %v1667_v22  ;;  %v1542_v33 = vadd.f32 %v9289_v43, %v16308_v30  ;;  %9804 = vmatpush3.bf16.xpose.msra.mxu1 %v16309_v4  ;;  %v1533_v10 = vpop.f32.mrb[73].mxu0  ;;  %v12588_v31 = vmul.f32 %v1698_v50, %v1666_v56  ;;  %v16311_v4 = vld [vmem:[#allocation96_spill] sm:$0xff] }
 0x1bd   : > { %v1697_v62 = vmul.f32 %v1665_v47, %v1665_v47  ;;  %v1534_v52 = vadd.f32 %v1533_v10, %v16269_v58  ;;  %9806 = vmatprep.subr.bf16.mxu1 %v16310_v23  ;;  %v9290_v26 = vpop.f32.mrb[74].mxu0  ;;  %v12593_v15 = vmul.f32 %v1696_v25, %v1664_v37  ;;  %v16312_v56 = vld [vmem:[#allocation80_spill] sm:$0xff]  ;;  %v16313_v37 = vld [vmem:[#allocation81_spill] sm:$0xff] }
 0x1be   : > { %v12590_v19 = vmul.f32 %v1699_v13, %v1667_v22  ;;  %v1638_v1 = vmax.f32 %v1542_v33, 0.0  ;;  %v1545_v43 = vadd.f32 %v9290_v26, %v16271_v36  ;;  %v1536_v30 = vpop.f32.mrb[75].mxu0 }
 0x1bf   : > { %v12595_v24 = vmul.f32 %v1697_v62, %v1665_v47  ;;  %v1636_v27 = vmax.f32 %v1534_v52, 0.0  ;;  %v1537_v10 = vadd.f32 %v1536_v30, %v16311_v4  ;;  %v16314_v52 = vld [vmem:[#allocation102_spill] sm:$0xff]  ;;  %v16319_v4 = vld [vmem:[#allocation103_spill] sm:$0xff] }
 0x1c0   : > { %v1670_v12 = vmax.f32 %v1638_v1, 1e-06  ;;  %v1639_v23 = vmax.f32 %v1545_v43, 0.0  ;;  %9402 = vmatmul.mubr.msk.bf16.gmra.mrb[180].mxu0 %vm682_vm1, %v16312_v56  ;;  %v16315_v43 = vpack.c.bf16 %v12444_v48, %v12442_v20 }
 0x1c1   : > { %v1668_v26 = vmax.f32 %v1636_v27, 1e-06  ;;  %v1637_v22 = vmax.f32 %v1537_v10, 0.0  ;;  %9405 = vmatprep.mubr.msk.bf16.mxu0 %vm682_vm1, %v16313_v37  ;;  %v16316_v10 = vpack.c.bf16 %v12546_v42, %v12544_v55  ;;  %v16325_v55 = vld [vmem:[#allocation106_spill] sm:$0xff] }
 0x1c2   : > { %v1702_v62 = vmul.f32 %v1670_v12, %v1670_v12  ;;  %v1671_v25 = vmax.f32 %v1639_v23, 1e-06 }
 0x1c3   : > { %v1700_v47 = vmul.f32 %v1668_v26, %v1668_v26  ;;  %v1669_v13 = vmax.f32 %v1637_v22, 1e-06  ;;  %v9293_v30 = vpop.f32.mrb[76].mxu0 }
 0x1c4   : > { %v1703_v33 = vmul.f32 %v1671_v25, %v1671_v25  ;;  %v1558_v1 = vadd.f32 %v9293_v30, %v16314_v52  ;;  %9808 = vmatpush3.bf16.xpose.msra.mxu1 %v16315_v43  ;;  %v1549_v14 = vpop.f32.mrb[77].mxu0  ;;  %v12614_v23 = vmul.f32 %v1702_v62, %v1670_v12  ;;  %v16320_v43 = vld [vmem:[#allocation100_spill] sm:$0xff]  ;;  %v16321_v12 = vld [vmem:[#allocation82_spill] sm:$0xff]  ;;  %v16327_v62 = vld [vmem:[#allocation85_spill] sm:$0xff] }
 0x1c5   : > { %v1701_v56 = vmul.f32 %v1669_v13, %v1669_v13  ;;  %v1550_v27 = vadd.f32 %v1549_v14, %v12229_v60  ;;  %9810 = vmatprep.subr.bf16.mxu1 %v16316_v10  ;;  %v9294_v50 = vpop.f32.mrb[78].mxu0  ;;  %v12619_v36 = vmul.f32 %v1700_v47, %v1668_v26  ;;  %v16322_v26 = vld [vmem:[#allocation83_spill] sm:$0xff] }
 0x1c6   : > { %16317 = vst [vmem:[#allocation105_spill] sm:$0xff] %v12614_v23  ;;  %v12616_v22 = vmul.f32 %v1703_v33, %v1671_v25  ;;  %v1642_v37 = vmax.f32 %v1558_v1, 0.0  ;;  %v1561_v30 = vadd.f32 %v9294_v50, %v16319_v4  ;;  %v1552_v52 = vpop.f32.mrb[79].mxu0  ;;  %v16331_v23 = vld [vmem:[#allocation88_spill] sm:$0xff] }
 0x1c7   : > { %v12621_v20 = vmul.f32 %v1701_v56, %v1669_v13  ;;  %v1640_v48 = vmax.f32 %v1550_v27, 0.0  ;;  %v1553_v14 = vadd.f32 %v1552_v52, %v16320_v43  ;;  %v16323_v27 = vld [vmem:[#allocation87_spill] sm:$0xff] }
 0x1c8   : > { %16318 = vst [vmem:[#allocation104_spill] sm:$0xff] %v12616_v22  ;;  %v1674_v42 = vmax.f32 %v1642_v37, 1e-06  ;;  %v1643_v10 = vmax.f32 %v1561_v30, 0.0  ;;  %9406 = vmatmul.mubr.msk.bf16.gmra.mrb[184].mxu0 %vm682_vm1, %v16321_v12  ;;  %v16324_v30 = vld [vmem:[#allocation107_spill] sm:$0xff] }
 0x1c9   : > { %v1672_v50 = vmax.f32 %v1640_v48, 1e-06  ;;  %v1641_v25 = vmax.f32 %v1553_v14, 0.0  ;;  %9409 = vmatprep.mubr.msk.bf16.mxu0 %vm682_vm1, %v16322_v26  ;;  %v16326_v43 = vpack.c.bf16 %v16324_v30, %v16325_v55  ;;  %v16328_v14 = vpack.c.bf16 %v12541_v5, %v12539_v57  ;;  %v16333_v30 = vld [vmem:[#allocation86_spill] sm:$0xff]  ;;  %v16338_v57 = vld [vmem:[#allocation76_spill] sm:$0xff] }
 0x1ca   : > { %v1706_v56 = vmul.f32 %v1674_v42, %v1674_v42  ;;  %v1675_v47 = vmax.f32 %v1643_v10, 1e-06 }
 0x1cb   : > { %v1704_v13 = vmul.f32 %v1672_v50, %v1672_v50  ;;  %v1673_v33 = vmax.f32 %v1641_v25, 1e-06  ;;  %v9297_v52 = vpop.f32.mrb[80].mxu0 }
 0x1cc   : > { %v1707_v1 = vmul.f32 %v1675_v47, %v1675_v47  ;;  %v1574_v37 = vadd.f32 %v9297_v52, %v16323_v27  ;;  %9812 = vmatpush3.bf16.xpose.msra.mxu1 %v16326_v43  ;;  %v1565_v12 = vpop.f32.mrb[81].mxu0  ;;  %v12640_v10 = vmul.f32 %v1706_v56, %v1674_v42  ;;  %v16334_v42 = vld [vmem:[#allocation84_spill] sm:$0xff]  ;;  %v3295_v56 = vsel %vm731_vm0, %v12494_v28, 0 }
 0x1cd   : > { %v1705_v4 = vmul.f32 %v1673_v33, %v1673_v33  ;;  %v1566_v48 = vadd.f32 %v1565_v12, %v16327_v62  ;;  %9814 = vmatprep.subr.bf16.mxu1 %v16328_v14  ;;  %v9298_v26 = vpop.f32.mrb[82].mxu0  ;;  %v12645_v22 = vmul.f32 %v1704_v13, %v1672_v50  ;;  %v16335_v50 = vld [vmem:[#allocation75_spill] sm:$0xff] }
 0x1ce   : > { %16329 = vst [vmem:[#allocation77_spill] sm:$0xff] %v12640_v10  ;;  %v12642_v25 = vmul.f32 %v1707_v1, %v1675_v47  ;;  %v1646_v60 = vmax.f32 %v1574_v37, 0.0  ;;  %v1577_v52 = vadd.f32 %v9298_v26, %v16331_v23  ;;  %v1568_v27 = vpop.f32.mrb[83].mxu0 }
 0x1cf   : > { %16332 = vst [vmem:[#allocation94_spill] sm:$0xff] %v12645_v22  ;;  %v12647_v43 = vmul.f32 %v1705_v4, %v1673_v33  ;;  %v1644_v55 = vmax.f32 %v1566_v48, 0.0  ;;  %v1569_v12 = vadd.f32 %v1568_v27, %v16333_v30  ;;  %v16336_v48 = vld [vmem:[#allocation92_spill] sm:$0xff] }
 0x1d0   : > { %16330 = vst [vmem:[#allocation93_spill] sm:$0xff] %v12642_v25  ;;  %v1678_v5 = vmax.f32 %v1646_v60, 1e-06  ;;  %v1647_v14 = vmax.f32 %v1577_v52, 0.0  ;;  %9410 = vmatmul.mubr.msk.bf16.gmra.mrb[188].mxu0 %vm682_vm1, %v16334_v42  ;;  %v16337_v52 = vld [vmem:[#allocation101_spill] sm:$0xff] }
 0x1d1   : > { %v1676_v26 = vmax.f32 %v1644_v55, 1e-06  ;;  %v1645_v47 = vmax.f32 %v1569_v12, 0.0  ;;  %9415 = vmatprep.mubr.msk.bf16.mxu0 %vm682_vm1, %v16335_v50  ;;  %v16339_v10 = vpack.c.bf16 %v16337_v52, %v16338_v57 }
 0x1d2   : > { %v1710_v4 = vmul.f32 %v1678_v5, %v1678_v5  ;;  %v1679_v13 = vmax.f32 %v1647_v14, 1e-06 }
 0x1d3   : > { %v1708_v33 = vmul.f32 %v1676_v26, %v1676_v26  ;;  %v1677_v1 = vmax.f32 %v1645_v47, 1e-06  ;;  %v9301_v27 = vpop.f32.mrb[84].mxu0 }
 0x1d4   : > { %v1711_v37 = vmul.f32 %v1679_v13, %v1679_v13  ;;  %v1590_v60 = vadd.f32 %v9301_v27, %v16336_v48  ;;  %9816 = vmatpush3.bf16.xpose.msra.mxu1 %v16339_v10  ;;  %v1581_v25 = vpop.f32.mrb[85].mxu0  ;;  %v1742_v50 = vmul.f32 %v1710_v4, %v1678_v5 }
 0x1d5   : > { %v1709_v42 = vmul.f32 %v1677_v1, %v1677_v1  ;;  %v1582_v55 = vadd.f32 %v1581_v25, %v12152_v34  ;;  %v9302_v12 = vpop.f32.mrb[86].mxu0  ;;  %v1740_v62 = vmul.f32 %v1708_v33, %v1676_v26 }
 0x1d6   : > { %v1743_v14 = vmul.f32 %v1711_v37, %v1679_v13  ;;  %v1650_v30 = vmax.f32 %v1590_v60, 0.0  ;;  %v1593_v47 = vadd.f32 %v9302_v12, %v12170_v2  ;;  %v1584_v23 = vpop.f32.mrb[87].mxu0 }
 0x1d7   : > { %v1741_v27 = vmul.f32 %v1709_v42, %v1677_v1  ;;  %v1648_v48 = vmax.f32 %v1582_v55, 0.0  ;;  %v1585_v57 = vadd.f32 %v1584_v23, %v12158_v35 }
 0x1d8   : > { %v1682_v10 = vmax.f32 %v1650_v30, 1e-06  ;;  %v1651_v52 = vmax.f32 %v1593_v47, 0.0  ;;  %9416 = vmatmul.mubr.msk.bf16.vlgmr.msra.gmra.mrb[192].mxu0 %vm682_vm1, %v11948_v41  ;;  %v9821_v25 = vpack.c.bf16 %v1743_v14, %v1742_v50  ;;  %v16340_v50 = vpack.c.bf16 %v12569_v21, %v12567_v11 }
 0x1d9   : > { %v1680_v34 = vmax.f32 %v1648_v48, 1e-06  ;;  %v1649_v22 = vmax.f32 %v1585_v57, 0.0  ;;  %9448 = vmatpush3.bf16.msra.mxu0 %v3295_v56  ;;  %v9817_v28 = vpack.c.bf16 %v1741_v27, %v1740_v62  ;;  %9419 = vmatprep.mubr.msk.bf16.mxu0 %vm682_vm1, %v11953_v9 }
 0x1da   : > { %v1714_v5 = vmul.f32 %v1682_v10, %v1682_v10  ;;  %v1683_v4 = vmax.f32 %v1651_v52, 1e-06 }
 0x1db   : > { %v1712_v26 = vmul.f32 %v1680_v34, %v1680_v34  ;;  %v1681_v42 = vmax.f32 %v1649_v22, 1e-06  ;;  %8494 = vmatmul.mubr.f32.vlgmr.msra.gmra.mrb[2].mxu1 %v16296_v3  ;;  %v9305_v23 = vpop.f32.mrb[88].mxu0  ;;  %9818 = vmatprep.subr.bf16.mxu1 %v9817_v28 }
 0x1dc   : > { %v1715_v30 = vmul.f32 %v1683_v4, %v1683_v4  ;;  %v1606_v13 = vadd.f32 %v9305_v23, %v12203_v29  ;;  %v1597_v33 = vpop.f32.mrb[89].mxu0  ;;  %9820 = vmatpush3.bf16.xpose.msra.mxu1 %v16340_v50  ;;  %8544 = vmatprep.mubr.f32.mxu1 %v16296_v3  ;;  %v1746_v22 = vmul.f32 %v1714_v5, %v1682_v10 }
 0x1dd   : > { %v1713_v62 = vmul.f32 %v1681_v42, %v1681_v42  ;;  %v1598_v56 = vadd.f32 %v1597_v33, %v12184_v0  ;;  %v9306_v1 = vpop.f32.mrb[90].mxu0  ;;  %9822 = vmatprep.subr.bf16.mxu1 %v9821_v25  ;;  %v1744_v12 = vmul.f32 %v1712_v26, %v1680_v34 }
 0x1de   : > { %v1747_v37 = vmul.f32 %v1715_v30, %v1683_v4  ;;  %v1654_v48 = vmax.f32 %v1606_v13, 0.0  ;;  %v1609_v60 = vadd.f32 %v9306_v1, %v12205_v46  ;;  %v1600_v55 = vpop.f32.mrb[91].mxu0  ;;  %v16341_v13 = vpack.c.bf16 %v12564_v45, %v12562_v32 }
 0x1df   : > { %v1745_v14 = vmul.f32 %v1713_v62, %v1681_v42  ;;  %v1652_v47 = vmax.f32 %v1598_v56, 0.0  ;;  %v1601_v27 = vadd.f32 %v1600_v55, %v12190_v63 }
 0x1e0   : > { %v1686_v11 = vmax.f32 %v1654_v48, 1e-06  ;;  %v1655_v21 = vmax.f32 %v1609_v60, 0.0  ;;  %9420 = vmatmul.mubr.msk.bf16.gmra.mrb[196].mxu0 %vm682_vm1, %v11970_v40  ;;  %v9829_v57 = vpack.c.bf16 %v1747_v37, %v1746_v22 }
 0x1e1   : > { %v1684_v52 = vmax.f32 %v1652_v47, 1e-06  ;;  %v1653_v28 = vmax.f32 %v1601_v27, 0.0  ;;  %v9825_v25 = vpack.c.bf16 %v1745_v14, %v1744_v12  ;;  %9423 = vmatprep.mubr.msk.bf16.mxu0 %vm682_vm1, %v11975_v53 }
 0x1e2   : > { %v1718_v10 = vmul.f32 %v1686_v11, %v1686_v11  ;;  %v1687_v5 = vmax.f32 %v1655_v21, 1e-06 }
 0x1e3   : > { %v1716_v4 = vmul.f32 %v1684_v52, %v1684_v52  ;;  %v1685_v34 = vmax.f32 %v1653_v28, 1e-06  ;;  %v9309_v26 = vpop.f32.mrb[92].mxu0 }
 0x1e4   : > { %v1719_v42 = vmul.f32 %v1687_v5, %v1687_v5  ;;  %v1622_v23 = vadd.f32 %v9309_v26, %v12251_v44  ;;  %v1613_v30 = vpop.f32.mrb[93].mxu0  ;;  %9824 = vmatpush3.bf16.xpose.msra.mxu1 %v16341_v13  ;;  %v12689_v56 = vmul.f32 %v1718_v10, %v1686_v11  ;;  %v16342_v26 = vpack.c.bf16 %v12595_v24, %v12593_v15 }
 0x1e5   : > { %v1717_v33 = vmul.f32 %v1685_v34, %v1685_v34  ;;  %v1614_v50 = vadd.f32 %v1613_v30, %v12219_v17  ;;  %v9310_v62 = vpop.f32.mrb[94].mxu0  ;;  %9826 = vmatprep.subr.bf16.mxu1 %v9825_v25  ;;  %v1748_v60 = vmul.f32 %v1716_v4, %v1684_v52 }
 0x1e6   : > { %v12691_v1 = vmul.f32 %v1719_v42, %v1687_v5  ;;  %v1658_v22 = vmax.f32 %v1622_v23, 0.0  ;;  %v1625_v37 = vadd.f32 %v9310_v62, %v12255_v18  ;;  %v1616_v48 = vpop.f32.mrb[95].mxu0 }
 0x1e7   : > { %v1749_v55 = vmul.f32 %v1717_v33, %v1685_v34  ;;  %v1656_v12 = vmax.f32 %v1614_v50, 0.0  ;;  %v1617_v14 = vadd.f32 %v1616_v48, %v12225_v61 }
 0x1e8   : > { %v1690_v32 = vmax.f32 %v1658_v22, 1e-06  ;;  %v1659_v45 = vmax.f32 %v1625_v37, 0.0  ;;  %9424 = vmatmul.mubr.msk.bf16.gmra.mrb[200].mxu0 %vm682_vm1, %v11986_v8  ;;  %v9837_v47 = vpack.c.bf16 %v12691_v1, %v12689_v56  ;;  %v16356_v56 = vld [vmem:[#allocation105_spill] sm:$0xff] }
 0x1e9   : > { %v1688_v27 = vmax.f32 %v1656_v12, 1e-06  ;;  %v1657_v11 = vmax.f32 %v1617_v14, 0.0  ;;  %9427 = vmatprep.mubr.msk.bf16.mxu0 %vm682_vm1, %v11991_v54  ;;  %v9833_v21 = vpack.c.bf16 %v1749_v55, %v1748_v60 }
 0x1ea   : > { %v1722_v28 = vmul.f32 %v1690_v32, %v1690_v32  ;;  %v1691_v52 = vmax.f32 %v1659_v45, 1e-06 }
 0x1eb   : > { %v1720_v25 = vmul.f32 %v1688_v27, %v1688_v27  ;;  %v1689_v10 = vmax.f32 %v1657_v11, 1e-06  ;;  %v9315_v5 = vpop.f32.mrb[96].mxu0 }
 0x1ec   : > { %v1723_v4 = vmul.f32 %v1691_v52, %v1691_v52  ;;  %v1876_v34 = vadd.f32 %v9315_v5, %v12148_v38  ;;  %9828 = vmatpush3.bf16.xpose.msra.mxu1 %v16342_v26  ;;  %v1867_v42 = vpop.f32.mrb[97].mxu0  ;;  %v12706_v33 = vmul.f32 %v1722_v28, %v1690_v32 }
 0x1ed   : > { %v1721_v23 = vmul.f32 %v1689_v10, %v1689_v10  ;;  %v1868_v30 = vadd.f32 %v1867_v42, %v12130_v6  ;;  %9830 = vmatprep.subr.bf16.mxu1 %v9829_v57  ;;  %v9316_v13 = vpop.f32.mrb[98].mxu0  ;;  %v12711_v48 = vmul.f32 %v1720_v25, %v1688_v27  ;;  %v16344_v42 = vld [vmem:[#allocation90_spill] sm:$0xff] }
 0x1ee   : > { %v12708_v50 = vmul.f32 %v1723_v4, %v1691_v52  ;;  %v1996_v62 = vmax.f32 %v1876_v34, 0.0  ;;  %v1879_v22 = vadd.f32 %v9316_v13, %v12150_v39  ;;  %v1870_v37 = vpop.f32.mrb[99].mxu0  ;;  %v16343_v4 = vpack.c.bf16 %v12590_v19, %v12588_v31  ;;  %v16345_v19 = vld [vmem:[#allocation91_spill] sm:$0xff]  ;;  %v16350_v57 = vld [vmem:[#allocation98_spill] sm:$0xff] }
 0x1ef   : > { %v12713_v60 = vmul.f32 %v1721_v23, %v1689_v10  ;;  %v1994_v15 = vmax.f32 %v1868_v30, 0.0  ;;  %v1871_v24 = vadd.f32 %v1870_v37, %v12134_v51 }
 0x1f0   : > { %v2028_v55 = vmax.f32 %v1996_v62, 1e-06  ;;  %v1997_v12 = vmax.f32 %v1879_v22, 0.0  ;;  %9428 = vmatmul.mubr.msk.bf16.gmra.mrb[204].mxu0 %vm682_vm1, %v16257_v59 }
 0x1f1   : > { %v2026_v14 = vmax.f32 %v1994_v15, 1e-06  ;;  %v1995_v32 = vmax.f32 %v1871_v24, 0.0  ;;  %9431 = vmatprep.mubr.msk.bf16.mxu0 %vm682_vm1, %v16300_v49 }
 0x1f2   : > { %v2060_v27 = vmul.f32 %v2028_v55, %v2028_v55  ;;  %v2029_v11 = vmax.f32 %v1997_v12, 1e-06 }
 0x1f3   : > { %v2058_v28 = vmul.f32 %v2026_v14, %v2026_v14  ;;  %v2027_v52 = vmax.f32 %v1995_v32, 1e-06  ;;  %v9319_v25 = vpop.f32.mrb[100].mxu0 }
 0x1f4   : > { %v2061_v10 = vmul.f32 %v2029_v11, %v2029_v11  ;;  %v1892_v5 = vadd.f32 %v9319_v25, %v16301_v16  ;;  %9832 = vmatpush3.bf16.xpose.msra.mxu1 %v16343_v4  ;;  %v1883_v34 = vpop.f32.mrb[101].mxu0  ;;  %v12729_v13 = vmul.f32 %v2060_v27, %v2028_v55  ;;  %v16346_v55 = vld [vmem:[#allocation78_spill] sm:$0xff] }
 0x1f5   : > { %v2059_v26 = vmul.f32 %v2027_v52, %v2027_v52  ;;  %v1884_v23 = vadd.f32 %v1883_v34, %v16344_v42  ;;  %9834 = vmatprep.subr.bf16.mxu1 %v9833_v21  ;;  %v9320_v30 = vpop.f32.mrb[102].mxu0  ;;  %v12734_v24 = vmul.f32 %v2058_v28, %v2026_v14  ;;  %v16347_v14 = vld [vmem:[#allocation79_spill] sm:$0xff] }
 0x1f6   : > { %v12731_v62 = vmul.f32 %v2061_v10, %v2029_v11  ;;  %v2000_v22 = vmax.f32 %v1892_v5, 0.0  ;;  %v1895_v37 = vadd.f32 %v9320_v30, %v16304_v7  ;;  %v1886_v15 = vpop.f32.mrb[103].mxu0  ;;  %v16348_v30 = vld [vmem:[#allocation97_spill] sm:$0xff] }
 0x1f7   : > { %v12736_v12 = vmul.f32 %v2059_v26, %v2027_v52  ;;  %v1998_v31 = vmax.f32 %v1884_v23, 0.0  ;;  %v1887_v32 = vadd.f32 %v1886_v15, %v16345_v19 }
 0x1f8   : > { %v2032_v21 = vmax.f32 %v2000_v22, 1e-06  ;;  %v2001_v4 = vmax.f32 %v1895_v37, 0.0  ;;  %9432 = vmatmul.mubr.msk.bf16.gmra.mrb[208].mxu0 %vm682_vm1, %v16346_v55  ;;  %v16349_v37 = vpack.c.bf16 %v12621_v20, %v12619_v36 }
 0x1f9   : > { %v2030_v11 = vmax.f32 %v1998_v31, 1e-06  ;;  %v1999_v10 = vmax.f32 %v1887_v32, 0.0  ;;  %9435 = vmatprep.mubr.msk.bf16.mxu0 %vm682_vm1, %v16347_v14  ;;  %v16362_v14 = vld [vmem:[#allocation103_spill] sm:$0xff] }
 0x1fa   : > { %v2064_v28 = vmul.f32 %v2032_v21, %v2032_v21  ;;  %v2033_v52 = vmax.f32 %v2001_v4, 1e-06 }
 0x1fb   : > { %v2062_v5 = vmul.f32 %v2030_v11, %v2030_v11  ;;  %v2031_v34 = vmax.f32 %v1999_v10, 1e-06  ;;  %v9323_v26 = vpop.f32.mrb[104].mxu0 }
 0x1fc   : > { %v2065_v23 = vmul.f32 %v2033_v52, %v2033_v52  ;;  %v1908_v22 = vadd.f32 %v9323_v26, %v16348_v30  ;;  %9836 = vmatpush3.bf16.xpose.msra.mxu1 %v16349_v37  ;;  %v1899_v15 = vpop.f32.mrb[105].mxu0  ;;  %v12755_v4 = vmul.f32 %v2064_v28, %v2032_v21  ;;  %v16351_v37 = vld [vmem:[#allocation96_spill] sm:$0xff]  ;;  %v16358_v28 = vld [vmem:[#allocation99_spill] sm:$0xff] }
 0x1fd   : > { %v2063_v25 = vmul.f32 %v2031_v34, %v2031_v34  ;;  %v1900_v31 = vadd.f32 %v1899_v15, %v16269_v58  ;;  %9838 = vmatprep.subr.bf16.mxu1 %v9837_v47  ;;  %v9324_v32 = vpop.f32.mrb[106].mxu0  ;;  %v12760_v30 = vmul.f32 %v2062_v5, %v2030_v11  ;;  %v16352_v21 = vld [vmem:[#allocation80_spill] sm:$0xff]  ;;  %v16353_v11 = vld [vmem:[#allocation81_spill] sm:$0xff] }
 0x1fe   : > { %v12757_v10 = vmul.f32 %v2065_v23, %v2033_v52  ;;  %v2004_v27 = vmax.f32 %v1908_v22, 0.0  ;;  %v1911_v26 = vadd.f32 %v9324_v32, %v16350_v57  ;;  %v1902_v45 = vpop.f32.mrb[107].mxu0  ;;  %v16354_v32 = vld [vmem:[#allocation102_spill] sm:$0xff] }
 0x1ff   : > { %v12762_v36 = vmul.f32 %v2063_v25, %v2031_v34  ;;  %v2002_v20 = vmax.f32 %v1900_v31, 0.0  ;;  %v1903_v15 = vadd.f32 %v1902_v45, %v16351_v37 }
 0x200   : > { %v2036_v1 = vmax.f32 %v2004_v27, 1e-06  ;;  %v2005_v47 = vmax.f32 %v1911_v26, 0.0  ;;  %9436 = vmatmul.mubr.msk.bf16.gmra.mrb[212].mxu0 %vm682_vm1, %v16352_v21  ;;  %v16355_v26 = vld [vmem:[#allocation104_spill] sm:$0xff] }
 0x201   : > { %v2034_v52 = vmax.f32 %v2002_v20, 1e-06  ;;  %v2003_v23 = vmax.f32 %v1903_v15, 0.0  ;;  %9439 = vmatprep.mubr.msk.bf16.mxu0 %vm682_vm1, %v16353_v11  ;;  %v16357_v37 = vpack.c.bf16 %v16355_v26, %v16356_v56  ;;  %v16359_v15 = vpack.c.bf16 %v12713_v60, %v12711_v48  ;;  %v16363_v26 = vld [vmem:[#allocation100_spill] sm:$0xff] }
 0x202   : > { %v2068_v25 = vmul.f32 %v2036_v1, %v2036_v1  ;;  %v2037_v5 = vmax.f32 %v2005_v47, 1e-06 }
 0x203   : > { %v2066_v34 = vmul.f32 %v2034_v52, %v2034_v52  ;;  %v2035_v45 = vmax.f32 %v2003_v23, 1e-06  ;;  %v9327_v22 = vpop.f32.mrb[108].mxu0 }
 0x204   : > { %v2069_v31 = vmul.f32 %v2037_v5, %v2037_v5  ;;  %v1924_v27 = vadd.f32 %v9327_v22, %v16354_v32  ;;  %9840 = vmatpush3.bf16.xpose.msra.mxu1 %v16357_v37  ;;  %v1915_v21 = vpop.f32.mrb[109].mxu0  ;;  %v12781_v47 = vmul.f32 %v2068_v25, %v2036_v1  ;;  %v16364_v1 = vld [vmem:[#allocation82_spill] sm:$0xff]  ;;  %v16369_v25 = vld [vmem:[#allocation85_spill] sm:$0xff] }
 0x205   : > { %v2067_v57 = vmul.f32 %v2035_v45, %v2035_v45  ;;  %v1916_v20 = vadd.f32 %v1915_v21, %v16358_v28  ;;  %9842 = vmatprep.subr.bf16.mxu1 %v16359_v15  ;;  %v9328_v11 = vpop.f32.mrb[110].mxu0  ;;  %v12786_v55 = vmul.f32 %v2066_v34, %v2034_v52  ;;  %v16365_v52 = vld [vmem:[#allocation83_spill] sm:$0xff]  ;;  %v16373_v28 = vld [vmem:[#allocation88_spill] sm:$0xff] }
 0x206   : > { %16360 = vst [vmem:[#allocation107_spill] sm:$0xff] %v12781_v47  ;;  %v12783_v23 = vmul.f32 %v2069_v31, %v2037_v5  ;;  %v2008_v58 = vmax.f32 %v1924_v27, 0.0  ;;  %v1927_v22 = vadd.f32 %v9328_v11, %v16362_v14  ;;  %v1918_v32 = vpop.f32.mrb[111].mxu0 }
 0x207   : > { %v12788_v37 = vmul.f32 %v2067_v57, %v2035_v45  ;;  %v2006_v56 = vmax.f32 %v1916_v20, 0.0  ;;  %v1919_v21 = vadd.f32 %v1918_v32, %v16363_v26  ;;  %v16366_v20 = vld [vmem:[#allocation87_spill] sm:$0xff] }
 0x208   : > { %16361 = vst [vmem:[#allocation106_spill] sm:$0xff] %v12783_v23  ;;  %v2040_v60 = vmax.f32 %v2008_v58, 1e-06  ;;  %v2009_v15 = vmax.f32 %v1927_v22, 0.0  ;;  %9440 = vmatmul.mubr.msk.bf16.gmra.mrb[216].mxu0 %vm682_vm1, %v16364_v1  ;;  %v16367_v22 = vld [vmem:[#allocation94_spill] sm:$0xff] }
 0x209   : > { %v2038_v11 = vmax.f32 %v2006_v56, 1e-06  ;;  %v2007_v5 = vmax.f32 %v1919_v21, 0.0  ;;  %9443 = vmatprep.mubr.msk.bf16.mxu0 %vm682_vm1, %v16365_v52  ;;  %v16368_v48 = vpack.c.bf16 %v12647_v43, %v16367_v22  ;;  %v16370_v21 = vpack.c.bf16 %v12708_v50, %v12706_v33  ;;  %v16376_v22 = vld [vmem:[#allocation86_spill] sm:$0xff]  ;;  %v16381_v33 = vld [vmem:[#allocation77_spill] sm:$0xff] }
 0x20a   : > { %v2072_v57 = vmul.f32 %v2040_v60, %v2040_v60  ;;  %v2041_v34 = vmax.f32 %v2009_v15, 1e-06 }
 0x20b   : > { %v2070_v45 = vmul.f32 %v2038_v11, %v2038_v11  ;;  %v2039_v31 = vmax.f32 %v2007_v5, 1e-06  ;;  %v9331_v32 = vpop.f32.mrb[112].mxu0 }
 0x20c   : > { %v2073_v27 = vmul.f32 %v2041_v34, %v2041_v34  ;;  %v1940_v58 = vadd.f32 %v9331_v32, %v16366_v20  ;;  %9844 = vmatpush3.bf16.xpose.msra.mxu1 %v16368_v48  ;;  %v1931_v1 = vpop.f32.mrb[113].mxu0  ;;  %v12807_v15 = vmul.f32 %v2072_v57, %v2040_v60  ;;  %v16377_v60 = vld [vmem:[#allocation84_spill] sm:$0xff]  ;;  %v16383_v57 = vld [vmem:[#allocation89_spill] sm:$0xff] }
 0x20d   : > { %v2071_v26 = vmul.f32 %v2039_v31, %v2039_v31  ;;  %v1932_v56 = vadd.f32 %v1931_v1, %v16369_v25  ;;  %9846 = vmatprep.subr.bf16.mxu1 %v16370_v21  ;;  %v9332_v52 = vpop.f32.mrb[114].mxu0  ;;  %v12812_v47 = vmul.f32 %v2070_v45, %v2038_v11  ;;  %v16378_v11 = vld [vmem:[#allocation75_spill] sm:$0xff] }
 0x20e   : > { %16371 = vst [vmem:[#allocation101_spill] sm:$0xff] %v12807_v15  ;;  %v12809_v5 = vmul.f32 %v2073_v27, %v2041_v34  ;;  %v2012_v14 = vmax.f32 %v1940_v58, 0.0  ;;  %v1943_v32 = vadd.f32 %v9332_v52, %v16373_v28  ;;  %v1934_v20 = vpop.f32.mrb[115].mxu0 }
 0x20f   : > { %16374 = vst [vmem:[#allocation90_spill] sm:$0xff] %v12812_v47  ;;  %v12814_v43 = vmul.f32 %v2071_v26, %v2039_v31  ;;  %v2010_v48 = vmax.f32 %v1932_v56, 0.0  ;;  %v1935_v1 = vadd.f32 %v1934_v20, %v16376_v22  ;;  %v16379_v56 = vld [vmem:[#allocation92_spill] sm:$0xff] }
 0x210   : > { %16372 = vst [vmem:[#allocation76_spill] sm:$0xff] %v12809_v5  ;;  %v2044_v50 = vmax.f32 %v2012_v14, 1e-06  ;;  %v2013_v21 = vmax.f32 %v1943_v32, 0.0  ;;  %9444 = vmatmul.mubr.msk.bf16.gmra.mrb[220].mxu0 %vm682_vm1, %v16377_v60  ;;  %v16380_v32 = vld [vmem:[#allocation93_spill] sm:$0xff] }
 0x211   : > { %16375 = vst [vmem:[#allocation91_spill] sm:$0xff] %v12814_v43  ;;  %v2042_v52 = vmax.f32 %v2010_v48, 1e-06  ;;  %v2011_v34 = vmax.f32 %v1935_v1, 0.0  ;;  %9449 = vmatprep.mubr.msk.bf16.mxu0 %vm682_vm1, %v16378_v11  ;;  %v16382_v15 = vpack.c.bf16 %v16380_v32, %v16381_v33 }
 0x212   : > { %v2076_v26 = vmul.f32 %v2044_v50, %v2044_v50  ;;  %v2045_v45 = vmax.f32 %v2013_v21, 1e-06 }
 0x213   : > { %v2074_v31 = vmul.f32 %v2042_v52, %v2042_v52  ;;  %v2043_v27 = vmax.f32 %v2011_v34, 1e-06  ;;  %v9335_v20 = vpop.f32.mrb[116].mxu0 }
 0x214   : > { %v2077_v58 = vmul.f32 %v2045_v45, %v2045_v45  ;;  %v1956_v14 = vadd.f32 %v9335_v20, %v16379_v56  ;;  %9848 = vmatpush3.bf16.xpose.msra.mxu1 %v16382_v15  ;;  %v1947_v5 = vpop.f32.mrb[117].mxu0  ;;  %v2108_v22 = vmul.f32 %v2076_v26, %v2044_v50 }
 0x215   : > { %v2075_v60 = vmul.f32 %v2043_v27, %v2043_v27  ;;  %v1948_v48 = vadd.f32 %v1947_v5, %v16383_v57  ;;  %v9336_v1 = vpop.f32.mrb[118].mxu0  ;;  %v2106_v34 = vmul.f32 %v2074_v31, %v2042_v52 }
 0x216   : > { %v2109_v28 = vmul.f32 %v2077_v58, %v2045_v45  ;;  %v2016_v11 = vmax.f32 %v1956_v14, 0.0  ;;  %v1959_v21 = vadd.f32 %v9336_v1, %v12170_v2  ;;  %v1950_v25 = vpop.f32.mrb[119].mxu0 }
 0x217   : > { %v2107_v47 = vmul.f32 %v2075_v60, %v2043_v27  ;;  %v2014_v43 = vmax.f32 %v1948_v48, 0.0  ;;  %v1951_v20 = vadd.f32 %v1950_v25, %v12158_v35 }
 0x218   : > { %v2048_v56 = vmax.f32 %v2016_v11, 1e-06  ;;  %v2017_v23 = vmax.f32 %v1959_v21, 0.0  ;;  %9450 = vmatmul.mubr.msk.bf16.vlgmr.msra.gmra.mrb[224].mxu0 %vm682_vm1, %v11948_v41  ;;  %v9853_v15 = vpack.c.bf16 %v2109_v28, %v2108_v22  ;;  %v16384_v41 = vpack.c.bf16 %v12736_v12, %v12734_v24 }
 0x219   : > { %v2046_v33 = vmax.f32 %v2014_v43, 1e-06  ;;  %v2015_v5 = vmax.f32 %v1951_v20, 0.0  ;;  %v9849_v32 = vpack.c.bf16 %v2107_v47, %v2106_v34  ;;  %9453 = vmatprep.mubr.msk.bf16.mxu0 %vm682_vm1, %v11953_v9 }
 0x21a   : > { %v2080_v50 = vmul.f32 %v2048_v56, %v2048_v56  ;;  %v2049_v26 = vmax.f32 %v2017_v23, 1e-06 }
 0x21b   : > { %v2078_v45 = vmul.f32 %v2046_v33, %v2046_v33  ;;  %v2047_v52 = vmax.f32 %v2015_v5, 1e-06  ;;  %8545 = vmatmul.mubr.f32.vlgmr.msra.gmra.mrb[4].mxu1 %v16296_v3  ;;  %v9339_v60 = vpop.f32.mrb[120].mxu0  ;;  %9850 = vmatprep.subr.bf16.mxu1 %v9849_v32 }
 0x21c   : > { %v2081_v25 = vmul.f32 %v2049_v26, %v2049_v26  ;;  %v1972_v31 = vadd.f32 %v9339_v60, %v12203_v29  ;;  %v1963_v27 = vpop.f32.mrb[121].mxu0  ;;  %9852 = vmatpush3.bf16.xpose.msra.mxu1 %v16384_v41  ;;  %8595 = vmatprep.mubr.f32.mxu1 %v16296_v3  ;;  %v2112_v23 = vmul.f32 %v2080_v50, %v2048_v56 }
 0x21d   : > { %v2079_v28 = vmul.f32 %v2047_v52, %v2047_v52  ;;  %v1964_v9 = vadd.f32 %v1963_v27, %v12184_v0  ;;  %v9340_v47 = vpop.f32.mrb[122].mxu0  ;;  %9854 = vmatprep.subr.bf16.mxu1 %v9853_v15  ;;  %v2110_v48 = vmul.f32 %v2078_v45, %v2046_v33 }
 0x21e   : > { %v2113_v43 = vmul.f32 %v2081_v25, %v2049_v26  ;;  %v2020_v22 = vmax.f32 %v1972_v31, 0.0  ;;  %v1975_v58 = vadd.f32 %v9340_v47, %v12205_v46  ;;  %v1966_v14 = vpop.f32.mrb[123].mxu0  ;;  %v16385_v25 = vpack.c.bf16 %v12731_v62, %v12729_v13 }
 0x21f   : > { %v2111_v1 = vmul.f32 %v2079_v28, %v2047_v52  ;;  %v2018_v11 = vmax.f32 %v1964_v9, 0.0  ;;  %v1967_v21 = vadd.f32 %v1966_v14, %v12190_v63 }
 0x220   : > { %v2052_v24 = vmax.f32 %v2020_v22, 1e-06  ;;  %v2021_v12 = vmax.f32 %v1975_v58, 0.0  ;;  %9454 = vmatmul.mubr.msk.bf16.gmra.mrb[228].mxu0 %vm682_vm1, %v11970_v40  ;;  %v9861_v34 = vpack.c.bf16 %v2113_v43, %v2112_v23 }
 0x221   : > { %v2050_v20 = vmax.f32 %v2018_v11, 1e-06  ;;  %v2019_v5 = vmax.f32 %v1967_v21, 0.0  ;;  %v9857_v15 = vpack.c.bf16 %v2111_v1, %v2110_v48  ;;  %9457 = vmatprep.mubr.msk.bf16.mxu0 %vm682_vm1, %v11975_v53 }
 0x222   : > { %v2084_v56 = vmul.f32 %v2052_v24, %v2052_v24  ;;  %v2053_v32 = vmax.f32 %v2021_v12, 1e-06 }
 0x223   : > { %v2082_v50 = vmul.f32 %v2050_v20, %v2050_v20  ;;  %v2051_v33 = vmax.f32 %v2019_v5, 1e-06  ;;  %v9343_v26 = vpop.f32.mrb[124].mxu0 }
 0x224   : > { %v2085_v45 = vmul.f32 %v2053_v32, %v2053_v32  ;;  %v1988_v52 = vadd.f32 %v9343_v26, %v12251_v44  ;;  %v1979_v60 = vpop.f32.mrb[125].mxu0  ;;  %9856 = vmatpush3.bf16.xpose.msra.mxu1 %v16385_v25  ;;  %v12854_v41 = vmul.f32 %v2084_v56, %v2052_v24 }
 0x225   : > { %v2083_v40 = vmul.f32 %v2051_v33, %v2051_v33  ;;  %v1980_v31 = vadd.f32 %v1979_v60, %v12219_v17  ;;  %v9344_v27 = vpop.f32.mrb[126].mxu0  ;;  %9858 = vmatprep.subr.bf16.mxu1 %v9857_v15  ;;  %v2114_v23 = vmul.f32 %v2082_v50, %v2050_v20 }
 0x226   : > { %v12856_v53 = vmul.f32 %v2085_v45, %v2053_v32  ;;  %v2024_v28 = vmax.f32 %v1988_v52, 0.0  ;;  %v1991_v9 = vadd.f32 %v9344_v27, %v12255_v18  ;;  %v1982_v47 = vpop.f32.mrb[127].mxu0 }
 0x227   : > { %v2115_v43 = vmul.f32 %v2083_v40, %v2051_v33  ;;  %v2022_v22 = vmax.f32 %v1980_v31, 0.0  ;;  %v1983_v58 = vadd.f32 %v1982_v47, %v12225_v61 }
 0x228   : > { %v2056_v13 = vmax.f32 %v2024_v28, 1e-06  ;;  %v2025_v62 = vmax.f32 %v1991_v9, 0.0  ;;  %9458 = vmatmul.mubr.msk.bf16.gmra.mrb[232].mxu0 %vm682_vm1, %v11986_v8  ;;  %v9869_v14 = vpack.c.bf16 %v12856_v53, %v12854_v41  ;;  %v16386_v8 = vpack.c.bf16 %v12762_v36, %v12760_v30 }
 0x229   : > { %v2054_v48 = vmax.f32 %v2022_v22, 1e-06  ;;  %v2023_v1 = vmax.f32 %v1983_v58, 0.0  ;;  %9461 = vmatprep.mubr.msk.bf16.mxu0 %vm682_vm1, %v11991_v54  ;;  %v9865_v11 = vpack.c.bf16 %v2115_v43, %v2114_v23 }
 0x22a   : > { %v2088_v21 = vmul.f32 %v2056_v13, %v2056_v13  ;;  %v2057_v24 = vmax.f32 %v2025_v62, 1e-06 }
 0x22b   : > { %v2086_v12 = vmul.f32 %v2054_v48, %v2054_v48  ;;  %v2055_v20 = vmax.f32 %v2023_v1, 1e-06  ;;  %v9349_v5 = vpop.f32.mrb[128].mxu0 }
 0x22c   : > { %v2089_v15 = vmul.f32 %v2057_v24, %v2057_v24  ;;  %v2242_v56 = vadd.f32 %v9349_v5, %v12148_v38  ;;  %9860 = vmatpush3.bf16.xpose.msra.mxu1 %v16386_v8  ;;  %v2233_v32 = vpop.f32.mrb[129].mxu0  ;;  %v12871_v54 = vmul.f32 %v2088_v21, %v2056_v13 }
 0x22d   : > { %v2087_v50 = vmul.f32 %v2055_v20, %v2055_v20  ;;  %v2234_v33 = vadd.f32 %v2233_v32, %v12130_v6  ;;  %9862 = vmatprep.subr.bf16.mxu1 %v9861_v34  ;;  %v9350_v26 = vpop.f32.mrb[130].mxu0  ;;  %v12876_v40 = vmul.f32 %v2086_v12, %v2054_v48 }
 0x22e   : > { %v12873_v45 = vmul.f32 %v2089_v15, %v2057_v24  ;;  %v2362_v52 = vmax.f32 %v2242_v56, 0.0  ;;  %v2245_v60 = vadd.f32 %v9350_v26, %v12150_v39  ;;  %v2236_v25 = vpop.f32.mrb[131].mxu0 }
 0x22f   : > { %v12878_v31 = vmul.f32 %v2087_v50, %v2055_v20  ;;  %v2360_v30 = vmax.f32 %v2234_v33, 0.0  ;;  %v2237_v36 = vadd.f32 %v2236_v25, %v12134_v51 }
 0x230   : > { %v2394_v27 = vmax.f32 %v2362_v52, 1e-06  ;;  %v2363_v28 = vmax.f32 %v2245_v60, 0.0  ;;  %9462 = vmatmul.mubr.msk.bf16.gmra.mrb[236].mxu0 %vm682_vm1, %v16257_v59  ;;  %v9877_v34 = vpack.c.bf16 %v12873_v45, %v12871_v54  ;;  %v16387_v59 = vpack.c.bf16 %v12757_v10, %v12755_v4  ;;  %v16388_v52 = vld [vmem:[#allocation78_spill] sm:$0xff]  ;;  %v16421_v54 = vld [vmem:[#allocation101_spill] sm:$0xff] }
 0x231   : > { %v2392_v9 = vmax.f32 %v2360_v30, 1e-06  ;;  %v2361_v47 = vmax.f32 %v2237_v36, 0.0  ;;  %9465 = vmatprep.mubr.msk.bf16.mxu0 %vm682_vm1, %v16300_v49  ;;  %v9873_v23 = vpack.c.bf16 %v12878_v31, %v12876_v40  ;;  %v16389_v36 = vld [vmem:[#allocation79_spill] sm:$0xff]  ;;  %v16409_v40 = vld [vmem:[#allocation90_spill] sm:$0xff] }
 0x232   : > { %v2426_v43 = vmul.f32 %v2394_v27, %v2394_v27  ;;  %v2395_v22 = vmax.f32 %v2363_v28, 1e-06 }
 0x233   : > { %v2424_v58 = vmul.f32 %v2392_v9, %v2392_v9  ;;  %v2393_v13 = vmax.f32 %v2361_v47, 1e-06  ;;  %v9353_v62 = vpop.f32.mrb[132].mxu0 }
 0x234   : > { %v2427_v48 = vmul.f32 %v2395_v22, %v2395_v22  ;;  %v2258_v1 = vadd.f32 %v9353_v62, %v16301_v16  ;;  %9864 = vmatpush3.bf16.xpose.msra.mxu1 %v16387_v59  ;;  %v2249_v21 = vpop.f32.mrb[133].mxu0  ;;  %v12894_v20 = vmul.f32 %v2426_v43, %v2394_v27  ;;  %v16391_v62 = vpack.c.bf16 %v12788_v37, %v12786_v55  ;;  %v16392_v59 = vld [vmem:[#allocation95_spill] sm:$0xff] }
 0x235   : > { %v2425_v24 = vmul.f32 %v2393_v13, %v2393_v13  ;;  %v2250_v12 = vadd.f32 %v2249_v21, %v16344_v42  ;;  %9866 = vmatprep.subr.bf16.mxu1 %v9865_v11  ;;  %v9354_v49 = vpop.f32.mrb[134].mxu0  ;;  %v12899_v32 = vmul.f32 %v2424_v58, %v2392_v9  ;;  %v16390_v58 = vld [vmem:[#allocation97_spill] sm:$0xff] }
 0x236   : > { %v12896_v5 = vmul.f32 %v2427_v48, %v2395_v22  ;;  %v2366_v15 = vmax.f32 %v2258_v1, 0.0  ;;  %v2261_v56 = vadd.f32 %v9354_v49, %v16304_v7  ;;  %v2252_v8 = vpop.f32.mrb[135].mxu0 }
 0x237   : > { %v12901_v50 = vmul.f32 %v2425_v24, %v2393_v13  ;;  %v2364_v4 = vmax.f32 %v2250_v12, 0.0  ;;  %v2253_v10 = vadd.f32 %v2252_v8, %v16345_v19 }
 0x238   : > { %v2398_v11 = vmax.f32 %v2366_v15, 1e-06  ;;  %v2367_v26 = vmax.f32 %v2261_v56, 0.0  ;;  %9466 = vmatmul.mubr.msk.bf16.gmra.mrb[240].mxu0 %vm682_vm1, %v16388_v52  ;;  %v16393_v56 = vld [vmem:[#allocation98_spill] sm:$0xff] }
 0x239   : > { %v2396_v25 = vmax.f32 %v2364_v4, 1e-06  ;;  %v2365_v30 = vmax.f32 %v2253_v10, 0.0  ;;  %9469 = vmatprep.mubr.msk.bf16.mxu0 %vm682_vm1, %v16389_v36 }
 0x23a   : > { %v2430_v27 = vmul.f32 %v2398_v11, %v2398_v11  ;;  %v2399_v28 = vmax.f32 %v2367_v26, 1e-06  ;;  %v16394_v26 = vld [vmem:[#allocation96_spill] sm:$0xff] }
 0x23b   : > { %v2428_v9 = vmul.f32 %v2396_v25, %v2396_v25  ;;  %v2397_v47 = vmax.f32 %v2365_v30, 1e-06  ;;  %v9357_v43 = vpop.f32.mrb[136].mxu0 }
 0x23c   : > { %v2431_v22 = vmul.f32 %v2399_v28, %v2399_v28  ;;  %v2274_v13 = vadd.f32 %v9357_v43, %v16390_v58  ;;  %9868 = vmatpush3.bf16.xpose.msra.mxu1 %v16391_v62  ;;  %v2265_v48 = vpop.f32.mrb[137].mxu0  ;;  %v12920_v12 = vmul.f32 %v2430_v27, %v2398_v11  ;;  %v16395_v11 = vld [vmem:[#allocation80_spill] sm:$0xff]  ;;  %v16397_v62 = vld [vmem:[#allocation102_spill] sm:$0xff] }
 0x23d   : > { %v2429_v1 = vmul.f32 %v2397_v47, %v2397_v47  ;;  %v2266_v21 = vadd.f32 %v2265_v48, %v16392_v59  ;;  %9870 = vmatprep.subr.bf16.mxu1 %v9869_v14  ;;  %v9358_v24 = vpop.f32.mrb[138].mxu0  ;;  %v12925_v10 = vmul.f32 %v2428_v9, %v2396_v25  ;;  %v16396_v25 = vld [vmem:[#allocation81_spill] sm:$0xff] }
 0x23e   : > { %v12922_v49 = vmul.f32 %v2431_v22, %v2399_v28  ;;  %v2370_v15 = vmax.f32 %v2274_v13, 0.0  ;;  %v2277_v8 = vadd.f32 %v9358_v24, %v16393_v56  ;;  %v2268_v4 = vpop.f32.mrb[139].mxu0 }
 0x23f   : > { %v12927_v55 = vmul.f32 %v2429_v1, %v2397_v47  ;;  %v2368_v37 = vmax.f32 %v2266_v21, 0.0  ;;  %v2269_v52 = vadd.f32 %v2268_v4, %v16394_v26  ;;  %v16398_v1 = vld [vmem:[#allocation106_spill] sm:$0xff]  ;;  %v16399_v21 = vld [vmem:[#allocation107_spill] sm:$0xff] }
 0x240   : > { %v2402_v53 = vmax.f32 %v2370_v15, 1e-06  ;;  %v2371_v14 = vmax.f32 %v2277_v8, 0.0  ;;  %9470 = vmatmul.mubr.msk.bf16.gmra.mrb[244].mxu0 %vm682_vm1, %v16395_v11  ;;  %v16400_v24 = vpack.c.bf16 %v16398_v1, %v16399_v21  ;;  %v16401_v4 = vld [vmem:[#allocation99_spill] sm:$0xff] }
 0x241   : > { %v2400_v36 = vmax.f32 %v2368_v37, 1e-06  ;;  %v2369_v27 = vmax.f32 %v2269_v52, 0.0  ;;  %9473 = vmatprep.mubr.msk.bf16.mxu0 %vm682_vm1, %v16396_v25  ;;  %v16403_v25 = vld [vmem:[#allocation103_spill] sm:$0xff] }
 0x242   : > { %v2434_v28 = vmul.f32 %v2402_v53, %v2402_v53  ;;  %v2403_v9 = vmax.f32 %v2371_v14, 1e-06 }
 0x243   : > { %v2432_v47 = vmul.f32 %v2400_v36, %v2400_v36  ;;  %v2401_v43 = vmax.f32 %v2369_v27, 1e-06  ;;  %v9361_v22 = vpop.f32.mrb[140].mxu0 }
 0x244   : > { %v2435_v13 = vmul.f32 %v2403_v9, %v2403_v9  ;;  %v2290_v48 = vadd.f32 %v9361_v22, %v16397_v62  ;;  %9872 = vmatpush3.bf16.xpose.msra.mxu1 %v16400_v24  ;;  %v2281_v15 = vpop.f32.mrb[141].mxu0  ;;  %v12946_v14 = vmul.f32 %v2434_v28, %v2402_v53  ;;  %v16404_v24 = vld [vmem:[#allocation100_spill] sm:$0xff]  ;;  %v16405_v53 = vld [vmem:[#allocation82_spill] sm:$0xff]  ;;  %v16411_v28 = vld [vmem:[#allocation85_spill] sm:$0xff] }
 0x245   : > { %v2433_v8 = vmul.f32 %v2401_v43, %v2401_v43  ;;  %v2282_v37 = vadd.f32 %v2281_v15, %v16401_v4  ;;  %9874 = vmatprep.subr.bf16.mxu1 %v9873_v23  ;;  %v9362_v52 = vpop.f32.mrb[142].mxu0  ;;  %v12951_v30 = vmul.f32 %v2432_v47, %v2400_v36  ;;  %v16406_v36 = vld [vmem:[#allocation83_spill] sm:$0xff] }
 0x246   : > { %16402 = vst [vmem:[#allocation104_spill] sm:$0xff] %v12946_v14  ;;  %v12948_v11 = vmul.f32 %v2435_v13, %v2403_v9  ;;  %v2374_v27 = vmax.f32 %v2290_v48, 0.0  ;;  %v2293_v22 = vadd.f32 %v9362_v52, %v16403_v25  ;;  %v2284_v41 = vpop.f32.mrb[143].mxu0  ;;  %v16407_v52 = vld [vmem:[#allocation87_spill] sm:$0xff] }
 0x247   : > { %v12953_v1 = vmul.f32 %v2433_v8, %v2401_v43  ;;  %v2372_v21 = vmax.f32 %v2282_v37, 0.0  ;;  %v2285_v15 = vadd.f32 %v2284_v41, %v16404_v24  ;;  %v16414_v24 = vld [vmem:[#allocation88_spill] sm:$0xff] }
 0x248   : > { %v2406_v31 = vmax.f32 %v2374_v27, 1e-06  ;;  %v2375_v23 = vmax.f32 %v2293_v22, 0.0  ;;  %9474 = vmatmul.mubr.msk.bf16.gmra.mrb[248].mxu0 %vm682_vm1, %v16405_v53  ;;  %v16408_v22 = vld [vmem:[#allocation91_spill] sm:$0xff] }
 0x249   : > { %v2404_v9 = vmax.f32 %v2372_v21, 1e-06  ;;  %v2373_v13 = vmax.f32 %v2285_v15, 0.0  ;;  %9477 = vmatprep.mubr.msk.bf16.mxu0 %vm682_vm1, %v16406_v36  ;;  %v16410_v33 = vpack.c.bf16 %v16408_v22, %v16409_v40  ;;  %v16417_v22 = vld [vmem:[#allocation86_spill] sm:$0xff] }
 0x24a   : > { %v2438_v47 = vmul.f32 %v2406_v31, %v2406_v31  ;;  %v2407_v43 = vmax.f32 %v2375_v23, 1e-06 }
 0x24b   : > { %v2436_v48 = vmul.f32 %v2404_v9, %v2404_v9  ;;  %v2405_v41 = vmax.f32 %v2373_v13, 1e-06  ;;  %v9365_v8 = vpop.f32.mrb[144].mxu0 }
 0x24c   : > { %v2439_v37 = vmul.f32 %v2407_v43, %v2407_v43  ;;  %v2306_v27 = vadd.f32 %v9365_v8, %v16407_v52  ;;  %9876 = vmatpush3.bf16.xpose.msra.mxu1 %v16410_v33  ;;  %v2297_v53 = vpop.f32.mrb[145].mxu0  ;;  %v12972_v23 = vmul.f32 %v2438_v47, %v2406_v31  ;;  %v16418_v31 = vld [vmem:[#allocation84_spill] sm:$0xff] }
 0x24d   : > { %v2437_v60 = vmul.f32 %v2405_v41, %v2405_v41  ;;  %v2298_v21 = vadd.f32 %v2297_v53, %v16411_v28  ;;  %9878 = vmatprep.subr.bf16.mxu1 %v9877_v34  ;;  %v9366_v15 = vpop.f32.mrb[146].mxu0  ;;  %v12977_v25 = vmul.f32 %v2436_v48, %v2404_v9 }
 0x24e   : > { %16412 = vst [vmem:[#allocation105_spill] sm:$0xff] %v12972_v23  ;;  %v12974_v13 = vmul.f32 %v2439_v37, %v2407_v43  ;;  %v2378_v36 = vmax.f32 %v2306_v27, 0.0  ;;  %v2309_v8 = vadd.f32 %v9366_v15, %v16414_v24  ;;  %v2300_v52 = vpop.f32.mrb[147].mxu0 }
 0x24f   : > { %16415 = vst [vmem:[#allocation75_spill] sm:$0xff] %v12977_v25  ;;  %v12979_v33 = vmul.f32 %v2437_v60, %v2405_v41  ;;  %v2376_v40 = vmax.f32 %v2298_v21, 0.0  ;;  %v2301_v53 = vadd.f32 %v2300_v52, %v16417_v22  ;;  %v16419_v52 = vld [vmem:[#allocation92_spill] sm:$0xff] }
 0x250   : > { %16413 = vst [vmem:[#allocation94_spill] sm:$0xff] %v12974_v13  ;;  %v2410_v45 = vmax.f32 %v2378_v36, 1e-06  ;;  %v2379_v34 = vmax.f32 %v2309_v8, 0.0  ;;  %9478 = vmatmul.mubr.msk.bf16.gmra.mrb[252].mxu0 %vm682_vm1, %v16418_v31  ;;  %v16420_v22 = vld [vmem:[#allocation76_spill] sm:$0xff] }
 0x251   : > { %16416 = vst [vmem:[#allocation93_spill] sm:$0xff] %v12979_v33  ;;  %v2408_v43 = vmax.f32 %v2376_v40, 1e-06  ;;  %v2377_v37 = vmax.f32 %v2301_v53, 0.0  ;;  %v16422_v36 = vpack.c.bf16 %v16420_v22, %v16421_v54 }
 0x252   : > { %v2442_v9 = vmul.f32 %v2410_v45, %v2410_v45  ;;  %v2411_v48 = vmax.f32 %v2379_v34, 1e-06 }
 0x253   : > { %v2440_v60 = vmul.f32 %v2408_v43, %v2408_v43  ;;  %v2409_v41 = vmax.f32 %v2377_v37, 1e-06  ;;  %v9369_v27 = vpop.f32.mrb[148].mxu0 }
 0x254   : > { %v2443_v21 = vmul.f32 %v2411_v48, %v2411_v48  ;;  %v2322_v15 = vadd.f32 %v9369_v27, %v16419_v52  ;;  %9880 = vmatpush3.bf16.xpose.msra.mxu1 %v16422_v36  ;;  %v2313_v8 = vpop.f32.mrb[149].mxu0  ;;  %v2474_v47 = vmul.f32 %v2442_v9, %v2410_v45 }
 0x255   : > { %v2441_v23 = vmul.f32 %v2409_v41, %v2409_v41  ;;  %v2314_v31 = vadd.f32 %v2313_v8, %v16383_v57  ;;  %v9370_v13 = vpop.f32.mrb[150].mxu0  ;;  %v2472_v37 = vmul.f32 %v2440_v60, %v2408_v43 }
 0x256   : > { %v2475_v40 = vmul.f32 %v2443_v21, %v2411_v48  ;;  %v2382_v53 = vmax.f32 %v2322_v15, 0.0  ;;  %v2325_v34 = vadd.f32 %v9370_v13, %v12170_v2  ;;  %v2316_v24 = vpop.f32.mrb[151].mxu0 }
 0x257   : > { %v2473_v28 = vmul.f32 %v2441_v23, %v2409_v41  ;;  %v2380_v25 = vmax.f32 %v2314_v31, 0.0  ;;  %v2317_v27 = vadd.f32 %v2316_v24, %v12158_v35  ;;  %v16423_v24 = vpack.c.bf16 %v12901_v50, %v12899_v32 }
 0x258   : > { %v2414_v52 = vmax.f32 %v2382_v53, 1e-06  ;;  %v2383_v33 = vmax.f32 %v2325_v34, 0.0  ;;  %v9885_v22 = vpack.c.bf16 %v2475_v40, %v2474_v47 }
 0x259   : > { %v2412_v54 = vmax.f32 %v2380_v25, 1e-06  ;;  %v2381_v36 = vmax.f32 %v2317_v27, 0.0  ;;  %v9881_v4 = vpack.c.bf16 %v2473_v28, %v2472_v37 }
 0x25a   : > { %v2446_v14 = vmul.f32 %v2414_v52, %v2414_v52  ;;  %v2415_v8 = vmax.f32 %v2383_v33, 1e-06 }
 0x25b   : > { %v2444_v57 = vmul.f32 %v2412_v54, %v2412_v54  ;;  %v2413_v45 = vmax.f32 %v2381_v36, 1e-06  ;;  %8596 = vmatmul.mubr.f32.vlgmr.msra.gmra.mrb[6].mxu1 %v16296_v3  ;;  %v9373_v9 = vpop.f32.mrb[152].mxu0  ;;  %9882 = vmatprep.subr.bf16.mxu1 %v9881_v4 }
 0x25c   : > { %v2447_v13 = vmul.f32 %v2415_v8, %v2415_v8  ;;  %v2338_v23 = vadd.f32 %v9373_v9, %v12203_v29  ;;  %v2329_v43 = vpop.f32.mrb[153].mxu0  ;;  %9884 = vmatpush3.bf16.xpose.msra.mxu1 %v16423_v24  ;;  %8646 = vmatprep.mubr.f32.mxu1 %v16296_v3  ;;  %v2478_v47 = vmul.f32 %v2446_v14, %v2414_v52 }
 0x25d   : > { %v2445_v25 = vmul.f32 %v2413_v45, %v2413_v45  ;;  %v2330_v28 = vadd.f32 %v2329_v43, %v12184_v0  ;;  %v9374_v33 = vpop.f32.mrb[154].mxu0  ;;  %9886 = vmatprep.subr.bf16.mxu1 %v9885_v22  ;;  %v2476_v21 = vmul.f32 %v2444_v57, %v2412_v54  ;;  %v16424_v57 = vpack.c.bf16 %v12896_v5, %v12894_v20 }
 0x25e   : > { %v2479_v48 = vmul.f32 %v2447_v13, %v2415_v8  ;;  %v2386_v60 = vmax.f32 %v2338_v23, 0.0  ;;  %v2341_v4 = vadd.f32 %v9374_v33, %v12205_v46  ;;  %v2332_v41 = vpop.f32.mrb[155].mxu0 }
 0x25f   : > { %v2477_v15 = vmul.f32 %v2445_v25, %v2413_v45  ;;  %v2384_v31 = vmax.f32 %v2330_v28, 0.0  ;;  %v2333_v40 = vadd.f32 %v2332_v41, %v12190_v63 }
 0x260   : > { %v2418_v32 = vmax.f32 %v2386_v60, 1e-06  ;;  %v2387_v50 = vmax.f32 %v2341_v4, 0.0  ;;  %v9893_v53 = vpack.c.bf16 %v2479_v48, %v2478_v47 }
 0x261   : > { %v2416_v34 = vmax.f32 %v2384_v31, 1e-06  ;;  %v2385_v37 = vmax.f32 %v2333_v40, 0.0  ;;  %v9889_v27 = vpack.c.bf16 %v2477_v15, %v2476_v21 }
 0x262   : > { %v2450_v36 = vmul.f32 %v2418_v32, %v2418_v32  ;;  %v2419_v9 = vmax.f32 %v2387_v50, 1e-06 }
 0x263   : > { %v2448_v22 = vmul.f32 %v2416_v34, %v2416_v34  ;;  %v2417_v14 = vmax.f32 %v2385_v37, 1e-06  ;;  %v9377_v52 = vpop.f32.mrb[156].mxu0 }
 0x264   : > { %v2451_v8 = vmul.f32 %v2419_v9, %v2419_v9  ;;  %v2354_v13 = vadd.f32 %v9377_v52, %v12251_v44  ;;  %v2345_v23 = vpop.f32.mrb[157].mxu0  ;;  %9888 = vmatpush3.bf16.xpose.msra.mxu1 %v16424_v57  ;;  %v13009_v24 = vmul.f32 %v2450_v36, %v2418_v32 }
 0x265   : > { %v2449_v54 = vmul.f32 %v2417_v14, %v2417_v14  ;;  %v2346_v45 = vadd.f32 %v2345_v23, %v12219_v17  ;;  %v9378_v43 = vpop.f32.mrb[158].mxu0  ;;  %9890 = vmatprep.subr.bf16.mxu1 %v9889_v27  ;;  %v2480_v48 = vmul.f32 %v2448_v22, %v2416_v34  ;;  %v16425_v22 = vpack.c.bf16 %v12927_v55, %v12925_v10 }
 0x266   : > { %v13011_v25 = vmul.f32 %v2451_v8, %v2419_v9  ;;  %v2390_v28 = vmax.f32 %v2354_v13, 0.0  ;;  %v2357_v33 = vadd.f32 %v9378_v43, %v12255_v18  ;;  %v2348_v47 = vpop.f32.mrb[159].mxu0 }
 0x267   : > { %v2481_v60 = vmul.f32 %v2449_v54, %v2417_v14  ;;  %v2388_v4 = vmax.f32 %v2346_v45, 0.0  ;;  %v2349_v41 = vadd.f32 %v2348_v47, %v12225_v61 }
 0x268   : > { %v2422_v20 = vmax.f32 %v2390_v28, 1e-06  ;;  %v2391_v5 = vmax.f32 %v2357_v33, 0.0  ;;  %v9901_v21 = vpack.c.bf16 %v13011_v25, %v13009_v24  ;;  %v16433_v24 = vld [vmem:[#allocation103_spill] sm:$0xff] }
 0x269   : > { %v2420_v15 = vmax.f32 %v2388_v4, 1e-06  ;;  %v2389_v31 = vmax.f32 %v2349_v41, 0.0  ;;  %v9897_v40 = vpack.c.bf16 %v2481_v60, %v2480_v48 }
 0x26a   : > { %v2454_v32 = vmul.f32 %v2422_v20, %v2422_v20  ;;  %v2423_v50 = vmax.f32 %v2391_v5, 1e-06 }
 0x26b   : > { %v2452_v37 = vmul.f32 %v2420_v15, %v2420_v15  ;;  %v2421_v27 = vmax.f32 %v2389_v31, 1e-06  ;;  %v9383_v36 = vpop.f32.mrb[160].mxu0 }
 0x26c   : > { %v2455_v9 = vmul.f32 %v2423_v50, %v2423_v50  ;;  %v2608_v34 = vadd.f32 %v9383_v36, %v12148_v38  ;;  %9892 = vmatpush3.bf16.xpose.msra.mxu1 %v16425_v22  ;;  %v2599_v14 = vpop.f32.mrb[161].mxu0  ;;  %v13022_v23 = vmul.f32 %v2454_v32, %v2422_v20 }
 0x26d   : > { %v2453_v52 = vmul.f32 %v2421_v27, %v2421_v27  ;;  %v2600_v8 = vadd.f32 %v2599_v14, %v12130_v6  ;;  %9894 = vmatprep.subr.bf16.mxu1 %v9893_v53  ;;  %v9384_v13 = vpop.f32.mrb[162].mxu0  ;;  %v13029_v33 = vmul.f32 %v2452_v37, %v2420_v15 }
 0x26e   : > { %v13024_v57 = vmul.f32 %v2455_v9, %v2423_v50  ;;  %v2728_v54 = vmax.f32 %v2608_v34, 0.0  ;;  %v2611_v45 = vadd.f32 %v9384_v13, %v12150_v39  ;;  %v2602_v43 = vpop.f32.mrb[163].mxu0  ;;  %v13027_v28 = vpop.f32.mrb[0].mxu1  ;;  %v16426_v9 = vpack.c.bf16 %v12922_v49, %v12920_v12 }
 0x26f   : > { %v13031_v10 = vmul.f32 %v2453_v52, %v2421_v27  ;;  %v2726_v55 = vmax.f32 %v2600_v8, 0.0  ;;  %v2603_v47 = vadd.f32 %v2602_v43, %v12134_v51  ;;  %v13034_v48 = vpop.f32.mrb[1].mxu1 }
 0x270   : > { %v2760_v53 = vmax.f32 %v2728_v54, 1e-06  ;;  %v2729_v60 = vmax.f32 %v2611_v45, 0.0 }
 0x271   : > { %v2758_v41 = vmax.f32 %v2726_v55, 1e-06  ;;  %v2727_v20 = vmax.f32 %v2603_v47, 0.0  ;;  %v9905_v5 = vpack.c.bf16 %v13031_v10, %v13029_v33 }
 0x272   : > { %v2792_v31 = vmul.f32 %v2760_v53, %v2760_v53  ;;  %v2761_v15 = vmax.f32 %v2729_v60, 1e-06 }
 0x273   : > { %v2790_v32 = vmul.f32 %v2758_v41, %v2758_v41  ;;  %v2759_v50 = vmax.f32 %v2727_v20, 1e-06  ;;  %v9387_v37 = vpop.f32.mrb[164].mxu0 }
 0x274   : > { %v2793_v27 = vmul.f32 %v2761_v15, %v2761_v15  ;;  %v2624_v36 = vadd.f32 %v9387_v37, %v16301_v16  ;;  %9896 = vmatpush3.bf16.xpose.msra.mxu1 %v16426_v9  ;;  %v2615_v34 = vpop.f32.mrb[165].mxu0  ;;  %v13045_v8 = vmul.f32 %v2792_v31, %v2760_v53  ;;  %v16436_v53 = vld [vmem:[#allocation93_spill] sm:$0xff] }
 0x275   : > { %v2791_v22 = vmul.f32 %v2759_v50, %v2759_v50  ;;  %v2616_v14 = vadd.f32 %v2615_v34, %v16344_v42  ;;  %9898 = vmatprep.subr.bf16.mxu1 %v9897_v40  ;;  %v9388_v52 = vpop.f32.mrb[166].mxu0  ;;  %v13050_v55 = vmul.f32 %v2790_v32, %v2758_v41  ;;  %v16427_v34 = vpack.c.bf16 %v12953_v1, %v12951_v30 }
 0x276   : > { %v13047_v13 = vmul.f32 %v2793_v27, %v2761_v15  ;;  %v2732_v54 = vmax.f32 %v2624_v36, 0.0  ;;  %v2627_v45 = vadd.f32 %v9388_v52, %v16304_v7  ;;  %v2618_v43 = vpop.f32.mrb[167].mxu0 }
 0x277   : > { %v13052_v47 = vmul.f32 %v2791_v22, %v2759_v50  ;;  %v2730_v12 = vmax.f32 %v2616_v14, 0.0  ;;  %v2619_v49 = vadd.f32 %v2618_v43, %v16345_v19 }
 0x278   : > { %v2764_v40 = vmax.f32 %v2732_v54, 1e-06  ;;  %v2733_v20 = vmax.f32 %v2627_v45, 0.0 }
 0x279   : > { %v2762_v31 = vmax.f32 %v2730_v12, 1e-06  ;;  %v2731_v15 = vmax.f32 %v2619_v49, 0.0 }
 0x27a   : > { %v2796_v37 = vmul.f32 %v2764_v40, %v2764_v40  ;;  %v2765_v27 = vmax.f32 %v2733_v20, 1e-06 }
 0x27b   : > { %v2794_v36 = vmul.f32 %v2762_v31, %v2762_v31  ;;  %v2763_v41 = vmax.f32 %v2731_v15, 1e-06  ;;  %v9391_v32 = vpop.f32.mrb[168].mxu0 }
 0x27c   : > { %v2797_v50 = vmul.f32 %v2765_v27, %v2765_v27  ;;  %v2640_v9 = vadd.f32 %v9391_v32, %v16390_v58  ;;  %9900 = vmatpush3.bf16.xpose.msra.mxu1 %v16427_v34  ;;  %v2631_v22 = vpop.f32.mrb[169].mxu0  ;;  %v13067_v45 = vmul.f32 %v2796_v37, %v2764_v40 }
 0x27d   : > { %v2795_v14 = vmul.f32 %v2763_v41, %v2763_v41  ;;  %v2632_v52 = vadd.f32 %v2631_v22, %v16392_v59  ;;  %9902 = vmatprep.subr.bf16.mxu1 %v9901_v21  ;;  %v9392_v54 = vpop.f32.mrb[170].mxu0  ;;  %v13072_v15 = vmul.f32 %v2794_v36, %v2762_v31 }
 0x27e   : > { %v13069_v43 = vmul.f32 %v2797_v50, %v2765_v27  ;;  %v2736_v12 = vmax.f32 %v2640_v9, 0.0  ;;  %v2643_v49 = vadd.f32 %v9392_v54, %v16393_v56  ;;  %v2634_v20 = vpop.f32.mrb[171].mxu0 }
 0x27f   : > { %v13074_v30 = vmul.f32 %v2795_v14, %v2763_v41  ;;  %v2734_v1 = vmax.f32 %v2632_v52, 0.0  ;;  %v2635_v32 = vadd.f32 %v2634_v20, %v16394_v26  ;;  %v16428_v14 = vld [vmem:[#allocation104_spill] sm:$0xff] }
 0x280   : > { %v2768_v25 = vmax.f32 %v2736_v12, 1e-06  ;;  %v2737_v21 = vmax.f32 %v2643_v49, 0.0  ;;  %v16429_v52 = vpack.c.bf16 %v12948_v11, %v16428_v14  ;;  %v16430_v49 = vld [vmem:[#allocation99_spill] sm:$0xff] }
 0x281   : > { %v2766_v37 = vmax.f32 %v2734_v1, 1e-06  ;;  %v2735_v27 = vmax.f32 %v2635_v32, 0.0 }
 0x282   : > { %v2800_v50 = vmul.f32 %v2768_v25, %v2768_v25  ;;  %v2769_v9 = vmax.f32 %v2737_v21, 1e-06 }
 0x283   : > { %v2798_v34 = vmul.f32 %v2766_v37, %v2766_v37  ;;  %v2767_v31 = vmax.f32 %v2735_v27, 1e-06  ;;  %v9395_v36 = vpop.f32.mrb[172].mxu0 }
 0x284   : > { %v2801_v41 = vmul.f32 %v2769_v9, %v2769_v9  ;;  %v2656_v22 = vadd.f32 %v9395_v36, %v16397_v62  ;;  %9904 = vmatpush3.bf16.xpose.msra.mxu1 %v16429_v52  ;;  %v2647_v54 = vpop.f32.mrb[173].mxu0  ;;  %v13089_v32 = vmul.f32 %v2800_v50, %v2768_v25  ;;  %v16434_v52 = vld [vmem:[#allocation100_spill] sm:$0xff] }
 0x285   : > { %v2799_v12 = vmul.f32 %v2767_v31, %v2767_v31  ;;  %v2648_v20 = vadd.f32 %v2647_v54, %v16430_v49  ;;  %9906 = vmatprep.subr.bf16.mxu1 %v9905_v5  ;;  %v9396_v1 = vpop.f32.mrb[174].mxu0  ;;  %v13094_v60 = vmul.f32 %v2798_v34, %v2766_v37 }
 0x286   : > { %16431 = vst [vmem:[#allocation77_spill] sm:$0xff] %v13089_v32  ;;  %v13091_v21 = vmul.f32 %v2801_v41, %v2769_v9  ;;  %v2740_v27 = vmax.f32 %v2656_v22, 0.0  ;;  %v2659_v36 = vadd.f32 %v9396_v1, %v16433_v24  ;;  %v2650_v40 = vpop.f32.mrb[175].mxu0  ;;  %v16443_v24 = vld [vmem:[#allocation88_spill] sm:$0xff] }
 0x287   : > { %v13096_v11 = vmul.f32 %v2799_v12, %v2767_v31  ;;  %v2738_v14 = vmax.f32 %v2648_v20, 0.0  ;;  %v2651_v54 = vadd.f32 %v2650_v40, %v16434_v52  ;;  %v16435_v12 = vld [vmem:[#allocation87_spill] sm:$0xff] }
 0x288   : > { %16432 = vst [vmem:[#allocation78_spill] sm:$0xff] %v13091_v21  ;;  %v2772_v10 = vmax.f32 %v2740_v27, 1e-06  ;;  %v2741_v5 = vmax.f32 %v2659_v36, 0.0  ;;  %v16437_v40 = vld [vmem:[#allocation75_spill] sm:$0xff]  ;;  %v16439_v36 = vld [vmem:[#allocation85_spill] sm:$0xff] }
 0x289   : > { %v2770_v50 = vmax.f32 %v2738_v14, 1e-06  ;;  %v2739_v9 = vmax.f32 %v2651_v54, 0.0  ;;  %v16438_v4 = vpack.c.bf16 %v16436_v53, %v16437_v40  ;;  %v16440_v14 = vpack.c.bf16 %v13024_v57, %v13022_v23  ;;  %v16446_v40 = vld [vmem:[#allocation86_spill] sm:$0xff] }
 0x28a   : > { %v2804_v41 = vmul.f32 %v2772_v10, %v2772_v10  ;;  %v2773_v22 = vmax.f32 %v2741_v5, 1e-06 }
 0x28b   : > { %v2802_v1 = vmul.f32 %v2770_v50, %v2770_v50  ;;  %v2771_v37 = vmax.f32 %v2739_v9, 1e-06  ;;  %v9399_v34 = vpop.f32.mrb[176].mxu0 }
 0x28c   : > { %v2805_v31 = vmul.f32 %v2773_v22, %v2773_v22  ;;  %v2672_v20 = vadd.f32 %v9399_v34, %v16435_v12  ;;  %9908 = vmatpush3.bf16.xpose.msra.mxu1 %v16438_v4  ;;  %v2663_v33 = vpop.f32.mrb[177].mxu0  ;;  %v13111_v5 = vmul.f32 %v2804_v41, %v2772_v10 }
 0x28d   : > { %v2803_v27 = vmul.f32 %v2771_v37, %v2771_v37  ;;  %v2664_v52 = vadd.f32 %v2663_v33, %v16439_v36  ;;  %9910 = vmatprep.subr.bf16.mxu1 %v16440_v14  ;;  %v9400_v54 = vpop.f32.mrb[178].mxu0  ;;  %v13116_v49 = vmul.f32 %v2802_v1, %v2770_v50 }
 0x28e   : > { %16441 = vst [vmem:[#allocation79_spill] sm:$0xff] %v13111_v5  ;;  %v13113_v9 = vmul.f32 %v2805_v31, %v2773_v22  ;;  %v2744_v25 = vmax.f32 %v2672_v20, 0.0  ;;  %v2675_v34 = vadd.f32 %v9400_v54, %v16443_v24  ;;  %v2666_v12 = vpop.f32.mrb[179].mxu0  ;;  %v16448_v24 = vld [vmem:[#allocation94_spill] sm:$0xff] }
 0x28f   : > { %16444 = vst [vmem:[#allocation95_spill] sm:$0xff] %v13116_v49  ;;  %v13118_v4 = vmul.f32 %v2803_v27, %v2771_v37  ;;  %v2742_v53 = vmax.f32 %v2664_v52, 0.0  ;;  %v2667_v33 = vadd.f32 %v2666_v12, %v16446_v40  ;;  %v16447_v27 = vld [vmem:[#allocation92_spill] sm:$0xff]  ;;  %v16449_v12 = vld [vmem:[#allocation105_spill] sm:$0xff] }
 0x290   : > { %16442 = vst [vmem:[#allocation97_spill] sm:$0xff] %v13113_v9  ;;  %v2776_v57 = vmax.f32 %v2744_v25, 1e-06  ;;  %v2745_v14 = vmax.f32 %v2675_v34, 0.0  ;;  %v16450_v40 = vpack.c.bf16 %v16448_v24, %v16449_v12  ;;  %v16451_v34 = vld [vmem:[#allocation89_spill] sm:$0xff] }
 0x291   : > { %16445 = vst [vmem:[#allocation98_spill] sm:$0xff] %v13118_v4  ;;  %v2774_v41 = vmax.f32 %v2742_v53, 1e-06  ;;  %v2743_v22 = vmax.f32 %v2667_v33, 0.0 }
 0x292   : > { %v2808_v31 = vmul.f32 %v2776_v57, %v2776_v57  ;;  %v2777_v20 = vmax.f32 %v2745_v14, 1e-06 }
 0x293   : > { %v2806_v54 = vmul.f32 %v2774_v41, %v2774_v41  ;;  %v2775_v50 = vmax.f32 %v2743_v22, 1e-06  ;;  %v9403_v1 = vpop.f32.mrb[180].mxu0 }
 0x294   : > { %v2809_v37 = vmul.f32 %v2777_v20, %v2777_v20  ;;  %v2688_v52 = vadd.f32 %v9403_v1, %v16447_v27  ;;  %9912 = vmatpush3.bf16.xpose.msra.mxu1 %v16450_v40  ;;  %v2679_v23 = vpop.f32.mrb[181].mxu0  ;;  %v2840_v10 = vmul.f32 %v2808_v31, %v2776_v57 }
 0x295   : > { %v2807_v25 = vmul.f32 %v2775_v50, %v2775_v50  ;;  %v2680_v5 = vadd.f32 %v2679_v23, %v16451_v34  ;;  %v9404_v9 = vpop.f32.mrb[182].mxu0  ;;  %v2838_v22 = vmul.f32 %v2806_v54, %v2774_v41 }
 0x296   : > { %v2841_v53 = vmul.f32 %v2809_v37, %v2777_v20  ;;  %v2748_v33 = vmax.f32 %v2688_v52, 0.0  ;;  %v2691_v14 = vadd.f32 %v9404_v9, %v12170_v2  ;;  %v2682_v36 = vpop.f32.mrb[183].mxu0 }
 0x297   : > { %v2839_v49 = vmul.f32 %v2807_v25, %v2775_v50  ;;  %v2746_v4 = vmax.f32 %v2680_v5, 0.0  ;;  %v2683_v1 = vadd.f32 %v2682_v36, %v12158_v35  ;;  %v16452_v36 = vpack.c.bf16 %v13052_v47, %v13050_v55 }
 0x298   : > { %v2780_v27 = vmax.f32 %v2748_v33, 1e-06  ;;  %v2749_v32 = vmax.f32 %v2691_v14, 0.0  ;;  %v9917_v24 = vpack.c.bf16 %v2841_v53, %v2840_v10 }
 0x299   : > { %v2778_v40 = vmax.f32 %v2746_v4, 1e-06  ;;  %v2747_v12 = vmax.f32 %v2683_v1, 0.0  ;;  %v9913_v21 = vpack.c.bf16 %v2839_v49, %v2838_v22 }
 0x29a   : > { %v2812_v62 = vmul.f32 %v2780_v27, %v2780_v27  ;;  %v2781_v23 = vmax.f32 %v2749_v32, 1e-06 }
 0x29b   : > { %v2810_v34 = vmul.f32 %v2778_v40, %v2778_v40  ;;  %v2779_v57 = vmax.f32 %v2747_v12, 1e-06  ;;  %8647 = vmatmul.mubr.f32.vlgmr.msra.gmra.mrb[8].mxu1 %v16296_v3  ;;  %v9407_v31 = vpop.f32.mrb[184].mxu0  ;;  %9914 = vmatprep.subr.bf16.mxu1 %v9913_v21 }
 0x29c   : > { %v2813_v9 = vmul.f32 %v2781_v23, %v2781_v23  ;;  %v2704_v41 = vadd.f32 %v9407_v31, %v12203_v29  ;;  %v2695_v5 = vpop.f32.mrb[185].mxu0  ;;  %9916 = vmatpush3.bf16.xpose.msra.mxu1 %v16452_v36  ;;  %8697 = vmatprep.mubr.f32.mxu1 %v16296_v3  ;;  %v2844_v10 = vmul.f32 %v2812_v62, %v2780_v27 }
 0x29d   : > { %v2811_v4 = vmul.f32 %v2779_v57, %v2779_v57  ;;  %v2696_v49 = vadd.f32 %v2695_v5, %v12184_v0  ;;  %v9408_v32 = vpop.f32.mrb[186].mxu0  ;;  %9918 = vmatprep.subr.bf16.mxu1 %v9917_v24  ;;  %v2842_v37 = vmul.f32 %v2810_v34, %v2778_v40  ;;  %v16453_v34 = vpack.c.bf16 %v13047_v13, %v13045_v8 }
 0x29e   : > { %v2845_v20 = vmul.f32 %v2813_v9, %v2781_v23  ;;  %v2752_v54 = vmax.f32 %v2704_v41, 0.0  ;;  %v2707_v21 = vadd.f32 %v9408_v32, %v12205_v46  ;;  %v2698_v50 = vpop.f32.mrb[187].mxu0 }
 0x29f   : > { %v2843_v52 = vmul.f32 %v2811_v4, %v2779_v57  ;;  %v2750_v25 = vmax.f32 %v2696_v49, 0.0  ;;  %v2699_v53 = vadd.f32 %v2698_v50, %v12190_v63 }
 0x2a0   : > { %v2784_v55 = vmax.f32 %v2752_v54, 1e-06  ;;  %v2753_v47 = vmax.f32 %v2707_v21, 0.0  ;;  %v9925_v33 = vpack.c.bf16 %v2845_v20, %v2844_v10 }
 0x2a1   : > { %v2782_v14 = vmax.f32 %v2750_v25, 1e-06  ;;  %v2751_v22 = vmax.f32 %v2699_v53, 0.0  ;;  %v9921_v1 = vpack.c.bf16 %v2843_v52, %v2842_v37 }
 0x2a2   : > { %v2816_v12 = vmul.f32 %v2784_v55, %v2784_v55  ;;  %v2785_v31 = vmax.f32 %v2753_v47, 1e-06 }
 0x2a3   : > { %v2814_v24 = vmul.f32 %v2782_v14, %v2782_v14  ;;  %v2783_v62 = vmax.f32 %v2751_v22, 1e-06  ;;  %v9411_v27 = vpop.f32.mrb[188].mxu0 }
 0x2a4   : > { %v2817_v23 = vmul.f32 %v2785_v31, %v2785_v31  ;;  %v2720_v9 = vadd.f32 %v9411_v27, %v12251_v44  ;;  %v2711_v41 = vpop.f32.mrb[189].mxu0  ;;  %9920 = vmatpush3.bf16.xpose.msra.mxu1 %v16453_v34  ;;  %v13146_v36 = vmul.f32 %v2816_v12, %v2784_v55 }
 0x2a5   : > { %v2815_v40 = vmul.f32 %v2783_v62, %v2783_v62  ;;  %v2712_v57 = vadd.f32 %v2711_v41, %v12219_v17  ;;  %v9412_v5 = vpop.f32.mrb[190].mxu0  ;;  %9922 = vmatprep.subr.bf16.mxu1 %v9921_v1  ;;  %v2846_v20 = vmul.f32 %v2814_v24, %v2782_v14  ;;  %v16454_v24 = vpack.c.bf16 %v13074_v30, %v13072_v15 }
 0x2a6   : > { %v13148_v4 = vmul.f32 %v2817_v23, %v2785_v31  ;;  %v2756_v49 = vmax.f32 %v2720_v9, 0.0  ;;  %v2723_v32 = vadd.f32 %v9412_v5, %v12255_v18  ;;  %v2714_v10 = vpop.f32.mrb[191].mxu0 }
 0x2a7   : > { %v2847_v54 = vmul.f32 %v2815_v40, %v2783_v62  ;;  %v2754_v21 = vmax.f32 %v2712_v57, 0.0  ;;  %v2715_v50 = vadd.f32 %v2714_v10, %v12225_v61 }
 0x2a8   : > { %v2788_v8 = vmax.f32 %v2756_v49, 1e-06  ;;  %v2757_v13 = vmax.f32 %v2723_v32, 0.0  ;;  %v9933_v37 = vpack.c.bf16 %v13148_v4, %v13146_v36  ;;  %v16464_v36 = vld [vmem:[#allocation103_spill] sm:$0xff] }
 0x2a9   : > { %v2786_v52 = vmax.f32 %v2754_v21, 1e-06  ;;  %v2755_v25 = vmax.f32 %v2715_v50, 0.0  ;;  %v9929_v53 = vpack.c.bf16 %v2847_v54, %v2846_v20 }
 0x2aa   : > { %v2820_v55 = vmul.f32 %v2788_v8, %v2788_v8  ;;  %v2789_v47 = vmax.f32 %v2757_v13, 1e-06 }
 0x2ab   : > { %v2818_v22 = vmul.f32 %v2786_v52, %v2786_v52  ;;  %v2787_v1 = vmax.f32 %v2755_v25, 1e-06  ;;  %v9417_v12 = vpop.f32.mrb[192].mxu0 }
 0x2ac   : > { %v2821_v31 = vmul.f32 %v2789_v47, %v2789_v47  ;;  %v2974_v14 = vadd.f32 %v9417_v12, %v12148_v38  ;;  %9924 = vmatpush3.bf16.xpose.msra.mxu1 %v16454_v24  ;;  %v2965_v62 = vpop.f32.mrb[193].mxu0  ;;  %v13158_v27 = vmul.f32 %v2820_v55, %v2788_v8 }
 0x2ad   : > { %v2819_v23 = vmul.f32 %v2787_v1, %v2787_v1  ;;  %v2966_v9 = vadd.f32 %v2965_v62, %v12130_v6  ;;  %9926 = vmatprep.subr.bf16.mxu1 %v9925_v33  ;;  %v9418_v41 = vpop.f32.mrb[194].mxu0  ;;  %v13161_v34 = vmul.f32 %v2818_v22, %v2786_v52 }
 0x2ae   : > { %v13163_v40 = vmul.f32 %v2821_v31, %v2789_v47  ;;  %v3094_v57 = vmax.f32 %v2974_v14, 0.0  ;;  %v2977_v5 = vadd.f32 %v9418_v41, %v12150_v39  ;;  %v1456_v49 = vpop.f32.mrb[2].mxu1  ;;  %v2968_v32 = vpop.f32.mrb[195].mxu0 }
 0x2af   : > { %v13166_v15 = vmul.f32 %v2819_v23, %v2787_v1  ;;  %v3092_v30 = vmax.f32 %v2966_v9, 0.0  ;;  %v3661_v10 = vrot.slane %v1456_v49, 7  ;;  %v2969_v20 = vadd.f32 %v2968_v32, %v12134_v51  ;;  %v1458_v54 = vpop.f32.mrb[3].mxu1 }
 0x2b0   : > { %v3126_v21 = vmax.f32 %v3094_v57, 1e-06  ;;  %v3095_v33 = vmax.f32 %v2977_v5, 0.0  ;;  %v3662_v50 = vrot.slane %v1458_v54, 7 }
 0x2b1   : > { %v3124_v13 = vmax.f32 %v3092_v30, 1e-06  ;;  %v13173_v52 = vsel %vm3701_vm2, %v13027_v28, %v3661_v10  ;;  %v3093_v25 = vmax.f32 %v2969_v20, 0.0  ;;  %v9937_v55 = vpack.c.bf16 %v13166_v15, %v13161_v34 }
 0x2b2   : > { %v3158_v47 = vmul.f32 %v3126_v21, %v3126_v21  ;;  %v3127_v22 = vmax.f32 %v3095_v33, 1e-06  ;;  %v13179_v1 = vsel %vm3701_vm2, %v13034_v48, %v3662_v50  ;;  %v16455_v28 = vpack.c.bf16 %v13069_v43, %v13067_v45 }
 0x2b3   : > { %v3156_v12 = vmul.f32 %v3124_v13, %v3124_v13  ;;  %v3125_v31 = vmax.f32 %v3093_v25, 1e-06  ;;  %v9421_v14 = vpop.f32.mrb[196].mxu0 }
 0x2b4   : > { %v3159_v24 = vmul.f32 %v3127_v22, %v3127_v22  ;;  %v2990_v62 = vadd.f32 %v9421_v14, %v16301_v16  ;;  %9928 = vmatpush3.bf16.xpose.msra.mxu1 %v16455_v28  ;;  %v2981_v23 = vpop.f32.mrb[197].mxu0  ;;  %v13186_v5 = vmul.f32 %v3158_v47, %v3126_v21  ;;  %v16467_v21 = vld [vmem:[#allocation98_spill] sm:$0xff] }
 0x2b5   : > { %v3157_v9 = vmul.f32 %v3125_v31, %v3125_v31  ;;  %v2982_v41 = vadd.f32 %v2981_v23, %v16344_v42  ;;  %9930 = vmatprep.subr.bf16.mxu1 %v9929_v53  ;;  %v9422_v57 = vpop.f32.mrb[198].mxu0  ;;  %v13191_v10 = vmul.f32 %v3156_v12, %v3124_v13 }
 0x2b6   : > { %v13188_v48 = vmul.f32 %v3159_v24, %v3127_v22  ;;  %v3098_v49 = vmax.f32 %v2990_v62, 0.0  ;;  %v2993_v32 = vadd.f32 %v9422_v57, %v16304_v7  ;;  %v2984_v30 = vpop.f32.mrb[199].mxu0  ;;  %v16456_v62 = vpack.c.bf16 %v13096_v11, %v13094_v60 }
 0x2b7   : > { %v13193_v20 = vmul.f32 %v3157_v9, %v3125_v31  ;;  %v3096_v45 = vmax.f32 %v2982_v41, 0.0  ;;  %v2985_v43 = vadd.f32 %v2984_v30, %v16345_v19 }
 0x2b8   : > { %v3130_v53 = vmax.f32 %v3098_v49, 1e-06  ;;  %v3099_v33 = vmax.f32 %v2993_v32, 0.0 }
 0x2b9   : > { %v3128_v50 = vmax.f32 %v3096_v45, 1e-06  ;;  %v3097_v25 = vmax.f32 %v2985_v43, 0.0 }
 0x2ba   : > { %v3162_v47 = vmul.f32 %v3130_v53, %v3130_v53  ;;  %v3131_v22 = vmax.f32 %v3099_v33, 1e-06 }
 0x2bb   : > { %v3160_v14 = vmul.f32 %v3128_v50, %v3128_v50  ;;  %v3129_v13 = vmax.f32 %v3097_v25, 1e-06  ;;  %v9425_v12 = vpop.f32.mrb[200].mxu0 }
 0x2bc   : > { %v3163_v31 = vmul.f32 %v3131_v22, %v3131_v22  ;;  %v3006_v24 = vadd.f32 %v9425_v12, %v16390_v58  ;;  %9932 = vmatpush3.bf16.xpose.msra.mxu1 %v16456_v62  ;;  %v2997_v28 = vpop.f32.mrb[201].mxu0  ;;  %v13208_v57 = vmul.f32 %v3162_v47, %v3130_v53 }
 0x2bd   : > { %v3161_v23 = vmul.f32 %v3129_v13, %v3129_v13  ;;  %v2998_v9 = vadd.f32 %v2997_v28, %v16392_v59  ;;  %9934 = vmatprep.subr.bf16.mxu1 %v9933_v37  ;;  %v9426_v41 = vpop.f32.mrb[202].mxu0  ;;  %v13213_v43 = vmul.f32 %v3160_v14, %v3128_v50  ;;  %v16458_v28 = vld [vmem:[#allocation78_spill] sm:$0xff] }
 0x2be   : > { %v13210_v49 = vmul.f32 %v3163_v31, %v3131_v22  ;;  %v3102_v32 = vmax.f32 %v3006_v24, 0.0  ;;  %v3009_v30 = vadd.f32 %v9426_v41, %v16393_v56  ;;  %v3000_v45 = vpop.f32.mrb[203].mxu0  ;;  %v16457_v24 = vld [vmem:[#allocation102_spill] sm:$0xff] }
 0x2bf   : > { %v13215_v60 = vmul.f32 %v3161_v23, %v3129_v13  ;;  %v3100_v11 = vmax.f32 %v2998_v9, 0.0  ;;  %v3001_v33 = vadd.f32 %v3000_v45, %v16394_v26  ;;  %v16459_v23 = vld [vmem:[#allocation77_spill] sm:$0xff] }
 0x2c0   : > { %v3134_v4 = vmax.f32 %v3102_v32, 1e-06  ;;  %v3103_v37 = vmax.f32 %v3009_v30, 0.0  ;;  %v16460_v9 = vpack.c.bf16 %v16458_v28, %v16459_v23  ;;  %v16461_v30 = vld [vmem:[#allocation99_spill] sm:$0xff] }
 0x2c1   : > { %v3132_v25 = vmax.f32 %v3100_v11, 1e-06  ;;  %v3101_v47 = vmax.f32 %v3001_v33, 0.0 }
 0x2c2   : > { %v3166_v22 = vmul.f32 %v3134_v4, %v3134_v4  ;;  %v3135_v12 = vmax.f32 %v3103_v37, 1e-06 }
 0x2c3   : > { %v3164_v31 = vmul.f32 %v3132_v25, %v3132_v25  ;;  %v3133_v50 = vmax.f32 %v3101_v47, 1e-06  ;;  %v9429_v14 = vpop.f32.mrb[204].mxu0 }
 0x2c4   : > { %v3167_v13 = vmul.f32 %v3135_v12, %v3135_v12  ;;  %v3022_v62 = vadd.f32 %v9429_v14, %v16457_v24  ;;  %9936 = vmatpush3.bf16.xpose.msra.mxu1 %v16460_v9  ;;  %v3013_v41 = vpop.f32.mrb[205].mxu0  ;;  %v13230_v33 = vmul.f32 %v3166_v22, %v3134_v4  ;;  %v16465_v9 = vld [vmem:[#allocation100_spill] sm:$0xff] }
 0x2c5   : > { %v3165_v32 = vmul.f32 %v3133_v50, %v3133_v50  ;;  %v3014_v45 = vadd.f32 %v3013_v41, %v16461_v30  ;;  %9938 = vmatprep.subr.bf16.mxu1 %v9937_v55  ;;  %v9430_v11 = vpop.f32.mrb[206].mxu0  ;;  %v13235_v54 = vmul.f32 %v3164_v31, %v3132_v25 }
 0x2c6   : > { %16462 = vst [vmem:[#allocation96_spill] sm:$0xff] %v13230_v33  ;;  %v13232_v37 = vmul.f32 %v3167_v13, %v3135_v12  ;;  %v3106_v47 = vmax.f32 %v3022_v62, 0.0  ;;  %v3025_v14 = vadd.f32 %v9430_v11, %v16464_v36  ;;  %v3016_v53 = vpop.f32.mrb[207].mxu0  ;;  %v16474_v36 = vld [vmem:[#allocation88_spill] sm:$0xff] }
 0x2c7   : > { %v13237_v28 = vmul.f32 %v3165_v32, %v3133_v50  ;;  %v3104_v23 = vmax.f32 %v3014_v45, 0.0  ;;  %v3017_v41 = vadd.f32 %v3016_v53, %v16465_v9  ;;  %v16466_v32 = vld [vmem:[#allocation87_spill] sm:$0xff] }
 0x2c8   : > { %16463 = vst [vmem:[#allocation80_spill] sm:$0xff] %v13232_v37  ;;  %v3138_v15 = vmax.f32 %v3106_v47, 1e-06  ;;  %v3107_v55 = vmax.f32 %v3025_v14, 0.0  ;;  %v16468_v53 = vld [vmem:[#allocation95_spill] sm:$0xff]  ;;  %v16470_v14 = vld [vmem:[#allocation85_spill] sm:$0xff] }
 0x2c9   : > { %v3136_v22 = vmax.f32 %v3104_v23, 1e-06  ;;  %v3105_v12 = vmax.f32 %v3017_v41, 0.0  ;;  %v16469_v8 = vpack.c.bf16 %v16467_v21, %v16468_v53  ;;  %v16471_v23 = vpack.c.bf16 %v13163_v40, %v13158_v27  ;;  %v16477_v53 = vld [vmem:[#allocation86_spill] sm:$0xff] }
 0x2ca   : > { %v3170_v13 = vmul.f32 %v3138_v15, %v3138_v15  ;;  %v3139_v62 = vmax.f32 %v3107_v55, 1e-06 }
 0x2cb   : > { %v3168_v11 = vmul.f32 %v3136_v22, %v3136_v22  ;;  %v3137_v25 = vmax.f32 %v3105_v12, 1e-06  ;;  %v9433_v31 = vpop.f32.mrb[208].mxu0 }
 0x2cc   : > { %v3171_v50 = vmul.f32 %v3139_v62, %v3139_v62  ;;  %v3038_v45 = vadd.f32 %v9433_v31, %v16466_v32  ;;  %9940 = vmatpush3.bf16.xpose.msra.mxu1 %v16469_v8  ;;  %v3029_v34 = vpop.f32.mrb[209].mxu0  ;;  %v13252_v55 = vmul.f32 %v3170_v13, %v3138_v15 }
 0x2cd   : > { %v3169_v47 = vmul.f32 %v3137_v25, %v3137_v25  ;;  %v3030_v9 = vadd.f32 %v3029_v34, %v16470_v14  ;;  %9942 = vmatprep.subr.bf16.mxu1 %v16471_v23  ;;  %v9434_v41 = vpop.f32.mrb[210].mxu0  ;;  %v13257_v30 = vmul.f32 %v3168_v11, %v3136_v22 }
 0x2ce   : > { %16472 = vst [vmem:[#allocation81_spill] sm:$0xff] %v13252_v55  ;;  %v13254_v12 = vmul.f32 %v3171_v50, %v3139_v62  ;;  %v3110_v4 = vmax.f32 %v3038_v45, 0.0  ;;  %v3041_v31 = vadd.f32 %v9434_v41, %v16474_v36  ;;  %v3032_v32 = vpop.f32.mrb[211].mxu0  ;;  %v16479_v36 = vld [vmem:[#allocation97_spill] sm:$0xff] }
 0x2cf   : > { %16475 = vst [vmem:[#allocation107_spill] sm:$0xff] %v13257_v30  ;;  %v13259_v8 = vmul.f32 %v3169_v47, %v3137_v25  ;;  %v3108_v21 = vmax.f32 %v3030_v9, 0.0  ;;  %v3033_v34 = vadd.f32 %v3032_v32, %v16477_v53  ;;  %v16478_v47 = vld [vmem:[#allocation92_spill] sm:$0xff]  ;;  %v16480_v32 = vld [vmem:[#allocation79_spill] sm:$0xff] }
 0x2d0   : > { %16473 = vst [vmem:[#allocation106_spill] sm:$0xff] %v13254_v12  ;;  %v3142_v40 = vmax.f32 %v3110_v4, 1e-06  ;;  %v3111_v23 = vmax.f32 %v3041_v31, 0.0  ;;  %v16481_v53 = vpack.c.bf16 %v16479_v36, %v16480_v32  ;;  %v16482_v31 = vld [vmem:[#allocation89_spill] sm:$0xff] }
 0x2d1   : > { %16476 = vst [vmem:[#allocation82_spill] sm:$0xff] %v13259_v8  ;;  %v3140_v13 = vmax.f32 %v3108_v21, 1e-06  ;;  %v3109_v62 = vmax.f32 %v3033_v34, 0.0 }
 0x2d2   : > { %v3174_v50 = vmul.f32 %v3142_v40, %v3142_v40  ;;  %v3143_v45 = vmax.f32 %v3111_v23, 1e-06 }
 0x2d3   : > { %v3172_v41 = vmul.f32 %v3140_v13, %v3140_v13  ;;  %v3141_v22 = vmax.f32 %v3109_v62, 1e-06  ;;  %v9437_v11 = vpop.f32.mrb[212].mxu0 }
 0x2d4   : > { %v3175_v25 = vmul.f32 %v3143_v45, %v3143_v45  ;;  %v3054_v9 = vadd.f32 %v9437_v11, %v16478_v47  ;;  %9944 = vmatpush3.bf16.xpose.msra.mxu1 %v16481_v53  ;;  %v3045_v27 = vpop.f32.mrb[213].mxu0  ;;  %v3206_v15 = vmul.f32 %v3174_v50, %v3142_v40 }
 0x2d5   : > { %v3173_v4 = vmul.f32 %v3141_v22, %v3141_v22  ;;  %v3046_v55 = vadd.f32 %v3045_v27, %v16482_v31  ;;  %v9438_v12 = vpop.f32.mrb[214].mxu0  ;;  %v3204_v62 = vmul.f32 %v3172_v41, %v3140_v13 }
 0x2d6   : > { %v3207_v21 = vmul.f32 %v3175_v25, %v3143_v45  ;;  %v3114_v34 = vmax.f32 %v3054_v9, 0.0  ;;  %v3057_v23 = vadd.f32 %v9438_v12, %v12170_v2  ;;  %v3048_v14 = vpop.f32.mrb[215].mxu0 }
 0x2d7   : > { %v3205_v30 = vmul.f32 %v3173_v4, %v3141_v22  ;;  %v3112_v8 = vmax.f32 %v3046_v55, 0.0  ;;  %v3049_v11 = vadd.f32 %v3048_v14, %v12158_v35  ;;  %v16483_v14 = vpack.c.bf16 %v13193_v20, %v13191_v10 }
 0x2d8   : > { %v3146_v47 = vmax.f32 %v3114_v34, 1e-06  ;;  %v3115_v33 = vmax.f32 %v3057_v23, 0.0  ;;  %v9949_v36 = vpack.c.bf16 %v3207_v21, %v3206_v15 }
 0x2d9   : > { %v3144_v53 = vmax.f32 %v3112_v8, 1e-06  ;;  %v3113_v32 = vmax.f32 %v3049_v11, 0.0  ;;  %v9945_v37 = vpack.c.bf16 %v3205_v30, %v3204_v62 }
 0x2da   : > { %v3178_v24 = vmul.f32 %v3146_v47, %v3146_v47  ;;  %v3147_v27 = vmax.f32 %v3115_v33, 1e-06 }
 0x2db   : > { %v3176_v31 = vmul.f32 %v3144_v53, %v3144_v53  ;;  %v3145_v40 = vmax.f32 %v3113_v32, 1e-06  ;;  %8698 = vmatmul.mubr.f32.vlgmr.msra.gmra.mrb[10].mxu1 %v16296_v3  ;;  %v9441_v50 = vpop.f32.mrb[216].mxu0  ;;  %9946 = vmatprep.subr.bf16.mxu1 %v9945_v37 }
 0x2dc   : > { %v3179_v12 = vmul.f32 %v3147_v27, %v3147_v27  ;;  %v3070_v13 = vadd.f32 %v9441_v50, %v12203_v29  ;;  %v3061_v55 = vpop.f32.mrb[217].mxu0  ;;  %9948 = vmatpush3.bf16.xpose.msra.mxu1 %v16483_v14  ;;  %8748 = vmatprep.mubr.f32.mxu1 %v16296_v3  ;;  %v3210_v15 = vmul.f32 %v3178_v24, %v3146_v47 }
 0x2dd   : > { %v3177_v8 = vmul.f32 %v3145_v40, %v3145_v40  ;;  %v3062_v30 = vadd.f32 %v3061_v55, %v12184_v0  ;;  %v9442_v33 = vpop.f32.mrb[218].mxu0  ;;  %9950 = vmatprep.subr.bf16.mxu1 %v9949_v36  ;;  %v3208_v25 = vmul.f32 %v3176_v31, %v3144_v53  ;;  %v16484_v31 = vpack.c.bf16 %v13188_v48, %v13186_v5 }
 0x2de   : > { %v3211_v45 = vmul.f32 %v3179_v12, %v3147_v27  ;;  %v3118_v41 = vmax.f32 %v3070_v13, 0.0  ;;  %v3073_v37 = vadd.f32 %v9442_v33, %v12205_v46  ;;  %v3064_v22 = vpop.f32.mrb[219].mxu0 }
 0x2df   : > { %v3209_v9 = vmul.f32 %v3177_v8, %v3145_v40  ;;  %v3116_v4 = vmax.f32 %v3062_v30, 0.0  ;;  %v3065_v21 = vadd.f32 %v3064_v22, %v12190_v63 }
 0x2e0   : > { %v3150_v10 = vmax.f32 %v3118_v41, 1e-06  ;;  %v3119_v20 = vmax.f32 %v3073_v37, 0.0  ;;  %v9957_v34 = vpack.c.bf16 %v3211_v45, %v3210_v15 }
 0x2e1   : > { %v3148_v23 = vmax.f32 %v3116_v4, 1e-06  ;;  %v3117_v62 = vmax.f32 %v3065_v21, 0.0  ;;  %v9953_v11 = vpack.c.bf16 %v3209_v9, %v3208_v25 }
 0x2e2   : > { %v3182_v32 = vmul.f32 %v3150_v10, %v3150_v10  ;;  %v3151_v50 = vmax.f32 %v3119_v20, 1e-06 }
 0x2e3   : > { %v3180_v36 = vmul.f32 %v3148_v23, %v3148_v23  ;;  %v3149_v24 = vmax.f32 %v3117_v62, 1e-06  ;;  %v9445_v47 = vpop.f32.mrb[220].mxu0 }
 0x2e4   : > { %v3183_v27 = vmul.f32 %v3151_v50, %v3151_v50  ;;  %v3086_v12 = vadd.f32 %v9445_v47, %v12251_v44  ;;  %v3077_v13 = vpop.f32.mrb[221].mxu0  ;;  %9952 = vmatpush3.bf16.xpose.msra.mxu1 %v16484_v31  ;;  %v13287_v14 = vmul.f32 %v3182_v32, %v3150_v10 }
 0x2e5   : > { %v3181_v53 = vmul.f32 %v3149_v24, %v3149_v24  ;;  %v3078_v40 = vadd.f32 %v3077_v13, %v12219_v17  ;;  %v9446_v55 = vpop.f32.mrb[222].mxu0  ;;  %9954 = vmatprep.subr.bf16.mxu1 %v9953_v11  ;;  %v3212_v45 = vmul.f32 %v3180_v36, %v3148_v23  ;;  %v16485_v36 = vpack.c.bf16 %v13215_v60, %v13213_v43 }
 0x2e6   : > { %v13289_v8 = vmul.f32 %v3183_v27, %v3151_v50  ;;  %v3122_v30 = vmax.f32 %v3086_v12, 0.0  ;;  %v3089_v33 = vadd.f32 %v9446_v55, %v12255_v18  ;;  %v3080_v15 = vpop.f32.mrb[223].mxu0 }
 0x2e7   : > { %v3213_v41 = vmul.f32 %v3181_v53, %v3149_v24  ;;  %v3120_v37 = vmax.f32 %v3078_v40, 0.0  ;;  %v3081_v22 = vadd.f32 %v3080_v15, %v12225_v61 }
 0x2e8   : > { %v3154_v5 = vmax.f32 %v3122_v30, 1e-06  ;;  %v3123_v48 = vmax.f32 %v3089_v33, 0.0  ;;  %v9965_v25 = vpack.c.bf16 %v13289_v8, %v13287_v14 }
 0x2e9   : > { %v3152_v9 = vmax.f32 %v3120_v37, 1e-06  ;;  %v3121_v4 = vmax.f32 %v3081_v22, 0.0  ;;  %v9961_v21 = vpack.c.bf16 %v3213_v41, %v3212_v45 }
 0x2ea   : > { %v3186_v10 = vmul.f32 %v3154_v5, %v3154_v5  ;;  %v3155_v20 = vmax.f32 %v3123_v48, 1e-06 }
 0x2eb   : > { %v3184_v62 = vmul.f32 %v3152_v9, %v3152_v9  ;;  %v3153_v11 = vmax.f32 %v3121_v4, 1e-06  ;;  %v9451_v32 = vpop.f32.mrb[224].mxu0 }
 0x2ec   : > { %v3187_v50 = vmul.f32 %v3155_v20, %v3155_v20  ;;  %v3340_v23 = vadd.f32 %v9451_v32, %v12148_v38  ;;  %9956 = vmatpush3.bf16.xpose.msra.mxu1 %v16485_v36  ;;  %v3331_v24 = vpop.f32.mrb[225].mxu0  ;;  %v13299_v47 = vmul.f32 %v3186_v10, %v3154_v5 }
 0x2ed   : > { %v3185_v27 = vmul.f32 %v3153_v11, %v3153_v11  ;;  %v3332_v12 = vadd.f32 %v3331_v24, %v12130_v6  ;;  %9958 = vmatprep.subr.bf16.mxu1 %v9957_v34  ;;  %v9452_v13 = vpop.f32.mrb[226].mxu0  ;;  %v13302_v31 = vmul.f32 %v3184_v62, %v3152_v9 }
 0x2ee   : > { %v13304_v53 = vmul.f32 %v3187_v50, %v3155_v20  ;;  %v3460_v40 = vmax.f32 %v3340_v23, 0.0  ;;  %v3343_v55 = vadd.f32 %v9452_v13, %v12150_v39  ;;  %v1822_v38 = vpop.f32.mrb[4].mxu1  ;;  %v3334_v30 = vpop.f32.mrb[227].mxu0 }
 0x2ef   : > { %v13307_v33 = vmul.f32 %v3185_v27, %v3153_v11  ;;  %v3458_v43 = vmax.f32 %v3332_v12, 0.0  ;;  %v3667_v60 = vrot.slane %v1822_v38, 6  ;;  %v3335_v15 = vadd.f32 %v3334_v30, %v12134_v51  ;;  %v1824_v45 = vpop.f32.mrb[5].mxu1 }
 0x2f0   : > { %v3492_v41 = vmax.f32 %v3460_v40, 1e-06  ;;  %v3461_v6 = vmax.f32 %v3343_v55, 0.0  ;;  %v3668_v34 = vrot.slane %v1824_v45, 6  ;;  %v9973_v37 = vpack.c.bf16 %v13304_v53, %v13299_v47 }
 0x2f1   : > { %v3490_v22 = vmax.f32 %v3458_v43, 1e-06  ;;  %v13314_v5 = vsel %vm731_vm0, %v13173_v52, %v3667_v60  ;;  %v3459_v39 = vmax.f32 %v3335_v15, 0.0  ;;  %v9969_v48 = vpack.c.bf16 %v13307_v33, %v13302_v31 }
 0x2f2   : > { %v3524_v9 = vmul.f32 %v3492_v41, %v3492_v41  ;;  %v3493_v4 = vmax.f32 %v3461_v6, 1e-06  ;;  %v13320_v51 = vsel %vm731_vm0, %v13179_v1, %v3668_v34  ;;  %v16486_v52 = vpack.c.bf16 %v13210_v49, %v13208_v57 }
 0x2f3   : > { %v3522_v10 = vmul.f32 %v3490_v22, %v3490_v22  ;;  %v3491_v20 = vmax.f32 %v3459_v39, 1e-06  ;;  %v9455_v62 = vpop.f32.mrb[228].mxu0 }
 0x2f4   : > { %v3525_v11 = vmul.f32 %v3493_v4, %v3493_v4  ;;  %v3356_v32 = vadd.f32 %v9455_v62, %v16301_v16  ;;  %9960 = vmatpush3.bf16.xpose.msra.mxu1 %v16486_v52  ;;  %v3347_v50 = vpop.f32.mrb[229].mxu0  ;;  %v13327_v27 = vmul.f32 %v3524_v9, %v3492_v41 }
 0x2f5   : > { %v3523_v23 = vmul.f32 %v3491_v20, %v3491_v20  ;;  %v3348_v36 = vadd.f32 %v3347_v50, %v16344_v42  ;;  %9962 = vmatprep.subr.bf16.mxu1 %v9961_v21  ;;  %v9456_v24 = vpop.f32.mrb[230].mxu0  ;;  %v13332_v55 = vmul.f32 %v3522_v10, %v3490_v22 }
 0x2f6   : > { %v13329_v1 = vmul.f32 %v3525_v11, %v3493_v4  ;;  %v3464_v12 = vmax.f32 %v3356_v32, 0.0  ;;  %v3359_v13 = vadd.f32 %v9456_v24, %v16304_v7  ;;  %v3350_v40 = vpop.f32.mrb[231].mxu0 }
 0x2f7   : > { %v13334_v16 = vmul.f32 %v3523_v23, %v3491_v20  ;;  %v3462_v57 = vmax.f32 %v3348_v36, 0.0  ;;  %v3351_v49 = vadd.f32 %v3350_v40, %v16345_v19  ;;  %v16487_v19 = vpack.c.bf16 %v13237_v28, %v13235_v54 }
 0x2f8   : > { %v9983_v42 = vpack.c.bf16 %v13329_v1, %v13327_v27  ;;  %v3496_v21 = vmax.f32 %v3464_v12, 1e-06  ;;  %v3465_v38 = vmax.f32 %v3359_v13, 0.0 }
 0x2f9   : > { %v9979_v30 = vpack.c.bf16 %v13334_v16, %v13332_v55  ;;  %v3494_v43 = vmax.f32 %v3462_v57, 1e-06  ;;  %v3463_v60 = vmax.f32 %v3351_v49, 0.0  ;;  %v16488_v49 = vld [vmem:[#allocation102_spill] sm:$0xff] }
 0x2fa   : > { %v3528_v15 = vmul.f32 %v3496_v21, %v3496_v21  ;;  %v3497_v7 = vmax.f32 %v3465_v38, 1e-06  ;;  %v16489_v38 = vld [vmem:[#allocation80_spill] sm:$0xff] }
 0x2fb   : > { %v3526_v45 = vmul.f32 %v3494_v43, %v3494_v43  ;;  %v3495_v41 = vmax.f32 %v3463_v60, 1e-06  ;;  %v9459_v6 = vpop.f32.mrb[232].mxu0 }
 0x2fc   : > { %v3529_v34 = vmul.f32 %v3497_v7, %v3497_v7  ;;  %v3372_v22 = vadd.f32 %v9459_v6, %v16390_v58  ;;  %9964 = vmatpush3.bf16.xpose.msra.mxu1 %v16487_v19  ;;  %v3363_v39 = vpop.f32.mrb[233].mxu0  ;;  %v13349_v20 = vmul.f32 %v3528_v15, %v3496_v21  ;;  %v16493_v19 = vld [vmem:[#allocation103_spill] sm:$0xff] }
 0x2fd   : > { %v3527_v9 = vmul.f32 %v3495_v41, %v3495_v41  ;;  %v3364_v4 = vadd.f32 %v3363_v39, %v16392_v59  ;;  %9966 = vmatprep.subr.bf16.mxu1 %v9965_v25  ;;  %v9460_v10 = vpop.f32.mrb[234].mxu0  ;;  %v13354_v52 = vmul.f32 %v3526_v45, %v3494_v43 }
 0x2fe   : > { %v13351_v62 = vmul.f32 %v3529_v34, %v3497_v7  ;;  %v3468_v11 = vmax.f32 %v3372_v22, 0.0  ;;  %v3375_v58 = vadd.f32 %v9460_v10, %v16393_v56  ;;  %v3366_v32 = vpop.f32.mrb[235].mxu0  ;;  %v16492_v7 = vld [vmem:[#allocation99_spill] sm:$0xff] }
 0x2ff   : > { %v13356_v54 = vmul.f32 %v3527_v9, %v3495_v41  ;;  %v3466_v28 = vmax.f32 %v3364_v4, 0.0  ;;  %v3367_v59 = vadd.f32 %v3366_v32, %v16394_v26  ;;  %v16490_v26 = vld [vmem:[#allocation96_spill] sm:$0xff] }
 0x300   : > { %v9991_v14 = vpack.c.bf16 %v13351_v62, %v13349_v20  ;;  %v3500_v8 = vmax.f32 %v3468_v11, 1e-06  ;;  %v3469_v25 = vmax.f32 %v3375_v58, 0.0  ;;  %v16491_v43 = vpack.c.bf16 %v16489_v38, %v16490_v26  ;;  %v16494_v58 = vld [vmem:[#allocation100_spill] sm:$0xff] }
 0x301   : > { %v9987_v50 = vpack.c.bf16 %v13356_v54, %v13354_v52  ;;  %v3498_v23 = vmax.f32 %v3466_v28, 1e-06  ;;  %v3467_v36 = vmax.f32 %v3367_v59, 0.0 }
 0x302   : > { %v3532_v24 = vmul.f32 %v3500_v8, %v3500_v8  ;;  %v3501_v56 = vmax.f32 %v3469_v25, 1e-06 }
 0x303   : > { %v3530_v12 = vmul.f32 %v3498_v23, %v3498_v23  ;;  %v3499_v13 = vmax.f32 %v3467_v36, 1e-06  ;;  %v9463_v40 = vpop.f32.mrb[236].mxu0 }
 0x304   : > { %v3533_v57 = vmul.f32 %v3501_v56, %v3501_v56  ;;  %v3388_v21 = vadd.f32 %v9463_v40, %v16488_v49  ;;  %9968 = vmatpush3.bf16.xpose.msra.mxu1 %v16491_v43  ;;  %v3379_v60 = vpop.f32.mrb[237].mxu0  ;;  %v13371_v6 = vmul.f32 %v3532_v24, %v3500_v8  ;;  %v16497_v49 = vld [vmem:[#allocation107_spill] sm:$0xff]  ;;  %v16499_v43 = vld [vmem:[#allocation85_spill] sm:$0xff] }
 0x305   : > { %v3531_v15 = vmul.f32 %v3499_v13, %v3499_v13  ;;  %v3380_v45 = vadd.f32 %v3379_v60, %v16492_v7  ;;  %9970 = vmatprep.subr.bf16.mxu1 %v9969_v48  ;;  %v9464_v41 = vpop.f32.mrb[238].mxu0  ;;  %v13376_v4 = vmul.f32 %v3530_v12, %v3498_v23 }
 0x306   : > { %v13373_v34 = vmul.f32 %v3533_v57, %v3501_v56  ;;  %v3472_v22 = vmax.f32 %v3388_v21, 0.0  ;;  %v3391_v39 = vadd.f32 %v9464_v41, %v16493_v19  ;;  %v3382_v9 = vpop.f32.mrb[239].mxu0  ;;  %v16496_v57 = vld [vmem:[#allocation82_spill] sm:$0xff] }
 0x307   : > { %v13378_v10 = vmul.f32 %v3531_v15, %v3499_v13  ;;  %v3470_v11 = vmax.f32 %v3380_v45, 0.0  ;;  %v3383_v32 = vadd.f32 %v3382_v9, %v16494_v58  ;;  %v16495_v13 = vld [vmem:[#allocation87_spill] sm:$0xff]  ;;  %v16498_v21 = vpack.c.bf16 %v16496_v57, %v16497_v49  ;;  %v16503_v57 = vld [vmem:[#allocation106_spill] sm:$0xff]  ;;  %v16504_v49 = vld [vmem:[#allocation81_spill] sm:$0xff] }
 0x308   : > { %v9999_v31 = vpack.c.bf16 %v13373_v34, %v13371_v6  ;;  %v3504_v33 = vmax.f32 %v3472_v22, 1e-06  ;;  %v3473_v48 = vmax.f32 %v3391_v39, 0.0  ;;  %v16500_v22 = vld [vmem:[#allocation88_spill] sm:$0xff] }
 0x309   : > { %v9995_v28 = vpack.c.bf16 %v13378_v10, %v13376_v4  ;;  %v3502_v59 = vmax.f32 %v3470_v11, 1e-06  ;;  %v3471_v8 = vmax.f32 %v3383_v32, 0.0  ;;  %v16501_v32 = vld [vmem:[#allocation86_spill] sm:$0xff] }
 0x30a   : > { %v3536_v25 = vmul.f32 %v3504_v33, %v3504_v33  ;;  %v3505_v36 = vmax.f32 %v3473_v48, 1e-06 }
 0x30b   : > { %v3534_v24 = vmul.f32 %v3502_v59, %v3502_v59  ;;  %v3503_v23 = vmax.f32 %v3471_v8, 1e-06  ;;  %v9467_v56 = vpop.f32.mrb[240].mxu0 }
 0x30c   : > { %v3537_v12 = vmul.f32 %v3505_v36, %v3505_v36  ;;  %v3404_v40 = vadd.f32 %v9467_v56, %v16495_v13  ;;  %9972 = vmatpush3.bf16.xpose.msra.mxu1 %v16498_v21  ;;  %v3395_v38 = vpop.f32.mrb[241].mxu0  ;;  %v13393_v7 = vmul.f32 %v3536_v25, %v3504_v33  ;;  %v16502_v13 = vld [vmem:[#allocation92_spill] sm:$0xff]  ;;  %v16505_v21 = vpack.c.bf16 %v16503_v57, %v16504_v49 }
 0x30d   : > { %v3535_v26 = vmul.f32 %v3503_v23, %v3503_v23  ;;  %v3396_v60 = vadd.f32 %v3395_v38, %v16499_v43  ;;  %9974 = vmatprep.subr.bf16.mxu1 %v9973_v37  ;;  %v9468_v15 = vpop.f32.mrb[242].mxu0  ;;  %v13398_v9 = vmul.f32 %v3534_v24, %v3502_v59  ;;  %v16506_v43 = vld [vmem:[#allocation89_spill] sm:$0xff] }
 0x30e   : > { %v13395_v45 = vmul.f32 %v3537_v12, %v3505_v36  ;;  %v3476_v41 = vmax.f32 %v3404_v40, 0.0  ;;  %v3407_v19 = vadd.f32 %v9468_v15, %v16500_v22  ;;  %v3398_v39 = vpop.f32.mrb[243].mxu0 }
 0x30f   : > { %v13400_v11 = vmul.f32 %v3535_v26, %v3503_v23  ;;  %v3474_v58 = vmax.f32 %v3396_v60, 0.0  ;;  %v3399_v48 = vadd.f32 %v3398_v39, %v16501_v32 }
 0x310   : > { %v3508_v53 = vmax.f32 %v3476_v41, 1e-06  ;;  %v3477_v37 = vmax.f32 %v3407_v19, 0.0 }
 0x311   : > { %v3506_v8 = vmax.f32 %v3474_v58, 1e-06  ;;  %v3475_v25 = vmax.f32 %v3399_v48, 0.0 }
 0x312   : > { %v3540_v36 = vmul.f32 %v3508_v53, %v3508_v53  ;;  %v3509_v56 = vmax.f32 %v3477_v37, 1e-06 }
 0x313   : > { %v3538_v12 = vmul.f32 %v3506_v8, %v3506_v8  ;;  %v3507_v59 = vmax.f32 %v3475_v25, 1e-06  ;;  %v9471_v24 = vpop.f32.mrb[244].mxu0 }
 0x314   : > { %v3541_v23 = vmul.f32 %v3509_v56, %v3509_v56  ;;  %v3420_v40 = vadd.f32 %v9471_v24, %v16502_v13  ;;  %9976 = vmatpush3.bf16.xpose.msra.mxu1 %v16505_v21  ;;  %v3411_v38 = vpop.f32.mrb[245].mxu0  ;;  %v3572_v41 = vmul.f32 %v3540_v36, %v3508_v53 }
 0x315   : > { %v3539_v26 = vmul.f32 %v3507_v59, %v3507_v59  ;;  %v3412_v60 = vadd.f32 %v3411_v38, %v16506_v43  ;;  %v9472_v15 = vpop.f32.mrb[246].mxu0  ;;  %v3570_v32 = vmul.f32 %v3538_v12, %v3506_v8 }
 0x316   : > { %v3573_v22 = vmul.f32 %v3541_v23, %v3509_v56  ;;  %v3480_v19 = vmax.f32 %v3420_v40, 0.0  ;;  %v3423_v39 = vadd.f32 %v9472_v15, %v12170_v2  ;;  %v3414_v58 = vpop.f32.mrb[247].mxu0 }
 0x317   : > { %v3571_v48 = vmul.f32 %v3539_v26, %v3507_v59  ;;  %v3478_v37 = vmax.f32 %v3412_v60, 0.0  ;;  %v3415_v25 = vadd.f32 %v3414_v58, %v12158_v35 }
 0x318   : > { %v3512_v24 = vmax.f32 %v3480_v19, 1e-06  ;;  %v3481_v13 = vmax.f32 %v3423_v39, 0.0  ;;  %v9981_v57 = vpack.c.bf16 %v3573_v22, %v3572_v41 }
 0x319   : > { %v3510_v49 = vmax.f32 %v3478_v37, 1e-06  ;;  %v3479_v21 = vmax.f32 %v3415_v25, 0.0  ;;  %v9977_v47 = vpack.c.bf16 %v3571_v48, %v3570_v32 }
 0x31a   : > { %v3544_v33 = vmul.f32 %v3512_v24, %v3512_v24  ;;  %v3513_v38 = vmax.f32 %v3481_v13, 1e-06 }
 0x31b   : > { %v3542_v43 = vmul.f32 %v3510_v49, %v3510_v49  ;;  %v3511_v53 = vmax.f32 %v3479_v21, 1e-06  ;;  %8749 = vmatmul.mubr.f32.vlgmr.msra.gmra.mrb[12].mxu1 %v16296_v3  ;;  %v9475_v36 = vpop.f32.mrb[248].mxu0  ;;  %9978 = vmatprep.subr.bf16.mxu1 %v9977_v47 }
 0x31c   : > { %v3545_v2 = vmul.f32 %v3513_v38, %v3513_v38  ;;  %v3436_v8 = vadd.f32 %v9475_v36, %v12203_v29  ;;  %v3427_v56 = vpop.f32.mrb[249].mxu0  ;;  %9980 = vmatpush3.bf16.xpose.msra.mxu1 %v9979_v30  ;;  %8799 = vmatprep.mubr.f32.mxu1 %v16296_v3  ;;  %v3576_v23 = vmul.f32 %v3544_v33, %v3512_v24 }
 0x31d   : > { %v3543_v35 = vmul.f32 %v3511_v53, %v3511_v53  ;;  %v3428_v12 = vadd.f32 %v3427_v56, %v12184_v0  ;;  %v9476_v59 = vpop.f32.mrb[250].mxu0  ;;  %9982 = vmatprep.subr.bf16.mxu1 %v9981_v57  ;;  %v3574_v15 = vmul.f32 %v3542_v43, %v3510_v49 }
 0x31e   : > { %v3577_v40 = vmul.f32 %v3545_v2, %v3513_v38  ;;  %v3484_v26 = vmax.f32 %v3436_v8, 0.0  ;;  %v3439_v47 = vadd.f32 %v9476_v59, %v12205_v46  ;;  %v3430_v60 = vpop.f32.mrb[251].mxu0 }
 0x31f   : > { %v3575_v29 = vmul.f32 %v3543_v35, %v3511_v53  ;;  %v3482_v41 = vmax.f32 %v3428_v12, 0.0  ;;  %v3431_v22 = vadd.f32 %v3430_v60, %v12190_v63 }
 0x320   : > { %v3516_v55 = vmax.f32 %v3484_v26, 1e-06  ;;  %v3485_v16 = vmax.f32 %v3439_v47, 0.0  ;;  %v9989_v30 = vpack.c.bf16 %v3577_v40, %v3576_v23 }
 0x321   : > { %v3514_v19 = vmax.f32 %v3482_v41, 1e-06  ;;  %v3483_v39 = vmax.f32 %v3431_v22, 0.0  ;;  %v9985_v58 = vpack.c.bf16 %v3575_v29, %v3574_v15 }
 0x322   : > { %v3548_v0 = vmul.f32 %v3516_v55, %v3516_v55  ;;  %v3517_v32 = vmax.f32 %v3485_v16, 1e-06 }
 0x323   : > { %v3546_v48 = vmul.f32 %v3514_v19, %v3514_v19  ;;  %v3515_v33 = vmax.f32 %v3483_v39, 1e-06  ;;  %v9479_v37 = vpop.f32.mrb[252].mxu0 }
 0x324   : > { %v3549_v25 = vmul.f32 %v3517_v32, %v3517_v32  ;;  %v3452_v46 = vadd.f32 %v9479_v37, %v12251_v44  ;;  %v3443_v24 = vpop.f32.mrb[253].mxu0  ;;  %9984 = vmatpush3.bf16.xpose.msra.mxu1 %v9983_v42  ;;  %v3580_v49 = vmul.f32 %v3548_v0, %v3516_v55  ;;  %v3658_v37 = vld [vmem:[#allocation2 + $0x8] sm:$0xff] }
 0x325   : > { %v3547_v63 = vmul.f32 %v3515_v33, %v3515_v33  ;;  %v3444_v13 = vadd.f32 %v3443_v24, %v12219_v17  ;;  %v9480_v57 = vpop.f32.mrb[254].mxu0  ;;  %9986 = vmatprep.subr.bf16.mxu1 %v9985_v58  ;;  %v3578_v36 = vmul.f32 %v3546_v48, %v3514_v19 }
 0x326   : > { %v3581_v21 = vmul.f32 %v3549_v25, %v3517_v32  ;;  %v3488_v38 = vmax.f32 %v3452_v46, 0.0  ;;  %v3455_v43 = vadd.f32 %v9480_v57, %v12255_v18  ;;  %v3446_v53 = vpop.f32.mrb[255].mxu0  ;;  %v3657_v32 = vld [vmem:[#allocation2] sm:$0xff] }
 0x327   : > { %v3579_v2 = vmul.f32 %v3547_v63, %v3515_v33  ;;  %v3486_v8 = vmax.f32 %v3444_v13, 0.0  ;;  %v3447_v44 = vadd.f32 %v3446_v53, %v12225_v61 }
 0x328   : > { %v3520_v56 = vmax.f32 %v3488_v38, 1e-06  ;;  %v3489_v35 = vmax.f32 %v3455_v43, 0.0  ;;  %v9997_v27 = vpack.c.bf16 %v3581_v21, %v3580_v49 }
 0x329   : > { %v3518_v1 = vmax.f32 %v3486_v8, 1e-06  ;;  %v3487_v42 = vmax.f32 %v3447_v44, 0.0  ;;  %v9993_v12 = vpack.c.bf16 %v3579_v2, %v3578_v36 }
 0x32a   : > { %v3552_v17 = vmul.f32 %v3520_v56, %v3520_v56  ;;  %v3521_v59 = vmax.f32 %v3489_v35, 1e-06 }
 0x32b   : > { %v3550_v23 = vmul.f32 %v3518_v1, %v3518_v1  ;;  %v3519_v40 = vmax.f32 %v3487_v42, 1e-06 }
 0x32c   : > { %v3553_v26 = vmul.f32 %v3521_v59, %v3521_v59  ;;  %9988 = vmatpush3.bf16.xpose.msra.mxu1 %v9987_v50  ;;  %v3584_v47 = vmul.f32 %v3552_v17, %v3520_v56 }
 0x32d   : > { %v3551_v18 = vmul.f32 %v3519_v40, %v3519_v40  ;;  %9990 = vmatprep.subr.bf16.mxu1 %v9989_v30  ;;  %v3582_v15 = vmul.f32 %v3550_v23, %v3518_v1 }
 0x32e   : > { %v3585_v60 = vmul.f32 %v3553_v26, %v3521_v59  ;;  %v2188_v61 = vpop.f32.mrb[6].mxu1 }
 0x32f   : > { %v3583_v29 = vmul.f32 %v3551_v18, %v3519_v40  ;;  %v3673_v41 = vrot.slane %v2188_v61, 5  ;;  %v2190_v22 = vpop.f32.mrb[7].mxu1 }
 0x330   : > { %v3674_v55 = vrot.slane %v2190_v22, 5  ;;  %v10005_v16 = vpack.c.bf16 %v3585_v60, %v3584_v47 }
 0x331   : > { %v3707_v19 = vsel %vm3706_vm3, %v13314_v5, %v3673_v41  ;;  %v10001_v39 = vpack.c.bf16 %v3583_v29, %v3582_v15  ;;  %v16507_v5 = vpack.c.bf16 %v13400_v11, %v13398_v9 }
 0x332   : > { %v3708_v58 = vsel %vm3706_vm3, %v13320_v51, %v3674_v55  ;;  %v16508_v51 = vpack.c.bf16 %v13395_v45, %v13393_v7 }
 0x334   : > { %9992 = vmatpush3.bf16.xpose.msra.mxu1 %v9991_v14 }
 0x335   : > { %9994 = vmatprep.subr.bf16.mxu1 %v9993_v12 }
 0x33c   : > { %9996 = vmatpush3.bf16.xpose.msra.mxu1 %v9995_v28 }
 0x33d   : > { %9998 = vmatprep.subr.bf16.mxu1 %v9997_v27 }
 0x344   : > { %10000 = vmatpush3.bf16.xpose.msra.mxu1 %v9999_v31 }
 0x345   : > { %10002 = vmatprep.subr.bf16.mxu1 %v10001_v39 }
 0x34c   : > { %10004 = vmatpush3.bf16.xpose.msra.mxu1 %v16507_v5 }
 0x34d   : > { %10006 = vmatprep.subr.bf16.mxu1 %v10005_v16 }
 0x354   : > { %10008 = vmatpush3.bf16.xpose.msra.mxu1 %v16508_v51 }
 0x35b   : > { %8800 = vmatmul.mubr.f32.vlgmr.msra.gmra.mrb[14].mxu1 %v16296_v3 }
 0x36e   : > { %v2554_v20 = vpop.f32.mrb[8].mxu1 }
 0x36f   : > { %v3679_v62 = vrot.slane %v2554_v20, 4  ;;  %v2556_v52 = vpop.f32.mrb[9].mxu1 }
 0x370   : > { %v3680_v54 = vrot.slane %v2556_v52, 4 }
 0x371   : > { %v3710_v14 = vsel %vm3709_vm4, %v3707_v19, %v3679_v62 }
 0x372   : > { %v3711_v50 = vsel %vm3709_vm4, %v3708_v58, %v3680_v54 }
 0x3ae   : > { %v2920_v6 = vpop.f32.mrb[10].mxu1 }
 0x3af   : > { %v3685_v34 = vrot.slane %v2920_v6, 3  ;;  %v2922_v4 = vpop.f32.mrb[11].mxu1 }
 0x3b0   : > { %v3686_v10 = vrot.slane %v2922_v4, 3 }
 0x3b1   : > { %v3713_v31 = vsel %vm3712_vm5, %v3710_v14, %v3685_v34 }
 0x3b2   : > { %v3714_v28 = vsel %vm3712_vm5, %v3711_v50, %v3686_v10 }
 0x3ee   : > { %v3286_v9 = vpop.f32.mrb[12].mxu1 }
 0x3ef   : > { %v3691_v7 = vrot.slane %v3286_v9, 2  ;;  %v3288_v45 = vpop.f32.mrb[13].mxu1 }
 0x3f0   : > { %v3692_v11 = vrot.slane %v3288_v45, 2 }
 0x3f1   : > { %v3716_v3 = vsel %vm3715_vm6, %v3713_v31, %v3691_v7 }
 0x3f2   : > { %v3717_v30 = vsel %vm3715_vm6, %v3714_v28, %v3692_v11 }
 0x42e   : > { %v3652_v0 = vpop.f32.mrb[14].mxu1 }
 0x42f   : > { %v3697_v48 = vrot.slane %v3652_v0, 1  ;;  %v3654_v33 = vpop.f32.mrb[15].mxu1 }
 0x430   : > { %v3698_v25 = vrot.slane %v3654_v33, 1 }
 0x431   : > { %v3719_v46 = vsel %vm3718_vm7, %v3716_v3, %v3697_v48 }
 0x432   : > { %v3721_v24 = vadd.f32 %v3719_v46, %v3657_v32  ;;  %v3720_v63 = vsel %vm3718_vm7, %v3717_v30, %v3698_v25 }
 0x433   : > { %v3722_v13 = vadd.f32 %v3720_v63, %v3658_v37 }
 0x434   : > { %3723 = vst [vmem:[#allocation2] sm:$0xff] %v3721_v24 }
 0x435   : > { %3724 = vst [vmem:[#allocation2 + $0x8] sm:$0xff] %v3722_v13 }
 0x436 PF: > { %3727 = sbr.rel (%p372_p10) target bundleno = 2148 (0x864), region = 97 }
 0x43d   : > { %v3728_v57 = vld [vmem:[%s11605_s21] sm:$0xf]  ;;  %vm4019_vm8 = vcmask 1041408   ;;  %v16509_v49 = vld [vmem:[#allocation12_spill] sm:$0xff]  ;;  %v16510_v21 = vld [vmem:[#allocation11_spill] sm:$0xff]  ;;  %vm3970_vm9 = vcmask 31744  }
 0x43e   : > { %v13456_v38 = vcombine.low %v16510_v21, %v16509_v49  ;;  %v8250_v43 = vld [vmem:[%s11605_s21 + $0x4] sm:$0xf]  ;;  %v3729_v53 = vpack.c.bf16 %v3728_v57, %v3728_v57  ;;  %v16513_v44 = vld [vmem:[#allocation13_spill] sm:$0xff]  ;;  %v8267_v35 = vld [vmem:[%s11605_s21 + $0x8] sm:$0xf]  ;;  %v11511_v17 = vmov 0  }
 0x43f   : > { %v4482_v36 = vpack.c.bf16 %v8250_v43, %v8250_v43  ;;  %v16512_v8 = vld [vmem:[#allocation14_spill] sm:$0xff]  ;;  %v16515_v27 = vld [vmem:[#allocation16_spill] sm:$0xff]  ;;  %v16516_v1 = vld [vmem:[#allocation15_spill] sm:$0xff]  ;;  %10344 = vset.pattern.permute.xlu0 %v11511_v17  ;;  %10345 = vset.pattern.permute.xlu1 %v11511_v17  ;;  %v13475_v23 = vpack.c.bf16 %v8267_v35, %v8267_v35  ;;  %vm7758_vm10 = vcmask 1040384   ;;  %vm7763_vm11 = vcmask 1042432  }
 0x440   : > { %16511 = vst [vmem:[#allocation108_spill] sm:$0xff] %v13456_v38  ;;  %9483 = vmatprep.mubr.msk.bf16.mxu0 %vm3970_vm9, %v13456_v38  ;;  %10273 = vmatprep.subr.msk.bf16.mxu0 %vm4019_vm8, %v3729_v53  ;;  %v4021_v2 = vsel %vm4019_vm8, %v3729_v53, 0  ;;  %v13465_v56 = vcombine.low %v16513_v44, %v16512_v8  ;;  %v13470_v42 = vcombine.low %v16516_v1, %v16515_v27  ;;  %v16518_v59 = vld [vmem:[#allocation59_spill] sm:$0xff]  ;;  %v16519_v40 = vld [vmem:[#allocation30_spill] sm:$0xff]  ;;  %v16520_v26 = vld [vmem:[#allocation60_spill] sm:$0xff]  ;;  %vm7766_vm12 = vcmask 1043456  }
 0x441   : > { %9482 = vmatpush3.bf16.msra.mxu0 %v4021_v2  ;;  %v4484_v12 = vsel %vm4019_vm8, %v4482_v36, 0  ;;  %3812 = vperm.xlu0 %10344, %v16518_v59   ;;  %v16521_v18 = vld [vmem:[#allocation18_spill] sm:$0xff]  ;;  %v16522_v47 = vld [vmem:[#allocation17_spill] sm:$0xff]  ;;  %v16523_v61 = vld [vmem:[#allocation44_spill] sm:$0xff]  ;;  %vm7769_vm13 = vcmask 1044480   ;;  %vm7772_vm14 = vcmask 1045504  }
 0x442   : > { %16514 = vst [vmem:[#allocation109_spill] sm:$0xff] %v13465_v56  ;;  %16517 = vst [vmem:[#allocation110_spill] sm:$0xff] %v13470_v42  ;;  %10274 = vmatprep.subr.msk.bf16.mxu0 %vm4019_vm8, %v4482_v36  ;;  %3732 = vperm.xlu1 %10345, %v16519_v40   ;;  %v13487_v60 = vcombine.low %v16522_v47, %v16521_v18  ;;  %v16524_v15 = vld [vmem:[#allocation20_spill] sm:$0xff]  ;;  %v16525_v29 = vld [vmem:[#allocation19_spill] sm:$0xff]  ;;  %vm7775_vm15 = vcmask 1046528  }
 0x443   : > { %v13492_v41 = vcombine.low %v16525_v29, %v16524_v15  ;;  %v16526_v22 = vld [vmem:[#allocation61_spill] sm:$0xff]  ;;  %v16527_v55 = vld [vmem:[#allocation62_spill] sm:$0xff]  ;;  %v16532_v51 = vld [vmem:[#allocation24_spill] sm:$0xff] }
 0x444   : > { %9484 = vmatmul.mubr.msk.bf16.vlgmr.msra.gmra.mrb[0].mxu0 %vm3970_vm9, %v13465_v56  ;;  %v16528_v16 = vld [vmem:[#allocation45_spill] sm:$0xff]  ;;  %v16529_v19 = vld [vmem:[#allocation22_spill] sm:$0xff]  ;;  %v16533_v20 = vld [vmem:[#allocation23_spill] sm:$0xff] }
 0x445   : > { %9516 = vmatpush3.bf16.msra.mxu0 %v4484_v12  ;;  %9487 = vmatprep.mubr.msk.bf16.mxu0 %vm3970_vm9, %v13470_v42  ;;  %v16530_v39 = vld [vmem:[#allocation21_spill] sm:$0xff]  ;;  %v16531_v5 = vld [vmem:[#allocation46_spill] sm:$0xff]  ;;  %v13508_v62 = vcombine.low %v16533_v20, %v16532_v51  ;;  %v16534_v52 = vld [vmem:[#allocation63_spill] sm:$0xff] }
 0x446   : > { %10275 = vmatprep.subr.msk.bf16.mxu0 %vm4019_vm8, %v13475_v23  ;;  %3817 = vperm.xlu0 %10344, %v16520_v26   ;;  %v13503_v58 = vcombine.low %v16530_v39, %v16529_v19  ;;  %v16535_v54 = vld [vmem:[#allocation64_spill] sm:$0xff]  ;;  %v16536_v14 = vld [vmem:[#allocation47_spill] sm:$0xff]  ;;  %v16537_v50 = vld [vmem:[#allocation26_spill] sm:$0xff]  ;;  %v4946_v39 = vsel %vm4019_vm8, %v13475_v23, 0 }
 0x447   : > { %3737 = vperm.xlu1 %10345, %v16523_v61   ;;  %v16538_v6 = vld [vmem:[#allocation25_spill] sm:$0xff]  ;;  %v16540_v4 = vld [vmem:[#allocation48_spill] sm:$0xff]  ;;  %v16542_v31 = vld [vmem:[#allocation27_spill] sm:$0xff] }
 0x448   : > { %v13519_v34 = vcombine.low %v16538_v6, %v16537_v50  ;;  %v16541_v10 = vld [vmem:[#allocation28_spill] sm:$0xff]  ;;  %v16544_v9 = vld [vmem:[#allocation65_spill] sm:$0xff]  ;;  %v16545_v7 = vld [vmem:[#allocation66_spill] sm:$0xff] }
 0x449   : > { %v13524_v28 = vcombine.low %v16542_v31, %v16541_v10  ;;  %v16546_v45 = vld [vmem:[#allocation49_spill] sm:$0xff]  ;;  %v16547_v11 = vld [vmem:[#allocation31_spill] sm:$0xff]  ;;  %v16550_v0 = vld [vmem:[#allocation50_spill] sm:$0xff] }
 0x44a   : > { %3822 = vperm.xlu0 %10344, %v16526_v22   ;;  %16539 = vst [vmem:[#allocation111_spill] sm:$0xff] %v13519_v34  ;;  %v16548_v3 = vld [vmem:[#allocation29_spill] sm:$0xff]  ;;  %v16552_v48 = vld [vmem:[#allocation32_spill] sm:$0xff]  ;;  %v16554_v37 = vld [vmem:[#allocation67_spill] sm:$0xff] }
 0x44b   : > { %3827 = vperm.xlu1 %10345, %v16527_v55   ;;  %16543 = vst [vmem:[#allocation112_spill] sm:$0xff] %v13524_v28  ;;  %v13535_v30 = vcombine.low %v16548_v3, %v16547_v11  ;;  %v16551_v32 = vld [vmem:[#allocation33_spill] sm:$0xff]  ;;  %v16555_v25 = vld [vmem:[#allocation68_spill] sm:$0xff]  ;;  %v16556_v46 = vld [vmem:[#allocation51_spill] sm:$0xff] }
 0x44c   : > { %9488 = vmatmul.mubr.msk.bf16.gmra.mrb[4].mxu0 %vm3970_vm9, %v13487_v60  ;;  %v13540_v33 = vcombine.low %v16552_v48, %v16551_v32  ;;  %v16557_v24 = vld [vmem:[#allocation35_spill] sm:$0xff]  ;;  %v16558_v63 = vld [vmem:[#allocation34_spill] sm:$0xff]  ;;  %v16560_v57 = vld [vmem:[#allocation52_spill] sm:$0xff] }
 0x44d   : > { %9491 = vmatprep.mubr.msk.bf16.mxu0 %vm3970_vm9, %v13492_v41  ;;  %16549 = vst [vmem:[#allocation113_spill] sm:$0xff] %v13535_v30  ;;  %v13551_v13 = vcombine.low %v16558_v63, %v16557_v24  ;;  %v16561_v49 = vld [vmem:[#allocation37_spill] sm:$0xff]  ;;  %v16562_v21 = vld [vmem:[#allocation36_spill] sm:$0xff]  ;;  %v16565_v36 = vld [vmem:[#allocation70_spill] sm:$0xff] }
 0x44e   : > { %3742 = vperm.xlu0 %10344, %v16528_v16   ;;  %16553 = vst [vmem:[#allocation114_spill] sm:$0xff] %v13540_v33  ;;  %v13556_v43 = vcombine.low %v16562_v21, %v16561_v49  ;;  %v16564_v53 = vld [vmem:[#allocation69_spill] sm:$0xff]  ;;  %v16567_v8 = vld [vmem:[#allocation39_spill] sm:$0xff]  ;;  %v16568_v44 = vld [vmem:[#allocation38_spill] sm:$0xff] }
 0x44f   : > { %3747 = vperm.xlu1 %10345, %v16531_v5   ;;  %16559 = vst [vmem:[#allocation115_spill] sm:$0xff] %v13551_v13  ;;  %v16566_v2 = vld [vmem:[#allocation53_spill] sm:$0xff]  ;;  %v13567_v35 = vcombine.low %v16568_v44, %v16567_v8  ;;  %v16569_v27 = vld [vmem:[#allocation54_spill] sm:$0xff]  ;;  %v16571_v12 = vld [vmem:[#allocation40_spill] sm:$0xff] }
 0x450   : > { %16563 = vst [vmem:[#allocation116_spill] sm:$0xff] %v13556_v43  ;;  %v16570_v1 = vld [vmem:[#allocation41_spill] sm:$0xff]  ;;  %v16572_v59 = vld [vmem:[#allocation71_spill] sm:$0xff]  ;;  %v16573_v40 = vld [vmem:[#allocation72_spill] sm:$0xff] }
 0x451   : > { %v13572_v17 = vcombine.low %v16571_v12, %v16570_v1  ;;  %v16574_v26 = vld [vmem:[#allocation55_spill] sm:$0xff]  ;;  %v16576_v47 = vld [vmem:[#allocation42_spill] sm:$0xff]  ;;  %v16578_v15 = vld [vmem:[#allocation56_spill] sm:$0xff] }
 0x452   : > { %3832 = vperm.xlu0 %10344, %v16534_v52   ;;  %v16575_v18 = vld [vmem:[#allocation43_spill] sm:$0xff]  ;;  %v16579_v29 = vld [vmem:[#allocation73_spill] sm:$0xff]  ;;  %v16580_v22 = vld [vmem:[#allocation74_spill] sm:$0xff] }
 0x453   : > { %3837 = vperm.xlu1 %10345, %v16535_v54   ;;  %v13583_v61 = vcombine.low %v16576_v47, %v16575_v18  ;;  %v16581_v55 = vld [vmem:[#allocation57_spill] sm:$0xff]  ;;  %v8284_v16 = vld [vmem:[%s11605_s21 + $0xc] sm:$0xf]  ;;  %v16582_v19 = vld [vmem:[#allocation58_spill] sm:$0xff] }
 0x454   : > { %9492 = vmatmul.mubr.msk.bf16.gmra.mrb[8].mxu0 %vm3970_vm9, %v13503_v58  ;;  %v5406_v5 = vpack.c.bf16 %v8284_v16, %v8284_v16  ;;  %v8301_v23 = vld [vmem:[%s11605_s21 + $0x10] sm:$0xf] }
 0x455   : > { %9495 = vmatprep.mubr.msk.bf16.mxu0 %vm3970_vm9, %v13508_v62  ;;  %16577 = vst [vmem:[#allocation117_spill] sm:$0xff] %v13583_v61  ;;  %v5868_v20 = vpack.c.bf16 %v8301_v23, %v8301_v23 }
 0x456   : > { %3752 = vperm.xlu0 %10344, %v16536_v14   ;;  %v5408_v51 = vsel %vm4019_vm8, %v5406_v5, 0 }
 0x457   : > { %3757 = vperm.xlu1 %10345, %v16540_v4  }
 0x45a   : > { %3842 = vperm.xlu0 %10344, %v16544_v9  }
 0x45b   : > { %3847 = vperm.xlu1 %10345, %v16545_v7  }
 0x45c   : > { %9496 = vmatmul.mubr.msk.bf16.gmra.mrb[12].mxu0 %vm3970_vm9, %v13519_v34 }
 0x45d   : > { %9499 = vmatprep.mubr.msk.bf16.mxu0 %vm3970_vm9, %v13524_v28 }
 0x45e   : > { %3762 = vperm.xlu0 %10344, %v16546_v45  }
 0x45f   : > { %3767 = vperm.xlu1 %10345, %v16550_v0  }
 0x462   : > { %3852 = vperm.xlu0 %10344, %v16554_v37   ;;  %v8318_v37 = vld [vmem:[%s11605_s21 + $0x14] sm:$0xf] }
 0x463   : > { %3857 = vperm.xlu1 %10345, %v16555_v25   ;;  %v5870_v25 = vsel %vm4019_vm8, %v5868_v20, 0 }
 0x464   : > { %9500 = vmatmul.mubr.msk.bf16.gmra.mrb[16].mxu0 %vm3970_vm9, %v13535_v30 }
 0x465   : > { %9503 = vmatprep.mubr.msk.bf16.mxu0 %vm3970_vm9, %v13540_v33 }
 0x466   : > { %3772 = vperm.xlu0 %10344, %v16556_v46   ;;  %v13699_v46 = vpack.c.bf16 %v8318_v37, %v8318_v37 }
 0x467   : > { %3777 = vperm.xlu1 %10345, %v16560_v57  }
 0x46a   : > { %3862 = vperm.xlu0 %10344, %v16564_v53  }
 0x46b   : > { %3867 = vperm.xlu1 %10345, %v16565_v36  }
 0x46c   : > { %9504 = vmatmul.mubr.msk.bf16.gmra.mrb[20].mxu0 %vm3970_vm9, %v13551_v13 }
 0x46d   : > { %9507 = vmatprep.mubr.msk.bf16.mxu0 %vm3970_vm9, %v13556_v43 }
 0x46e   : > { %3782 = vperm.xlu0 %10344, %v16566_v2  }
 0x46f   : > { %3787 = vperm.xlu1 %10345, %v16569_v27  }
 0x472   : > { %3872 = vperm.xlu0 %10344, %v16572_v59  }
 0x473   : > { %3877 = vperm.xlu1 %10345, %v16573_v40  }
 0x474   : > { %9508 = vmatmul.mubr.msk.bf16.gmra.mrb[24].mxu0 %vm3970_vm9, %v13567_v35 }
 0x475   : > { %9511 = vmatprep.mubr.msk.bf16.mxu0 %vm3970_vm9, %v13572_v17 }
 0x476   : > { %3792 = vperm.xlu0 %10344, %v16574_v26  }
 0x477   : > { %3797 = vperm.xlu1 %10345, %v16578_v15  }
 0x47a   : > { %3882 = vperm.xlu0 %10344, %v16579_v29  }
 0x47b   : > { %3887 = vperm.xlu1 %10345, %v16580_v22  }
 0x47c   : > { %9512 = vmatmul.mubr.msk.bf16.gmra.mrb[28].mxu0 %vm3970_vm9, %v13583_v61 }
 0x47d   : > { %9517 = vmatprep.mubr.msk.bf16.mxu0 %vm3970_vm9, %v13456_v38 }
 0x47e   : > { %3802 = vperm.xlu0 %10344, %v16581_v55  }
 0x47f   : > { %3807 = vperm.xlu1 %10345, %v16582_v19  }
 0x484   : > { %9518 = vmatmul.mubr.msk.bf16.vlgmr.msra.gmra.mrb[32].mxu0 %vm3970_vm9, %v13465_v56 }
 0x485   : > { %9550 = vmatpush3.bf16.msra.mxu0 %v4946_v39  ;;  %9521 = vmatprep.mubr.msk.bf16.mxu0 %vm3970_vm9, %v13470_v42 }
 0x486   : > { %10276 = vmatprep.subr.msk.bf16.mxu0 %vm4019_vm8, %v5406_v5 }
 0x48c   : > { %9522 = vmatmul.mubr.msk.bf16.gmra.mrb[36].mxu0 %vm3970_vm9, %v13487_v60 }
 0x48d   : > { %9525 = vmatprep.mubr.msk.bf16.mxu0 %vm3970_vm9, %v13492_v41 }
 0x494   : > { %9526 = vmatmul.mubr.msk.bf16.gmra.mrb[40].mxu0 %vm3970_vm9, %v13503_v58 }
 0x495   : > { %9529 = vmatprep.mubr.msk.bf16.mxu0 %vm3970_vm9, %v13508_v62 }
 0x49c   : > { %9530 = vmatmul.mubr.msk.bf16.gmra.mrb[44].mxu0 %vm3970_vm9, %v13519_v34 }
 0x49d   : > { %9533 = vmatprep.mubr.msk.bf16.mxu0 %vm3970_vm9, %v13524_v28 }
 0x4a4   : > { %9534 = vmatmul.mubr.msk.bf16.gmra.mrb[48].mxu0 %vm3970_vm9, %v13535_v30 }
 0x4a5   : > { %9537 = vmatprep.mubr.msk.bf16.mxu0 %vm3970_vm9, %v13540_v33 }
 0x4ac   : > { %9538 = vmatmul.mubr.msk.bf16.gmra.mrb[52].mxu0 %vm3970_vm9, %v13551_v13 }
 0x4ad   : > { %9541 = vmatprep.mubr.msk.bf16.mxu0 %vm3970_vm9, %v13556_v43 }
 0x4b4   : > { %9542 = vmatmul.mubr.msk.bf16.gmra.mrb[56].mxu0 %vm3970_vm9, %v13567_v35 }
 0x4b5   : > { %9545 = vmatprep.mubr.msk.bf16.mxu0 %vm3970_vm9, %v13572_v17 }
 0x4bc   : > { %9546 = vmatmul.mubr.msk.bf16.gmra.mrb[60].mxu0 %vm3970_vm9, %v13583_v61 }
 0x4bd   : > { %9551 = vmatprep.mubr.msk.bf16.mxu0 %vm3970_vm9, %v13456_v38 }
 0x4c0   : > { %v13641_v52 = vpop.permute.xlu0 %3812 }
 0x4c1   : > { %16583 = vst [vmem:[#allocation118_spill] sm:$0xff] %v13641_v52  ;;  %v13647_v54 = vpop.permute.xlu1 %3732 }
 0x4c2   : > { %16584 = vst [vmem:[#allocation119_spill] sm:$0xff] %v13647_v54 }
 0x4c4   : > { %9552 = vmatmul.mubr.msk.bf16.vlgmr.msra.gmra.mrb[64].mxu0 %vm3970_vm9, %v13465_v56 }
 0x4c5   : > { %9584 = vmatpush3.bf16.msra.mxu0 %v5408_v51  ;;  %9555 = vmatprep.mubr.msk.bf16.mxu0 %vm3970_vm9, %v13470_v42  ;;  %v13649_v14 = vpop.permute.xlu0 %3817 }
 0x4c6   : > { %10277 = vmatprep.subr.msk.bf16.mxu0 %vm4019_vm8, %v5868_v20  ;;  %16585 = vst [vmem:[#allocation120_spill] sm:$0xff] %v13649_v14  ;;  %v13651_v50 = vpop.permute.xlu1 %3737 }
 0x4c7   : > { %16586 = vst [vmem:[#allocation121_spill] sm:$0xff] %v13651_v50 }
 0x4c9   : > { %v13657_v6 = vpop.permute.xlu0 %3822 }
 0x4ca   : > { %16587 = vst [vmem:[#allocation122_spill] sm:$0xff] %v13657_v6  ;;  %v13659_v4 = vpop.permute.xlu1 %3827 }
 0x4cb   : > { %16588 = vst [vmem:[#allocation123_spill] sm:$0xff] %v13659_v4 }
 0x4cc   : > { %9556 = vmatmul.mubr.msk.bf16.gmra.mrb[68].mxu0 %vm3970_vm9, %v13487_v60 }
 0x4cd   : > { %9559 = vmatprep.mubr.msk.bf16.mxu0 %vm3970_vm9, %v13492_v41  ;;  %v13665_v10 = vpop.permute.xlu0 %3742 }
 0x4ce   : > { %16589 = vst [vmem:[#allocation124_spill] sm:$0xff] %v13665_v10  ;;  %v13667_v31 = vpop.permute.xlu1 %3747 }
 0x4cf   : > { %16590 = vst [vmem:[#allocation125_spill] sm:$0xff] %v13667_v31 }
 0x4d1   : > { %v13669_v9 = vpop.permute.xlu0 %3832 }
 0x4d2   : > { %16591 = vst [vmem:[#allocation126_spill] sm:$0xff] %v13669_v9  ;;  %v13675_v7 = vpop.permute.xlu1 %3837 }
 0x4d3   : > { %16592 = vst [vmem:[#allocation127_spill] sm:$0xff] %v13675_v7 }
 0x4d4   : > { %9560 = vmatmul.mubr.msk.bf16.gmra.mrb[72].mxu0 %vm3970_vm9, %v13503_v58 }
 0x4d5   : > { %9563 = vmatprep.mubr.msk.bf16.mxu0 %vm3970_vm9, %v13508_v62  ;;  %v13677_v45 = vpop.permute.xlu0 %3752 }
 0x4d6   : > { %16593 = vst [vmem:[#allocation128_spill] sm:$0xff] %v13677_v45  ;;  %v13679_v11 = vpop.permute.xlu1 %3757 }
 0x4d7   : > { %16594 = vst [vmem:[#allocation129_spill] sm:$0xff] %v13679_v11 }
 0x4d9   : > { %v13685_v3 = vpop.permute.xlu0 %3842 }
 0x4da   : > { %16595 = vst [vmem:[#allocation130_spill] sm:$0xff] %v13685_v3  ;;  %v13687_v0 = vpop.permute.xlu1 %3847 }
 0x4db   : > { %16596 = vst [vmem:[#allocation131_spill] sm:$0xff] %v13687_v0 }
 0x4dc   : > { %9564 = vmatmul.mubr.msk.bf16.gmra.mrb[76].mxu0 %vm3970_vm9, %v13519_v34 }
 0x4dd   : > { %9567 = vmatprep.mubr.msk.bf16.mxu0 %vm3970_vm9, %v13524_v28  ;;  %v13693_v32 = vpop.permute.xlu0 %3762 }
 0x4de   : > { %16597 = vst [vmem:[#allocation132_spill] sm:$0xff] %v13693_v32  ;;  %v13695_v48 = vpop.permute.xlu1 %3767 }
 0x4df   : > { %16598 = vst [vmem:[#allocation133_spill] sm:$0xff] %v13695_v48 }
 0x4e1   : > { %v13701_v24 = vpop.permute.xlu0 %3852 }
 0x4e2   : > { %16599 = vst [vmem:[#allocation134_spill] sm:$0xff] %v13701_v24  ;;  %v13707_v63 = vpop.permute.xlu1 %3857 }
 0x4e3   : > { %16600 = vst [vmem:[#allocation135_spill] sm:$0xff] %v13707_v63 }
 0x4e4   : > { %9568 = vmatmul.mubr.msk.bf16.gmra.mrb[80].mxu0 %vm3970_vm9, %v13535_v30 }
 0x4e5   : > { %9571 = vmatprep.mubr.msk.bf16.mxu0 %vm3970_vm9, %v13540_v33  ;;  %v13711_v57 = vpop.permute.xlu0 %3772 }
 0x4e6   : > { %16601 = vst [vmem:[#allocation136_spill] sm:$0xff] %v13711_v57  ;;  %v13713_v49 = vpop.permute.xlu1 %3777 }
 0x4e7   : > { %16602 = vst [vmem:[#allocation137_spill] sm:$0xff] %v13713_v49 }
 0x4e9   : > { %v13719_v21 = vpop.permute.xlu0 %3862 }
 0x4ea   : > { %16603 = vst [vmem:[#allocation138_spill] sm:$0xff] %v13719_v21  ;;  %v13721_v53 = vpop.permute.xlu1 %3867 }
 0x4eb   : > { %16604 = vst [vmem:[#allocation139_spill] sm:$0xff] %v13721_v53 }
 0x4ec   : > { %9572 = vmatmul.mubr.msk.bf16.gmra.mrb[84].mxu0 %vm3970_vm9, %v13551_v13 }
 0x4ed   : > { %9575 = vmatprep.mubr.msk.bf16.mxu0 %vm3970_vm9, %v13556_v43  ;;  %v13727_v36 = vpop.permute.xlu0 %3782 }
 0x4ee   : > { %16605 = vst [vmem:[#allocation140_spill] sm:$0xff] %v13727_v36  ;;  %v13729_v8 = vpop.permute.xlu1 %3787 }
 0x4ef   : > { %16606 = vst [vmem:[#allocation141_spill] sm:$0xff] %v13729_v8 }
 0x4f1   : > { %v13735_v15 = vpop.permute.xlu0 %3872 }
 0x4f2   : > { %16607 = vst [vmem:[#allocation142_spill] sm:$0xff] %v13735_v15  ;;  %v13741_v19 = vpop.permute.xlu1 %3877 }
 0x4f3   : > { %16608 = vst [vmem:[#allocation143_spill] sm:$0xff] %v13741_v19 }
 0x4f4   : > { %9576 = vmatmul.mubr.msk.bf16.gmra.mrb[88].mxu0 %vm3970_vm9, %v13567_v35 }
 0x4f5   : > { %9579 = vmatprep.mubr.msk.bf16.mxu0 %vm3970_vm9, %v13572_v17 }
 0x4fc   : > { %9580 = vmatmul.mubr.msk.bf16.gmra.mrb[92].mxu0 %vm3970_vm9, %v13583_v61 }
 0x4fd   : > { %9585 = vmatprep.mubr.msk.bf16.mxu0 %vm3970_vm9, %v13456_v38 }
 0x504   : > { %9586 = vmatmul.mubr.msk.bf16.vlgmr.msra.gmra.mrb[96].mxu0 %vm3970_vm9, %v13465_v56 }
 0x505   : > { %9618 = vmatpush3.bf16.msra.mxu0 %v5870_v25  ;;  %9589 = vmatprep.mubr.msk.bf16.mxu0 %vm3970_vm9, %v13470_v42 }
 0x506   : > { %10278 = vmatprep.subr.msk.bf16.mxu0 %vm4019_vm8, %v13699_v46 }
 0x50c   : > { %9590 = vmatmul.mubr.msk.bf16.gmra.mrb[100].mxu0 %vm3970_vm9, %v13487_v60 }
 0x50d   : > { %9593 = vmatprep.mubr.msk.bf16.mxu0 %vm3970_vm9, %v13492_v41 }
 0x514   : > { %9594 = vmatmul.mubr.msk.bf16.gmra.mrb[104].mxu0 %vm3970_vm9, %v13503_v58 }
 0x515   : > { %9597 = vmatprep.mubr.msk.bf16.mxu0 %vm3970_vm9, %v13508_v62 }
 0x517   : > { %v9485_v2 = vpop.f32.mrb[0].mxu0 }
 0x518   : > { %v4066_v44 = vadd.f32 %v9485_v2, %v13665_v10  ;;  %v4057_v27 = vpop.f32.mrb[1].mxu0  ;;  %v13745_v2 = vpop.permute.xlu0 %3792 }
 0x519   : > { %v4058_v1 = vadd.f32 %v4057_v27, %v13647_v54  ;;  %v9486_v12 = vpop.f32.mrb[2].mxu0  ;;  %16609 = vst [vmem:[#allocation144_spill] sm:$0xff] %v13745_v2 }
 0x51a   : > { %v4186_v59 = vmax.f32 %v4066_v44, 0.0  ;;  %v4069_v40 = vadd.f32 %v9486_v12, %v13667_v31  ;;  %v4060_v26 = vpop.f32.mrb[3].mxu0 }
 0x51b   : > { %v4184_v18 = vmax.f32 %v4058_v1, 0.0  ;;  %v4061_v47 = vadd.f32 %v4060_v26, %v13651_v50 }
 0x51c   : > { %v4218_v29 = vmax.f32 %v4186_v59, 1e-06  ;;  %v4187_v22 = vmax.f32 %v4069_v40, 0.0  ;;  %9598 = vmatmul.mubr.msk.bf16.gmra.mrb[108].mxu0 %vm3970_vm9, %v13519_v34  ;;  %v13749_v40 = vpop.permute.xlu1 %3797 }
 0x51d   : > { %v4216_v55 = vmax.f32 %v4184_v18, 1e-06  ;;  %v4185_v16 = vmax.f32 %v4061_v47, 0.0  ;;  %9601 = vmatprep.mubr.msk.bf16.mxu0 %vm3970_vm9, %v13524_v28  ;;  %16610 = vst [vmem:[#allocation145_spill] sm:$0xff] %v13749_v40 }
 0x51e   : > { %10346 = vlog2.f32 %v4218_v29  ;;  %v4219_v39 = vmax.f32 %v4187_v22, 1e-06 }
 0x51f   : > { %10348 = vlog2.f32 %v4216_v55  ;;  %v4217_v5 = vmax.f32 %v4185_v16, 1e-06  ;;  %v9489_v23 = vpop.f32.mrb[4].mxu0 }
 0x520   : > { %10350 = vlog2.f32 %v4219_v39  ;;  %v4082_v51 = vadd.f32 %v9489_v23, %v13693_v32  ;;  %v4073_v20 = vpop.f32.mrb[5].mxu0  ;;  %v13755_v39 = vpop.permute.xlu0 %3882  ;;  %v13758_v23 = vstv %s11608_s22 }
 0x521   : > { %10352 = vlog2.f32 %v4217_v5  ;;  %v4074_v37 = vadd.f32 %v4073_v20, %v13677_v45  ;;  %v9490_v25 = vpop.f32.mrb[6].mxu0  ;;  %16611 = vst [vmem:[#allocation146_spill] sm:$0xff] %v13755_v39 }
 0x522   : > { %v4190_v44 = vmax.f32 %v4082_v51, 0.0  ;;  %v4085_v27 = vadd.f32 %v9490_v25, %v13695_v48  ;;  %v4076_v1 = vpop.f32.mrb[7].mxu0 }
 0x523   : > { %v4188_v12 = vmax.f32 %v4074_v37, 0.0  ;;  %v4077_v59 = vadd.f32 %v4076_v1, %v13679_v11  ;;  %v13762_v1 = vpop.permute.xlu1 %3887 }
 0x524   : > { %v4222_v26 = vmax.f32 %v4190_v44, 1e-06  ;;  %v4191_v18 = vmax.f32 %v4085_v27, 0.0  ;;  %9602 = vmatmul.mubr.msk.bf16.gmra.mrb[112].mxu0 %vm3970_vm9, %v13535_v30  ;;  %16612 = vst [vmem:[#allocation147_spill] sm:$0xff] %v13762_v1 }
 0x525   : > { %v4220_v47 = vmax.f32 %v4188_v12, 1e-06  ;;  %v4189_v29 = vmax.f32 %v4077_v59, 0.0  ;;  %9605 = vmatprep.mubr.msk.bf16.mxu0 %vm3970_vm9, %v13540_v33 }
 0x526   : > { %10354 = vlog2.f32 %v4222_v26  ;;  %v4223_v22 = vmax.f32 %v4191_v18, 1e-06 }
 0x527   : > { %10356 = vlog2.f32 %v4220_v47  ;;  %v4221_v55 = vmax.f32 %v4189_v29, 1e-06  ;;  %v9493_v16 = vpop.f32.mrb[8].mxu0 }
 0x528   : > { %v10347_v5 = vpop.eup %10346  ;;  %10358 = vlog2.f32 %v4223_v22  ;;  %v4098_v51 = vadd.f32 %v9493_v16, %v13727_v36  ;;  %v4089_v20 = vpop.f32.mrb[9].mxu0 }
 0x529   : > { %v10349_v37 = vpop.eup %10348  ;;  %v4253_v25 = vmul.f32 0.6931472, %v10347_v5  ;;  %10360 = vlog2.f32 %v4221_v55  ;;  %v4090_v44 = vadd.f32 %v4089_v20, %v13711_v57  ;;  %v9494_v27 = vpop.f32.mrb[10].mxu0 }
 0x52a   : > { %v10351_v12 = vpop.eup %10350  ;;  %v4249_v59 = vmul.f32 0.6931472, %v10349_v37  ;;  %v4194_v26 = vmax.f32 %v4098_v51, 0.0  ;;  %v4101_v18 = vadd.f32 %v9494_v27, %v13729_v8  ;;  %v4092_v47 = vpop.f32.mrb[11].mxu0 }
 0x52b   : > { %v10353_v29 = vpop.eup %10352  ;;  %v4315_v22 = vmul.f32 %v13758_v23, %v4253_v25  ;;  %v4255_v33 = vmul.f32 0.6931472, %v10351_v12  ;;  %v4192_v16 = vmax.f32 %v4090_v44, 0.0  ;;  %v4093_v36 = vadd.f32 %v4092_v47, %v13713_v49  ;;  %v13771_v8 = vpop.permute.xlu0 %3802 }
 0x52c   : > { %v4313_v55 = vmul.f32 %v13758_v23, %v4249_v59  ;;  %v4251_v5 = vmul.f32 0.6931472, %v10353_v29  ;;  %v4226_v20 = vmax.f32 %v4194_v26, 1e-06  ;;  %v4195_v57 = vmax.f32 %v4101_v18, 0.0  ;;  %9606 = vmatmul.mubr.msk.bf16.gmra.mrb[116].mxu0 %vm3970_vm9, %v13551_v13  ;;  %16613 = vst [vmem:[#allocation148_spill] sm:$0xff] %v13771_v8  ;;  %v13776_v18 = vpop.permute.xlu1 %3807 }
 0x52d   : > { %v4349_v37 = vmul.f32 1.442695, %v4315_v22  ;;  %v4316_v51 = vmul.f32 %v13758_v23, %v4255_v33  ;;  %v4193_v27 = vmax.f32 %v4093_v36, 0.0  ;;  %9609 = vmatprep.mubr.msk.bf16.mxu0 %vm3970_vm9, %v13556_v43  ;;  %v4224_v59 = vmax.f32 %v4192_v16, 1e-06  ;;  %16614 = vst [vmem:[#allocation149_spill] sm:$0xff] %v13776_v18 }
 0x52e   : > { %v4345_v25 = vmul.f32 1.442695, %v4313_v55  ;;  %v4314_v44 = vmul.f32 %v13758_v23, %v4251_v5  ;;  %10362 = vlog2.f32 %v4226_v20  ;;  %v4227_v33 = vmax.f32 %v4195_v57, 1e-06 }
 0x52f   : > { %10364 = vpow2.f32 %v4349_v37  ;;  %v4351_v12 = vmul.f32 1.442695, %v4316_v51  ;;  %v9497_v26 = vpop.f32.mrb[12].mxu0  ;;  %v4225_v55 = vmax.f32 %v4193_v27, 1e-06 }
 0x530   : > { %v10355_v47 = vpop.eup %10354  ;;  %10366 = vpow2.f32 %v4345_v25  ;;  %v4347_v29 = vmul.f32 1.442695, %v4314_v44  ;;  %v4114_v36 = vadd.f32 %v9497_v26, %v13771_v8  ;;  %v4105_v22 = vpop.f32.mrb[13].mxu0 }
 0x531   : > { %v10357_v49 = vpop.eup %10356  ;;  %10368 = vpow2.f32 %v4351_v12  ;;  %v4261_v43 = vmul.f32 0.6931472, %v10355_v47  ;;  %v4106_v5 = vadd.f32 %v4105_v22, %v13745_v2  ;;  %v9498_v20 = vpop.f32.mrb[14].mxu0  ;;  %v8335_v22 = vld [vmem:[%s11605_s21 + $0x18] sm:$0xf] }
 0x532   : > { %v10359_v37 = vpop.eup %10358  ;;  %10370 = vpow2.f32 %v4347_v29  ;;  %v4257_v16 = vmul.f32 0.6931472, %v10357_v49  ;;  %v4198_v51 = vmax.f32 %v4114_v36, 0.0  ;;  %v4117_v13 = vadd.f32 %v9498_v20, %v13776_v18  ;;  %v4108_v11 = vpop.f32.mrb[15].mxu0 }
 0x533   : > { %v10361_v25 = vpop.eup %10360  ;;  %v4319_v57 = vmul.f32 %v13758_v23, %v4261_v43  ;;  %v4263_v44 = vmul.f32 0.6931472, %v10359_v37  ;;  %10372 = vlog2.f32 %v4224_v59  ;;  %v4196_v26 = vmax.f32 %v4106_v5, 0.0 }
 0x534   : > { %v4317_v12 = vmul.f32 %v13758_v23, %v4257_v16  ;;  %v4259_v27 = vmul.f32 0.6931472, %v10361_v25  ;;  %10374 = vlog2.f32 %v4227_v33  ;;  %v4230_v47 = vmax.f32 %v4198_v51, 1e-06  ;;  %9610 = vmatmul.mubr.msk.bf16.gmra.mrb[120].mxu0 %vm3970_vm9, %v13567_v35 }
 0x535   : > { %v4357_v49 = vmul.f32 1.442695, %v4319_v57  ;;  %v4320_v29 = vmul.f32 %v13758_v23, %v4263_v44  ;;  %10376 = vlog2.f32 %v4225_v55  ;;  %9613 = vmatprep.mubr.msk.bf16.mxu0 %vm3970_vm9, %v13572_v17  ;;  %v13790_v43 = vsel %vm4019_vm8, %v13699_v46, 0 }
 0x536   : > { %v4353_v59 = vmul.f32 1.442695, %v4317_v12  ;;  %v4318_v36 = vmul.f32 %v13758_v23, %v4259_v27  ;;  %10378 = vlog2.f32 %v4230_v47  ;;  %v4199_v33 = vmax.f32 %v4117_v13, 0.0 }
 0x537   : > { %10380 = vpow2.f32 %v4357_v49  ;;  %v4359_v5 = vmul.f32 1.442695, %v4320_v29  ;;  %v4228_v20 = vmax.f32 %v4196_v26, 1e-06  ;;  %v4109_v37 = vadd.f32 %v4108_v11, %v13749_v40  ;;  %v9501_v16 = vpop.f32.mrb[16].mxu0 }
 0x538   : > { %v10363_v55 = vpop.eup %10362  ;;  %10382 = vpow2.f32 %v4353_v59  ;;  %v4355_v51 = vmul.f32 1.442695, %v4318_v36  ;;  %v4231_v25 = vmax.f32 %v4199_v33, 1e-06  ;;  %v4130_v57 = vadd.f32 %v9501_v16, %v13657_v6  ;;  %v4121_v46 = vpop.f32.mrb[17].mxu0 }
 0x539   : > { %v13796_v44 = vpop.eup %10364  ;;  %10384 = vpow2.f32 %v4359_v5  ;;  %v4269_v12 = vmul.f32 0.6931472, %v10363_v55  ;;  %v4197_v27 = vmax.f32 %v4109_v37, 0.0  ;;  %v4122_v13 = vadd.f32 %v4121_v46, %v13641_v52  ;;  %v9502_v47 = vpop.f32.mrb[18].mxu0 }
 0x53a   : > { %v13799_v49 = vpop.eup %10366  ;;  %10386 = vpow2.f32 %v4355_v51  ;;  %v4202_v11 = vmax.f32 %v4130_v57, 0.0  ;;  %v4133_v26 = vadd.f32 %v9502_v47, %v13659_v4  ;;  %v4124_v29 = vpop.f32.mrb[19].mxu0  ;;  %v13802_v59 = vpack.c.bf16 %v8335_v22, %v8335_v22 }
 0x53b   : > { %v13804_v36 = vpop.eup %10368  ;;  %v4323_v33 = vmul.f32 %v13758_v23, %v4269_v12  ;;  %10388 = vlog2.f32 %v4228_v20  ;;  %v4229_v5 = vmax.f32 %v4197_v27, 1e-06  ;;  %v4200_v16 = vmax.f32 %v4122_v13, 0.0 }
 0x53c   : > { %v13807_v37 = vpop.eup %10370  ;;  %10390 = vlog2.f32 %v4231_v25  ;;  %v4234_v55 = vmax.f32 %v4202_v11, 1e-06  ;;  %v4203_v46 = vmax.f32 %v4133_v26, 0.0  ;;  %v4125_v51 = vadd.f32 %v4124_v29, %v13649_v14  ;;  %9614 = vmatmul.mubr.msk.bf16.gmra.mrb[124].mxu0 %vm3970_vm9, %v13583_v61 }
 0x53d   : > { %v10373_v57 = vpop.eup %10372  ;;  %v4365_v22 = vmul.f32 1.442695, %v4323_v33  ;;  %10392 = vlog2.f32 %v4229_v5  ;;  %v4232_v47 = vmax.f32 %v4200_v16, 1e-06  ;;  %9619 = vmatprep.mubr.msk.bf16.mxu0 %vm3970_vm9, %v13456_v38  ;;  %v16062_v61 = vmov 1.0  }
 0x53e   : > { %v10375_v12 = vpop.eup %10374  ;;  %v4265_v27 = vmul.f32 0.6931472, %v10373_v57  ;;  %10394 = vlog2.f32 %v4234_v55  ;;  %v4235_v25 = vmax.f32 %v4203_v46, 1e-06  ;;  %v4201_v13 = vmax.f32 %v4125_v51, 0.0  ;;  %8850 = vmatprep.mubr.f32.mxu1 %v16062_v61 }
 0x53f   : > { %v10377_v11 = vpop.eup %10376  ;;  %10396 = vpow2.f32 %v4365_v22  ;;  %v4271_v26 = vmul.f32 0.6931472, %v10375_v12  ;;  %v9505_v29 = vpop.f32.mrb[20].mxu0 }
 0x540   : > { %v13818_v5 = vpop.eup %10378  ;;  %v4321_v16 = vmul.f32 %v13758_v23, %v4265_v27  ;;  %v4267_v38 = vmul.f32 0.6931472, %v10377_v11  ;;  %10398 = vlog2.f32 %v4232_v47  ;;  %v4233_v14 = vmax.f32 %v4201_v13, 1e-06  ;;  %v4137_v20 = vpop.f32.mrb[21].mxu0 }
 0x541   : > { %16615 = vst [vmem:[#allocation150_spill] sm:$0xff] %v13818_v5  ;;  %v13822_v55 = vpop.eup %10380  ;;  %v4324_v46 = vmul.f32 %v13758_v23, %v4271_v26  ;;  %10400 = vlog2.f32 %v4235_v25  ;;  %v4146_v51 = vadd.f32 %v9505_v29, %v13685_v3  ;;  %v4138_v57 = vadd.f32 %v4137_v20, %v13669_v9  ;;  %v9506_v22 = vpop.f32.mrb[22].mxu0 }
 0x542   : > { %v13827_v12 = vpop.eup %10382  ;;  %v4361_v27 = vmul.f32 1.442695, %v4321_v16  ;;  %v4322_v47 = vmul.f32 %v13758_v23, %v4267_v38  ;;  %10402 = vlog2.f32 %v4233_v14  ;;  %v4149_v13 = vadd.f32 %v9506_v22, %v13687_v0  ;;  %v4140_v11 = vpop.f32.mrb[23].mxu0 }
 0x543   : > { %v13831_v61 = vpop.eup %10384  ;;  %v4367_v33 = vmul.f32 1.442695, %v4324_v46  ;;  %v4206_v5 = vmax.f32 %v4146_v51, 0.0  ;;  %v4204_v26 = vmax.f32 %v4138_v57, 0.0  ;;  %v4141_v25 = vadd.f32 %v4140_v11, %v13675_v7 }
 0x544   : > { %v13834_v29 = vpop.eup %10386  ;;  %10404 = vpow2.f32 %v4361_v27  ;;  %v4363_v20 = vmul.f32 1.442695, %v4322_v47  ;;  %v4207_v9 = vmax.f32 %v4149_v13, 0.0  ;;  %9620 = vmatmul.mubr.msk.bf16.vlgmr.msra.gmra.mrb[128].mxu0 %vm3970_vm9, %v13465_v56 }
 0x545   : > { %v10389_v14 = vpop.eup %10388  ;;  %10406 = vpow2.f32 %v4367_v33  ;;  %v4238_v16 = vmax.f32 %v4206_v5, 1e-06  ;;  %v4236_v22 = vmax.f32 %v4204_v26, 1e-06  ;;  %v4205_v46 = vmax.f32 %v4141_v25, 0.0  ;;  %9652 = vmatpush3.bf16.msra.mxu0 %v13790_v43  ;;  %9623 = vmatprep.mubr.msk.bf16.mxu0 %vm3970_vm9, %v13470_v42 }
 0x546   : > { %v10391_v51 = vpop.eup %10390  ;;  %10408 = vpow2.f32 %v4363_v20  ;;  %v4273_v57 = vmul.f32 0.6931472, %v10389_v14  ;;  %v4239_v27 = vmax.f32 %v4207_v9, 1e-06  ;;  %10279 = vmatprep.subr.msk.bf16.mxu0 %vm4019_vm8, %v13802_v59  ;;  %v13849_v43 = vsel %vm4019_vm8, %v13802_v59, 0 }
 0x547   : > { %v10393_v13 = vpop.eup %10392  ;;  %v4279_v33 = vmul.f32 0.6931472, %v10391_v51  ;;  %10410 = vlog2.f32 %v4238_v16  ;;  %v4237_v5 = vmax.f32 %v4205_v46, 1e-06  ;;  %v9509_v11 = vpop.f32.mrb[24].mxu0  ;;  %16616 = vst [vmem:[#allocation151_spill] sm:$0xff] %v13849_v43 }
 0x548   : > { %v10395_v26 = vpop.eup %10394  ;;  %v4325_v25 = vmul.f32 %v13758_v23, %v4273_v57  ;;  %v4275_v20 = vmul.f32 0.6931472, %v10393_v13  ;;  %10412 = vlog2.f32 %v4236_v22  ;;  %v4162_v9 = vadd.f32 %v9509_v11, %v13719_v21  ;;  %v4153_v14 = vpop.f32.mrb[25].mxu0 }
 0x549   : > { %v13853_v38 = vpop.eup %10396  ;;  %v4328_v47 = vmul.f32 %v13758_v23, %v4279_v33  ;;  %v4285_v51 = vmul.f32 0.6931472, %v10395_v26  ;;  %10414 = vlog2.f32 %v4239_v27  ;;  %v4154_v16 = vadd.f32 %v4153_v14, %v13701_v24  ;;  %v9510_v46 = vpop.f32.mrb[26].mxu0 }
 0x54a   : > { %16617 = vst [vmem:[#allocation152_spill] sm:$0xff] %v13853_v38  ;;  %v10399_v7 = vpop.eup %10398  ;;  %v4369_v59 = vmul.f32 1.442695, %v4325_v25  ;;  %v4326_v0 = vmul.f32 %v13758_v23, %v4275_v20  ;;  %10416 = vlog2.f32 %v4237_v5  ;;  %v4210_v57 = vmax.f32 %v4162_v9, 0.0  ;;  %v4156_v13 = vpop.f32.mrb[27].mxu0 }
 0x54b   : > { %v10401_v22 = vpop.eup %10400  ;;  %v4375_v42 = vmul.f32 1.442695, %v4328_v47  ;;  %v4331_v11 = vmul.f32 %v13758_v23, %v4285_v51  ;;  %v4281_v21 = vmul.f32 0.6931472, %v10399_v7  ;;  %v4208_v38 = vmax.f32 %v4154_v16, 0.0 }
 0x54c   : > { %v10403_v43 = vpop.eup %10402  ;;  %10418 = vpow2.f32 %v4369_v59  ;;  %v4371_v33 = vmul.f32 1.442695, %v4326_v0  ;;  %v4287_v27 = vmul.f32 0.6931472, %v10401_v22  ;;  %v4242_v26 = vmax.f32 %v4210_v57, 1e-06  ;;  %9624 = vmatmul.mubr.msk.bf16.gmra.mrb[132].mxu0 %vm3970_vm9, %v13487_v60 }
 0x54d   : > { %10420 = vpow2.f32 %v4375_v42  ;;  %v4381_v25 = vmul.f32 1.442695, %v4331_v11  ;;  %v4329_v5 = vmul.f32 %v13758_v23, %v4281_v21  ;;  %v4283_v20 = vmul.f32 0.6931472, %v10403_v43  ;;  %9627 = vmatprep.mubr.msk.bf16.mxu0 %vm3970_vm9, %v13492_v41 }
 0x54e   : > { %v13864_v47 = vpop.eup %10404  ;;  %10422 = vpow2.f32 %v4371_v33  ;;  %v4332_v7 = vmul.f32 %v13758_v23, %v4287_v27  ;;  %v4240_v9 = vmax.f32 %v4208_v38, 1e-06  ;;  %v4165_v0 = vadd.f32 %v9510_v46, %v13721_v53 }
 0x54f   : > { %v13868_v14 = vpop.eup %10406  ;;  %10424 = vpow2.f32 %v4381_v25  ;;  %v4377_v51 = vmul.f32 1.442695, %v4329_v5  ;;  %v4330_v42 = vmul.f32 %v13758_v23, %v4283_v20  ;;  %v4157_v21 = vadd.f32 %v4156_v13, %v13707_v63  ;;  %v9513_v43 = vpop.f32.mrb[28].mxu0 }
 0x550   : > { %v13872_v16 = vpop.eup %10408  ;;  %v4383_v59 = vmul.f32 1.442695, %v4332_v7  ;;  %10426 = vlog2.f32 %v4242_v26  ;;  %v4211_v57 = vmax.f32 %v4165_v0, 0.0  ;;  %v4178_v22 = vadd.f32 %v9513_v43, %v13755_v39  ;;  %v4169_v11 = vpop.f32.mrb[29].mxu0 }
 0x551   : > { %v10411_v38 = vpop.eup %10410  ;;  %10428 = vpow2.f32 %v4377_v51  ;;  %v4379_v46 = vmul.f32 1.442695, %v4330_v42  ;;  %v4209_v33 = vmax.f32 %v4157_v21, 0.0  ;;  %v4170_v27 = vadd.f32 %v4169_v11, %v13735_v15  ;;  %v9514_v25 = vpop.f32.mrb[30].mxu0 }
 0x552   : > { %v10413_v5 = vpop.eup %10412  ;;  %10430 = vpow2.f32 %v4383_v59  ;;  %v4293_v20 = vmul.f32 0.6931472, %v10411_v38  ;;  %v4243_v13 = vmax.f32 %v4211_v57, 1e-06  ;;  %v4214_v63 = vmax.f32 %v4178_v22, 0.0  ;;  %v4172_v53 = vpop.f32.mrb[31].mxu0 }
 0x553   : > { %v10415_v24 = vpop.eup %10414  ;;  %10432 = vpow2.f32 %v4379_v46  ;;  %v4289_v26 = vmul.f32 0.6931472, %v10413_v5  ;;  %v4241_v7 = vmax.f32 %v4209_v33, 1e-06  ;;  %v4212_v0 = vmax.f32 %v4170_v27, 0.0 }
 0x554   : > { %v10417_v43 = vpop.eup %10416  ;;  %v4335_v39 = vmul.f32 %v13758_v23, %v4293_v20  ;;  %v4295_v51 = vmul.f32 0.6931472, %v10415_v24  ;;  %10434 = vlog2.f32 %v4240_v9  ;;  %v4246_v42 = vmax.f32 %v4214_v63, 1e-06  ;;  %9628 = vmatmul.mubr.msk.bf16.gmra.mrb[136].mxu0 %vm3970_vm9, %v13503_v58 }
 0x555   : > { %v4333_v21 = vmul.f32 %v13758_v23, %v4289_v26  ;;  %v4291_v59 = vmul.f32 0.6931472, %v10417_v43  ;;  %10436 = vlog2.f32 %v4243_v13  ;;  %v4244_v57 = vmax.f32 %v4212_v0, 1e-06  ;;  %9631 = vmatprep.mubr.msk.bf16.mxu0 %vm3970_vm9, %v13508_v62 }
 0x556   : > { %v13882_v22 = vpop.eup %10418  ;;  %v4389_v11 = vmul.f32 1.442695, %v4335_v39  ;;  %v4336_v38 = vmul.f32 %v13758_v23, %v4295_v51  ;;  %10438 = vlog2.f32 %v4241_v7  ;;  %v4181_v24 = vadd.f32 %v9514_v25, %v13762_v1 }
 0x557   : > { %v13886_v63 = vpop.eup %10420  ;;  %v4385_v9 = vmul.f32 1.442695, %v4333_v21  ;;  %v4334_v46 = vmul.f32 %v13758_v23, %v4291_v59  ;;  %10440 = vlog2.f32 %v4246_v42  ;;  %v4173_v33 = vadd.f32 %v4172_v53, %v13741_v19  ;;  %v9519_v27 = vpop.f32.mrb[32].mxu0 }
 0x558   : > { %16618 = vst [vmem:[#allocation153_spill] sm:$0xff] %v13886_v63  ;;  %v13890_v5 = vpop.eup %10422  ;;  %10442 = vpow2.f32 %v4389_v11  ;;  %v4391_v20 = vmul.f32 1.442695, %v4336_v38  ;;  %v4215_v13 = vmax.f32 %v4181_v24, 0.0  ;;  %v4529_v39 = vadd.f32 %v9519_v27, %v13665_v10  ;;  %v4520_v26 = vpop.f32.mrb[33].mxu0 }
 0x559   : > { %v10425_v7 = vpop.eup %10424  ;;  %10444 = vpow2.f32 %v4385_v9  ;;  %v4387_v25 = vmul.f32 1.442695, %v4334_v46  ;;  %v4213_v0 = vmax.f32 %v4173_v33, 0.0  ;;  %v4521_v43 = vadd.f32 %v4520_v26, %v13647_v54  ;;  %v9520_v51 = vpop.f32.mrb[34].mxu0 }
 0x55a   : > { %v10427_v21 = vpop.eup %10426  ;;  %10446 = vpow2.f32 %v4391_v20  ;;  %v4247_v42 = vmax.f32 %v4215_v13, 1e-06  ;;  %v4649_v53 = vmax.f32 %v4529_v39, 0.0  ;;  %v4532_v59 = vadd.f32 %v9520_v51, %v13667_v31  ;;  %v4523_v63 = vpop.f32.mrb[35].mxu0 }
 0x55b   : > { %v10429_v11 = vpop.eup %10428  ;;  %10448 = vpow2.f32 %v4387_v25  ;;  %v4301_v38 = vmul.f32 0.6931472, %v10427_v21  ;;  %v4245_v24 = vmax.f32 %v4213_v0, 1e-06  ;;  %v4647_v27 = vmax.f32 %v4521_v43, 0.0 }
 0x55c   : > { %v10431_v10 = vpop.eup %10430  ;;  %10450 = vlog2.f32 %v4244_v57  ;;  %v4681_v9 = vmax.f32 %v4649_v53, 1e-06  ;;  %v4650_v46 = vmax.f32 %v4532_v59, 0.0  ;;  %v4524_v33 = vadd.f32 %v4523_v63, %v13651_v50  ;;  %9632 = vmatmul.mubr.msk.bf16.gmra.mrb[140].mxu0 %vm3970_vm9, %v13519_v34 }
 0x55d   : > { %v10433_v20 = vpop.eup %10432  ;;  %v4339_v13 = vmul.f32 %v13758_v23, %v4301_v38  ;;  %10452 = vlog2.f32 %v4247_v42  ;;  %v4679_v39 = vmax.f32 %v4647_v27, 1e-06  ;;  %v10013_v26 = vpack.c.bf16 %v10431_v10, %v10425_v7  ;;  %9635 = vmatprep.mubr.msk.bf16.mxu0 %vm3970_vm9, %v13524_v28 }
 0x55e   : > { %v10435_v25 = vpop.eup %10434  ;;  %10454 = vlog2.f32 %v4245_v24  ;;  %v4682_v0 = vmax.f32 %v4650_v46, 1e-06  ;;  %v4648_v57 = vmax.f32 %v4524_v33, 0.0  ;;  %v10009_v43 = vpack.c.bf16 %v10433_v20, %v10429_v11 }
 0x55f   : > { %v10437_v51 = vpop.eup %10436  ;;  %v4397_v21 = vmul.f32 1.442695, %v4339_v13  ;;  %v4297_v63 = vmul.f32 0.6931472, %v10435_v25  ;;  %10456 = vlog2.f32 %v4681_v9  ;;  %v9523_v53 = vpop.f32.mrb[36].mxu0  ;;  %v16619_v9 = vpack.c.bf16 %v13807_v37, %v13799_v49 }
 0x560   : > { %v10439_v38 = vpop.eup %10438  ;;  %v4303_v42 = vmul.f32 0.6931472, %v10437_v51  ;;  %10458 = vlog2.f32 %v4679_v39  ;;  %v4680_v10 = vmax.f32 %v4648_v57, 1e-06  ;;  %10010 = vmatprep.subr.bf16.mxu1 %v10009_v43  ;;  %v4545_v7 = vadd.f32 %v9523_v53, %v13693_v32  ;;  %v4536_v27 = vpop.f32.mrb[37].mxu0 }
 0x561   : > { %v10441_v24 = vpop.eup %10440  ;;  %10460 = vpow2.f32 %v4397_v21  ;;  %v4337_v11 = vmul.f32 %v13758_v23, %v4297_v63  ;;  %v4299_v46 = vmul.f32 0.6931472, %v10439_v38  ;;  %10012 = vmatpush3.bf16.xpose.msra.mxu1 %v16619_v9  ;;  %v4537_v33 = vadd.f32 %v4536_v27, %v13677_v45  ;;  %v9524_v20 = vpop.f32.mrb[38].mxu0 }
 0x562   : > { %v13909_v13 = vpop.eup %10442  ;;  %v4340_v39 = vmul.f32 %v13758_v23, %v4303_v42  ;;  %v4309_v25 = vmul.f32 0.6931472, %v10441_v24  ;;  %10462 = vlog2.f32 %v4682_v0  ;;  %v4653_v57 = vmax.f32 %v4545_v7, 0.0  ;;  %10014 = vmatprep.subr.bf16.mxu1 %v10013_v26  ;;  %v4539_v43 = vpop.f32.mrb[39].mxu0  ;;  %v16620_v7 = vld [vmem:[#allocation129_spill] sm:$0xff] }
 0x563   : > { %v10445_v51 = vpop.eup %10444  ;;  %v4393_v21 = vmul.f32 1.442695, %v4337_v11  ;;  %v4338_v63 = vmul.f32 %v13758_v23, %v4299_v46  ;;  %10464 = vlog2.f32 %v4680_v10  ;;  %v4651_v53 = vmax.f32 %v4537_v33, 0.0  ;;  %v16621_v11 = vld [vmem:[#allocation114_spill] sm:$0xff] }
 0x564   : > { %v13913_v49 = vpop.eup %10446  ;;  %v4399_v37 = vmul.f32 1.442695, %v4340_v39  ;;  %v4343_v38 = vmul.f32 %v13758_v23, %v4309_v25  ;;  %v4685_v27 = vmax.f32 %v4653_v57, 1e-06  ;;  %v4548_v9 = vadd.f32 %v9524_v20, %v13695_v48  ;;  %9636 = vmatmul.mubr.msk.bf16.gmra.mrb[144].mxu0 %vm3970_vm9, %v13535_v30 }
 0x565   : > { %v10449_v0 = vpop.eup %10448  ;;  %10466 = vpow2.f32 %v4393_v21  ;;  %v4395_v26 = vmul.f32 1.442695, %v4338_v63  ;;  %v4683_v42 = vmax.f32 %v4651_v53, 1e-06  ;;  %v4540_v24 = vadd.f32 %v4539_v43, %v16620_v7  ;;  %9639 = vmatprep.mubr.msk.bf16.mxu0 %vm3970_vm9, %v16621_v11  ;;  %v16622_v7 = vld [vmem:[#allocation140_spill] sm:$0xff] }
 0x566   : > { %v10451_v10 = vpop.eup %10450  ;;  %10468 = vpow2.f32 %v4399_v37  ;;  %v4405_v46 = vmul.f32 1.442695, %v4343_v38  ;;  %v4654_v33 = vmax.f32 %v4548_v9, 0.0  ;;  %v10017_v39 = vpack.c.bf16 %v10449_v0, %v10445_v51 }
 0x567   : > { %v10453_v25 = vpop.eup %10452  ;;  %10470 = vpow2.f32 %v4395_v26  ;;  %v4305_v20 = vmul.f32 0.6931472, %v10451_v10  ;;  %v4652_v57 = vmax.f32 %v4540_v24, 0.0  ;;  %v9527_v59 = vpop.f32.mrb[40].mxu0  ;;  %v16623_v9 = vpack.c.bf16 %v13804_v36, %v13796_v44 }
 0x568   : > { %v10455_v63 = vpop.eup %10454  ;;  %10472 = vpow2.f32 %v4405_v46  ;;  %v4311_v53 = vmul.f32 0.6931472, %v10453_v25  ;;  %v4686_v43 = vmax.f32 %v4654_v33, 1e-06  ;;  %v4561_v48 = vadd.f32 %v9527_v59, %v16622_v7  ;;  %v4552_v45 = vpop.f32.mrb[41].mxu0 }
 0x569   : > { %v10457_v11 = vpop.eup %10456  ;;  %v4341_v37 = vmul.f32 %v13758_v23, %v4305_v20  ;;  %v4307_v38 = vmul.f32 0.6931472, %v10455_v63  ;;  %10474 = vlog2.f32 %v4685_v27  ;;  %v4684_v51 = vmax.f32 %v4652_v57, 1e-06  ;;  %10016 = vmatpush3.bf16.xpose.msra.mxu1 %v16623_v9  ;;  %v9528_v0 = vpop.f32.mrb[42].mxu0  ;;  %v16624_v9 = vld [vmem:[#allocation115_spill] sm:$0xff] }
 0x56a   : > { %v10459_v26 = vpop.eup %10458  ;;  %v4344_v24 = vmul.f32 %v13758_v23, %v4311_v53  ;;  %v4716_v10 = vmul.f32 0.6931472, %v10457_v11  ;;  %10476 = vlog2.f32 %v4683_v42  ;;  %v4657_v46 = vmax.f32 %v4561_v48, 0.0  ;;  %10018 = vmatprep.subr.bf16.mxu1 %v10017_v39  ;;  %v4555_v59 = vpop.f32.mrb[43].mxu0  ;;  %v16625_v53 = vld [vmem:[#allocation116_spill] sm:$0xff] }
 0x56b   : > { %v13930_v33 = vpop.eup %10460  ;;  %v4401_v25 = vmul.f32 1.442695, %v4341_v37  ;;  %v4342_v20 = vmul.f32 %v13758_v23, %v4307_v38  ;;  %v4712_v27 = vmul.f32 0.6931472, %v10459_v26  ;;  %10478 = vlog2.f32 %v4686_v43  ;;  %v16626_v38 = vld [vmem:[#allocation136_spill] sm:$0xff] }
 0x56c   : > { %v10463_v57 = vpop.eup %10462  ;;  %v4407_v63 = vmul.f32 1.442695, %v4344_v24  ;;  %v4777_v44 = vmul.f32 %v4716_v10, %v13758_v23  ;;  %10480 = vlog2.f32 %v4684_v51  ;;  %v4689_v36 = vmax.f32 %v4657_v46, 1e-06  ;;  %9640 = vmatmul.mubr.msk.bf16.gmra.mrb[148].mxu0 %vm3970_vm9, %v16624_v9  ;;  %v16627_v46 = vld [vmem:[#allocation141_spill] sm:$0xff] }
 0x56d   : > { %v10465_v42 = vpop.eup %10464  ;;  %10482 = vpow2.f32 %v4401_v25  ;;  %v4403_v48 = vmul.f32 1.442695, %v4342_v20  ;;  %v4775_v11 = vmul.f32 %v4712_v27, %v13758_v23  ;;  %v4718_v39 = vmul.f32 0.6931472, %v10463_v57  ;;  %9643 = vmatprep.mubr.msk.bf16.mxu0 %vm3970_vm9, %v16625_v53 }
 0x56e   : > { %10484 = vpow2.f32 %v4407_v63  ;;  %v4811_v43 = vmul.f32 1.442695, %v4777_v44  ;;  %v4714_v37 = vmul.f32 0.6931472, %v10465_v42  ;;  %v4553_v26 = vadd.f32 %v4552_v45, %v16626_v38  ;;  %v16628_v63 = vld [vmem:[#allocation137_spill] sm:$0xff] }
 0x56f   : > { %v13940_v24 = vpop.eup %10466  ;;  %10486 = vpow2.f32 %v4403_v48  ;;  %v4807_v51 = vmul.f32 1.442695, %v4775_v11  ;;  %v4778_v10 = vmul.f32 %v4718_v39, %v13758_v23  ;;  %v4564_v25 = vadd.f32 %v9528_v0, %v16627_v46  ;;  %v9531_v20 = vpop.f32.mrb[44].mxu0 }
 0x570   : > { %v13944_v21 = vpop.eup %10468  ;;  %10488 = vpow2.f32 %v4811_v43  ;;  %v4776_v27 = vmul.f32 %v4714_v37, %v13758_v23  ;;  %v4655_v57 = vmax.f32 %v4553_v26, 0.0  ;;  %v4556_v44 = vadd.f32 %v4555_v59, %v16628_v63  ;;  %v4568_v42 = vpop.f32.mrb[45].mxu0 }
 0x571   : > { %v13948_v53 = vpop.eup %10470  ;;  %10490 = vpow2.f32 %v4807_v51  ;;  %v4813_v45 = vmul.f32 1.442695, %v4778_v10  ;;  %v4658_v48 = vmax.f32 %v4564_v25, 0.0  ;;  %v4577_v11 = vadd.f32 %v9531_v20, %v13771_v8  ;;  %v9532_v39 = vpop.f32.mrb[46].mxu0 }
 0x572   : > { %v16629_v0 = vpack.c.bf16 %v13834_v29, %v13827_v12  ;;  %v13954_v46 = vpop.eup %10472  ;;  %v4809_v43 = vmul.f32 1.442695, %v4776_v27  ;;  %10492 = vlog2.f32 %v4689_v36  ;;  %v4687_v37 = vmax.f32 %v4655_v57, 1e-06  ;;  %v4571_v51 = vpop.f32.mrb[47].mxu0 }
 0x573   : > { %v4656_v26 = vmax.f32 %v4556_v44, 0.0  ;;  %v16630_v59 = vpack.c.bf16 %v13913_v49, %v13909_v13  ;;  %v10475_v10 = vpop.eup %10474  ;;  %10494 = vpow2.f32 %v4813_v45  ;;  %v4690_v25 = vmax.f32 %v4658_v48, 1e-06 }
 0x574   : > { %10020 = vmatpush3.bf16.xpose.msra.mxu1 %v16629_v0  ;;  %v4661_v20 = vmax.f32 %v4577_v11, 0.0  ;;  %v4569_v8 = vadd.f32 %v4568_v42, %v13745_v2  ;;  %v10477_v12 = vpop.eup %10476  ;;  %10496 = vpow2.f32 %v4809_v43  ;;  %v4724_v29 = vmul.f32 0.6931472, %v10475_v10  ;;  %9644 = vmatmul.mubr.msk.bf16.gmra.mrb[152].mxu0 %vm3970_vm9, %v13567_v35 }
 0x575   : > { %10022 = vmatprep.subr.bf16.mxu1 %v16630_v59  ;;  %v4688_v0 = vmax.f32 %v4656_v26, 1e-06  ;;  %v4580_v27 = vadd.f32 %v9532_v39, %v13776_v18  ;;  %v10479_v36 = vpop.eup %10478  ;;  %v4720_v57 = vmul.f32 0.6931472, %v10477_v12  ;;  %10498 = vlog2.f32 %v4687_v37  ;;  %9647 = vmatprep.mubr.msk.bf16.mxu0 %vm3970_vm9, %v13572_v17 }
 0x576   : > { %v4693_v13 = vmax.f32 %v4661_v20, 1e-06  ;;  %v4659_v49 = vmax.f32 %v4569_v8, 0.0  ;;  %v10481_v44 = vpop.eup %10480  ;;  %v4781_v42 = vmul.f32 %v4724_v29, %v13758_v23  ;;  %v4726_v45 = vmul.f32 0.6931472, %v10479_v36 }
 0x577   : > { %10500 = vlog2.f32 %v4690_v25  ;;  %v4662_v48 = vmax.f32 %v4580_v27, 0.0  ;;  %v13966_v11 = vpop.eup %10482  ;;  %v4779_v39 = vmul.f32 %v4720_v57, %v13758_v23  ;;  %v4722_v43 = vmul.f32 0.6931472, %v10481_v44  ;;  %v9535_v59 = vpop.f32.mrb[48].mxu0 }
 0x578   : > { %10502 = vlog2.f32 %v4688_v0  ;;  %v4691_v26 = vmax.f32 %v4659_v49, 1e-06  ;;  %v13969_v37 = vpop.eup %10484  ;;  %v4819_v8 = vmul.f32 1.442695, %v4781_v42  ;;  %v4782_v10 = vmul.f32 %v4726_v45, %v13758_v23  ;;  %v4584_v12 = vpop.f32.mrb[49].mxu0 }
 0x579   : > { %10504 = vlog2.f32 %v4693_v13  ;;  %v4694_v20 = vmax.f32 %v4662_v48, 1e-06  ;;  %v13972_v29 = vpop.eup %10486  ;;  %v4815_v25 = vmul.f32 1.442695, %v4779_v39  ;;  %v4780_v27 = vmul.f32 %v4722_v43, %v13758_v23  ;;  %v9536_v57 = vpop.f32.mrb[50].mxu0 }
 0x57a   : > { %10506 = vlog2.f32 %v4691_v26  ;;  %v4572_v36 = vadd.f32 %v4571_v51, %v13749_v40  ;;  %v16631_v0 = vpack.c.bf16 %v13831_v61, %v13822_v55  ;;  %v13979_v49 = vpop.eup %10488  ;;  %v4821_v44 = vmul.f32 1.442695, %v4782_v10  ;;  %v4587_v45 = vpop.f32.mrb[51].mxu0  ;;  %v16632_v10 = vld [vmem:[#allocation117_spill] sm:$0xff] }
 0x57b   : > { %10508 = vpow2.f32 %v4819_v8  ;;  %v4593_v13 = vadd.f32 %v9535_v59, %v13657_v6  ;;  %v4585_v42 = vadd.f32 %v4584_v12, %v13641_v52  ;;  %v13983_v48 = vpop.eup %10490  ;;  %v4817_v39 = vmul.f32 1.442695, %v4780_v27 }
 0x57c   : > { %10024 = vmatpush3.bf16.xpose.msra.mxu1 %v16631_v0  ;;  %10510 = vpow2.f32 %v4815_v25  ;;  %v4660_v43 = vmax.f32 %v4572_v36, 0.0  ;;  %v10025_v51 = vpack.c.bf16 %v13948_v53, %v13940_v24  ;;  %v10493_v61 = vpop.eup %10492  ;;  %v4596_v8 = vadd.f32 %v9536_v57, %v13659_v4  ;;  %9648 = vmatmul.mubr.msk.bf16.gmra.mrb[156].mxu0 %vm3970_vm9, %v16632_v10  ;;  %v16633_v25 = vld [vmem:[#allocation120_spill] sm:$0xff] }
 0x57d   : > { %10512 = vpow2.f32 %v4821_v44  ;;  %v4665_v55 = vmax.f32 %v4593_v13, 0.0  ;;  %v4663_v26 = vmax.f32 %v4585_v42, 0.0  ;;  %v13990_v59 = vpop.eup %10494  ;;  %v4732_v12 = vmul.f32 0.6931472, %v10493_v61  ;;  %v16634_v36 = vld [vmem:[#allocation108_spill] sm:$0xff] }
 0x57e   : > { %10514 = vpow2.f32 %v4817_v39  ;;  %v4692_v0 = vmax.f32 %v4660_v43, 1e-06  ;;  %10026 = vmatprep.subr.bf16.mxu1 %v10025_v51  ;;  %v4588_v27 = vadd.f32 %v4587_v45, %v16633_v25  ;;  %9653 = vmatprep.mubr.msk.bf16.mxu0 %vm3970_vm9, %v16634_v36  ;;  %v13995_v53 = vpop.eup %10496  ;;  %v4666_v57 = vmax.f32 %v4596_v8, 0.0 }
 0x57f   : > { %10516 = vlog2.f32 %v4694_v20  ;;  %v4697_v24 = vmax.f32 %v4665_v55, 1e-06  ;;  %v4695_v44 = vmax.f32 %v4663_v26, 1e-06  ;;  %v10499_v13 = vpop.eup %10498  ;;  %v4785_v42 = vmul.f32 %v4732_v12, %v13758_v23  ;;  %v9539_v39 = vpop.f32.mrb[52].mxu0 }
 0x580   : > { %10518 = vlog2.f32 %v4692_v0  ;;  %v4664_v4 = vmax.f32 %v4588_v27, 0.0  ;;  %v10029_v43 = vpack.c.bf16 %v13944_v21, %v13930_v33  ;;  %v4728_v45 = vmul.f32 0.6931472, %v10499_v13  ;;  %v4600_v52 = vpop.f32.mrb[53].mxu0 }
 0x581   : > { %v10501_v51 = vpop.eup %10500  ;;  %10520 = vlog2.f32 %v4697_v24  ;;  %v4698_v61 = vmax.f32 %v4666_v57, 1e-06  ;;  %v4609_v25 = vadd.f32 %v9539_v39, %v13685_v3  ;;  %v4827_v55 = vmul.f32 1.442695, %v4785_v42  ;;  %v9540_v24 = vpop.f32.mrb[54].mxu0  ;;  %v16636_v39 = vld [vmem:[#allocation126_spill] sm:$0xff] }
 0x582   : > { %v10503_v20 = vpop.eup %10502  ;;  %v4734_v26 = vmul.f32 0.6931472, %v10501_v51  ;;  %10522 = vlog2.f32 %v4695_v44  ;;  %v4696_v8 = vmax.f32 %v4664_v4, 1e-06  ;;  %v16635_v12 = vpack.c.bf16 %v13872_v16, %v13864_v47  ;;  %v4603_v4 = vpop.f32.mrb[55].mxu0 }
 0x583   : > { %v10505_v0 = vpop.eup %10504  ;;  %v4783_v27 = vmul.f32 %v4728_v45, %v13758_v23  ;;  %v4730_v21 = vmul.f32 0.6931472, %v10503_v20  ;;  %10524 = vlog2.f32 %v4698_v61  ;;  %v4669_v33 = vmax.f32 %v4609_v25, 0.0 }
 0x584   : > { %10028 = vmatpush3.bf16.xpose.msra.mxu1 %v16635_v12  ;;  %v10507_v57 = vpop.eup %10506  ;;  %10526 = vpow2.f32 %v4827_v55  ;;  %v4786_v13 = vmul.f32 %v4734_v26, %v13758_v23  ;;  %v4740_v42 = vmul.f32 0.6931472, %v10505_v0  ;;  %v4601_v44 = vadd.f32 %v4600_v52, %v16636_v39  ;;  %9654 = vmatmul.mubr.msk.bf16.vlgmr.msra.gmra.mrb[160].mxu0 %vm3970_vm9, %v13465_v56  ;;  %v16638_v55 = vld [vmem:[#allocation151_spill] sm:$0xff]  ;;  %v16639_v52 = vld [vmem:[#allocation110_spill] sm:$0xff] }
 0x585   : > { %10030 = vmatprep.subr.bf16.mxu1 %v10029_v43  ;;  %v14007_v51 = vpop.eup %10508  ;;  %v4823_v47 = vmul.f32 1.442695, %v4783_v27  ;;  %v4784_v16 = vmul.f32 %v4730_v21, %v13758_v23  ;;  %v4736_v12 = vmul.f32 0.6931472, %v10507_v57  ;;  %10528 = vlog2.f32 %v4696_v8  ;;  %9686 = vmatpush3.bf16.msra.mxu0 %v16638_v55  ;;  %v16641_v27 = vld [vmem:[#allocation131_spill] sm:$0xff]  ;;  %v16643_v56 = vld [vmem:[#allocation138_spill] sm:$0xff] }
 0x586   : > { %16637 = vst [vmem:[#allocation115_spill] sm:$0xff] %v14007_v51  ;;  %v14012_v25 = vpop.eup %10510  ;;  %v4829_v43 = vmul.f32 1.442695, %v4786_v13  ;;  %v4789_v45 = vmul.f32 %v4740_v42, %v13758_v23  ;;  %v4701_v61 = vmax.f32 %v4669_v33, 1e-06  ;;  %v4667_v20 = vmax.f32 %v4601_v44, 0.0  ;;  %9657 = vmatprep.mubr.msk.bf16.mxu0 %vm3970_vm9, %v16639_v52 }
 0x587   : > { %v14018_v26 = vpop.eup %10512  ;;  %10530 = vpow2.f32 %v4823_v47  ;;  %v4825_v0 = vmul.f32 1.442695, %v4784_v16  ;;  %v4787_v8 = vmul.f32 %v4736_v12, %v13758_v23  ;;  %v4612_v21 = vadd.f32 %v9540_v24, %v16641_v27  ;;  %v16642_v33 = vld [vmem:[#allocation127_spill] sm:$0xff]  ;;  %v9543_v39 = vpop.f32.mrb[56].mxu0  ;;  %v16644_v24 = vld [vmem:[#allocation152_spill] sm:$0xff] }
 0x588   : > { %16640 = vst [vmem:[#allocation117_spill] sm:$0xff] %v14018_v26  ;;  %v14022_v57 = vpop.eup %10514  ;;  %10532 = vpow2.f32 %v4829_v43  ;;  %v4835_v13 = vmul.f32 1.442695, %v4789_v45  ;;  %v4699_v42 = vmax.f32 %v4667_v20, 1e-06  ;;  %v4604_v44 = vadd.f32 %v4603_v4, %v16642_v33  ;;  %v4616_v47 = vpop.f32.mrb[57].mxu0 }
 0x589   : > { %v10517_v55 = vpop.eup %10516  ;;  %10534 = vpow2.f32 %v4825_v0  ;;  %v4831_v3 = vmul.f32 1.442695, %v4787_v8  ;;  %v4670_v52 = vmax.f32 %v4612_v21, 0.0  ;;  %v4625_v26 = vadd.f32 %v9543_v39, %v16643_v56  ;;  %v9544_v43 = vpop.f32.mrb[58].mxu0 }
 0x58a   : > { %v10519_v16 = vpop.eup %10518  ;;  %10536 = vpow2.f32 %v4835_v13  ;;  %v4742_v12 = vmul.f32 0.6931472, %v10517_v55  ;;  %v4668_v51 = vmax.f32 %v4604_v44, 0.0  ;;  %v10031_v27 = vpack.c.bf16 %v13868_v14, %v16644_v24  ;;  %v4619_v6 = vpop.f32.mrb[59].mxu0 }
 0x58b   : > { %v10521_v45 = vpop.eup %10520  ;;  %10538 = vpow2.f32 %v4831_v3  ;;  %v4738_v20 = vmul.f32 0.6931472, %v10519_v16  ;;  %v4702_v4 = vmax.f32 %v4670_v52, 1e-06  ;;  %v4673_v33 = vmax.f32 %v4625_v26, 0.0 }
 0x58c   : > { %v10523_v0 = vpop.eup %10522  ;;  %v4790_v8 = vmul.f32 %v4742_v12, %v13758_v23  ;;  %v4748_v21 = vmul.f32 0.6931472, %v10521_v45  ;;  %10540 = vlog2.f32 %v4701_v61  ;;  %v4700_v39 = vmax.f32 %v4668_v51, 1e-06  ;;  %10032 = vmatpush3.bf16.xpose.msra.mxu1 %v10031_v27  ;;  %9658 = vmatmul.mubr.msk.bf16.gmra.mrb[164].mxu0 %vm3970_vm9, %v13487_v60 }
 0x58d   : > { %v10525_v13 = vpop.eup %10524  ;;  %v4788_v44 = vmul.f32 %v4738_v20, %v13758_v23  ;;  %v4744_v55 = vmul.f32 0.6931472, %v10523_v0  ;;  %10542 = vlog2.f32 %v4699_v42  ;;  %v4705_v14 = vmax.f32 %v4673_v33, 1e-06  ;;  %9661 = vmatprep.mubr.msk.bf16.mxu0 %vm3970_vm9, %v13492_v41  ;;  %v16645_v42 = vld [vmem:[#allocation134_spill] sm:$0xff] }
 0x58e   : > { %v14032_v3 = vpop.eup %10526  ;;  %v4837_v52 = vmul.f32 1.442695, %v4790_v8  ;;  %v4793_v26 = vmul.f32 %v4748_v21, %v13758_v23  ;;  %v4750_v16 = vmul.f32 0.6931472, %v10525_v13  ;;  %10544 = vlog2.f32 %v4702_v4 }
 0x58f   : > { %v10529_v51 = vpop.eup %10528  ;;  %v4833_v61 = vmul.f32 1.442695, %v4788_v44  ;;  %v4791_v27 = vmul.f32 %v4744_v55, %v13758_v23  ;;  %10546 = vlog2.f32 %v4700_v39  ;;  %v4617_v33 = vadd.f32 %v4616_v47, %v16645_v42  ;;  %v9547_v20 = vpop.f32.mrb[60].mxu0  ;;  %v16646_v55 = vld [vmem:[#allocation139_spill] sm:$0xff] }
 0x590   : > { %10548 = vpow2.f32 %v4837_v52  ;;  %v4843_v12 = vmul.f32 1.442695, %v4793_v26  ;;  %v4794_v24 = vmul.f32 %v4750_v16, %v13758_v23  ;;  %v4746_v45 = vmul.f32 0.6931472, %v10529_v51  ;;  %v4632_v13 = vpop.f32.mrb[61].mxu0 }
 0x591   : > { %v14040_v0 = vpop.eup %10530  ;;  %10550 = vpow2.f32 %v4833_v61  ;;  %v4839_v4 = vmul.f32 1.442695, %v4791_v27  ;;  %v4671_v8 = vmax.f32 %v4617_v33, 0.0  ;;  %v10033_v21 = vpack.c.bf16 %v13972_v29, %v13966_v11  ;;  %v9548_v26 = vpop.f32.mrb[62].mxu0  ;;  %v16647_v61 = vld [vmem:[#allocation135_spill] sm:$0xff]  ;;  %v16648_v33 = vld [vmem:[#allocation146_spill] sm:$0xff] }
 0x592   : > { %v14044_v44 = vpop.eup %10532  ;;  %10552 = vpow2.f32 %v4843_v12  ;;  %v4845_v39 = vmul.f32 1.442695, %v4794_v24  ;;  %v4792_v47 = vmul.f32 %v4746_v45, %v13758_v23  ;;  %v4628_v52 = vadd.f32 %v9544_v43, %v16646_v55  ;;  %v4635_v11 = vpop.f32.mrb[63].mxu0 }
 0x593   : > { %v14048_v16 = vpop.eup %10534  ;;  %10554 = vpow2.f32 %v4839_v4  ;;  %v4703_v51 = vmax.f32 %v4671_v8, 1e-06  ;;  %10034 = vmatprep.subr.bf16.mxu1 %v10033_v21  ;;  %v4620_v27 = vadd.f32 %v4619_v6, %v16647_v61  ;;  %v4641_v42 = vadd.f32 %v9547_v20, %v16648_v33 }
 0x594   : > { %v14052_v29 = vpop.eup %10536  ;;  %10556 = vpow2.f32 %v4845_v39  ;;  %v4841_v12 = vmul.f32 1.442695, %v4792_v47  ;;  %v4674_v24 = vmax.f32 %v4628_v52, 0.0  ;;  %v10035_v45 = vpack.c.bf16 %v13890_v5, %v13882_v22  ;;  %9662 = vmatmul.mubr.msk.bf16.gmra.mrb[168].mxu0 %vm3970_vm9, %v13503_v58 }
 0x595   : > { %16649 = vst [vmem:[#allocation108_spill] sm:$0xff] %v14052_v29  ;;  %v14056_v43 = vpop.eup %10538  ;;  %10558 = vlog2.f32 %v4705_v14  ;;  %v4672_v55 = vmax.f32 %v4620_v27, 0.0  ;;  %v4677_v4 = vmax.f32 %v4641_v42, 0.0  ;;  %v4633_v8 = vadd.f32 %v4632_v13, %v13735_v15  ;;  %9665 = vmatprep.mubr.msk.bf16.mxu0 %vm3970_vm9, %v13508_v62 }
 0x596   : > { %v10541_v6 = vpop.eup %10540  ;;  %10560 = vpow2.f32 %v4841_v12  ;;  %v4706_v20 = vmax.f32 %v4674_v24, 1e-06  ;;  %10036 = vmatpush3.bf16.xpose.msra.mxu1 %v10035_v45  ;;  %v10037_v21 = vpack.c.bf16 %v13969_v37, %v13954_v46  ;;  %v4644_v39 = vadd.f32 %v9548_v26, %v13762_v1 }
 0x597   : > { %v10543_v22 = vpop.eup %10542  ;;  %v4756_v5 = vmul.f32 0.6931472, %v10541_v6  ;;  %10562 = vlog2.f32 %v4703_v51  ;;  %v4704_v14 = vmax.f32 %v4672_v55, 1e-06  ;;  %v4709_v42 = vmax.f32 %v4677_v4, 1e-06 }
 0x598   : > { %v10545_v13 = vpop.eup %10544  ;;  %v4752_v47 = vmul.f32 0.6931472, %v10543_v22  ;;  %10564 = vlog2.f32 %v4706_v20  ;;  %v4675_v52 = vmax.f32 %v4633_v8, 0.0  ;;  %10038 = vmatprep.subr.bf16.mxu1 %v10037_v21  ;;  %v4678_v27 = vmax.f32 %v4644_v39, 0.0  ;;  %v9553_v12 = vpop.f32.mrb[64].mxu0 }
 0x599   : > { %v10547_v24 = vpop.eup %10546  ;;  %v4797_v46 = vmul.f32 %v4756_v5, %v13758_v23  ;;  %v4758_v37 = vmul.f32 0.6931472, %v10545_v13  ;;  %10566 = vlog2.f32 %v4704_v14  ;;  %v4636_v26 = vadd.f32 %v4635_v11, %v13741_v19  ;;  %v4982_v45 = vpop.f32.mrb[65].mxu0  ;;  %v16653_v19 = vld [vmem:[#allocation150_spill] sm:$0xff] }
 0x59a   : > { %v14068_v29 = vpop.eup %10548  ;;  %v4795_v55 = vmul.f32 %v4752_v47, %v13758_v23  ;;  %v4754_v51 = vmul.f32 0.6931472, %v10547_v24  ;;  %10568 = vlog2.f32 %v4709_v42  ;;  %v4707_v4 = vmax.f32 %v4675_v52, 1e-06  ;;  %v9554_v6 = vpop.f32.mrb[66].mxu0 }
 0x59b   : > { %16650 = vst [vmem:[#allocation151_spill] sm:$0xff] %v14068_v29  ;;  %v14071_v8 = vpop.eup %10550  ;;  %v4851_v20 = vmul.f32 1.442695, %v4797_v46  ;;  %v4798_v21 = vmul.f32 %v4758_v37, %v13758_v23  ;;  %v4710_v39 = vmax.f32 %v4678_v27, 1e-06  ;;  %v4676_v22 = vmax.f32 %v4636_v26, 0.0 }
 0x59c   : > { %16651 = vst [vmem:[#allocation152_spill] sm:$0xff] %v14071_v8  ;;  %v4985_v5 = vpop.f32.mrb[67].mxu0  ;;  %v14074_v14 = vpop.eup %10552  ;;  %v4847_v11 = vmul.f32 1.442695, %v4795_v55  ;;  %v4796_v13 = vmul.f32 %v4754_v51, %v13758_v23  ;;  %10570 = vlog2.f32 %v4707_v4  ;;  %v16652_v29 = vld [vmem:[#allocation124_spill] sm:$0xff]  ;;  %9666 = vmatmul.mubr.msk.bf16.gmra.mrb[172].mxu0 %vm3970_vm9, %v13519_v34  ;;  %v4983_v55 = vadd.f32 %v4982_v45, %v13647_v54 }
 0x59d   : > { %v4991_v47 = vadd.f32 %v9553_v12, %v16652_v29  ;;  %v14078_v24 = vpop.eup %10554  ;;  %10572 = vpow2.f32 %v4851_v20  ;;  %v4853_v42 = vmul.f32 1.442695, %v4798_v21  ;;  %v4708_v52 = vmax.f32 %v4676_v22, 1e-06  ;;  %9669 = vmatprep.mubr.msk.bf16.mxu0 %vm3970_vm9, %v13524_v28 }
 0x59e   : > { %v4277_v46 = vmul.f32 0.6931472, %v16653_v19  ;;  %v14083_v27 = vpop.eup %10556  ;;  %10574 = vpow2.f32 %v4847_v11  ;;  %v4849_v37 = vmul.f32 1.442695, %v4796_v13  ;;  %v4994_v4 = vadd.f32 %v9554_v6, %v13667_v31 }
 0x59f   : > { %v5111_v26 = vmax.f32 %v4991_v47, 0.0  ;;  %v10559_v12 = vpop.eup %10558  ;;  %10576 = vpow2.f32 %v4853_v42  ;;  %v4986_v19 = vadd.f32 %v4985_v5, %v13651_v50  ;;  %v5109_v11 = vmax.f32 %v4983_v55, 0.0  ;;  %v9557_v13 = vpop.f32.mrb[68].mxu0 }
 0x5a0   : > { %v4327_v51 = vmul.f32 %v13758_v23, %v4277_v46  ;;  %v14091_v20 = vpop.eup %10560  ;;  %10578 = vpow2.f32 %v4849_v37  ;;  %v4764_v21 = vmul.f32 0.6931472, %v10559_v12  ;;  %v5112_v54 = vmax.f32 %v4994_v4, 0.0  ;;  %v4998_v28 = vpop.f32.mrb[69].mxu0 }
 0x5a1   : > { %v5143_v22 = vmax.f32 %v5111_v26, 1e-06  ;;  %v10563_v47 = vpop.eup %10562  ;;  %10580 = vlog2.f32 %v4710_v39  ;;  %v5110_v29 = vmax.f32 %v4986_v19, 0.0  ;;  %v5141_v6 = vmax.f32 %v5109_v11, 1e-06  ;;  %v9558_v5 = vpop.f32.mrb[70].mxu0 }
 0x5a2   : > { %v4373_v45 = vmul.f32 1.442695, %v4327_v51  ;;  %v10565_v42 = vpop.eup %10564  ;;  %v4801_v46 = vmul.f32 %v4764_v21, %v13758_v23  ;;  %v4760_v1 = vmul.f32 0.6931472, %v10563_v47  ;;  %10582 = vlog2.f32 %v4708_v52  ;;  %v5001_v4 = vpop.f32.mrb[71].mxu0 }
 0x5a3   : > { %v10567_v50 = vpop.eup %10566  ;;  %v4766_v31 = vmul.f32 0.6931472, %v10565_v42  ;;  %10584 = vlog2.f32 %v5143_v22  ;;  %v5144_v37 = vmax.f32 %v5112_v54, 1e-06  ;;  %v5142_v26 = vmax.f32 %v5110_v29, 1e-06 }
 0x5a4   : > { %v10569_v55 = vpop.eup %10568  ;;  %v4859_v12 = vmul.f32 1.442695, %v4801_v46  ;;  %v4799_v39 = vmul.f32 %v4760_v1, %v13758_v23  ;;  %v4762_v51 = vmul.f32 0.6931472, %v10567_v50  ;;  %10586 = vpow2.f32 %v4373_v45  ;;  %9670 = vmatmul.mubr.msk.bf16.gmra.mrb[176].mxu0 %vm3970_vm9, %v13535_v30  ;;  %v16654_v50 = vld [vmem:[#allocation114_spill] sm:$0xff] }
 0x5a5   : > { %v4802_v19 = vmul.f32 %v4766_v31, %v13758_v23  ;;  %v4772_v34 = vmul.f32 0.6931472, %v10569_v55  ;;  %10588 = vlog2.f32 %v5141_v6  ;;  %v5007_v1 = vadd.f32 %v9557_v13, %v13693_v32  ;;  %9673 = vmatprep.mubr.msk.bf16.mxu0 %vm3970_vm9, %v16654_v50 }
 0x5a6   : > { %v10571_v21 = vpop.eup %10570  ;;  %10590 = vpow2.f32 %v4859_v12  ;;  %v4855_v54 = vmul.f32 1.442695, %v4799_v39  ;;  %v4800_v29 = vmul.f32 %v4762_v51, %v13758_v23  ;;  %v16655_v51 = vld [vmem:[#allocation128_spill] sm:$0xff] }
 0x5a7   : > { %v14104_v22 = vpop.eup %10572  ;;  %v4861_v31 = vmul.f32 1.442695, %v4802_v19  ;;  %v4805_v11 = vmul.f32 %v4772_v34, %v13758_v23  ;;  %v4768_v47 = vmul.f32 0.6931472, %v10571_v21  ;;  %10592 = vlog2.f32 %v5144_v37  ;;  %v9561_v55 = vpop.f32.mrb[72].mxu0 }
 0x5a8   : > { %v14107_v45 = vpop.eup %10574  ;;  %10594 = vpow2.f32 %v4855_v54  ;;  %v4857_v42 = vmul.f32 1.442695, %v4800_v29  ;;  %v5115_v46 = vmax.f32 %v5007_v1, 0.0  ;;  %v4999_v19 = vadd.f32 %v4998_v28, %v16655_v51  ;;  %v5014_v34 = vpop.f32.mrb[73].mxu0  ;;  %v16656_v29 = vld [vmem:[#allocation133_spill] sm:$0xff] }
 0x5a9   : > { %v14111_v13 = vpop.eup %10576  ;;  %10596 = vpow2.f32 %v4861_v31  ;;  %v4867_v12 = vmul.f32 1.442695, %v4805_v11  ;;  %v4803_v39 = vmul.f32 %v4768_v47, %v13758_v23  ;;  %v5010_v1 = vadd.f32 %v9558_v5, %v16656_v29  ;;  %v9562_v6 = vpop.f32.mrb[74].mxu0  ;;  %v16657_v11 = vld [vmem:[#allocation129_spill] sm:$0xff] }
 0x5aa   : > { %v14115_v21 = vpop.eup %10578  ;;  %10598 = vpow2.f32 %v4857_v42  ;;  %v5147_v37 = vmax.f32 %v5115_v46, 1e-06  ;;  %v5113_v31 = vmax.f32 %v4999_v19, 0.0  ;;  %v5002_v50 = vadd.f32 %v5001_v4, %v16657_v11  ;;  %v5017_v47 = vpop.f32.mrb[75].mxu0  ;;  %v16658_v19 = vld [vmem:[#allocation116_spill] sm:$0xff] }
 0x5ab   : > { %v10581_v52 = vpop.eup %10580  ;;  %10600 = vpow2.f32 %v4867_v12  ;;  %v4863_v32 = vmul.f32 1.442695, %v4803_v39  ;;  %v5116_v51 = vmax.f32 %v5010_v1, 0.0  ;;  %v5023_v42 = vadd.f32 %v9561_v55, %v16622_v7  ;;  %v16659_v55 = vld [vmem:[#allocation153_spill] sm:$0xff] }
 0x5ac   : > { %v10583_v30 = vpop.eup %10582  ;;  %v4774_v28 = vmul.f32 0.6931472, %v10581_v52  ;;  %10602 = vlog2.f32 %v5142_v26  ;;  %v5145_v54 = vmax.f32 %v5113_v31, 1e-06  ;;  %v5114_v8 = vmax.f32 %v5002_v50, 0.0  ;;  %9674 = vmatmul.mubr.msk.bf16.gmra.mrb[180].mxu0 %vm3970_vm9, %v16624_v9 }
 0x5ad   : > { %v10585_v46 = vpop.eup %10584  ;;  %10604 = vpow2.f32 %v4863_v32  ;;  %v4770_v15 = vmul.f32 0.6931472, %v10583_v30  ;;  %v5148_v4 = vmax.f32 %v5116_v51, 1e-06  ;;  %9677 = vmatprep.mubr.msk.bf16.mxu0 %vm3970_vm9, %v16658_v19 }
 0x5ae   : > { %v10587_v5 = vpop.eup %10586  ;;  %v4806_v12 = vmul.f32 %v4774_v28, %v13758_v23  ;;  %v5178_v39 = vmul.f32 0.6931472, %v10585_v46  ;;  %10606 = vlog2.f32 %v5147_v37  ;;  %v5146_v30 = vmax.f32 %v5114_v8, 1e-06 }
 0x5af   : > { %v10589_v26 = vpop.eup %10588  ;;  %v4804_v52 = vmul.f32 %v4770_v15, %v13758_v23  ;;  %v10039_v32 = vpack.c.bf16 %v16659_v55, %v10587_v5  ;;  %10608 = vlog2.f32 %v5145_v54  ;;  %v9565_v28 = vpop.f32.mrb[76].mxu0  ;;  %v5119_v46 = vmax.f32 %v5023_v42, 0.0 }
 0x5b0   : > { %v14129_v50 = vpop.eup %10590  ;;  %v4869_v1 = vmul.f32 1.442695, %v4806_v12  ;;  %v5239_v31 = vmul.f32 %v5178_v39, %v13758_v23  ;;  %v5174_v7 = vmul.f32 0.6931472, %v10589_v26  ;;  %10610 = vlog2.f32 %v5148_v4  ;;  %v5030_v11 = vpop.f32.mrb[77].mxu0 }
 0x5b1   : > { %v10593_v37 = vpop.eup %10592  ;;  %v4865_v51 = vmul.f32 1.442695, %v4804_v52  ;;  %10040 = vmatpush3.bf16.xpose.msra.mxu1 %v10039_v32  ;;  %10612 = vlog2.f32 %v5146_v30  ;;  %v16660_v39 = vpack.c.bf16 %v14091_v20, %v14078_v24  ;;  %v14140_v4 = vpop.f32.mrb[78].mxu0  ;;  %v5151_v42 = vmax.f32 %v5119_v46, 1e-06  ;;  %v16661_v20 = vld [vmem:[#allocation141_spill] sm:$0xff] }
 0x5b2   : > { %v14134_v5 = vpop.eup %10594  ;;  %10614 = vpow2.f32 %v4869_v1  ;;  %v5273_v8 = vmul.f32 1.442695, %v5239_v31  ;;  %v5237_v54 = vmul.f32 %v5174_v7, %v13758_v23  ;;  %v5180_v12 = vmul.f32 0.6931472, %v10593_v37  ;;  %v14147_v32 = vpop.f32.mrb[79].mxu0 }
 0x5b3   : > { %10042 = vmatprep.subr.bf16.mxu1 %v16660_v39  ;;  %v14142_v26 = vpop.eup %10596  ;;  %10616 = vpow2.f32 %v4865_v51  ;;  %v5015_v52 = vadd.f32 %v5014_v34, %v16626_v38  ;;  %v5026_v1 = vadd.f32 %v9562_v6, %v16661_v20  ;;  %v5018_v51 = vadd.f32 %v5017_v47, %v16628_v63  ;;  %v16662_v34 = vld [vmem:[#allocation148_spill] sm:$0xff] }
 0x5b4   : > { %v14149_v30 = vpop.eup %10598  ;;  %10618 = vpow2.f32 %v5273_v8  ;;  %v5269_v7 = vmul.f32 1.442695, %v5237_v54  ;;  %v5240_v24 = vmul.f32 %v5180_v12, %v13758_v23  ;;  %v5039_v46 = vadd.f32 %v9565_v28, %v16662_v34  ;;  %9678 = vmatmul.mubr.msk.bf16.gmra.mrb[184].mxu0 %vm3970_vm9, %v13567_v35 }
 0x5b5   : > { %v14153_v31 = vpop.eup %10600  ;;  %10620 = vlog2.f32 %v5151_v42  ;;  %v5117_v37 = vmax.f32 %v5015_v52, 0.0  ;;  %v5120_v8 = vmax.f32 %v5026_v1, 0.0  ;;  %9681 = vmatprep.mubr.msk.bf16.mxu0 %vm3970_vm9, %v13572_v17  ;;  %v5118_v47 = vmax.f32 %v5018_v51, 0.0 }
 0x5b6   : > { %v10603_v39 = vpop.eup %10602  ;;  %10622 = vpow2.f32 %v5269_v7  ;;  %v5275_v55 = vmul.f32 1.442695, %v5240_v24  ;;  %v5123_v52 = vmax.f32 %v5039_v46, 0.0  ;;  %v16663_v15 = vmov 1.0  }
 0x5b7   : > { %v14163_v6 = vpop.eup %10604  ;;  %v5176_v12 = vmul.f32 0.6931472, %v10603_v39  ;;  %v5149_v42 = vmax.f32 %v5117_v37, 1e-06  ;;  %v5152_v34 = vmax.f32 %v5120_v8, 1e-06  ;;  %v5031_v7 = vadd.f32 %v5030_v11, %v13745_v2 }
 0x5b8   : > { %v10607_v28 = vpop.eup %10606  ;;  %10624 = vpow2.f32 %v5275_v55  ;;  %8851 = vmatmul.mubr.f32.vlgmr.msra.gmra.mrb[0].mxu1 %v16663_v15  ;;  %v9569_v1 = vpop.f32.mrb[80].mxu0  ;;  %v16664_v37 = vpack.c.bf16 %v13995_v53, %v13983_v48  ;;  %v5150_v51 = vmax.f32 %v5118_v47, 1e-06  ;;  %v16665_v11 = vpack.c.bf16 %v14083_v27, %v14074_v14 }
 0x5b9   : > { %v10609_v54 = vpop.eup %10608  ;;  %v5238_v63 = vmul.f32 %v5176_v12, %v13758_v23  ;;  %v5186_v20 = vmul.f32 0.6931472, %v10607_v28  ;;  %10626 = vlog2.f32 %v5149_v42  ;;  %v5046_v55 = vpop.f32.mrb[81].mxu0  ;;  %8901 = vmatprep.mubr.f32.mxu1 %v16663_v15  ;;  %v5155_v8 = vmax.f32 %v5123_v52, 1e-06 }
 0x5ba   : > { %10044 = vmatpush3.bf16.xpose.msra.mxu1 %v16664_v37  ;;  %v10611_v46 = vpop.eup %10610  ;;  %v5182_v39 = vmul.f32 0.6931472, %v10609_v54  ;;  %10628 = vlog2.f32 %v5152_v34  ;;  %v5121_v24 = vmax.f32 %v5031_v7, 0.0  ;;  %v9570_v12 = vpop.f32.mrb[82].mxu0 }
 0x5bb   : > { %10046 = vmatprep.subr.bf16.mxu1 %v16665_v11  ;;  %v10613_v28 = vpop.eup %10612  ;;  %v5271_v2 = vmul.f32 1.442695, %v5238_v63  ;;  %v5243_v48 = vmul.f32 %v5186_v20, %v13758_v23  ;;  %v5188_v53 = vmul.f32 0.6931472, %v10611_v46  ;;  %10630 = vlog2.f32 %v5150_v51  ;;  %v5049_v42 = vpop.f32.mrb[83].mxu0 }
 0x5bc   : > { %v14178_v47 = vpop.eup %10614  ;;  %v5241_v37 = vmul.f32 %v5182_v39, %v13758_v23  ;;  %v5184_v54 = vmul.f32 0.6931472, %v10613_v28  ;;  %10632 = vlog2.f32 %v5155_v8  ;;  %v5153_v15 = vmax.f32 %v5121_v24, 1e-06  ;;  %9682 = vmatmul.mubr.msk.bf16.gmra.mrb[188].mxu0 %vm3970_vm9, %v16632_v10 }
 0x5bd   : > { %v14181_v14 = vpop.eup %10616  ;;  %10634 = vpow2.f32 %v5271_v2  ;;  %v5281_v27 = vmul.f32 1.442695, %v5243_v48  ;;  %v5244_v34 = vmul.f32 %v5188_v53, %v13758_v23  ;;  %v5042_v63 = vadd.f32 %v14140_v4, %v13776_v18  ;;  %9687 = vmatprep.mubr.msk.bf16.mxu0 %vm3970_vm9, %v16634_v36  ;;  %v16666_v4 = vld [vmem:[#allocation122_spill] sm:$0xff]  ;;  %v16674_v18 = vld [vmem:[#allocation109_spill] sm:$0xff] }
 0x5be   : > { %v14188_v20 = vpop.eup %10618  ;;  %v5277_v52 = vmul.f32 1.442695, %v5241_v37  ;;  %v5242_v7 = vmul.f32 %v5184_v54, %v13758_v23  ;;  %10636 = vlog2.f32 %v5153_v15  ;;  %v5034_v24 = vadd.f32 %v14147_v32, %v13749_v40  ;;  %v16668_v54 = vld [vmem:[#allocation115_spill] sm:$0xff] }
 0x5bf   : > { %v10621_v2 = vpop.eup %10620  ;;  %10638 = vpow2.f32 %v5281_v27  ;;  %v5283_v51 = vmul.f32 1.442695, %v5244_v34  ;;  %v5124_v46 = vmax.f32 %v5042_v63, 0.0  ;;  %v5055_v39 = vadd.f32 %v9569_v1, %v16666_v4  ;;  %v9573_v53 = vpop.f32.mrb[84].mxu0  ;;  %v16669_v27 = vld [vmem:[#allocation117_spill] sm:$0xff] }
 0x5c0   : > { %v14196_v11 = vpop.eup %10622  ;;  %10640 = vpow2.f32 %v5277_v52  ;;  %v5279_v8 = vmul.f32 1.442695, %v5242_v7  ;;  %v5194_v28 = vmul.f32 0.6931472, %v10621_v2  ;;  %v5122_v48 = vmax.f32 %v5034_v24, 0.0  ;;  %v14203_v63 = vpop.f32.mrb[85].mxu0 }
 0x5c1   : > { %10642 = vpow2.f32 %v5283_v51  ;;  %v16667_v15 = vpack.c.bf16 %v13990_v59, %v13979_v49  ;;  %v5156_v32 = vmax.f32 %v5124_v46, 1e-06  ;;  %v5127_v37 = vmax.f32 %v5055_v39, 0.0  ;;  %v16671_v2 = vld [vmem:[#allocation118_spill] sm:$0xff]  ;;  %v14212_v59 = vpop.f32.mrb[86].mxu0 }
 0x5c2   : > { %v14205_v1 = vpop.eup %10624  ;;  %10644 = vpow2.f32 %v5279_v8  ;;  %v5247_v52 = vmul.f32 %v5194_v28, %v13758_v23  ;;  %v16670_v7 = vpack.c.bf16 %v14115_v21, %v14107_v45  ;;  %v5154_v24 = vmax.f32 %v5122_v48, 1e-06  ;;  %v5065_v8 = vpop.f32.mrb[87].mxu0 }
 0x5c3   : > { %10048 = vmatpush3.bf16.xpose.msra.mxu1 %v16667_v15  ;;  %v5047_v49 = vadd.f32 %v5046_v55, %v16671_v2  ;;  %v10627_v51 = vpop.eup %10626  ;;  %10646 = vlog2.f32 %v5156_v32  ;;  %v5159_v46 = vmax.f32 %v5127_v37, 1e-06  ;;  %v16672_v15 = vld [vmem:[#allocation123_spill] sm:$0xff] }
 0x5c4   : > { %10050 = vmatprep.subr.bf16.mxu1 %v16670_v7  ;;  %v5058_v34 = vadd.f32 %v9570_v12, %v16672_v15  ;;  %v10629_v4 = vpop.eup %10628  ;;  %v5289_v28 = vmul.f32 1.442695, %v5247_v52  ;;  %v5190_v40 = vmul.f32 0.6931472, %v10627_v51  ;;  %10648 = vlog2.f32 %v5154_v24  ;;  %v16673_v7 = vld [vmem:[#allocation120_spill] sm:$0xff]  ;;  %9688 = vmatmul.mubr.msk.bf16.vlgmr.msra.gmra.mrb[192].mxu0 %vm3970_vm9, %v16674_v18  ;;  %v16675_v15 = vld [vmem:[#allocation110_spill] sm:$0xff] }
 0x5c5   : > { %v5125_v45 = vmax.f32 %v5047_v49, 0.0  ;;  %v10631_v21 = vpop.eup %10630  ;;  %v5196_v48 = vmul.f32 0.6931472, %v10629_v4  ;;  %10650 = vlog2.f32 %v5159_v46  ;;  %v5050_v2 = vadd.f32 %v5049_v42, %v16673_v7  ;;  %9691 = vmatprep.mubr.msk.bf16.mxu0 %vm3970_vm9, %v16675_v15 }
 0x5c6   : > { %v5128_v55 = vmax.f32 %v5058_v34, 0.0  ;;  %v10633_v32 = vpop.eup %10632  ;;  %10652 = vpow2.f32 %v5289_v28  ;;  %v5245_v37 = vmul.f32 %v5190_v40, %v13758_v23  ;;  %v5192_v12 = vmul.f32 0.6931472, %v10631_v21  ;;  %v16676_v28 = vld [vmem:[#allocation130_spill] sm:$0xff] }
 0x5c7   : > { %v5157_v39 = vmax.f32 %v5125_v45, 1e-06  ;;  %v14223_v52 = vpop.eup %10634  ;;  %v5248_v4 = vmul.f32 %v5196_v48, %v13758_v23  ;;  %v5202_v24 = vmul.f32 0.6931472, %v10633_v32  ;;  %v5126_v49 = vmax.f32 %v5050_v2, 0.0  ;;  %v14228_v40 = vpop.f32.mrb[88].mxu0 }
 0x5c8   : > { %v5160_v34 = vmax.f32 %v5128_v55, 1e-06  ;;  %v10637_v42 = vpop.eup %10636  ;;  %v5285_v51 = vmul.f32 1.442695, %v5245_v37  ;;  %v5246_v46 = vmul.f32 %v5192_v12, %v13758_v23  ;;  %v5071_v7 = vadd.f32 %v9573_v53, %v16676_v28  ;;  %v14236_v55 = vpop.f32.mrb[89].mxu0 }
 0x5c9   : > { %10654 = vlog2.f32 %v5157_v39  ;;  %v14230_v45 = vpop.eup %10638  ;;  %v5291_v21 = vmul.f32 1.442695, %v5248_v4  ;;  %v5251_v15 = vmul.f32 %v5202_v24, %v13758_v23  ;;  %v16677_v48 = vpack.c.bf16 %v14022_v57, %v14012_v25  ;;  %v14243_v4 = vpop.f32.mrb[90].mxu0 }
 0x5ca   : > { %v5198_v2 = vmul.f32 0.6931472, %v10637_v42  ;;  %10656 = vlog2.f32 %v5160_v34  ;;  %v14238_v32 = vpop.eup %10640  ;;  %v5287_v53 = vmul.f32 1.442695, %v5246_v46  ;;  %v16678_v39 = vpack.c.bf16 %v14111_v13, %v14104_v22  ;;  %v8352_v42 = vld [vmem:[%s11605_s21 + $0x1c] sm:$0xf] }
 0x5cb   : > { %10052 = vmatpush3.bf16.xpose.msra.mxu1 %v16677_v48  ;;  %10658 = vpow2.f32 %v5285_v51  ;;  %v5158_v37 = vmax.f32 %v5126_v49, 1e-06  ;;  %v5131_v12 = vmax.f32 %v5071_v7, 0.0  ;;  %v14245_v24 = vpop.eup %10642  ;;  %v5297_v25 = vmul.f32 1.442695, %v5251_v15  ;;  %v14251_v51 = vpop.f32.mrb[91].mxu0 }
 0x5cc   : > { %10054 = vmatprep.subr.bf16.mxu1 %v16678_v39  ;;  %10660 = vpow2.f32 %v5291_v21  ;;  %v5249_v57 = vmul.f32 %v5198_v2, %v13758_v23  ;;  %v14253_v46 = vpop.eup %10644  ;;  %v16679_v13 = vld [vmem:[#allocation126_spill] sm:$0xff]  ;;  %v16680_v48 = vld [vmem:[#allocation131_spill] sm:$0xff]  ;;  %9692 = vmatmul.mubr.msk.bf16.gmra.mrb[196].mxu0 %vm3970_vm9, %v13487_v60  ;;  %v7254_v18 = vpack.c.bf16 %v8352_v42, %v8352_v42 }
 0x5cd   : > { %10662 = vpow2.f32 %v5287_v53  ;;  %v5163_v22 = vmax.f32 %v5131_v12, 1e-06  ;;  %v5063_v7 = vadd.f32 %v14203_v63, %v16679_v13  ;;  %v10647_v21 = vpop.eup %10646  ;;  %v5074_v2 = vadd.f32 %v14212_v59, %v16680_v48  ;;  %v16681_v39 = vld [vmem:[#allocation127_spill] sm:$0xff]  ;;  %9695 = vmatprep.mubr.msk.bf16.mxu0 %vm3970_vm9, %v13492_v41 }
 0x5ce   : > { %10664 = vpow2.f32 %v5297_v25  ;;  %v5293_v15 = vmul.f32 1.442695, %v5249_v57  ;;  %v5066_v34 = vadd.f32 %v5065_v8, %v16681_v39  ;;  %v10649_v28 = vpop.eup %10648  ;;  %v5204_v53 = vmul.f32 0.6931472, %v10647_v21  ;;  %10280 = vmatprep.subr.msk.bf16.mxu0 %vm4019_vm8, %v7254_v18 }
 0x5cf   : > { %10666 = vlog2.f32 %v5158_v37  ;;  %v5129_v12 = vmax.f32 %v5063_v7, 0.0  ;;  %v10651_v63 = vpop.eup %10650  ;;  %v5200_v25 = vmul.f32 0.6931472, %v10649_v28  ;;  %v5132_v57 = vmax.f32 %v5074_v2, 0.0  ;;  %v9581_v37 = vpop.f32.mrb[92].mxu0 }
 0x5d0   : > { %10668 = vpow2.f32 %v5293_v15  ;;  %v5130_v49 = vmax.f32 %v5066_v34, 0.0  ;;  %v14266_v13 = vpop.eup %10652  ;;  %v5252_v59 = vmul.f32 %v5204_v53, %v13758_v23  ;;  %v5210_v8 = vmul.f32 0.6931472, %v10651_v63  ;;  %v14275_v15 = vpop.f32.mrb[93].mxu0 }
 0x5d1   : > { %10670 = vlog2.f32 %v5163_v22  ;;  %v5161_v39 = vmax.f32 %v5129_v12, 1e-06  ;;  %v5250_v42 = vmul.f32 %v5200_v25, %v13758_v23  ;;  %v16682_v7 = vpack.c.bf16 %v16669_v27, %v16668_v54  ;;  %v14283_v27 = vpop.f32.mrb[94].mxu0 }
 0x5d2   : > { %v5164_v21 = vmax.f32 %v5132_v57, 1e-06  ;;  %v5162_v28 = vmax.f32 %v5130_v49, 1e-06  ;;  %v7256_v34 = vsel %vm4019_vm8, %v7254_v18, 0  ;;  %v5255_v22 = vmul.f32 %v5210_v8, %v13758_v23  ;;  %v14287_v57 = vpop.f32.mrb[95].mxu0 }
 0x5d3   : > { %10056 = vmatpush3.bf16.xpose.msra.mxu1 %v16682_v7  ;;  %v10655_v2 = vpop.eup %10654  ;;  %v5299_v53 = vmul.f32 1.442695, %v5252_v59  ;;  %v16683_v12 = vpack.c.bf16 %v14149_v30, %v14134_v5  ;;  %10672 = vlog2.f32 %v5161_v39  ;;  %9720 = vmatpush3.bf16.msra.mxu0 %v7256_v34  ;;  %v5087_v54 = vadd.f32 %v14228_v40, %v16643_v56  ;;  %v16684_v7 = vld [vmem:[#allocation134_spill] sm:$0xff] }
 0x5d4   : > { %v10657_v49 = vpop.eup %10656  ;;  %v5295_v63 = vmul.f32 1.442695, %v5250_v42  ;;  %v5206_v18 = vmul.f32 0.6931472, %v10655_v2  ;;  %10674 = vlog2.f32 %v5164_v21  ;;  %v5305_v5 = vmul.f32 1.442695, %v5255_v22  ;;  %9696 = vmatmul.mubr.msk.bf16.gmra.mrb[200].mxu0 %vm3970_vm9, %v13503_v58 }
 0x5d5   : > { %10058 = vmatprep.subr.bf16.mxu1 %v16683_v12  ;;  %v14289_v59 = vpop.eup %10658  ;;  %10676 = vpow2.f32 %v5299_v53  ;;  %v5212_v30 = vmul.f32 0.6931472, %v10657_v49  ;;  %v5135_v39 = vmax.f32 %v5087_v54, 0.0  ;;  %v5079_v42 = vadd.f32 %v14236_v55, %v16684_v7  ;;  %v16685_v22 = vld [vmem:[#allocation139_spill] sm:$0xff]  ;;  %9699 = vmatprep.mubr.msk.bf16.mxu0 %vm3970_vm9, %v13508_v62 }
 0x5d6   : > { %v14291_v8 = vpop.eup %10660  ;;  %10678 = vpow2.f32 %v5295_v63  ;;  %v5253_v40 = vmul.f32 %v5206_v18, %v13758_v23  ;;  %v5090_v12 = vadd.f32 %v14243_v4, %v16685_v22  ;;  %v5082_v63 = vadd.f32 %v14251_v51, %v16647_v61 }
 0x5d7   : > { %v14300_v34 = vpop.eup %10662  ;;  %10680 = vpow2.f32 %v5305_v5  ;;  %v5256_v2 = vmul.f32 %v5212_v30, %v13758_v23  ;;  %v5167_v53 = vmax.f32 %v5135_v39, 1e-06  ;;  %v5133_v49 = vmax.f32 %v5079_v42, 0.0  ;;  %v9587_v39 = vpop.f32.mrb[96].mxu0 }
 0x5d8   : > { %v14307_v54 = vpop.eup %10664  ;;  %v5301_v55 = vmul.f32 1.442695, %v5253_v40  ;;  %10682 = vlog2.f32 %v5162_v28  ;;  %v5136_v5 = vmax.f32 %v5090_v12, 0.0  ;;  %v5103_v30 = vadd.f32 %v9581_v37, %v16648_v33  ;;  %v14317_v42 = vpop.f32.mrb[97].mxu0  ;;  %v16690_v12 = vld [vmem:[#allocation152_spill] sm:$0xff] }
 0x5d9   : > { %16686 = vst [vmem:[#allocation150_spill] sm:$0xff] %v14307_v54  ;;  %v10667_v18 = vpop.eup %10666  ;;  %v5307_v21 = vmul.f32 1.442695, %v5256_v2  ;;  %10684 = vlog2.f32 %v5167_v53  ;;  %v16688_v54 = vpack.c.bf16 %v14048_v16, %v14040_v0  ;;  %v5165_v28 = vmax.f32 %v5133_v49, 1e-06 }
 0x5da   : > { %v14312_v25 = vpop.eup %10668  ;;  %10686 = vpow2.f32 %v5301_v55  ;;  %v5208_v4 = vmul.f32 0.6931472, %v10667_v18  ;;  %v5134_v40 = vmax.f32 %v5082_v63, 0.0  ;;  %v16689_v2 = vpack.c.bf16 %v14142_v26, %v14129_v50  ;;  %v9588_v18 = vpop.f32.mrb[98].mxu0 }
 0x5db   : > { %16687 = vst [vmem:[#allocation133_spill] sm:$0xff] %v14312_v25  ;;  %10060 = vmatpush3.bf16.xpose.msra.mxu1 %v16688_v54  ;;  %v10671_v51 = vpop.eup %10670  ;;  %10688 = vpow2.f32 %v5307_v21  ;;  %v5168_v37 = vmax.f32 %v5136_v5, 1e-06  ;;  %v5139_v53 = vmax.f32 %v5103_v30, 0.0  ;;  %v5447_v54 = vpop.f32.mrb[99].mxu0  ;;  %v16691_v21 = vld [vmem:[#allocation142_spill] sm:$0xff] }
 0x5dc   : > { %10062 = vmatprep.subr.bf16.mxu1 %v16689_v2  ;;  %v5254_v25 = vmul.f32 %v5208_v4, %v13758_v23  ;;  %v5218_v0 = vmul.f32 0.6931472, %v10671_v51  ;;  %10690 = vlog2.f32 %v5165_v28  ;;  %v5166_v16 = vmax.f32 %v5134_v40, 1e-06  ;;  %v16692_v4 = vld [vmem:[#allocation111_spill] sm:$0xff] }
 0x5dd   : > { %v10673_v49 = vpop.eup %10672  ;;  %10692 = vlog2.f32 %v5168_v37  ;;  %v5171_v63 = vmax.f32 %v5139_v53, 1e-06  ;;  %v5095_v33 = vadd.f32 %v14275_v15, %v16691_v21  ;;  %9700 = vmatmul.mubr.msk.bf16.gmra.mrb[204].mxu0 %vm3970_vm9, %v16692_v4  ;;  %v16694_v37 = vld [vmem:[#allocation147_spill] sm:$0xff]  ;;  %v16695_v53 = vld [vmem:[#allocation112_spill] sm:$0xff] }
 0x5de   : > { %v10675_v26 = vpop.eup %10674  ;;  %v5303_v5 = vmul.f32 1.442695, %v5254_v25  ;;  %v5259_v30 = vmul.f32 %v5218_v0, %v13758_v23  ;;  %v5214_v2 = vmul.f32 0.6931472, %v10673_v49  ;;  %10694 = vlog2.f32 %v5166_v16  ;;  %9703 = vmatprep.mubr.msk.bf16.mxu0 %vm3970_vm9, %v16695_v53  ;;  %v16697_v16 = vld [vmem:[#allocation143_spill] sm:$0xff] }
 0x5df   : > { %v14332_v28 = vpop.eup %10676  ;;  %v5220_v40 = vmul.f32 0.6931472, %v10675_v26  ;;  %10696 = vlog2.f32 %v5171_v63  ;;  %v5137_v51 = vmax.f32 %v5095_v33, 0.0  ;;  %v5106_v15 = vadd.f32 %v14283_v27, %v16694_v37  ;;  %v14347_v37 = vpop.f32.mrb[100].mxu0 }
 0x5e0   : > { %16693 = vst [vmem:[#allocation116_spill] sm:$0xff] %v14332_v28  ;;  %v14338_v50 = vpop.eup %10678  ;;  %10698 = vpow2.f32 %v5303_v5  ;;  %v5313_v25 = vmul.f32 1.442695, %v5259_v30  ;;  %v5257_v0 = vmul.f32 %v5214_v2, %v13758_v23  ;;  %v5098_v49 = vadd.f32 %v14287_v57, %v16697_v16  ;;  %v16698_v28 = vld [vmem:[#allocation124_spill] sm:$0xff]  ;;  %v16701_v57 = vld [vmem:[#allocation151_spill] sm:$0xff]  ;;  %v14354_v53 = vpop.f32.mrb[101].mxu0 }
 0x5e1   : > { %16696 = vst [vmem:[#allocation153_spill] sm:$0xff] %v14338_v50  ;;  %v14343_v55 = vpop.eup %10680  ;;  %v5260_v63 = vmul.f32 %v5220_v40, %v13758_v23  ;;  %v5169_v33 = vmax.f32 %v5137_v51, 1e-06  ;;  %v5140_v26 = vmax.f32 %v5106_v15, 0.0  ;;  %v5453_v27 = vadd.f32 %v9587_v39, %v16698_v28  ;;  %v16700_v2 = vld [vmem:[#allocation108_spill] sm:$0xff] }
 0x5e2   : > { %v10683_v21 = vpop.eup %10682  ;;  %10700 = vpow2.f32 %v5313_v25  ;;  %v5309_v50 = vmul.f32 1.442695, %v5257_v0  ;;  %v16699_v5 = vpack.c.bf16 %v14044_v44, %v14032_v3  ;;  %v5138_v30 = vmax.f32 %v5098_v49, 0.0 }
 0x5e3   : > { %v10685_v40 = vpop.eup %10684  ;;  %v5315_v51 = vmul.f32 1.442695, %v5260_v63  ;;  %v5216_v15 = vmul.f32 0.6931472, %v10683_v21  ;;  %v16702_v39 = vpack.c.bf16 %v14181_v14, %v14163_v6  ;;  %10702 = vlog2.f32 %v5169_v33  ;;  %v16703_v21 = vld [vmem:[#allocation119_spill] sm:$0xff]  ;;  %v16704_v6 = vld [vmem:[#allocation125_spill] sm:$0xff] }
 0x5e4   : > { %10064 = vmatpush3.bf16.xpose.msra.mxu1 %v16699_v5  ;;  %v5172_v25 = vmax.f32 %v5140_v26, 1e-06  ;;  %v14359_v0 = vpop.eup %10686  ;;  %10704 = vpow2.f32 %v5309_v50  ;;  %v5226_v3 = vmul.f32 0.6931472, %v10685_v40  ;;  %v5170_v44 = vmax.f32 %v5138_v30, 1e-06 }
 0x5e5   : > { %10066 = vmatprep.subr.bf16.mxu1 %v16702_v39  ;;  %v5573_v49 = vmax.f32 %v5453_v27, 0.0  ;;  %v14361_v5 = vpop.f32.mrb[102].mxu0  ;;  %v14363_v16 = vpop.eup %10688  ;;  %10706 = vpow2.f32 %v5315_v51  ;;  %v5258_v63 = vmul.f32 %v5216_v15, %v13758_v23  ;;  %v5445_v28 = vadd.f32 %v14317_v42, %v16703_v21  ;;  %v16705_v27 = vld [vmem:[#allocation121_spill] sm:$0xff]  ;;  %v16707_v42 = vld [vmem:[#allocation114_spill] sm:$0xff] }
 0x5e6   : > { %v5456_v14 = vadd.f32 %v9588_v18, %v16704_v6  ;;  %v14369_v33 = vpop.f32.mrb[103].mxu0  ;;  %v10691_v26 = vpop.eup %10690  ;;  %v5263_v50 = vmul.f32 %v5226_v3, %v13758_v23  ;;  %10708 = vlog2.f32 %v5172_v25  ;;  %v5448_v40 = vadd.f32 %v5447_v54, %v16705_v27  ;;  %v16706_v39 = vld [vmem:[#allocation113_spill] sm:$0xff] }
 0x5e7   : > { %v5605_v30 = vmax.f32 %v5573_v49, 1e-06  ;;  %9704 = vmatmul.mubr.msk.bf16.gmra.mrb[208].mxu0 %vm3970_vm9, %v16706_v39  ;;  %v10693_v51 = vpop.eup %10692  ;;  %v5311_v4 = vmul.f32 1.442695, %v5258_v63  ;;  %v5222_v15 = vmul.f32 0.6931472, %v10691_v26  ;;  %10710 = vlog2.f32 %v5170_v44 }
 0x5e8   : > { %v5571_v61 = vmax.f32 %v5445_v28, 0.0  ;;  %9707 = vmatprep.mubr.msk.bf16.mxu0 %vm3970_vm9, %v16707_v42  ;;  %v10695_v18 = vpop.eup %10694  ;;  %v5321_v6 = vmul.f32 1.442695, %v5263_v50  ;;  %v5228_v21 = vmul.f32 0.6931472, %v10693_v51  ;;  %v5574_v3 = vmax.f32 %v5456_v14, 0.0 }
 0x5e9   : > { %10712 = vlog2.f32 %v5605_v30  ;;  %v10697_v25 = vpop.eup %10696  ;;  %v5261_v54 = vmul.f32 %v5222_v15, %v13758_v23  ;;  %v5224_v49 = vmul.f32 0.6931472, %v10695_v18  ;;  %v14378_v39 = vpop.f32.mrb[104].mxu0  ;;  %v16708_v26 = vpack.c.bf16 %v16690_v12, %v14056_v43 }
 0x5ea   : > { %10714 = vpow2.f32 %v5311_v4  ;;  %v5603_v27 = vmax.f32 %v5571_v61, 1e-06  ;;  %v10699_v63 = vpop.eup %10698  ;;  %v5264_v28 = vmul.f32 %v5228_v21, %v13758_v23  ;;  %v5234_v44 = vmul.f32 0.6931472, %v10697_v25  ;;  %v14384_v30 = vpop.f32.mrb[105].mxu0 }
 0x5eb   : > { %10716 = vpow2.f32 %v5321_v6  ;;  %v5606_v50 = vmax.f32 %v5574_v3, 1e-06  ;;  %v5317_v14 = vmul.f32 1.442695, %v5261_v54  ;;  %v5262_v4 = vmul.f32 %v5224_v49, %v13758_v23  ;;  %v14390_v6 = vpop.f32.mrb[106].mxu0 }
 0x5ec   : > { %10068 = vmatpush3.bf16.xpose.msra.mxu1 %v16708_v26  ;;  %v16709_v61 = vpack.c.bf16 %v14178_v47, %v14153_v31  ;;  %10718 = vlog2.f32 %v5603_v27  ;;  %v5572_v51 = vmax.f32 %v5448_v40, 0.0  ;;  %v14392_v21 = vpop.eup %10700  ;;  %v5323_v15 = vmul.f32 1.442695, %v5264_v28  ;;  %v14396_v18 = vpop.f32.mrb[107].mxu0  ;;  %v16710_v31 = vld [vmem:[#allocation132_spill] sm:$0xff] }
 0x5ed   : > { %v5267_v43 = vmul.f32 %v5234_v44, %v13758_v23  ;;  %10720 = vlog2.f32 %v5606_v50  ;;  %v10073_v12 = vpack.c.bf16 %v10699_v63, %v14359_v0  ;;  %v10703_v3 = vpop.eup %10702  ;;  %v5319_v25 = vmul.f32 1.442695, %v5262_v4  ;;  %v16711_v44 = vld [vmem:[#allocation128_spill] sm:$0xff] }
 0x5ee   : > { %10070 = vmatprep.subr.bf16.mxu1 %v16709_v61  ;;  %10722 = vpow2.f32 %v5317_v14  ;;  %v5604_v54 = vmax.f32 %v5572_v51, 1e-06  ;;  %v5469_v47 = vadd.f32 %v14347_v37, %v16710_v31  ;;  %v14400_v27 = vpop.eup %10704  ;;  %v5230_v49 = vmul.f32 0.6931472, %v10703_v3  ;;  %v16712_v61 = vld [vmem:[#allocation129_spill] sm:$0xff] }
 0x5ef   : > { %10724 = vpow2.f32 %v5323_v15  ;;  %v5329_v40 = vmul.f32 1.442695, %v5267_v43  ;;  %9708 = vmatmul.mubr.msk.bf16.gmra.mrb[212].mxu0 %vm3970_vm9, %v16624_v9  ;;  %v14406_v0 = vpop.eup %10706  ;;  %v5461_v26 = vadd.f32 %v14354_v53, %v16711_v44  ;;  %v5472_v4 = vadd.f32 %v14361_v5, %v16656_v29 }
 0x5f0   : > { %10726 = vpow2.f32 %v5319_v25  ;;  %v5577_v63 = vmax.f32 %v5469_v47, 0.0  ;;  %9711 = vmatprep.mubr.msk.bf16.mxu0 %vm3970_vm9, %v16658_v19  ;;  %v10709_v50 = vpop.eup %10708  ;;  %v5265_v14 = vmul.f32 %v5230_v49, %v13758_v23  ;;  %v5464_v51 = vadd.f32 %v14369_v33, %v16712_v61  ;;  %v14419_v25 = vpop.f32.mrb[108].mxu0 }
 0x5f1   : > { %10728 = vpow2.f32 %v5329_v40  ;;  %v10711_v15 = vpop.eup %10710  ;;  %v5236_v43 = vmul.f32 0.6931472, %v10709_v50  ;;  %v5575_v3 = vmax.f32 %v5461_v26, 0.0  ;;  %v16713_v40 = vpack.c.bf16 %v16701_v57, %v16700_v2 }
 0x5f2   : > { %10730 = vlog2.f32 %v5604_v54  ;;  %v5609_v53 = vmax.f32 %v5577_v63, 1e-06  ;;  %v5325_v37 = vmul.f32 1.442695, %v5265_v14  ;;  %v5232_v28 = vmul.f32 0.6931472, %v10711_v15 }
 0x5f3   : > { %v10713_v47 = vpop.eup %10712  ;;  %v5578_v49 = vmax.f32 %v5472_v4, 0.0  ;;  %v5576_v44 = vmax.f32 %v5464_v51, 0.0  ;;  %v5268_v33 = vmul.f32 %v5236_v43, %v13758_v23  ;;  %v5607_v54 = vmax.f32 %v5575_v3, 1e-06  ;;  %v14427_v63 = vpop.f32.mrb[109].mxu0  ;;  %v16714_v43 = vld [vmem:[#allocation140_spill] sm:$0xff] }
 0x5f4   : > { %10072 = vmatpush3.bf16.xpose.msra.mxu1 %v16713_v40  ;;  %v14424_v5 = vpop.eup %10714  ;;  %v5640_v61 = vmul.f32 0.6931472, %v10713_v47  ;;  %10732 = vlog2.f32 %v5609_v53  ;;  %v5266_v50 = vmul.f32 %v5232_v28, %v13758_v23  ;;  %v14432_v57 = vpop.f32.mrb[110].mxu0 }
 0x5f5   : > { %10074 = vmatprep.subr.bf16.mxu1 %v10073_v12  ;;  %v14429_v26 = vpop.eup %10716  ;;  %10734 = vpow2.f32 %v5325_v37  ;;  %v5610_v14 = vmax.f32 %v5578_v49, 1e-06  ;;  %v5608_v2 = vmax.f32 %v5576_v44, 1e-06  ;;  %v5331_v51 = vmul.f32 1.442695, %v5268_v33 }
 0x5f6   : > { %v10719_v4 = vpop.eup %10718  ;;  %v5701_v15 = vmul.f32 %v5640_v61, %v13758_v23  ;;  %10736 = vlog2.f32 %v5607_v54  ;;  %v5485_v12 = vadd.f32 %v14378_v39, %v16714_v43  ;;  %v14437_v53 = vpop.f32.mrb[111].mxu0  ;;  %v5327_v47 = vmul.f32 1.442695, %v5266_v50 }
 0x5f7   : > { %v10721_v3 = vpop.eup %10720  ;;  %v5636_v40 = vmul.f32 0.6931472, %v10719_v4  ;;  %10738 = vlog2.f32 %v5610_v14  ;;  %9712 = vmatmul.mubr.msk.bf16.gmra.mrb[216].mxu0 %vm3970_vm9, %v13567_v35  ;;  %v5477_v54 = vadd.f32 %v14384_v30, %v16626_v38  ;;  %v16717_v30 = vpack.c.bf16 %v14223_v52, %v14196_v11  ;;  %v16718_v38 = vld [vmem:[#allocation137_spill] sm:$0xff] }
 0x5f8   : > { %v14443_v44 = vpop.eup %10722  ;;  %10740 = vpow2.f32 %v5331_v51  ;;  %v5735_v37 = vmul.f32 1.442695, %v5701_v15  ;;  %v5642_v61 = vmul.f32 0.6931472, %v10721_v3  ;;  %v5581_v49 = vmax.f32 %v5485_v12, 0.0  ;;  %9715 = vmatprep.mubr.msk.bf16.mxu0 %vm3970_vm9, %v13572_v17  ;;  %v16716_v12 = vld [vmem:[#allocation141_spill] sm:$0xff] }
 0x5f9   : > { %v14447_v39 = vpop.eup %10724  ;;  %10742 = vpow2.f32 %v5327_v47  ;;  %v5699_v33 = vmul.f32 %v5636_v40, %v13758_v23  ;;  %v16715_v51 = vmov 1.0   ;;  %v5488_v3 = vadd.f32 %v14390_v6, %v16716_v12  ;;  %v9603_v47 = vpop.f32.mrb[112].mxu0  ;;  %v16720_v12 = vld [vmem:[#allocation148_spill] sm:$0xff] }
 0x5fa   : > { %v14454_v14 = vpop.eup %10726  ;;  %10744 = vpow2.f32 %v5735_v37  ;;  %v5702_v4 = vmul.f32 %v5642_v61, %v13758_v23  ;;  %v5613_v15 = vmax.f32 %v5581_v49, 1e-06  ;;  %v5579_v50 = vmax.f32 %v5477_v54, 0.0  ;;  %v14467_v61 = vpop.f32.mrb[113].mxu0 }
 0x5fb   : > { %8902 = vmatmul.mubr.f32.vlgmr.msra.gmra.mrb[2].mxu1 %v16715_v51  ;;  %v14460_v28 = vpop.eup %10728  ;;  %v5731_v40 = vmul.f32 1.442695, %v5699_v33  ;;  %10746 = vlog2.f32 %v5608_v2  ;;  %v5480_v37 = vadd.f32 %v14396_v18, %v16718_v38  ;;  %v16719_v6 = vpack.c.bf16 %v14363_v16, %v14343_v55  ;;  %v14475_v52 = vpop.f32.mrb[114].mxu0 }
 0x5fc   : > { %10076 = vmatpush3.bf16.xpose.msra.mxu1 %v16717_v30  ;;  %8952 = vmatprep.mubr.f32.mxu1 %v16715_v51  ;;  %v10731_v49 = vpop.eup %10730  ;;  %v5737_v43 = vmul.f32 1.442695, %v5702_v4  ;;  %10748 = vlog2.f32 %v5613_v15  ;;  %v5582_v33 = vmax.f32 %v5488_v3, 0.0  ;;  %v5501_v11 = vadd.f32 %v14419_v25, %v16720_v12  ;;  %v14477_v30 = vpop.f32.mrb[115].mxu0 }
 0x5fd   : > { %10078 = vmatprep.subr.bf16.mxu1 %v16719_v6  ;;  %10750 = vpow2.f32 %v5731_v40  ;;  %v5638_v2 = vmul.f32 0.6931472, %v10731_v49  ;;  %v5611_v18 = vmax.f32 %v5579_v50, 1e-06  ;;  %v5580_v54 = vmax.f32 %v5480_v37, 0.0  ;;  %v16721_v37 = vld [vmem:[#allocation144_spill] sm:$0xff] }
 0x5fe   : > { %v10733_v38 = vpop.eup %10732  ;;  %10752 = vpow2.f32 %v5737_v43  ;;  %v5614_v4 = vmax.f32 %v5582_v33, 1e-06  ;;  %v5585_v51 = vmax.f32 %v5501_v11, 0.0  ;;  %v5493_v43 = vadd.f32 %v14427_v63, %v16721_v37 }
 0x5ff   : > { %v14481_v16 = vpop.eup %10734  ;;  %v5700_v15 = vmul.f32 %v5638_v2, %v13758_v23  ;;  %v5648_v25 = vmul.f32 0.6931472, %v10733_v38  ;;  %10754 = vlog2.f32 %v5611_v18  ;;  %v5612_v3 = vmax.f32 %v5580_v54, 1e-06  ;;  %9716 = vmatmul.mubr.msk.bf16.gmra.mrb[220].mxu0 %vm3970_vm9, %v16632_v10  ;;  %v16722_v54 = vld [vmem:[#allocation149_spill] sm:$0xff] }
 0x600   : > { %v10737_v50 = vpop.eup %10736  ;;  %10756 = vlog2.f32 %v5614_v4  ;;  %v5617_v40 = vmax.f32 %v5585_v51, 1e-06  ;;  %9721 = vmatprep.mubr.msk.bf16.mxu0 %vm3970_vm9, %v16634_v36  ;;  %v5583_v51 = vmax.f32 %v5493_v43, 0.0  ;;  %v5504_v63 = vadd.f32 %v14432_v57, %v16722_v54  ;;  %v14497_v4 = vpop.f32.mrb[116].mxu0 }
 0x601   : > { %v10739_v6 = vpop.eup %10738  ;;  %v5733_v33 = vmul.f32 1.442695, %v5700_v15  ;;  %v5705_v38 = vmul.f32 %v5648_v25, %v13758_v23  ;;  %v5644_v11 = vmul.f32 0.6931472, %v10737_v50  ;;  %10758 = vlog2.f32 %v5612_v3  ;;  %v16724_v3 = vld [vmem:[#allocation145_spill] sm:$0xff] }
 0x602   : > { %v14493_v2 = vpop.eup %10740  ;;  %v5650_v18 = vmul.f32 0.6931472, %v10739_v6  ;;  %10760 = vlog2.f32 %v5617_v40  ;;  %v16723_v25 = vpack.c.bf16 %v14205_v1, %v14188_v20  ;;  %v5496_v50 = vadd.f32 %v14437_v53, %v16724_v3  ;;  %v14507_v40 = vpop.f32.mrb[117].mxu0 }
 0x603   : > { %v14499_v49 = vpop.eup %10742  ;;  %10762 = vpow2.f32 %v5733_v33  ;;  %v5743_v36 = vmul.f32 1.442695, %v5705_v38  ;;  %v5703_v15 = vmul.f32 %v5644_v11, %v13758_v23  ;;  %v16725_v6 = vpack.c.bf16 %v14424_v5, %v14400_v27  ;;  %v16726_v11 = vld [vmem:[#allocation122_spill] sm:$0xff]  ;;  %v14516_v54 = vpop.f32.mrb[118].mxu0 }
 0x604   : > { %10080 = vmatpush3.bf16.xpose.msra.mxu1 %v16723_v25  ;;  %v14509_v43 = vpop.eup %10744  ;;  %v5706_v57 = vmul.f32 %v5650_v18, %v13758_v23  ;;  %v5615_v33 = vmax.f32 %v5583_v51, 1e-06  ;;  %v5586_v38 = vmax.f32 %v5504_v63, 0.0  ;;  %v5517_v55 = vadd.f32 %v9603_v47, %v16726_v11  ;;  %v14520_v3 = vpop.f32.mrb[119].mxu0 }
 0x605   : > { %10082 = vmatprep.subr.bf16.mxu1 %v16725_v6  ;;  %v10747_v20 = vpop.eup %10746  ;;  %10764 = vpow2.f32 %v5743_v36  ;;  %v5739_v1 = vmul.f32 1.442695, %v5703_v15  ;;  %v5584_v53 = vmax.f32 %v5496_v50, 0.0  ;;  %v16727_v6 = vld [vmem:[#allocation109_spill] sm:$0xff]  ;;  %v16728_v50 = vld [vmem:[#allocation118_spill] sm:$0xff] }
 0x606   : > { %v10749_v18 = vpop.eup %10748  ;;  %v5745_v37 = vmul.f32 1.442695, %v5706_v57  ;;  %v5646_v12 = vmul.f32 0.6931472, %v10747_v20  ;;  %10766 = vlog2.f32 %v5615_v33  ;;  %v5618_v27 = vmax.f32 %v5586_v38, 1e-06 }
 0x607   : > { %v14522_v5 = vpop.eup %10750  ;;  %10768 = vpow2.f32 %v5739_v1  ;;  %v5656_v47 = vmul.f32 0.6931472, %v10749_v18  ;;  %v5616_v51 = vmax.f32 %v5584_v53, 1e-06  ;;  %v5589_v63 = vmax.f32 %v5517_v55, 0.0  ;;  %9722 = vmatmul.mubr.msk.bf16.vlgmr.msra.gmra.mrb[224].mxu0 %vm3970_vm9, %v16727_v6  ;;  %v16729_v38 = vld [vmem:[#allocation110_spill] sm:$0xff] }
 0x608   : > { %v14526_v36 = vpop.eup %10752  ;;  %10770 = vpow2.f32 %v5745_v37  ;;  %v5704_v15 = vmul.f32 %v5646_v12, %v13758_v23  ;;  %v5509_v57 = vadd.f32 %v14467_v61, %v16728_v50  ;;  %9725 = vmatprep.mubr.msk.bf16.mxu0 %vm3970_vm9, %v16729_v38  ;;  %v16730_v53 = vld [vmem:[#allocation123_spill] sm:$0xff]  ;;  %v14538_v61 = vpop.f32.mrb[120].mxu0  ;;  %v16731_v38 = vpack.c.bf16 %v14253_v46, %v14238_v32 }
 0x609   : > { %v10755_v20 = vpop.eup %10754  ;;  %v5709_v55 = vmul.f32 %v5656_v47, %v13758_v23  ;;  %10772 = vlog2.f32 %v5618_v27  ;;  %v5621_v1 = vmax.f32 %v5589_v63, 1e-06  ;;  %v5520_v18 = vadd.f32 %v14475_v52, %v16730_v53  ;;  %v14543_v47 = vpop.f32.mrb[121].mxu0 }
 0x60a   : > { %v10757_v37 = vpop.eup %10756  ;;  %v5741_v6 = vmul.f32 1.442695, %v5704_v15  ;;  %v5652_v12 = vmul.f32 0.6931472, %v10755_v20  ;;  %10774 = vlog2.f32 %v5616_v51  ;;  %v5587_v25 = vmax.f32 %v5509_v57, 0.0  ;;  %v14549_v20 = vpop.f32.mrb[122].mxu0 }
 0x60b   : > { %v10759_v50 = vpop.eup %10758  ;;  %v5751_v33 = vmul.f32 1.442695, %v5709_v55  ;;  %v5658_v11 = vmul.f32 0.6931472, %v10757_v37  ;;  %10776 = vlog2.f32 %v5621_v1  ;;  %v5590_v27 = vmax.f32 %v5520_v18, 0.0  ;;  %v14554_v18 = vpop.f32.mrb[123].mxu0 }
 0x60c   : > { %10084 = vmatpush3.bf16.xpose.msra.mxu1 %v16731_v38  ;;  %v10761_v63 = vpop.eup %10760  ;;  %10778 = vpow2.f32 %v5741_v6  ;;  %v5707_v52 = vmul.f32 %v5652_v12, %v13758_v23  ;;  %v5654_v15 = vmul.f32 0.6931472, %v10759_v50  ;;  %v16732_v51 = vpack.c.bf16 %v14406_v0, %v14392_v21  ;;  %v16733_v50 = vld [vmem:[#allocation120_spill] sm:$0xff] }
 0x60d   : > { %v5619_v57 = vmax.f32 %v5587_v25, 1e-06  ;;  %v14551_v55 = vpop.eup %10762  ;;  %10780 = vpow2.f32 %v5751_v33  ;;  %v5710_v32 = vmul.f32 %v5658_v11, %v13758_v23  ;;  %v5664_v46 = vmul.f32 0.6931472, %v10761_v63  ;;  %v16734_v33 = vld [vmem:[#allocation130_spill] sm:$0xff] }
 0x60e   : > { %10086 = vmatprep.subr.bf16.mxu1 %v16732_v51  ;;  %v5622_v1 = vmax.f32 %v5590_v27, 1e-06  ;;  %v5747_v37 = vmul.f32 1.442695, %v5707_v52  ;;  %v5708_v6 = vmul.f32 %v5654_v15, %v13758_v23  ;;  %v5512_v21 = vadd.f32 %v14477_v30, %v16733_v50 }
 0x60f   : > { %10782 = vlog2.f32 %v5619_v57  ;;  %v14559_v0 = vpop.eup %10764  ;;  %v5753_v25 = vmul.f32 1.442695, %v5710_v32  ;;  %v5713_v12 = vmul.f32 %v5664_v46, %v13758_v23  ;;  %v5533_v11 = vadd.f32 %v14497_v4, %v16734_v33  ;;  %9726 = vmatmul.mubr.msk.bf16.gmra.mrb[228].mxu0 %vm3970_vm9, %v13487_v60  ;;  %v16735_v32 = vld [vmem:[#allocation126_spill] sm:$0xff] }
 0x610   : > { %10784 = vlog2.f32 %v5622_v1  ;;  %v10767_v38 = vpop.eup %10766  ;;  %v5749_v27 = vmul.f32 1.442695, %v5708_v6  ;;  %v5588_v63 = vmax.f32 %v5512_v21, 0.0  ;;  %v10091_v52 = vpack.c.bf16 %v14300_v34, %v14289_v59  ;;  %9729 = vmatprep.mubr.msk.bf16.mxu0 %vm3970_vm9, %v13492_v41 }
 0x611   : > { %10786 = vpow2.f32 %v5747_v37  ;;  %v14570_v30 = vpop.eup %10768  ;;  %v5759_v15 = vmul.f32 1.442695, %v5713_v12  ;;  %v5660_v51 = vmul.f32 0.6931472, %v10767_v38  ;;  %v5593_v57 = vmax.f32 %v5533_v11, 0.0  ;;  %v14578_v37 = vpop.f32.mrb[124].mxu0 }
 0x612   : > { %10788 = vpow2.f32 %v5753_v25  ;;  %v14572_v4 = vpop.eup %10770  ;;  %v5620_v60 = vmax.f32 %v5588_v63, 1e-06  ;;  %v5525_v46 = vadd.f32 %v14507_v40, %v16735_v32  ;;  %v10093_v1 = vpack.c.bf16 %v14447_v39, %v14429_v26  ;;  %v14586_v11 = vpop.f32.mrb[125].mxu0 }
 0x613   : > { %10790 = vpow2.f32 %v5749_v27  ;;  %v10773_v6 = vpop.eup %10772  ;;  %v5711_v41 = vmul.f32 %v5660_v51, %v13758_v23  ;;  %v16736_v21 = vpack.c.bf16 %v14245_v24, %v14230_v45  ;;  %v5625_v25 = vmax.f32 %v5593_v57, 1e-06  ;;  %v16738_v27 = vld [vmem:[#allocation127_spill] sm:$0xff] }
 0x614   : > { %10792 = vpow2.f32 %v5759_v15  ;;  %v5536_v12 = vadd.f32 %v14516_v54, %v16680_v48  ;;  %v10775_v40 = vpop.eup %10774  ;;  %v5666_v38 = vmul.f32 0.6931472, %v10773_v6  ;;  %v16737_v26 = vpack.c.bf16 %v14454_v14, %v14443_v44  ;;  %v14593_v15 = vpop.f32.mrb[126].mxu0 }
 0x615   : > { %10088 = vmatpush3.bf16.xpose.msra.mxu1 %v16736_v21  ;;  %10794 = vlog2.f32 %v5620_v60  ;;  %v5591_v39 = vmax.f32 %v5525_v46, 0.0  ;;  %v5528_v63 = vadd.f32 %v14520_v3, %v16738_v27  ;;  %v10777_v45 = vpop.eup %10776  ;;  %v5755_v24 = vmul.f32 1.442695, %v5711_v41  ;;  %v14595_v57 = vpop.f32.mrb[127].mxu0 }
 0x616   : > { %10090 = vmatprep.subr.bf16.mxu1 %v16737_v26  ;;  %v5662_v51 = vmul.f32 0.6931472, %v10775_v40  ;;  %10796 = vlog2.f32 %v5625_v25  ;;  %v5594_v54 = vmax.f32 %v5536_v12, 0.0  ;;  %v14597_v21 = vpop.eup %10778  ;;  %v5714_v6 = vmul.f32 %v5666_v38, %v13758_v23 }
 0x617   : > { %v5672_v44 = vmul.f32 0.6931472, %v10777_v45  ;;  %v5623_v14 = vmax.f32 %v5591_v39, 1e-06  ;;  %v5592_v60 = vmax.f32 %v5528_v63, 0.0  ;;  %v14600_v46 = vpop.eup %10780  ;;  %10798 = vpow2.f32 %v5755_v24  ;;  %9730 = vmatmul.mubr.msk.bf16.gmra.mrb[232].mxu0 %vm3970_vm9, %v13503_v58 }
 0x618   : > { %v5712_v3 = vmul.f32 %v5662_v51, %v13758_v23  ;;  %v5626_v26 = vmax.f32 %v5594_v54, 1e-06  ;;  %v5549_v41 = vadd.f32 %v14538_v61, %v16643_v56  ;;  %v5761_v12 = vmul.f32 1.442695, %v5714_v6  ;;  %9733 = vmatprep.mubr.msk.bf16.mxu0 %vm3970_vm9, %v13508_v62  ;;  %v14614_v6 = vpop.f32.mrb[128].mxu0 }
 0x619   : > { %v10783_v25 = vpop.eup %10782  ;;  %v5717_v40 = vmul.f32 %v5672_v44, %v13758_v23  ;;  %10800 = vlog2.f32 %v5623_v14  ;;  %v5624_v38 = vmax.f32 %v5592_v60, 1e-06  ;;  %v10095_v58 = vpack.c.bf16 %v14291_v8, %v14266_v13 }
 0x61a   : > { %v10785_v39 = vpop.eup %10784  ;;  %v5757_v63 = vmul.f32 1.442695, %v5712_v3  ;;  %v5668_v45 = vmul.f32 0.6931472, %v10783_v25  ;;  %10802 = vlog2.f32 %v5626_v26  ;;  %v5597_v24 = vmax.f32 %v5549_v41, 0.0  ;;  %v14624_v3 = vpop.f32.mrb[129].mxu0 }
 0x61b   : > { %v14610_v51 = vpop.eup %10786  ;;  %10804 = vpow2.f32 %v5761_v12  ;;  %v5767_v61 = vmul.f32 1.442695, %v5717_v40  ;;  %v5674_v54 = vmul.f32 0.6931472, %v10785_v39  ;;  %v5541_v60 = vadd.f32 %v14543_v47, %v16684_v7  ;;  %v14633_v59 = vpop.f32.mrb[130].mxu0  ;;  %v16740_v25 = vld [vmem:[#allocation135_spill] sm:$0xff] }
 0x61c   : > { %v14616_v44 = vpop.eup %10788  ;;  %10806 = vpow2.f32 %v5757_v63  ;;  %v5715_v62 = vmul.f32 %v5668_v45, %v13758_v23  ;;  %v5629_v14 = vmax.f32 %v5597_v24, 1e-06  ;;  %v10097_v8 = vpack.c.bf16 %v14499_v49, %v14481_v16  ;;  %v14639_v40 = vpop.f32.mrb[131].mxu0  ;;  %v16741_v16 = vld [vmem:[#allocation146_spill] sm:$0xff] }
 0x61d   : > { %10092 = vmatpush3.bf16.xpose.msra.mxu1 %v10091_v52  ;;  %v14626_v26 = vpop.eup %10790  ;;  %10808 = vpow2.f32 %v5767_v61  ;;  %v5718_v13 = vmul.f32 %v5674_v54, %v13758_v23  ;;  %v5552_v41 = vadd.f32 %v14549_v20, %v16685_v22  ;;  %v5595_v47 = vmax.f32 %v5541_v60, 0.0  ;;  %v16742_v54 = vld [vmem:[#allocation111_spill] sm:$0xff]  ;;  %v16743_v60 = vld [vmem:[#allocation112_spill] sm:$0xff] }
 0x61e   : > { %10094 = vmatprep.subr.bf16.mxu1 %v10093_v1  ;;  %v14635_v34 = vpop.eup %10792  ;;  %v5763_v52 = vmul.f32 1.442695, %v5715_v62  ;;  %10810 = vlog2.f32 %v5624_v38  ;;  %v5544_v12 = vadd.f32 %v14554_v18, %v16740_v25  ;;  %v5565_v49 = vadd.f32 %v14578_v37, %v16741_v16 }
 0x61f   : > { %16739 = vst [vmem:[#allocation115_spill] sm:$0xff] %v14635_v34  ;;  %v10795_v39 = vpop.eup %10794  ;;  %v5769_v1 = vmul.f32 1.442695, %v5718_v13  ;;  %10812 = vlog2.f32 %v5629_v14  ;;  %v5598_v63 = vmax.f32 %v5552_v41, 0.0  ;;  %v5627_v24 = vmax.f32 %v5595_v47, 1e-06  ;;  %9734 = vmatmul.mubr.msk.bf16.gmra.mrb[236].mxu0 %vm3970_vm9, %v16742_v54 }
 0x620   : > { %v10797_v20 = vpop.eup %10796  ;;  %10814 = vpow2.f32 %v5763_v52  ;;  %v5670_v45 = vmul.f32 0.6931472, %v10795_v39  ;;  %v5596_v61 = vmax.f32 %v5544_v12, 0.0  ;;  %v5601_v62 = vmax.f32 %v5565_v49, 0.0  ;;  %9737 = vmatprep.mubr.msk.bf16.mxu0 %vm3970_vm9, %v16743_v60  ;;  %v16745_v41 = vld [vmem:[#allocation133_spill] sm:$0xff]  ;;  %v14655_v49 = vpop.f32.mrb[132].mxu0 }
 0x621   : > { %10816 = vpow2.f32 %v5769_v1  ;;  %v5680_v38 = vmul.f32 0.6931472, %v10797_v20  ;;  %v5630_v18 = vmax.f32 %v5598_v63, 1e-06  ;;  %v14647_v14 = vpop.eup %10798  ;;  %v16746_v52 = vld [vmem:[#allocation153_spill] sm:$0xff]  ;;  %v16747_v20 = vld [vmem:[#allocation142_spill] sm:$0xff] }
 0x622   : > { %16744 = vst [vmem:[#allocation117_spill] sm:$0xff] %v14647_v14  ;;  %v5716_v13 = vmul.f32 %v5670_v45, %v13758_v23  ;;  %10818 = vlog2.f32 %v5627_v24  ;;  %v5628_v37 = vmax.f32 %v5596_v61, 1e-06  ;;  %v10099_v47 = vpack.c.bf16 %v16746_v52, %v16745_v41  ;;  %v14659_v24 = vpop.f32.mrb[133].mxu0 }
 0x623   : > { %v10801_v12 = vpop.eup %10800  ;;  %v5721_v39 = vmul.f32 %v5680_v38, %v13758_v23  ;;  %10820 = vlog2.f32 %v5630_v18  ;;  %v5633_v1 = vmax.f32 %v5601_v62, 1e-06  ;;  %v5557_v63 = vadd.f32 %v14586_v11, %v16747_v20  ;;  %v14663_v11 = vpop.f32.mrb[134].mxu0  ;;  %v16753_v20 = vld [vmem:[#allocation150_spill] sm:$0xff] }
 0x624   : > { %v10803_v54 = vpop.eup %10802  ;;  %v5765_v60 = vmul.f32 1.442695, %v5716_v13  ;;  %v5676_v34 = vmul.f32 0.6931472, %v10801_v12  ;;  %10822 = vlog2.f32 %v5628_v37  ;;  %v10101_v45 = vpack.c.bf16 %v14493_v2, %v14460_v28  ;;  %v16750_v13 = vld [vmem:[#allocation147_spill] sm:$0xff]  ;;  %v14672_v52 = vpop.f32.mrb[135].mxu0 }
 0x625   : > { %10096 = vmatpush3.bf16.xpose.msra.mxu1 %v10095_v58  ;;  %v14661_v61 = vpop.eup %10804  ;;  %v5775_v38 = vmul.f32 1.442695, %v5721_v39  ;;  %v5682_v18 = vmul.f32 0.6931472, %v10803_v54  ;;  %10824 = vlog2.f32 %v5633_v1  ;;  %v5599_v62 = vmax.f32 %v5557_v63, 0.0  ;;  %v16751_v28 = vld [vmem:[#allocation143_spill] sm:$0xff] }
 0x626   : > { %16748 = vst [vmem:[#allocation152_spill] sm:$0xff] %v14661_v61  ;;  %10098 = vmatprep.subr.bf16.mxu1 %v10097_v8  ;;  %v14665_v41 = vpop.eup %10806  ;;  %10826 = vpow2.f32 %v5765_v60  ;;  %v5719_v58 = vmul.f32 %v5676_v34, %v13758_v23  ;;  %v5568_v37 = vadd.f32 %v14593_v15, %v16750_v13  ;;  %v5560_v2 = vadd.f32 %v14595_v57, %v16751_v28  ;;  %v16752_v1 = vld [vmem:[#allocation124_spill] sm:$0xff]  ;;  %v16756_v13 = vld [vmem:[#allocation119_spill] sm:$0xff] }
 0x627   : > { %16749 = vst [vmem:[#allocation108_spill] sm:$0xff] %v14665_v41  ;;  %v14674_v12 = vpop.eup %10808  ;;  %10828 = vpow2.f32 %v5775_v38  ;;  %v5722_v8 = vmul.f32 %v5682_v18, %v13758_v23  ;;  %v5631_v39 = vmax.f32 %v5599_v62, 1e-06  ;;  %v5915_v63 = vadd.f32 %v14614_v6, %v16752_v1  ;;  %v16754_v15 = vld [vmem:[#allocation116_spill] sm:$0xff]  ;;  %v16755_v41 = vld [vmem:[#allocation113_spill] sm:$0xff] }
 0x628   : > { %v10811_v54 = vpop.eup %10810  ;;  %v5771_v60 = vmul.f32 1.442695, %v5719_v58  ;;  %v5602_v34 = vmax.f32 %v5568_v37, 0.0  ;;  %v5600_v61 = vmax.f32 %v5560_v2, 0.0  ;;  %9738 = vmatmul.mubr.msk.bf16.gmra.mrb[240].mxu0 %vm3970_vm9, %v16755_v41 }
 0x629   : > { %v10813_v57 = vpop.eup %10812  ;;  %v5777_v28 = vmul.f32 1.442695, %v5722_v8  ;;  %v5678_v14 = vmul.f32 0.6931472, %v10811_v54  ;;  %10830 = vlog2.f32 %v5631_v39  ;;  %v6035_v38 = vmax.f32 %v5915_v63, 0.0  ;;  %9741 = vmatprep.mubr.msk.bf16.mxu0 %vm3970_vm9, %v16707_v42  ;;  %v14692_v39 = vpop.f32.mrb[136].mxu0 }
 0x62a   : > { %v14685_v18 = vpop.eup %10814  ;;  %10832 = vpow2.f32 %v5771_v60  ;;  %v5688_v6 = vmul.f32 0.6931472, %v10813_v57  ;;  %v5634_v62 = vmax.f32 %v5602_v34, 1e-06  ;;  %v5632_v58 = vmax.f32 %v5600_v61, 1e-06 }
 0x62b   : > { %v14687_v37 = vpop.eup %10816  ;;  %10834 = vpow2.f32 %v5777_v28  ;;  %v5720_v2 = vmul.f32 %v5678_v14, %v13758_v23  ;;  %v6067_v41 = vmax.f32 %v6035_v38, 1e-06  ;;  %v5907_v8 = vadd.f32 %v14624_v3, %v16756_v13  ;;  %v16757_v54 = vld [vmem:[#allocation125_spill] sm:$0xff]  ;;  %v14699_v28 = vpop.f32.mrb[137].mxu0 }
 0x62c   : > { %v10819_v63 = vpop.eup %10818  ;;  %v5725_v42 = vmul.f32 %v5688_v6, %v13758_v23  ;;  %10836 = vlog2.f32 %v5634_v62  ;;  %v5918_v60 = vadd.f32 %v14633_v59, %v16757_v54  ;;  %v16758_v61 = vld [vmem:[#allocation121_spill] sm:$0xff]  ;;  %v14701_v13 = vpop.f32.mrb[138].mxu0 }
 0x62d   : > { %10100 = vmatpush3.bf16.xpose.msra.mxu1 %v10099_v47  ;;  %v5910_v34 = vadd.f32 %v14639_v40, %v16758_v61  ;;  %v10821_v14 = vpop.eup %10820  ;;  %v5773_v57 = vmul.f32 1.442695, %v5720_v2  ;;  %v5684_v38 = vmul.f32 0.6931472, %v10819_v63  ;;  %10838 = vlog2.f32 %v5632_v58  ;;  %v14703_v16 = vpop.f32.mrb[139].mxu0 }
 0x62e   : > { %10102 = vmatprep.subr.bf16.mxu1 %v10101_v45  ;;  %v6033_v3 = vmax.f32 %v5907_v8, 0.0  ;;  %v10823_v1 = vpop.eup %10822  ;;  %v5783_v6 = vmul.f32 1.442695, %v5725_v42  ;;  %v5690_v47 = vmul.f32 0.6931472, %v10821_v14  ;;  %10840 = vlog2.f32 %v6067_v41 }
 0x62f   : > { %v6036_v62 = vmax.f32 %v5918_v60, 0.0  ;;  %v10825_v59 = vpop.eup %10824  ;;  %10842 = vpow2.f32 %v5773_v57  ;;  %v5723_v40 = vmul.f32 %v5684_v38, %v13758_v23  ;;  %v5686_v61 = vmul.f32 0.6931472, %v10823_v1 }
 0x630   : > { %v6065_v54 = vmax.f32 %v6033_v3, 1e-06  ;;  %v10827_v2 = vpop.eup %10826  ;;  %10844 = vpow2.f32 %v5783_v6  ;;  %v5726_v45 = vmul.f32 %v5690_v47, %v13758_v23  ;;  %v5696_v58 = vmul.f32 0.6931472, %v10825_v59  ;;  %9742 = vmatmul.mubr.msk.bf16.gmra.mrb[244].mxu0 %vm3970_vm9, %v16624_v9  ;;  %v14718_v47 = vpop.f32.mrb[140].mxu0 }
 0x631   : > { %v6068_v8 = vmax.f32 %v6036_v62, 1e-06  ;;  %v14709_v63 = vpop.eup %10828  ;;  %v5779_v41 = vmul.f32 1.442695, %v5723_v40  ;;  %v5724_v42 = vmul.f32 %v5686_v61, %v13758_v23  ;;  %v6034_v60 = vmax.f32 %v5910_v34, 0.0  ;;  %9745 = vmatprep.mubr.msk.bf16.mxu0 %vm3970_vm9, %v16658_v19  ;;  %v14727_v62 = vpop.f32.mrb[141].mxu0 }
 0x632   : > { %10846 = vlog2.f32 %v6065_v54  ;;  %v5785_v1 = vmul.f32 1.442695, %v5726_v45  ;;  %v5729_v14 = vmul.f32 %v5696_v58, %v13758_v23  ;;  %v10105_v57 = vpack.c.bf16 %v10827_v2, %v14685_v18  ;;  %v16760_v40 = vld [vmem:[#allocation128_spill] sm:$0xff]  ;;  %v14735_v58 = vpop.f32.mrb[142].mxu0 }
 0x633   : > { %10848 = vlog2.f32 %v6068_v8  ;;  %v10831_v38 = vpop.eup %10830  ;;  %v5781_v3 = vmul.f32 1.442695, %v5724_v42  ;;  %v6066_v9 = vmax.f32 %v6034_v60, 1e-06  ;;  %v5931_v6 = vadd.f32 %v14655_v49, %v16710_v31 }
 0x634   : > { %10850 = vpow2.f32 %v5779_v41  ;;  %v14720_v54 = vpop.eup %10832  ;;  %v5791_v61 = vmul.f32 1.442695, %v5729_v14  ;;  %v5692_v19 = vmul.f32 0.6931472, %v10831_v38  ;;  %v16759_v34 = vpack.c.bf16 %v16754_v15, %v16753_v20  ;;  %v14742_v41 = vpop.f32.mrb[143].mxu0 }
 0x635   : > { %10852 = vpow2.f32 %v5785_v1  ;;  %v10107_v18 = vpack.c.bf16 %v14551_v55, %v14522_v5  ;;  %v14729_v59 = vpop.eup %10834  ;;  %v6039_v49 = vmax.f32 %v5931_v6, 0.0  ;;  %v5923_v2 = vadd.f32 %v14659_v24, %v16760_v40  ;;  %v16761_v55 = vld [vmem:[#allocation129_spill] sm:$0xff] }
 0x636   : > { %10104 = vmatpush3.bf16.xpose.msra.mxu1 %v16759_v34  ;;  %10854 = vpow2.f32 %v5781_v3  ;;  %v10109_v45 = vpack.c.bf16 %v14687_v37, %v14674_v12  ;;  %v10837_v20 = vpop.eup %10836  ;;  %v5727_v15 = vmul.f32 %v5692_v19, %v13758_v23  ;;  %v5934_v5 = vadd.f32 %v14663_v11, %v16656_v29 }
 0x637   : > { %10106 = vmatprep.subr.bf16.mxu1 %v10105_v57  ;;  %10856 = vpow2.f32 %v5791_v61  ;;  %v5926_v8 = vadd.f32 %v14672_v52, %v16761_v55  ;;  %v10839_v42 = vpop.eup %10838  ;;  %v5698_v60 = vmul.f32 0.6931472, %v10837_v20  ;;  %v6071_v24 = vmax.f32 %v6039_v49, 1e-06 }
 0x638   : > { %10858 = vlog2.f32 %v6066_v9  ;;  %v6037_v1 = vmax.f32 %v5923_v2, 0.0  ;;  %v10841_v12 = vpop.eup %10840  ;;  %v5787_v37 = vmul.f32 1.442695, %v5727_v15  ;;  %v5694_v14 = vmul.f32 0.6931472, %v10839_v42  ;;  %9746 = vmatmul.mubr.msk.bf16.gmra.mrb[248].mxu0 %vm3970_vm9, %v13567_v35  ;;  %v16763_v15 = vld [vmem:[#allocation140_spill] sm:$0xff] }
 0x639   : > { %v6040_v57 = vmax.f32 %v5934_v5, 0.0  ;;  %v6038_v38 = vmax.f32 %v5926_v8, 0.0  ;;  %v14746_v3 = vpop.eup %10842  ;;  %v5730_v11 = vmul.f32 %v5698_v60, %v13758_v23  ;;  %v6102_v52 = vmul.f32 0.6931472, %v10841_v12  ;;  %9749 = vmatprep.mubr.msk.bf16.mxu0 %vm3970_vm9, %v13572_v17  ;;  %v14758_v8 = vpop.f32.mrb[144].mxu0 }
 0x63a   : > { %10860 = vlog2.f32 %v6071_v24  ;;  %v6069_v6 = vmax.f32 %v6037_v1, 1e-06  ;;  %v14751_v9 = vpop.eup %10844  ;;  %v5728_v61 = vmul.f32 %v5694_v14, %v13758_v23  ;;  %v16762_v20 = vmov 1.0   ;;  %v14762_v1 = vpop.f32.mrb[145].mxu0 }
 0x63b   : > { %10862 = vpow2.f32 %v5787_v37  ;;  %v6072_v19 = vmax.f32 %v6040_v57, 1e-06  ;;  %v6070_v34 = vmax.f32 %v6038_v38, 1e-06  ;;  %v5793_v2 = vmul.f32 1.442695, %v5730_v11 }
 0x63c   : > { %v10847_v49 = vpop.eup %10846  ;;  %v6163_v35 = vmul.f32 %v6102_v52, %v13758_v23  ;;  %10864 = vlog2.f32 %v6069_v6  ;;  %v5947_v5 = vadd.f32 %v14692_v39, %v16763_v15  ;;  %v5789_v42 = vmul.f32 1.442695, %v5728_v61  ;;  %v14767_v57 = vpop.f32.mrb[146].mxu0  ;;  %v16764_v11 = vld [vmem:[#allocation136_spill] sm:$0xff] }
 0x63d   : > { %8953 = vmatmul.mubr.f32.vlgmr.msra.gmra.mrb[4].mxu1 %v16762_v20  ;;  %v10849_v17 = vpop.eup %10848  ;;  %v6098_v60 = vmul.f32 0.6931472, %v10847_v49  ;;  %10866 = vlog2.f32 %v6072_v19  ;;  %v10111_v24 = vpack.c.bf16 %v14526_v36, %v14509_v43  ;;  %v5939_v43 = vadd.f32 %v14699_v28, %v16764_v11  ;;  %v14776_v52 = vpop.f32.mrb[147].mxu0  ;;  %v16765_v19 = vld [vmem:[#allocation141_spill] sm:$0xff] }
 0x63e   : > { %10108 = vmatpush3.bf16.xpose.msra.mxu1 %v10107_v18  ;;  %9003 = vmatprep.mubr.f32.mxu1 %v16762_v20  ;;  %v14765_v12 = vpop.eup %10850  ;;  %10868 = vpow2.f32 %v5793_v2  ;;  %v6197_v37 = vmul.f32 1.442695, %v6163_v35  ;;  %v6104_v14 = vmul.f32 0.6931472, %v10849_v17  ;;  %v6043_v39 = vmax.f32 %v5947_v5, 0.0  ;;  %v16766_v28 = vld [vmem:[#allocation137_spill] sm:$0xff] }
 0x63f   : > { %10110 = vmatprep.subr.bf16.mxu1 %v10109_v45  ;;  %v14769_v38 = vpop.eup %10852  ;;  %10870 = vpow2.f32 %v5789_v42  ;;  %v6161_v18 = vmul.f32 %v6098_v60, %v13758_v23  ;;  %v10113_v36 = vpack.c.bf16 %v14746_v3, %v14720_v54  ;;  %v5950_v49 = vadd.f32 %v14701_v13, %v16765_v19  ;;  %v16767_v60 = vld [vmem:[#allocation148_spill] sm:$0xff] }
 0x640   : > { %v14778_v6 = vpop.eup %10854  ;;  %10872 = vpow2.f32 %v6197_v37  ;;  %v6164_v45 = vmul.f32 %v6104_v14, %v13758_v23  ;;  %v6075_v61 = vmax.f32 %v6043_v39, 1e-06  ;;  %v6041_v5 = vmax.f32 %v5939_v43, 0.0  ;;  %9750 = vmatmul.mubr.msk.bf16.gmra.mrb[252].mxu0 %vm3970_vm9, %v16632_v10 }
 0x641   : > { %v14783_v2 = vpop.eup %10856  ;;  %v6193_v35 = vmul.f32 1.442695, %v6161_v18  ;;  %10874 = vlog2.f32 %v6070_v34  ;;  %v5942_v17 = vadd.f32 %v14703_v16, %v16766_v28  ;;  %v6044_v42 = vmax.f32 %v5950_v49, 0.0  ;;  %v14793_v28 = vpop.f32.mrb[148].mxu0 }
 0x642   : > { %v10859_v54 = vpop.eup %10858  ;;  %v6199_v3 = vmul.f32 1.442695, %v6164_v45  ;;  %10876 = vlog2.f32 %v6075_v61  ;;  %v5963_v37 = vadd.f32 %v14718_v47, %v16767_v60  ;;  %v6073_v14 = vmax.f32 %v6041_v5, 1e-06  ;;  %v14798_v49 = vpop.f32.mrb[149].mxu0 }
 0x643   : > { %10878 = vpow2.f32 %v6193_v35  ;;  %v6100_v13 = vmul.f32 0.6931472, %v10859_v54  ;;  %v6042_v39 = vmax.f32 %v5942_v17, 0.0  ;;  %v6076_v34 = vmax.f32 %v6044_v42, 1e-06  ;;  %v16768_v17 = vld [vmem:[#allocation144_spill] sm:$0xff] }
 0x644   : > { %v10861_v18 = vpop.eup %10860  ;;  %10880 = vpow2.f32 %v6199_v3  ;;  %v6047_v43 = vmax.f32 %v5963_v37, 0.0  ;;  %v10115_v16 = vpack.c.bf16 %v14597_v21, %v14570_v30  ;;  %v5955_v54 = vadd.f32 %v14727_v62, %v16768_v17  ;;  %v14804_v21 = vpop.f32.mrb[150].mxu0 }
 0x645   : > { %v14795_v10 = vpop.eup %10862  ;;  %v6162_v45 = vmul.f32 %v6100_v13, %v13758_v23  ;;  %v6110_v61 = vmul.f32 0.6931472, %v10861_v18  ;;  %10882 = vlog2.f32 %v6073_v14  ;;  %v6074_v47 = vmax.f32 %v6042_v39, 1e-06  ;;  %v14807_v13 = vpop.f32.mrb[151].mxu0  ;;  %v16769_v18 = vld [vmem:[#allocation149_spill] sm:$0xff] }
 0x646   : > { %10112 = vmatpush3.bf16.xpose.msra.mxu1 %v10111_v24  ;;  %v10865_v35 = vpop.eup %10864  ;;  %10884 = vlog2.f32 %v6076_v34  ;;  %v6079_v5 = vmax.f32 %v6047_v43, 1e-06  ;;  %v10117_v30 = vpack.c.bf16 %v14729_v59, %v14709_v63  ;;  %v6045_v39 = vmax.f32 %v5955_v54, 0.0  ;;  %v16770_v43 = vld [vmem:[#allocation145_spill] sm:$0xff] }
 0x647   : > { %10114 = vmatprep.subr.bf16.mxu1 %v10113_v36  ;;  %v10867_v3 = vpop.eup %10866  ;;  %v6195_v42 = vmul.f32 1.442695, %v6162_v45  ;;  %v6167_v24 = vmul.f32 %v6110_v61, %v13758_v23  ;;  %v6106_v37 = vmul.f32 0.6931472, %v10865_v35  ;;  %10886 = vlog2.f32 %v6074_v47 }
 0x648   : > { %v14809_v14 = vpop.eup %10868  ;;  %v6112_v36 = vmul.f32 0.6931472, %v10867_v3  ;;  %10888 = vlog2.f32 %v6079_v5  ;;  %v5966_v62 = vadd.f32 %v14735_v58, %v16769_v18  ;;  %v5958_v45 = vadd.f32 %v14742_v41, %v16770_v43  ;;  %v16771_v5 = vld [vmem:[#allocation122_spill] sm:$0xff] }
 0x649   : > { %v14813_v34 = vpop.eup %10870  ;;  %10890 = vpow2.f32 %v6195_v42  ;;  %v6205_v63 = vmul.f32 1.442695, %v6167_v24  ;;  %v6165_v59 = vmul.f32 %v6106_v37, %v13758_v23  ;;  %v6077_v35 = vmax.f32 %v6045_v39, 1e-06 }
 0x64a   : > { %v14818_v61 = vpop.eup %10872  ;;  %v6168_v47 = vmul.f32 %v6112_v36, %v13758_v23  ;;  %v6048_v3 = vmax.f32 %v5966_v62, 0.0  ;;  %v5979_v54 = vadd.f32 %v14758_v8, %v16771_v5  ;;  %v6046_v18 = vmax.f32 %v5958_v45, 0.0  ;;  %v14827_v8 = vpop.f32.mrb[152].mxu0 }
 0x64b   : > { %v10875_v17 = vpop.eup %10874  ;;  %10892 = vpow2.f32 %v6205_v63  ;;  %v6201_v58 = vmul.f32 1.442695, %v6165_v59  ;;  %v10119_v42 = vpack.c.bf16 %v14572_v4, %v14559_v0  ;;  %v16772_v0 = vld [vmem:[#allocation118_spill] sm:$0xff]  ;;  %v14836_v45 = vpop.f32.mrb[153].mxu0 }
 0x64c   : > { %v10877_v24 = vpop.eup %10876  ;;  %v6207_v37 = vmul.f32 1.442695, %v6168_v47  ;;  %v6108_v60 = vmul.f32 0.6931472, %v10875_v17  ;;  %10894 = vlog2.f32 %v6077_v35  ;;  %v6080_v41 = vmax.f32 %v6048_v3, 1e-06 }
 0x64d   : > { %v14825_v43 = vpop.eup %10878  ;;  %10896 = vpow2.f32 %v6201_v58  ;;  %v6118_v36 = vmul.f32 0.6931472, %v10877_v24  ;;  %v6078_v39 = vmax.f32 %v6046_v18, 1e-06  ;;  %v6051_v62 = vmax.f32 %v5979_v54, 0.0  ;;  %v14841_v3 = vpop.f32.mrb[154].mxu0 }
 0x64e   : > { %10116 = vmatpush3.bf16.xpose.msra.mxu1 %v10115_v16  ;;  %v14829_v63 = vpop.eup %10880  ;;  %10898 = vpow2.f32 %v6207_v37  ;;  %v6166_v59 = vmul.f32 %v6108_v60, %v13758_v23  ;;  %v5971_v4 = vadd.f32 %v14762_v1, %v16772_v0  ;;  %v10121_v17 = vpack.c.bf16 %v14778_v6, %v14765_v12  ;;  %v14843_v58 = vpop.f32.mrb[155].mxu0 }
 0x64f   : > { %10118 = vmatprep.subr.bf16.mxu1 %v10117_v30  ;;  %v10883_v47 = vpop.eup %10882  ;;  %v6171_v16 = vmul.f32 %v6118_v36, %v13758_v23  ;;  %10900 = vlog2.f32 %v6080_v41  ;;  %v6083_v18 = vmax.f32 %v6051_v62, 1e-06  ;;  %v5982_v35 = vadd.f32 %v14767_v57, %v16730_v53 }
 0x650   : > { %v10885_v60 = vpop.eup %10884  ;;  %v6203_v30 = vmul.f32 1.442695, %v6166_v59  ;;  %v6114_v54 = vmul.f32 0.6931472, %v10883_v47  ;;  %10902 = vlog2.f32 %v6078_v39  ;;  %v6049_v1 = vmax.f32 %v5971_v4, 0.0 }
 0x651   : > { %v10887_v12 = vpop.eup %10886  ;;  %v6213_v6 = vmul.f32 1.442695, %v6171_v16  ;;  %v6120_v24 = vmul.f32 0.6931472, %v10885_v60  ;;  %10904 = vlog2.f32 %v6083_v18  ;;  %v6052_v37 = vmax.f32 %v5982_v35, 0.0  ;;  %v14852_v18 = vpop.f32.mrb[156].mxu0 }
 0x652   : > { %v10889_v36 = vpop.eup %10888  ;;  %10906 = vpow2.f32 %v6203_v30  ;;  %v6169_v41 = vmul.f32 %v6114_v54, %v13758_v23  ;;  %v6116_v62 = vmul.f32 0.6931472, %v10887_v12  ;;  %v6081_v57 = vmax.f32 %v6049_v1, 1e-06  ;;  %v14859_v1 = vpop.f32.mrb[157].mxu0 }
 0x653   : > { %v14846_v53 = vpop.eup %10890  ;;  %10908 = vpow2.f32 %v6213_v6  ;;  %v6172_v59 = vmul.f32 %v6120_v24, %v13758_v23  ;;  %v6126_v39 = vmul.f32 0.6931472, %v10889_v36  ;;  %v6084_v4 = vmax.f32 %v6052_v37, 1e-06  ;;  %v14863_v37 = vpop.f32.mrb[158].mxu0 }
 0x654   : > { %v6209_v47 = vmul.f32 1.442695, %v6169_v41  ;;  %v6170_v0 = vmul.f32 %v6116_v62, %v13758_v23  ;;  %10910 = vlog2.f32 %v6081_v57  ;;  %v5974_v16 = vadd.f32 %v14776_v52, %v16733_v50  ;;  %v14867_v57 = vpop.f32.mrb[159].mxu0 }
 0x655   : > { %v14854_v35 = vpop.eup %10892  ;;  %v6215_v60 = vmul.f32 1.442695, %v6172_v59  ;;  %v6175_v30 = vmul.f32 %v6126_v39, %v13758_v23  ;;  %10912 = vlog2.f32 %v6084_v4  ;;  %v5995_v54 = vadd.f32 %v14793_v28, %v16734_v33 }
 0x656   : > { %10120 = vmatpush3.bf16.xpose.msra.mxu1 %v10119_v42  ;;  %v10895_v12 = vpop.eup %10894  ;;  %10914 = vpow2.f32 %v6209_v47  ;;  %v6211_v6 = vmul.f32 1.442695, %v6170_v0  ;;  %v6050_v24 = vmax.f32 %v5974_v16, 0.0  ;;  %v10123_v52 = vpack.c.bf16 %v14626_v26, %v14610_v51 }
 0x657   : > { %10122 = vmatprep.subr.bf16.mxu1 %v10121_v17  ;;  %v14865_v36 = vpop.eup %10896  ;;  %10916 = vpow2.f32 %v6215_v60  ;;  %v6221_v42 = vmul.f32 1.442695, %v6175_v30  ;;  %v6122_v41 = vmul.f32 0.6931472, %v10895_v12  ;;  %v6055_v62 = vmax.f32 %v5995_v54, 0.0 }
 0x658   : > { %v14869_v28 = vpop.eup %10898  ;;  %10918 = vpow2.f32 %v6211_v6  ;;  %v6082_v59 = vmax.f32 %v6050_v24, 1e-06  ;;  %v5987_v0 = vadd.f32 %v14798_v49, %v16735_v32  ;;  %v10125_v51 = vpack.c.bf16 %v14769_v38, %v14751_v9 }
 0x659   : > { %v10901_v26 = vpop.eup %10900  ;;  %10920 = vpow2.f32 %v6221_v42  ;;  %v6173_v17 = vmul.f32 %v6122_v41, %v13758_v23  ;;  %v6087_v39 = vmax.f32 %v6055_v62, 1e-06  ;;  %v5998_v4 = vadd.f32 %v14804_v21, %v16680_v48  ;;  %v14883_v21 = vpop.f32.mrb[160].mxu0 }
 0x65a   : > { %v10903_v47 = vpop.eup %10902  ;;  %v6128_v16 = vmul.f32 0.6931472, %v10901_v26  ;;  %10922 = vlog2.f32 %v6082_v59  ;;  %v6053_v60 = vmax.f32 %v5987_v0, 0.0  ;;  %v5990_v30 = vadd.f32 %v14807_v13, %v16738_v27  ;;  %v14890_v26 = vpop.f32.mrb[161].mxu0 }
 0x65b   : > { %v10905_v54 = vpop.eup %10904  ;;  %v6217_v49 = vmul.f32 1.442695, %v6173_v17  ;;  %v6124_v12 = vmul.f32 0.6931472, %v10903_v47  ;;  %10924 = vlog2.f32 %v6087_v39  ;;  %v6056_v9 = vmax.f32 %v5998_v4, 0.0 }
 0x65c   : > { %v14880_v38 = vpop.eup %10906  ;;  %v6176_v6 = vmul.f32 %v6128_v16, %v13758_v23  ;;  %v6134_v24 = vmul.f32 0.6931472, %v10905_v54  ;;  %v6085_v42 = vmax.f32 %v6053_v60, 1e-06  ;;  %v6054_v41 = vmax.f32 %v5990_v30, 0.0  ;;  %v14893_v16 = vpop.f32.mrb[162].mxu0 }
 0x65d   : > { %v14885_v62 = vpop.eup %10908  ;;  %10926 = vpow2.f32 %v6217_v49  ;;  %v6174_v59 = vmul.f32 %v6124_v12, %v13758_v23  ;;  %v6088_v13 = vmax.f32 %v6056_v9, 1e-06  ;;  %v6011_v0 = vadd.f32 %v14827_v8, %v16643_v56  ;;  %v14895_v49 = vpop.f32.mrb[163].mxu0 }
 0x65e   : > { %10124 = vmatpush3.bf16.xpose.msra.mxu1 %v10123_v52  ;;  %v10911_v17 = vpop.eup %10910  ;;  %v6223_v39 = vmul.f32 1.442695, %v6176_v6  ;;  %v6179_v4 = vmul.f32 %v6134_v24, %v13758_v23  ;;  %10928 = vlog2.f32 %v6085_v42  ;;  %v6086_v47 = vmax.f32 %v6054_v41, 1e-06 }
 0x65f   : > { %10126 = vmatprep.subr.bf16.mxu1 %v10125_v51  ;;  %v10913_v60 = vpop.eup %10912  ;;  %v6219_v30 = vmul.f32 1.442695, %v6174_v59  ;;  %v6130_v54 = vmul.f32 0.6931472, %v10911_v17  ;;  %10930 = vlog2.f32 %v6088_v13  ;;  %v6059_v52 = vmax.f32 %v6011_v0, 0.0 }
 0x660   : > { %v14897_v12 = vpop.eup %10914  ;;  %10932 = vpow2.f32 %v6223_v39  ;;  %v6229_v8 = vmul.f32 1.442695, %v6179_v4  ;;  %v6136_v9 = vmul.f32 0.6931472, %v10913_v60  ;;  %v10127_v6 = vpack.c.bf16 %v14616_v44, %v14600_v46 }
 0x661   : > { %v14901_v24 = vpop.eup %10916  ;;  %10934 = vpow2.f32 %v6219_v30  ;;  %v6177_v51 = vmul.f32 %v6130_v54, %v13758_v23  ;;  %v6091_v42 = vmax.f32 %v6059_v52, 1e-06  ;;  %v6003_v41 = vadd.f32 %v14836_v45, %v16684_v7  ;;  %v16774_v54 = vld [vmem:[#allocation146_spill] sm:$0xff] }
 0x662   : > { %v14906_v59 = vpop.eup %10918  ;;  %10936 = vpow2.f32 %v6229_v8  ;;  %v6180_v13 = vmul.f32 %v6136_v9, %v13758_v23  ;;  %v10129_v0 = vpack.c.bf16 %v14813_v34, %v14795_v10  ;;  %v6014_v46 = vadd.f32 %v14841_v3, %v16685_v22  ;;  %v14919_v8 = vpop.f32.mrb[164].mxu0 }
 0x663   : > { %v14913_v44 = vpop.eup %10920  ;;  %v6225_v17 = vmul.f32 1.442695, %v6177_v51  ;;  %10938 = vlog2.f32 %v6086_v47  ;;  %v6057_v39 = vmax.f32 %v6003_v41, 0.0  ;;  %v6006_v4 = vadd.f32 %v14843_v58, %v16740_v25  ;;  %v14921_v47 = vpop.f32.mrb[165].mxu0 }
 0x664   : > { %16773 = vst [vmem:[#allocation151_spill] sm:$0xff] %v14913_v44  ;;  %v10923_v45 = vpop.eup %10922  ;;  %v6231_v60 = vmul.f32 1.442695, %v6180_v13  ;;  %10940 = vlog2.f32 %v6091_v42  ;;  %v6060_v30 = vmax.f32 %v6014_v46, 0.0  ;;  %v6027_v52 = vadd.f32 %v14852_v18, %v16774_v54  ;;  %v14923_v42 = vpop.f32.mrb[166].mxu0 }
 0x665   : > { %v10925_v10 = vpop.eup %10924  ;;  %10942 = vpow2.f32 %v6225_v17  ;;  %v6132_v34 = vmul.f32 0.6931472, %v10923_v45  ;;  %v6089_v3 = vmax.f32 %v6057_v39, 1e-06  ;;  %v6058_v9 = vmax.f32 %v6006_v4, 0.0  ;;  %v16776_v17 = vld [vmem:[#allocation117_spill] sm:$0xff] }
 0x666   : > { %10128 = vmatpush3.bf16.xpose.msra.mxu1 %v10127_v6  ;;  %10944 = vpow2.f32 %v6231_v60  ;;  %v6142_v51 = vmul.f32 0.6931472, %v10925_v10  ;;  %v6092_v58 = vmax.f32 %v6060_v30, 1e-06  ;;  %v6063_v41 = vmax.f32 %v6027_v52, 0.0  ;;  %v16777_v45 = vld [vmem:[#allocation108_spill] sm:$0xff] }
 0x667   : > { %10130 = vmatprep.subr.bf16.mxu1 %v10129_v0  ;;  %v14925_v13 = vpop.eup %10926  ;;  %v6178_v18 = vmul.f32 %v6132_v34, %v13758_v23  ;;  %10946 = vlog2.f32 %v6089_v3  ;;  %v6090_v46 = vmax.f32 %v6058_v9, 1e-06  ;;  %v10131_v6 = vpack.c.bf16 %v16777_v45, %v16776_v17  ;;  %v14930_v39 = vpop.f32.mrb[167].mxu0  ;;  %v16778_v30 = vld [vmem:[#allocation142_spill] sm:$0xff] }
 0x668   : > { %16775 = vst [vmem:[#allocation114_spill] sm:$0xff] %v14925_v13  ;;  %v10929_v4 = vpop.eup %10928  ;;  %v6183_v60 = vmul.f32 %v6142_v51, %v13758_v23  ;;  %10948 = vlog2.f32 %v6092_v58  ;;  %v6095_v0 = vmax.f32 %v6063_v41, 1e-06  ;;  %v6019_v52 = vadd.f32 %v14859_v1, %v16778_v30  ;;  %v16781_v58 = vld [vmem:[#allocation147_spill] sm:$0xff] }
 0x669   : > { %v10931_v10 = vpop.eup %10930  ;;  %v6227_v44 = vmul.f32 1.442695, %v6178_v18  ;;  %v6138_v13 = vmul.f32 0.6931472, %v10929_v4  ;;  %10950 = vlog2.f32 %v6090_v46  ;;  %v10133_v34 = vpack.c.bf16 %v14809_v14, %v14783_v2  ;;  %v16782_v41 = vld [vmem:[#allocation143_spill] sm:$0xff]  ;;  %v16783_v4 = vld [vmem:[#allocation124_spill] sm:$0xff] }
 0x66a   : > { %v14937_v3 = vpop.eup %10932  ;;  %v6237_v9 = vmul.f32 1.442695, %v6183_v60  ;;  %v6144_v17 = vmul.f32 0.6931472, %v10931_v10  ;;  %10952 = vlog2.f32 %v6095_v0  ;;  %v6061_v45 = vmax.f32 %v6019_v52, 0.0  ;;  %v14951_v0 = vpop.f32.mrb[168].mxu0 }
 0x66b   : > { %16779 = vst [vmem:[#allocation132_spill] sm:$0xff] %v14937_v3  ;;  %v14939_v54 = vpop.eup %10934  ;;  %10954 = vpow2.f32 %v6227_v44  ;;  %v6181_v51 = vmul.f32 %v6138_v13, %v13758_v23  ;;  %v6030_v1 = vadd.f32 %v14863_v37, %v16781_v58  ;;  %v6022_v18 = vadd.f32 %v14867_v57, %v16782_v41  ;;  %v16784_v37 = vld [vmem:[#allocation115_spill] sm:$0xff]  ;;  %v16785_v3 = vld [vmem:[#allocation152_spill] sm:$0xff]  ;;  %v14955_v57 = vpop.f32.mrb[169].mxu0 }
 0x66c   : > { %16780 = vst [vmem:[#allocation109_spill] sm:$0xff] %v14939_v54  ;;  %v14946_v46 = vpop.eup %10936  ;;  %10956 = vpow2.f32 %v6237_v9  ;;  %v6184_v2 = vmul.f32 %v6144_v17, %v13758_v23  ;;  %v6093_v14 = vmax.f32 %v6061_v45, 1e-06  ;;  %v6377_v60 = vadd.f32 %v14883_v21, %v16783_v4  ;;  %v14957_v45 = vpop.f32.mrb[170].mxu0 }
 0x66d   : > { %v10939_v44 = vpop.eup %10938  ;;  %v6233_v52 = vmul.f32 1.442695, %v6181_v51  ;;  %v6064_v13 = vmax.f32 %v6030_v1, 0.0  ;;  %v6062_v10 = vmax.f32 %v6022_v18, 0.0  ;;  %v10135_v58 = vpack.c.bf16 %v16785_v3, %v16784_v37  ;;  %v16786_v37 = vld [vmem:[#allocation119_spill] sm:$0xff] }
 0x66e   : > { %10132 = vmatpush3.bf16.xpose.msra.mxu1 %v10131_v6  ;;  %v10941_v41 = vpop.eup %10940  ;;  %v6239_v9 = vmul.f32 1.442695, %v6184_v2  ;;  %v6140_v30 = vmul.f32 0.6931472, %v10939_v44  ;;  %10958 = vlog2.f32 %v6093_v14  ;;  %v6497_v17 = vmax.f32 %v6377_v60, 0.0  ;;  %v14964_v44 = vpop.f32.mrb[171].mxu0 }
 0x66f   : > { %10134 = vmatprep.subr.bf16.mxu1 %v10133_v34  ;;  %v10943_v21 = vpop.eup %10942  ;;  %10960 = vpow2.f32 %v6233_v52  ;;  %v6150_v4 = vmul.f32 0.6931472, %v10941_v41  ;;  %v6096_v51 = vmax.f32 %v6064_v13, 1e-06  ;;  %v6094_v6 = vmax.f32 %v6062_v10, 1e-06 }
 0x670   : > { %v14959_v1 = vpop.eup %10944  ;;  %10962 = vpow2.f32 %v6239_v9  ;;  %v6182_v3 = vmul.f32 %v6140_v30, %v13758_v23  ;;  %v6529_v18 = vmax.f32 %v6497_v17, 1e-06  ;;  %v6369_v2 = vadd.f32 %v14890_v26, %v16786_v37  ;;  %v16787_v60 = vld [vmem:[#allocation125_spill] sm:$0xff] }
 0x671   : > { %v10947_v34 = vpop.eup %10946  ;;  %v6187_v14 = vmul.f32 %v6150_v4, %v13758_v23  ;;  %10964 = vlog2.f32 %v6096_v51  ;;  %v6380_v41 = vadd.f32 %v14893_v16, %v16787_v60  ;;  %v16788_v52 = vld [vmem:[#allocation121_spill] sm:$0xff]  ;;  %v14972_v16 = vpop.f32.mrb[172].mxu0 }
 0x672   : > { %v6372_v13 = vadd.f32 %v14895_v49, %v16788_v52  ;;  %v10949_v10 = vpop.eup %10948  ;;  %v6235_v9 = vmul.f32 1.442695, %v6182_v3  ;;  %v6146_v54 = vmul.f32 0.6931472, %v10947_v34  ;;  %10966 = vlog2.f32 %v6094_v6 }
 0x673   : > { %v6495_v30 = vmax.f32 %v6369_v2, 0.0  ;;  %v10951_v17 = vpop.eup %10950  ;;  %v6245_v25 = vmul.f32 1.442695, %v6187_v14  ;;  %v6152_v26 = vmul.f32 0.6931472, %v10949_v10  ;;  %10968 = vlog2.f32 %v6529_v18  ;;  %v14975_v2 = vpop.f32.mrb[173].mxu0 }
 0x674   : > { %v6498_v37 = vmax.f32 %v6380_v41, 0.0  ;;  %v10953_v22 = vpop.eup %10952  ;;  %10970 = vpow2.f32 %v6235_v9  ;;  %v6185_v4 = vmul.f32 %v6146_v54, %v13758_v23  ;;  %v6148_v51 = vmul.f32 0.6931472, %v10951_v17  ;;  %v14980_v41 = vpop.f32.mrb[174].mxu0 }
 0x675   : > { %v6527_v7 = vmax.f32 %v6495_v30, 1e-06  ;;  %v10955_v60 = vpop.eup %10954  ;;  %10972 = vpow2.f32 %v6245_v25  ;;  %v6188_v49 = vmul.f32 %v6152_v26, %v13758_v23  ;;  %v6158_v3 = vmul.f32 0.6931472, %v10953_v22  ;;  %v14983_v30 = vpop.f32.mrb[175].mxu0 }
 0x676   : > { %10136 = vmatpush3.bf16.xpose.msra.mxu1 %v10135_v58  ;;  %v6530_v6 = vmax.f32 %v6498_v37, 1e-06  ;;  %v14977_v34 = vpop.eup %10956  ;;  %v6241_v18 = vmul.f32 1.442695, %v6185_v4  ;;  %v6186_v14 = vmul.f32 %v6148_v51, %v13758_v23  ;;  %v6496_v54 = vmax.f32 %v6372_v13, 0.0 }
 0x677   : > { %10974 = vlog2.f32 %v6527_v7  ;;  %v6247_v10 = vmul.f32 1.442695, %v6188_v49  ;;  %v6191_v9 = vmul.f32 %v6158_v3, %v13758_v23  ;;  %v10137_v25 = vpack.c.bf16 %v10955_v60, %v10943_v21 }
 0x678   : > { %10976 = vlog2.f32 %v6530_v6  ;;  %v10959_v22 = vpop.eup %10958  ;;  %v6243_v58 = vmul.f32 1.442695, %v6186_v14  ;;  %v6528_v37 = vmax.f32 %v6496_v54, 1e-06  ;;  %v6393_v17 = vadd.f32 %v14919_v8, %v16710_v31  ;;  %v15003_v54 = vpop.f32.mrb[176].mxu0 }
 0x679   : > { %10978 = vpow2.f32 %v6241_v18  ;;  %v14987_v26 = vpop.eup %10960  ;;  %v6253_v7 = vmul.f32 1.442695, %v6191_v9  ;;  %v6154_v13 = vmul.f32 0.6931472, %v10959_v22  ;;  %10138 = vmatprep.subr.bf16.mxu1 %v10137_v25  ;;  %v10139_v4 = vpack.c.bf16 %v14846_v53, %v14825_v43 }
 0x67a   : > { %10980 = vpow2.f32 %v6247_v10  ;;  %v14991_v51 = vpop.eup %10962  ;;  %v6501_v21 = vmax.f32 %v6393_v17, 0.0  ;;  %v6385_v60 = vadd.f32 %v14921_v47, %v16760_v40  ;;  %v10141_v49 = vpack.c.bf16 %v14959_v1, %v14946_v46 }
 0x67b   : > { %10982 = vpow2.f32 %v6243_v58  ;;  %v10965_v8 = vpop.eup %10964  ;;  %v6189_v3 = vmul.f32 %v6154_v13, %v13758_v23  ;;  %v6396_v6 = vadd.f32 %v14923_v42, %v16656_v29  ;;  %v6388_v53 = vadd.f32 %v14930_v39, %v16761_v55 }
 0x67c   : > { %10984 = vpow2.f32 %v6253_v7  ;;  %v10967_v43 = vpop.eup %10966  ;;  %v6160_v18 = vmul.f32 0.6931472, %v10965_v8  ;;  %v6533_v14 = vmax.f32 %v6501_v21, 1e-06  ;;  %v6499_v47 = vmax.f32 %v6385_v60, 0.0 }
 0x67d   : > { %10986 = vlog2.f32 %v6528_v37  ;;  %9004 = vmatmul.mubr.f32.vlgmr.msra.gmra.mrb[6].mxu1 %v16762_v20  ;;  %v10969_v46 = vpop.eup %10968  ;;  %v6249_v1 = vmul.f32 1.442695, %v6189_v3  ;;  %v6156_v10 = vmul.f32 0.6931472, %v10967_v43  ;;  %v6502_v9 = vmax.f32 %v6396_v6, 0.0  ;;  %v15007_v37 = vpop.f32.mrb[177].mxu0 }
 0x67e   : > { %10140 = vmatpush3.bf16.xpose.msra.mxu1 %v10139_v4  ;;  %v6500_v25 = vmax.f32 %v6388_v53, 0.0  ;;  %9054 = vmatprep.mubr.f32.mxu1 %v16762_v20  ;;  %v10971_v42 = vpop.eup %10970  ;;  %v6192_v39 = vmul.f32 %v6160_v18, %v13758_v23  ;;  %v6564_v22 = vmul.f32 0.6931472, %v10969_v46  ;;  %10988 = vlog2.f32 %v6533_v14  ;;  %v15012_v21 = vpop.f32.mrb[178].mxu0 }
 0x67f   : > { %v6531_v58 = vmax.f32 %v6499_v47, 1e-06  ;;  %10142 = vmatprep.subr.bf16.mxu1 %v10141_v49  ;;  %v15009_v17 = vpop.eup %10972  ;;  %10990 = vpow2.f32 %v6249_v1  ;;  %v6190_v7 = vmul.f32 %v6156_v10, %v13758_v23  ;;  %v6534_v13 = vmax.f32 %v6502_v9, 1e-06  ;;  %v15017_v49 = vpop.f32.mrb[179].mxu0 }
 0x680   : > { %v6532_v4 = vmax.f32 %v6500_v25, 1e-06  ;;  %v6255_v8 = vmul.f32 1.442695, %v6192_v39  ;;  %v6625_v3 = vmul.f32 %v6564_v22, %v13758_v23  ;;  %v6409_v6 = vadd.f32 %v14951_v0, %v16763_v15 }
 0x681   : > { %v10975_v60 = vpop.eup %10974  ;;  %10992 = vlog2.f32 %v6531_v58  ;;  %v6251_v43 = vmul.f32 1.442695, %v6190_v7  ;;  %v10143_v14 = vpack.c.bf16 %v14829_v63, %v14818_v61  ;;  %v6401_v25 = vadd.f32 %v14955_v57, %v16764_v11  ;;  %v15034_v7 = vpop.f32.mrb[180].mxu0  ;;  %v16789_v57 = vld [vmem:[#allocation137_spill] sm:$0xff] }
 0x682   : > { %v10977_v53 = vpop.eup %10976  ;;  %v6560_v18 = vmul.f32 0.6931472, %v10975_v60  ;;  %10994 = vlog2.f32 %v6534_v13  ;;  %v6659_v46 = vmul.f32 1.442695, %v6625_v3  ;;  %v6505_v10 = vmax.f32 %v6409_v6, 0.0 }
 0x683   : > { %v15021_v47 = vpop.eup %10978  ;;  %10996 = vpow2.f32 %v6255_v8  ;;  %v6566_v1 = vmul.f32 0.6931472, %v10977_v53  ;;  %v10145_v39 = vpack.c.bf16 %v10971_v42, %v14987_v26  ;;  %v6412_v58 = vadd.f32 %v14957_v45, %v16765_v19  ;;  %v15040_v42 = vpop.f32.mrb[181].mxu0 }
 0x684   : > { %v15023_v9 = vpop.eup %10980  ;;  %10998 = vpow2.f32 %v6251_v43  ;;  %v6623_v0 = vmul.f32 %v6560_v18, %v13758_v23  ;;  %v6537_v63 = vmax.f32 %v6505_v10, 1e-06  ;;  %v6503_v8 = vmax.f32 %v6401_v25, 0.0  ;;  %v16790_v43 = vld [vmem:[#allocation148_spill] sm:$0xff]  ;;  %v15044_v18 = vpop.f32.mrb[182].mxu0 }
 0x685   : > { %v15029_v22 = vpop.eup %10982  ;;  %11000 = vpow2.f32 %v6659_v46  ;;  %v6626_v61 = vmul.f32 %v6566_v1, %v13758_v23  ;;  %v6404_v26 = vadd.f32 %v14964_v44, %v16789_v57  ;;  %v6506_v53 = vmax.f32 %v6412_v58, 0.0  ;;  %v15046_v1 = vpop.f32.mrb[183].mxu0 }
 0x686   : > { %v15036_v13 = vpop.eup %10984  ;;  %v6655_v60 = vmul.f32 1.442695, %v6623_v0  ;;  %11002 = vlog2.f32 %v6532_v4  ;;  %10144 = vmatpush3.bf16.xpose.msra.mxu1 %v10143_v14  ;;  %v6425_v45 = vadd.f32 %v14972_v16, %v16790_v43  ;;  %v6535_v4 = vmax.f32 %v6503_v8, 1e-06  ;;  %v16791_v8 = vld [vmem:[#allocation144_spill] sm:$0xff] }
 0x687   : > { %v10987_v3 = vpop.eup %10986  ;;  %v6661_v6 = vmul.f32 1.442695, %v6626_v61  ;;  %11004 = vlog2.f32 %v6537_v63  ;;  %10146 = vmatprep.subr.bf16.mxu1 %v10145_v39  ;;  %v6504_v14 = vmax.f32 %v6404_v26, 0.0  ;;  %v6538_v44 = vmax.f32 %v6506_v53, 1e-06 }
 0x688   : > { %11006 = vpow2.f32 %v6655_v60  ;;  %v6562_v46 = vmul.f32 0.6931472, %v10987_v3  ;;  %v10989_v10 = vpop.eup %10988  ;;  %v6509_v0 = vmax.f32 %v6425_v45, 0.0  ;;  %v10147_v25 = vpack.c.bf16 %v14880_v38, %v14865_v36 }
 0x689   : > { %11008 = vpow2.f32 %v6661_v6  ;;  %v15050_v39 = vpop.eup %10990  ;;  %v6572_v16 = vmul.f32 0.6931472, %v10989_v10  ;;  %v6536_v63 = vmax.f32 %v6504_v14, 1e-06  ;;  %v6417_v26 = vadd.f32 %v14975_v2, %v16791_v8  ;;  %v16792_v14 = vld [vmem:[#allocation149_spill] sm:$0xff] }
 0x68a   : > { %v6624_v61 = vmul.f32 %v6562_v46, %v13758_v23  ;;  %11010 = vlog2.f32 %v6535_v4  ;;  %v6541_v60 = vmax.f32 %v6509_v0, 1e-06  ;;  %v10149_v3 = vpack.c.bf16 %v14991_v51, %v14977_v34  ;;  %v16793_v0 = vld [vmem:[#allocation145_spill] sm:$0xff] }
 0x68b   : > { %v10993_v58 = vpop.eup %10992  ;;  %11012 = vlog2.f32 %v6538_v44  ;;  %v6629_v36 = vmul.f32 %v6572_v16, %v13758_v23  ;;  %v6507_v4 = vmax.f32 %v6417_v26, 0.0  ;;  %v6428_v10 = vadd.f32 %v14980_v41, %v16792_v14  ;;  %v15062_v44 = vpop.f32.mrb[184].mxu0 }
 0x68c   : > { %v10995_v6 = vpop.eup %10994  ;;  %v6657_v53 = vmul.f32 1.442695, %v6624_v61  ;;  %v6568_v38 = vmul.f32 0.6931472, %v10993_v58  ;;  %11014 = vlog2.f32 %v6536_v63  ;;  %v6420_v61 = vadd.f32 %v14983_v30, %v16793_v0  ;;  %v15069_v16 = vpop.f32.mrb[185].mxu0 }
 0x68d   : > { %v15058_v45 = vpop.eup %10996  ;;  %v6574_v46 = vmul.f32 0.6931472, %v10995_v6  ;;  %11016 = vlog2.f32 %v6541_v60  ;;  %v6667_v34 = vmul.f32 1.442695, %v6629_v36  ;;  %v6539_v60 = vmax.f32 %v6507_v4, 1e-06 }
 0x68e   : > { %v15064_v2 = vpop.eup %10998  ;;  %11018 = vpow2.f32 %v6657_v53  ;;  %v6627_v51 = vmul.f32 %v6568_v38, %v13758_v23  ;;  %10148 = vmatpush3.bf16.xpose.msra.mxu1 %v10147_v25  ;;  %v6510_v41 = vmax.f32 %v6428_v10, 0.0  ;;  %v6441_v26 = vadd.f32 %v15003_v54, %v16771_v5  ;;  %v15076_v6 = vpop.f32.mrb[186].mxu0 }
 0x68f   : > { %v15071_v63 = vpop.eup %11000  ;;  %v6630_v58 = vmul.f32 %v6574_v46, %v13758_v23  ;;  %10150 = vmatprep.subr.bf16.mxu1 %v10149_v3  ;;  %11020 = vpow2.f32 %v6667_v34  ;;  %v6508_v36 = vmax.f32 %v6420_v61, 0.0  ;;  %v15078_v38 = vpop.f32.mrb[0].mxu1  ;;  %v10151_v30 = vpack.c.bf16 %v14869_v28, %v14854_v35  ;;  %v16796_v28 = vld [vmem:[#allocation118_spill] sm:$0xff] }
 0x690   : > { %v11003_v53 = vpop.eup %11002  ;;  %v6663_v25 = vmul.f32 1.442695, %v6627_v51  ;;  %16794 = vst [vmem:[#allocation110_spill] sm:$0xff] %v15078_v38  ;;  %v15082_v0 = vpop.f32.mrb[187].mxu0  ;;  %11022 = vlog2.f32 %v6539_v60  ;;  %v6542_v10 = vmax.f32 %v6510_v41, 1e-06  ;;  %v6433_v38 = vadd.f32 %v15007_v37, %v16796_v28 }
 0x691   : > { %v11005_v46 = vpop.eup %11004  ;;  %v6669_v4 = vmul.f32 1.442695, %v6630_v58  ;;  %v6570_v3 = vmul.f32 0.6931472, %v11003_v53  ;;  %v6540_v5 = vmax.f32 %v6508_v36, 1e-06  ;;  %v10153_v58 = vpack.c.bf16 %v15029_v22, %v15021_v47 }
 0x692   : > { %v15084_v14 = vpop.eup %11006  ;;  %11024 = vpow2.f32 %v6663_v25  ;;  %v6580_v54 = vmul.f32 0.6931472, %v11005_v46  ;;  %v15086_v34 = vpop.f32.mrb[1].mxu1  ;;  %v6513_v51 = vmax.f32 %v6441_v26, 0.0  ;;  %v16797_v25 = vld [vmem:[#allocation123_spill] sm:$0xff] }
 0x693   : > { %16795 = vst [vmem:[#allocation120_spill] sm:$0xff] %v15086_v34  ;;  %v15088_v61 = vpop.eup %11008  ;;  %11026 = vpow2.f32 %v6669_v4  ;;  %v6628_v35 = vmul.f32 %v6570_v3, %v13758_v23  ;;  %v6444_v36 = vadd.f32 %v15012_v21, %v16797_v25  ;;  %v6511_v4 = vmax.f32 %v6433_v38, 0.0  ;;  %v15098_v3 = vpop.f32.mrb[188].mxu0 }
 0x694   : > { %v11011_v60 = vpop.eup %11010  ;;  %v6633_v41 = vmul.f32 %v6580_v54, %v13758_v23  ;;  %11028 = vlog2.f32 %v6542_v10  ;;  %v6545_v53 = vmax.f32 %v6513_v51, 1e-06  ;;  %v15100_v22 = vpop.f32.mrb[189].mxu0 }
 0x695   : > { %v11013_v26 = vpop.eup %11012  ;;  %v6665_v46 = vmul.f32 1.442695, %v6628_v35  ;;  %v6576_v34 = vmul.f32 0.6931472, %v11011_v60  ;;  %11030 = vlog2.f32 %v6540_v5  ;;  %v6514_v47 = vmax.f32 %v6444_v36, 0.0  ;;  %v15103_v35 = vpop.f32.mrb[190].mxu0 }
 0x696   : > { %v11015_v8 = vpop.eup %11014  ;;  %v6675_v37 = vmul.f32 1.442695, %v6633_v41  ;;  %v6582_v28 = vmul.f32 0.6931472, %v11013_v26  ;;  %11032 = vlog2.f32 %v6545_v53  ;;  %10152 = vmatpush3.bf16.xpose.msra.mxu1 %v10151_v30  ;;  %v6543_v51 = vmax.f32 %v6511_v4, 1e-06 }
 0x697   : > { %v11017_v10 = vpop.eup %11016  ;;  %11034 = vpow2.f32 %v6665_v46  ;;  %v6631_v54 = vmul.f32 %v6576_v34, %v13758_v23  ;;  %v6578_v21 = vmul.f32 0.6931472, %v11015_v8  ;;  %10154 = vmatprep.subr.bf16.mxu1 %v10153_v58  ;;  %v6546_v41 = vmax.f32 %v6514_v47, 1e-06  ;;  %v15108_v30 = vpop.f32.mrb[191].mxu0 }
 0x698   : > { %v15105_v5 = vpop.eup %11018  ;;  %11036 = vpow2.f32 %v6675_v37  ;;  %v6634_v38 = vmul.f32 %v6582_v28, %v13758_v23  ;;  %v6588_v60 = vmul.f32 0.6931472, %v11017_v10  ;;  %v6436_v8 = vadd.f32 %v15017_v49, %v16733_v50 }
 0x699   : > { %v6671_v53 = vmul.f32 1.442695, %v6631_v54  ;;  %v6632_v36 = vmul.f32 %v6578_v21, %v13758_v23  ;;  %11038 = vlog2.f32 %v6543_v51  ;;  %v15113_v34 = vpop.eup %11020  ;;  %v6457_v28 = vadd.f32 %v15034_v7, %v16734_v33 }
 0x69a   : > { %v6677_v58 = vmul.f32 1.442695, %v6634_v38  ;;  %v6637_v26 = vmul.f32 %v6588_v60, %v13758_v23  ;;  %11040 = vlog2.f32 %v6546_v41  ;;  %v11023_v46 = vpop.eup %11022  ;;  %v6512_v37 = vmax.f32 %v6436_v8, 0.0  ;;  %v15128_v41 = vpop.f32.mrb[192].mxu0 }
 0x69b   : > { %11042 = vpow2.f32 %v6671_v53  ;;  %v6673_v4 = vmul.f32 1.442695, %v6632_v36  ;;  %v10155_v47 = vpack.c.bf16 %v14906_v59, %v14897_v12  ;;  %v6584_v54 = vmul.f32 0.6931472, %v11023_v46  ;;  %v15133_v8 = vpop.f32.mrb[193].mxu0 }
 0x69c   : > { %v15120_v10 = vpop.eup %11024  ;;  %11044 = vpow2.f32 %v6677_v58  ;;  %v6683_v49 = vmul.f32 1.442695, %v6637_v26  ;;  %v6517_v21 = vmax.f32 %v6457_v28, 0.0  ;;  %v6544_v38 = vmax.f32 %v6512_v37, 1e-06 }
 0x69d   : > { %v15122_v51 = vpop.eup %11026  ;;  %11046 = vpow2.f32 %v6673_v4  ;;  %v6449_v7 = vadd.f32 %v15040_v42, %v16735_v32  ;;  %v10157_v60 = vpack.c.bf16 %v15023_v9, %v15009_v17  ;;  %v6635_v12 = vmul.f32 %v6584_v54, %v13758_v23  ;;  %v15137_v9 = vpop.f32.mrb[194].mxu0 }
 0x69e   : > { %v11029_v53 = vpop.eup %11028  ;;  %11048 = vpow2.f32 %v6683_v49  ;;  %v6549_v59 = vmax.f32 %v6517_v21, 1e-06  ;;  %10156 = vmatpush3.bf16.xpose.msra.mxu1 %v10155_v47  ;;  %v6460_v36 = vadd.f32 %v15044_v18, %v16680_v48  ;;  %v6452_v17 = vadd.f32 %v15046_v1, %v16738_v27  ;;  %v15139_v47 = vpop.f32.mrb[195].mxu0 }
 0x69f   : > { %v11031_v58 = vpop.eup %11030  ;;  %v6590_v26 = vmul.f32 0.6931472, %v11029_v53  ;;  %11050 = vlog2.f32 %v6544_v38  ;;  %v6515_v42 = vmax.f32 %v6449_v7, 0.0  ;;  %10158 = vmatprep.subr.bf16.mxu1 %v10157_v60  ;;  %v6679_v46 = vmul.f32 1.442695, %v6635_v12 }
 0x6a0   : > { %v11033_v28 = vpop.eup %11032  ;;  %v6586_v4 = vmul.f32 0.6931472, %v11031_v58  ;;  %11052 = vlog2.f32 %v6549_v59  ;;  %v6518_v37 = vmax.f32 %v6460_v36, 0.0  ;;  %v6516_v38 = vmax.f32 %v6452_v17, 0.0 }
 0x6a1   : > { %v15141_v18 = vpop.eup %11034  ;;  %v6638_v49 = vmul.f32 %v6590_v26, %v13758_v23  ;;  %v6596_v54 = vmul.f32 0.6931472, %v11033_v28  ;;  %v6547_v21 = vmax.f32 %v6515_v42, 1e-06  ;;  %11054 = vpow2.f32 %v6679_v46 }
 0x6a2   : > { %v15144_v7 = vpop.eup %11036  ;;  %v6636_v1 = vmul.f32 %v6586_v4, %v13758_v23  ;;  %v6550_v60 = vmax.f32 %v6518_v37, 1e-06  ;;  %v6473_v53 = vadd.f32 %v15062_v44, %v16643_v56  ;;  %v6548_v58 = vmax.f32 %v6516_v38, 1e-06  ;;  %v15154_v44 = vpop.f32.mrb[196].mxu0  ;;  %v16800_v38 = vld [vmem:[#allocation134_spill] sm:$0xff] }
 0x6a3   : > { %16798 = vst [vmem:[#allocation126_spill] sm:$0xff] %v15144_v7  ;;  %v11039_v12 = vpop.eup %11038  ;;  %v6685_v59 = vmul.f32 1.442695, %v6638_v49  ;;  %v6641_v36 = vmul.f32 %v6596_v54, %v13758_v23  ;;  %11056 = vlog2.f32 %v6547_v21  ;;  %v10159_v37 = vpack.c.bf16 %v14901_v24, %v14885_v62  ;;  %v16801_v24 = vld [vmem:[#allocation139_spill] sm:$0xff] }
 0x6a4   : > { %v11041_v27 = vpop.eup %11040  ;;  %v6681_v26 = vmul.f32 1.442695, %v6636_v1  ;;  %v6592_v28 = vmul.f32 0.6931472, %v11039_v12  ;;  %11058 = vlog2.f32 %v6550_v60  ;;  %v6521_v42 = vmax.f32 %v6473_v53, 0.0  ;;  %v15161_v60 = vpop.f32.mrb[197].mxu0 }
 0x6a5   : > { %v15150_v17 = vpop.eup %11042  ;;  %11060 = vpow2.f32 %v6685_v59  ;;  %v6691_v46 = vmul.f32 1.442695, %v6641_v36  ;;  %v6598_v4 = vmul.f32 0.6931472, %v11041_v27  ;;  %v6465_v1 = vadd.f32 %v15069_v16, %v16800_v38  ;;  %v15170_v59 = vpop.f32.mrb[198].mxu0 }
 0x6a6   : > { %v15156_v49 = vpop.eup %11044  ;;  %11062 = vpow2.f32 %v6681_v26  ;;  %v6639_v54 = vmul.f32 %v6592_v28, %v13758_v23  ;;  %v6553_v21 = vmax.f32 %v6521_v42, 1e-06  ;;  %10160 = vmatpush3.bf16.xpose.msra.mxu1 %v10159_v37  ;;  %v10161_v62 = vpack.c.bf16 %v15064_v2, %v15050_v39  ;;  %v16803_v28 = vld [vmem:[#allocation135_spill] sm:$0xff]  ;;  %v16804_v2 = vld [vmem:[#allocation146_spill] sm:$0xff] }
 0x6a7   : > { %16799 = vst [vmem:[#allocation111_spill] sm:$0xff] %v15156_v49  ;;  %v15163_v53 = vpop.eup %11046  ;;  %11064 = vpow2.f32 %v6691_v46  ;;  %v6642_v27 = vmul.f32 %v6598_v4, %v13758_v23  ;;  %v6476_v12 = vadd.f32 %v15076_v6, %v16801_v24  ;;  %v6519_v16 = vmax.f32 %v6465_v1, 0.0  ;;  %v15176_v46 = vpop.f32.mrb[199].mxu0 }
 0x6a8   : > { %v15172_v36 = vpop.eup %11048  ;;  %v6687_v26 = vmul.f32 1.442695, %v6639_v54  ;;  %11066 = vlog2.f32 %v6548_v58  ;;  %v6468_v42 = vadd.f32 %v15082_v0, %v16803_v28  ;;  %10162 = vmatprep.subr.bf16.mxu1 %v10161_v62  ;;  %v6489_v6 = vadd.f32 %v15098_v3, %v16804_v2  ;;  %v16807_v62 = vld [vmem:[#allocation109_spill] sm:$0xff] }
 0x6a9   : > { %16802 = vst [vmem:[#allocation112_spill] sm:$0xff] %v15172_v36  ;;  %v11051_v4 = vpop.eup %11050  ;;  %v6693_v37 = vmul.f32 1.442695, %v6642_v27  ;;  %11068 = vlog2.f32 %v6553_v21  ;;  %v6522_v39 = vmax.f32 %v6476_v12, 0.0  ;;  %v6551_v36 = vmax.f32 %v6519_v16, 1e-06 }
 0x6aa   : > { %v11053_v24 = vpop.eup %11052  ;;  %11070 = vpow2.f32 %v6687_v26  ;;  %v6594_v38 = vmul.f32 0.6931472, %v11051_v4  ;;  %v6520_v54 = vmax.f32 %v6468_v42, 0.0  ;;  %v6525_v49 = vmax.f32 %v6489_v6, 0.0  ;;  %v16806_v27 = vld [vmem:[#allocation114_spill] sm:$0xff] }
 0x6ab   : > { %11072 = vpow2.f32 %v6693_v37  ;;  %v6604_v58 = vmul.f32 0.6931472, %v11053_v24  ;;  %v6554_v1 = vmax.f32 %v6522_v39, 1e-06  ;;  %v15180_v0 = vpop.eup %11054  ;;  %v10163_v12 = vpack.c.bf16 %v16807_v62, %v16806_v27  ;;  %v16808_v16 = vld [vmem:[#allocation142_spill] sm:$0xff]  ;;  %v15188_v24 = vpop.f32.mrb[200].mxu0 }
 0x6ac   : > { %16805 = vst [vmem:[#allocation133_spill] sm:$0xff] %v15180_v0  ;;  %v6640_v28 = vmul.f32 %v6594_v38, %v13758_v23  ;;  %11074 = vlog2.f32 %v6551_v36  ;;  %v6552_v21 = vmax.f32 %v6520_v54, 1e-06  ;;  %v6557_v26 = vmax.f32 %v6525_v49, 1e-06  ;;  %v15192_v36 = vpop.f32.mrb[201].mxu0 }
 0x6ad   : > { %v11057_v7 = vpop.eup %11056  ;;  %v6645_v3 = vmul.f32 %v6604_v58, %v13758_v23  ;;  %11076 = vlog2.f32 %v6554_v1  ;;  %v6481_v42 = vadd.f32 %v15100_v22, %v16808_v16  ;;  %v10165_v38 = vpack.c.bf16 %v15058_v45, %v15036_v13  ;;  %v15196_v1 = vpop.f32.mrb[202].mxu0  ;;  %v16812_v45 = vld [vmem:[#allocation143_spill] sm:$0xff] }
 0x6ae   : > { %v11059_v4 = vpop.eup %11058  ;;  %v6689_v37 = vmul.f32 1.442695, %v6640_v28  ;;  %v6600_v39 = vmul.f32 0.6931472, %v11057_v7  ;;  %11078 = vlog2.f32 %v6552_v21  ;;  %10164 = vmatpush3.bf16.xpose.msra.mxu1 %v10163_v12  ;;  %v16811_v28 = vld [vmem:[#allocation147_spill] sm:$0xff]  ;;  %v6484_v21 = vadd.f32 %v15108_v30, %v16812_v45  ;;  %v15205_v27 = vpop.f32.mrb[203].mxu0 }
 0x6af   : > { %v15194_v6 = vpop.eup %11060  ;;  %v6699_v54 = vmul.f32 1.442695, %v6645_v3  ;;  %v6606_v58 = vmul.f32 0.6931472, %v11059_v4  ;;  %11080 = vlog2.f32 %v6557_v26  ;;  %v6523_v49 = vmax.f32 %v6481_v42, 0.0  ;;  %10166 = vmatprep.subr.bf16.mxu1 %v10165_v38  ;;  %v16813_v26 = vld [vmem:[#allocation124_spill] sm:$0xff] }
 0x6b0   : > { %16809 = vst [vmem:[#allocation153_spill] sm:$0xff] %v15194_v6  ;;  %v15198_v22 = vpop.eup %11062  ;;  %11082 = vpow2.f32 %v6689_v37  ;;  %v6643_v7 = vmul.f32 %v6600_v39, %v13758_v23  ;;  %v6492_v13 = vadd.f32 %v15103_v35, %v16811_v28  ;;  %v6839_v42 = vadd.f32 %v15128_v41, %v16813_v26  ;;  %v16814_v6 = vld [vmem:[#allocation151_spill] sm:$0xff]  ;;  %v16815_v35 = vld [vmem:[#allocation132_spill] sm:$0xff] }
 0x6b1   : > { %16810 = vst [vmem:[#allocation150_spill] sm:$0xff] %v15198_v22  ;;  %v15207_v62 = vpop.eup %11064  ;;  %11084 = vpow2.f32 %v6699_v54  ;;  %v6646_v12 = vmul.f32 %v6606_v58, %v13758_v23  ;;  %v6555_v3 = vmax.f32 %v6523_v49, 1e-06  ;;  %v6524_v38 = vmax.f32 %v6484_v21, 0.0 }
 0x6b2   : > { %v11067_v4 = vpop.eup %11066  ;;  %v6695_v37 = vmul.f32 1.442695, %v6643_v7  ;;  %v6526_v39 = vmax.f32 %v6492_v13, 0.0  ;;  %v10167_v28 = vpack.c.bf16 %v16815_v35, %v16814_v6  ;;  %v6959_v22 = vmax.f32 %v6839_v42, 0.0  ;;  %v16816_v13 = vld [vmem:[#allocation119_spill] sm:$0xff]  ;;  %v15219_v6 = vpop.f32.mrb[204].mxu0 }
 0x6b3   : > { %v11069_v16 = vpop.eup %11068  ;;  %v6701_v30 = vmul.f32 1.442695, %v6646_v12  ;;  %v6602_v45 = vmul.f32 0.6931472, %v11067_v4  ;;  %11086 = vlog2.f32 %v6555_v3  ;;  %v6556_v49 = vmax.f32 %v6524_v38, 1e-06 }
 0x6b4   : > { %v11071_v0 = vpop.eup %11070  ;;  %11088 = vpow2.f32 %v6695_v37  ;;  %v6612_v54 = vmul.f32 0.6931472, %v11069_v16  ;;  %v6558_v58 = vmax.f32 %v6526_v39, 1e-06  ;;  %v6991_v7 = vmax.f32 %v6959_v22, 1e-06 }
 0x6b5   : > { %v15214_v2 = vpop.eup %11072  ;;  %11090 = vpow2.f32 %v6701_v30  ;;  %v6644_v41 = vmul.f32 %v6602_v45, %v13758_v23  ;;  %v6831_v21 = vadd.f32 %v15133_v8, %v16816_v13  ;;  %v16817_v42 = vld [vmem:[#allocation125_spill] sm:$0xff]  ;;  %v6834_v4 = vadd.f32 %v15139_v47, %v16788_v52  ;;  %v15226_v37 = vpop.f32.mrb[205].mxu0 }
 0x6b6   : > { %v11075_v12 = vpop.eup %11074  ;;  %v6649_v3 = vmul.f32 %v6612_v54, %v13758_v23  ;;  %11092 = vlog2.f32 %v6558_v58  ;;  %v6842_v16 = vadd.f32 %v15137_v9, %v16817_v42  ;;  %10168 = vmatpush3.bf16.xpose.msra.mxu1 %v10167_v28  ;;  %v15228_v38 = vpop.f32.mrb[206].mxu0 }
 0x6b7   : > { %v11077_v39 = vpop.eup %11076  ;;  %v6697_v45 = vmul.f32 1.442695, %v6644_v41  ;;  %v6608_v22 = vmul.f32 0.6931472, %v11075_v12  ;;  %11094 = vlog2.f32 %v6556_v49  ;;  %v6957_v8 = vmax.f32 %v6831_v21, 0.0  ;;  %v15230_v13 = vpop.f32.mrb[207].mxu0 }
 0x6b8   : > { %v11079_v35 = vpop.eup %11078  ;;  %v6707_v30 = vmul.f32 1.442695, %v6649_v3  ;;  %v6614_v54 = vmul.f32 0.6931472, %v11077_v39  ;;  %11096 = vlog2.f32 %v6991_v7  ;;  %v6960_v58 = vmax.f32 %v6842_v16, 0.0 }
 0x6b9   : > { %v11081_v9 = vpop.eup %11080  ;;  %11098 = vpow2.f32 %v6697_v45  ;;  %v6647_v47 = vmul.f32 %v6608_v22, %v13758_v23  ;;  %v6610_v52 = vmul.f32 0.6931472, %v11079_v35  ;;  %v6989_v42 = vmax.f32 %v6957_v8, 1e-06 }
 0x6ba   : > { %v11083_v41 = vpop.eup %11082  ;;  %11100 = vpow2.f32 %v6707_v30  ;;  %v6650_v28 = vmul.f32 %v6614_v54, %v13758_v23  ;;  %v6620_v49 = vmul.f32 0.6931472, %v11081_v9  ;;  %v6992_v21 = vmax.f32 %v6960_v58, 1e-06  ;;  %v15240_v58 = vpop.f32.mrb[208].mxu0 }
 0x6bb   : > { %v15234_v12 = vpop.eup %11084  ;;  %v6703_v3 = vmul.f32 1.442695, %v6647_v47  ;;  %v6648_v7 = vmul.f32 %v6610_v52, %v13758_v23  ;;  %11102 = vlog2.f32 %v6989_v42  ;;  %v6958_v16 = vmax.f32 %v6834_v4, 0.0  ;;  %v15247_v4 = vpop.f32.mrb[209].mxu0 }
 0x6bc   : > { %v6709_v39 = vmul.f32 1.442695, %v6650_v28  ;;  %v6653_v45 = vmul.f32 %v6620_v49, %v13758_v23  ;;  %11104 = vlog2.f32 %v6992_v21  ;;  %v10169_v22 = vpack.c.bf16 %v11083_v41, %v11071_v0  ;;  %v15255_v49 = vpop.f32.mrb[210].mxu0 }
 0x6bd   : > { %v11087_v35 = vpop.eup %11086  ;;  %11106 = vpow2.f32 %v6703_v3  ;;  %v6705_v8 = vmul.f32 1.442695, %v6648_v7  ;;  %v6990_v30 = vmax.f32 %v6958_v16, 1e-06  ;;  %v6855_v54 = vadd.f32 %v15154_v44, %v16710_v31  ;;  %9055 = vmatmul.mubr.f32.vlgmr.msra.gmra.mrb[8].mxu1 %v16762_v20  ;;  %v15263_v7 = vpop.f32.mrb[211].mxu0 }
 0x6be   : > { %v15242_v9 = vpop.eup %11088  ;;  %11108 = vpow2.f32 %v6709_v39  ;;  %v6715_v52 = vmul.f32 1.442695, %v6653_v45  ;;  %v6616_v42 = vmul.f32 0.6931472, %v11087_v35  ;;  %10170 = vmatprep.subr.bf16.mxu1 %v10169_v22  ;;  %v10171_v0 = vpack.c.bf16 %v15105_v5, %v15084_v14  ;;  %9105 = vmatprep.mubr.f32.mxu1 %v16762_v20 }
 0x6bf   : > { %v15249_v47 = vpop.eup %11090  ;;  %11110 = vpow2.f32 %v6705_v8  ;;  %v6963_v41 = vmax.f32 %v6855_v54, 0.0  ;;  %v6847_v44 = vadd.f32 %v15161_v60, %v16760_v40  ;;  %v10173_v28 = vpack.c.bf16 %v15214_v2, %v15207_v62 }
 0x6c0   : > { %v11093_v21 = vpop.eup %11092  ;;  %11112 = vpow2.f32 %v6715_v52  ;;  %v6651_v14 = vmul.f32 %v6616_v42, %v13758_v23  ;;  %10172 = vmatpush3.bf16.xpose.msra.mxu1 %v10171_v0  ;;  %v6858_v5 = vadd.f32 %v15170_v59, %v16656_v29  ;;  %v6850_v3 = vadd.f32 %v15176_v46, %v16761_v55 }
 0x6c1   : > { %v11095_v60 = vpop.eup %11094  ;;  %v6622_v16 = vmul.f32 0.6931472, %v11093_v21  ;;  %11114 = vlog2.f32 %v6990_v30  ;;  %v6995_v2 = vmax.f32 %v6963_v41, 1e-06  ;;  %v6961_v62 = vmax.f32 %v6847_v44, 0.0  ;;  %10174 = vmatprep.subr.bf16.mxu1 %v10173_v28 }
 0x6c2   : > { %v11097_v39 = vpop.eup %11096  ;;  %v6711_v45 = vmul.f32 1.442695, %v6651_v14  ;;  %v6618_v22 = vmul.f32 0.6931472, %v11095_v60  ;;  %v6964_v35 = vmax.f32 %v6858_v5, 0.0  ;;  %v6962_v8 = vmax.f32 %v6850_v3, 0.0 }
 0x6c3   : > { %v11099_v54 = vpop.eup %11098  ;;  %v6654_v52 = vmul.f32 %v6622_v16, %v13758_v23  ;;  %v7026_v59 = vmul.f32 0.6931472, %v11097_v39  ;;  %11116 = vlog2.f32 %v6995_v2  ;;  %v6993_v42 = vmax.f32 %v6961_v62, 1e-06  ;;  %v15272_v5 = vpop.f32.mrb[212].mxu0 }
 0x6c4   : > { %v15266_v46 = vpop.eup %11100  ;;  %11118 = vpow2.f32 %v6711_v45  ;;  %v6652_v0 = vmul.f32 %v6618_v22, %v13758_v23  ;;  %v6996_v30 = vmax.f32 %v6964_v35, 1e-06  ;;  %v6994_v41 = vmax.f32 %v6962_v8, 1e-06  ;;  %v15276_v62 = vpop.f32.mrb[213].mxu0 }
 0x6c5   : > { %v11103_v44 = vpop.eup %11102  ;;  %v6717_v28 = vmul.f32 1.442695, %v6654_v52  ;;  %v7087_v21 = vmul.f32 %v7026_v59, %v13758_v23  ;;  %11120 = vlog2.f32 %v6993_v42  ;;  %v6871_v14 = vadd.f32 %v15188_v24, %v16763_v15  ;;  %v15280_v8 = vpop.f32.mrb[214].mxu0 }
 0x6c6   : > { %v11105_v3 = vpop.eup %11104  ;;  %v6713_v60 = vmul.f32 1.442695, %v6652_v0  ;;  %v7022_v16 = vmul.f32 0.6931472, %v11103_v44  ;;  %11122 = vlog2.f32 %v6996_v30  ;;  %v10175_v2 = vpack.c.bf16 %v15088_v61, %v15071_v63  ;;  %v15288_v61 = vpop.f32.mrb[215].mxu0 }
 0x6c7   : > { %v15278_v39 = vpop.eup %11106  ;;  %11124 = vpow2.f32 %v6717_v28  ;;  %v7121_v45 = vmul.f32 1.442695, %v7087_v21  ;;  %v7028_v22 = vmul.f32 0.6931472, %v11105_v3  ;;  %v6967_v35 = vmax.f32 %v6871_v14, 0.0 }
 0x6c8   : > { %v15282_v24 = vpop.eup %11108  ;;  %11126 = vpow2.f32 %v6713_v60  ;;  %v7085_v52 = vmul.f32 %v7022_v16, %v13758_v23  ;;  %10176 = vmatpush3.bf16.xpose.msra.mxu1 %v10175_v2  ;;  %v6863_v59 = vadd.f32 %v15192_v36, %v16764_v11  ;;  %v10177_v63 = vpack.c.bf16 %v11099_v54, %v15242_v9 }
 0x6c9   : > { %v15290_v42 = vpop.eup %11110  ;;  %11128 = vpow2.f32 %v7121_v45  ;;  %v7088_v0 = vmul.f32 %v7028_v22, %v13758_v23  ;;  %v6999_v30 = vmax.f32 %v6967_v35, 1e-06  ;;  %v6874_v44 = vadd.f32 %v15196_v1, %v16765_v19 }
 0x6ca   : > { %v15295_v28 = vpop.eup %11112  ;;  %v7117_v21 = vmul.f32 1.442695, %v7085_v52  ;;  %11130 = vlog2.f32 %v6994_v41  ;;  %v6965_v14 = vmax.f32 %v6863_v59, 0.0  ;;  %10178 = vmatprep.subr.bf16.mxu1 %v10177_v63  ;;  %v6866_v36 = vadd.f32 %v15205_v27, %v16789_v57  ;;  %v15303_v52 = vpop.f32.mrb[216].mxu0 }
 0x6cb   : > { %v11115_v9 = vpop.eup %11114  ;;  %v7123_v54 = vmul.f32 1.442695, %v7088_v0  ;;  %11132 = vlog2.f32 %v6999_v30  ;;  %v6968_v3 = vmax.f32 %v6874_v44, 0.0  ;;  %v6887_v60 = vadd.f32 %v15219_v6, %v16790_v43  ;;  %v15308_v0 = vpop.f32.mrb[217].mxu0 }
 0x6cc   : > { %11134 = vpow2.f32 %v7117_v21  ;;  %v7024_v16 = vmul.f32 0.6931472, %v11115_v9  ;;  %v6997_v2 = vmax.f32 %v6965_v14, 1e-06  ;;  %v6966_v1 = vmax.f32 %v6866_v36, 0.0  ;;  %v16818_v21 = vld [vmem:[#allocation144_spill] sm:$0xff] }
 0x6cd   : > { %v11117_v45 = vpop.eup %11116  ;;  %11136 = vpow2.f32 %v7123_v54  ;;  %v7000_v22 = vmax.f32 %v6968_v3, 1e-06  ;;  %v6971_v41 = vmax.f32 %v6887_v60, 0.0  ;;  %v10179_v35 = vpack.c.bf16 %v15141_v18, %v15120_v10  ;;  %v15314_v18 = vpop.f32.mrb[218].mxu0 }
 0x6ce   : > { %v15305_v27 = vpop.eup %11118  ;;  %v7086_v59 = vmul.f32 %v7024_v16, %v13758_v23  ;;  %v7034_v63 = vmul.f32 0.6931472, %v11117_v45  ;;  %11138 = vlog2.f32 %v6997_v2  ;;  %v6998_v6 = vmax.f32 %v6966_v1, 1e-06  ;;  %v4937_v60 = vpop.f32.mrb[2].mxu1  ;;  %v16819_v45 = vld [vmem:[#allocation149_spill] sm:$0xff] }
 0x6cf   : > { %v11121_v30 = vpop.eup %11120  ;;  %11140 = vlog2.f32 %v7000_v22  ;;  %v7003_v44 = vmax.f32 %v6971_v41, 1e-06  ;;  %v6879_v14 = vadd.f32 %v15226_v37, %v16818_v21  ;;  %v10181_v10 = vpack.c.bf16 %v15249_v47, %v15234_v12  ;;  %v15317_v16 = vpop.f32.mrb[219].mxu0 }
 0x6d0   : > { %v11123_v36 = vpop.eup %11122  ;;  %v7119_v9 = vmul.f32 1.442695, %v7086_v59  ;;  %v7091_v54 = vmul.f32 %v7034_v63, %v13758_v23  ;;  %v7030_v3 = vmul.f32 0.6931472, %v11121_v30  ;;  %11142 = vlog2.f32 %v6998_v6  ;;  %10180 = vmatpush3.bf16.xpose.msra.mxu1 %v10179_v35  ;;  %v4939_v47 = vpop.f32.mrb[3].mxu1 }
 0x6d1   : > { %v15319_v2 = vpop.eup %11124  ;;  %v7036_v1 = vmul.f32 0.6931472, %v11123_v36  ;;  %11144 = vlog2.f32 %v7003_v44  ;;  %v6969_v37 = vmax.f32 %v6879_v14, 0.0  ;;  %10182 = vmatprep.subr.bf16.mxu1 %v10181_v10  ;;  %v6890_v12 = vadd.f32 %v15228_v38, %v16819_v45  ;;  %v16820_v10 = vld [vmem:[#allocation110_spill] sm:$0xff]  ;;  %v16822_v45 = vld [vmem:[#allocation145_spill] sm:$0xff] }
 0x6d2   : > { %v15323_v22 = vpop.eup %11126  ;;  %11146 = vpow2.f32 %v7119_v9  ;;  %v7129_v41 = vmul.f32 1.442695, %v7091_v54  ;;  %v7089_v59 = vmul.f32 %v7030_v3, %v13758_v23  ;;  %v7718_v35 = vrot.slane %v4937_v60, 7 }
 0x6d3   : > { %v15326_v63 = vpop.eup %11128  ;;  %v7092_v6 = vmul.f32 %v7036_v1, %v13758_v23  ;;  %v7001_v30 = vmax.f32 %v6969_v37, 1e-06  ;;  %v6972_v36 = vmax.f32 %v6890_v12, 0.0  ;;  %v6882_v9 = vadd.f32 %v15230_v13, %v16822_v45 }
 0x6d4   : > { %v11131_v44 = vpop.eup %11130  ;;  %11148 = vpow2.f32 %v7129_v41  ;;  %v7125_v14 = vmul.f32 1.442695, %v7089_v59  ;;  %v15331_v38 = vsel %vm7758_vm10, %v16820_v10, %v7718_v35  ;;  %v7719_v12 = vrot.slane %v4939_v47, 7  ;;  %v15337_v41 = vpop.f32.mrb[220].mxu0  ;;  %v16823_v10 = vld [vmem:[#allocation122_spill] sm:$0xff] }
 0x6d5   : > { %16821 = vst [vmem:[#allocation116_spill] sm:$0xff] %v15331_v38  ;;  %v11133_v54 = vpop.eup %11132  ;;  %v7131_v3 = vmul.f32 1.442695, %v7092_v6  ;;  %v7032_v60 = vmul.f32 0.6931472, %v11131_v44  ;;  %11150 = vlog2.f32 %v7001_v30  ;;  %v6970_v37 = vmax.f32 %v6882_v9, 0.0 }
 0x6d6   : > { %v7004_v21 = vmax.f32 %v6972_v36, 1e-06  ;;  %v15335_v43 = vpop.eup %11134  ;;  %11152 = vpow2.f32 %v7125_v14  ;;  %v7042_v1 = vmul.f32 0.6931472, %v11133_v54  ;;  %v6903_v13 = vadd.f32 %v15240_v58, %v16823_v10  ;;  %v15346_v30 = vpop.f32.mrb[221].mxu0  ;;  %v16824_v14 = vld [vmem:[#allocation120_spill] sm:$0xff] }
 0x6d7   : > { %v15339_v59 = vpop.eup %11136  ;;  %11154 = vpow2.f32 %v7131_v3  ;;  %v7090_v35 = vmul.f32 %v7032_v60, %v13758_v23  ;;  %v10183_v6 = vpack.c.bf16 %v15122_v51, %v15113_v34  ;;  %v7002_v47 = vmax.f32 %v6970_v37, 1e-06  ;;  %v15353_v54 = vpop.f32.mrb[222].mxu0  ;;  %v16825_v10 = vld [vmem:[#allocation118_spill] sm:$0xff] }
 0x6d8   : > { %v11139_v36 = vpop.eup %11138  ;;  %v7095_v44 = vmul.f32 %v7042_v1, %v13758_v23  ;;  %11156 = vlog2.f32 %v7004_v21  ;;  %v15351_v9 = vsel %vm7758_vm10, %v16824_v14, %v7719_v12  ;;  %v6975_v58 = vmax.f32 %v6903_v13, 0.0  ;;  %v15357_v51 = vpop.f32.mrb[223].mxu0 }
 0x6d9   : > { %v11141_v3 = vpop.eup %11140  ;;  %v7127_v60 = vmul.f32 1.442695, %v7090_v35  ;;  %v7038_v38 = vmul.f32 0.6931472, %v11139_v36  ;;  %10184 = vmatpush3.bf16.xpose.msra.mxu1 %v10183_v6  ;;  %v6895_v34 = vadd.f32 %v15247_v4, %v16825_v10  ;;  %11158 = vlog2.f32 %v7002_v47 }
 0x6da   : > { %v11143_v45 = vpop.eup %11142  ;;  %v7137_v1 = vmul.f32 1.442695, %v7095_v44  ;;  %v7044_v21 = vmul.f32 0.6931472, %v11141_v3  ;;  %v10185_v37 = vpack.c.bf16 %v15290_v42, %v15278_v39  ;;  %v7007_v36 = vmax.f32 %v6975_v58, 1e-06 }
 0x6db   : > { %v11145_v12 = vpop.eup %11144  ;;  %11160 = vpow2.f32 %v7127_v60  ;;  %v7093_v14 = vmul.f32 %v7038_v38, %v13758_v23  ;;  %v7040_v35 = vmul.f32 0.6931472, %v11143_v45  ;;  %v6973_v10 = vmax.f32 %v6895_v34, 0.0  ;;  %v15368_v42 = vpop.f32.mrb[224].mxu0 }
 0x6dc   : > { %v15362_v13 = vpop.eup %11146  ;;  %11162 = vpow2.f32 %v7137_v1  ;;  %v7096_v4 = vmul.f32 %v7044_v21, %v13758_v23  ;;  %v7050_v6 = vmul.f32 0.6931472, %v11145_v12  ;;  %10186 = vmatprep.subr.bf16.mxu1 %v10185_v37  ;;  %v6906_v39 = vadd.f32 %v15255_v49, %v16797_v25  ;;  %v15375_v34 = vpop.f32.mrb[225].mxu0 }
 0x6dd   : > { %v7133_v44 = vmul.f32 1.442695, %v7093_v14  ;;  %v7094_v47 = vmul.f32 %v7040_v35, %v13758_v23  ;;  %11164 = vlog2.f32 %v7007_v36  ;;  %v7005_v60 = vmax.f32 %v6973_v10, 1e-06  ;;  %v15379_v12 = vpop.f32.mrb[226].mxu0 }
 0x6de   : > { %v15370_v38 = vpop.eup %11148  ;;  %v7139_v45 = vmul.f32 1.442695, %v7096_v4  ;;  %v7099_v3 = vmul.f32 %v7050_v6, %v13758_v23  ;;  %v6898_v58 = vadd.f32 %v15263_v7, %v16733_v50  ;;  %v6976_v37 = vmax.f32 %v6906_v39, 0.0  ;;  %v15383_v4 = vpop.f32.mrb[227].mxu0 }
 0x6df   : > { %v11151_v1 = vpop.eup %11150  ;;  %11166 = vpow2.f32 %v7133_v44  ;;  %v7135_v21 = vmul.f32 1.442695, %v7094_v47  ;;  %v6919_v49 = vadd.f32 %v15272_v5, %v16734_v33  ;;  %v10187_v47 = vpack.c.bf16 %v15163_v53, %v15150_v17 }
 0x6e0   : > { %v15381_v14 = vpop.eup %11152  ;;  %11168 = vpow2.f32 %v7139_v45  ;;  %v7145_v35 = vmul.f32 1.442695, %v7099_v3  ;;  %v7046_v36 = vmul.f32 0.6931472, %v11151_v1  ;;  %v6974_v10 = vmax.f32 %v6898_v58, 0.0 }
 0x6e1   : > { %v15385_v7 = vpop.eup %11154  ;;  %11170 = vpow2.f32 %v7135_v21  ;;  %v7008_v6 = vmax.f32 %v6976_v37, 1e-06  ;;  %v6979_v44 = vmax.f32 %v6919_v49, 0.0  ;;  %v6911_v45 = vadd.f32 %v15276_v62, %v16735_v32  ;;  %10188 = vmatpush3.bf16.xpose.msra.mxu1 %v10187_v47  ;;  %v16826_v62 = vld [vmem:[#allocation127_spill] sm:$0xff] }
 0x6e2   : > { %v11157_v39 = vpop.eup %11156  ;;  %11172 = vpow2.f32 %v7145_v35  ;;  %v7097_v5 = vmul.f32 %v7046_v36, %v13758_v23  ;;  %v7006_v33 = vmax.f32 %v6974_v10, 1e-06  ;;  %v10189_v1 = vpack.c.bf16 %v15282_v24, %v15266_v46  ;;  %v15401_v10 = vpop.f32.mrb[228].mxu0 }
 0x6e3   : > { %v7052_v3 = vmul.f32 0.6931472, %v11157_v39  ;;  %11174 = vlog2.f32 %v7005_v60  ;;  %v7011_v58 = vmax.f32 %v6979_v44, 1e-06  ;;  %v11159_v21 = vpop.eup %11158  ;;  %v6977_v49 = vmax.f32 %v6911_v45, 0.0  ;;  %v15407_v44 = vpop.f32.mrb[229].mxu0 }
 0x6e4   : > { %v7141_v37 = vmul.f32 1.442695, %v7097_v5  ;;  %11176 = vlog2.f32 %v7008_v6  ;;  %v6922_v17 = vadd.f32 %v15280_v8, %v16680_v48  ;;  %v7048_v36 = vmul.f32 0.6931472, %v11159_v21  ;;  %10190 = vmatprep.subr.bf16.mxu1 %v10189_v1  ;;  %v15410_v45 = vpop.f32.mrb[230].mxu0 }
 0x6e5   : > { %v15396_v53 = vpop.eup %11160  ;;  %v7100_v35 = vmul.f32 %v7052_v3, %v13758_v23  ;;  %11178 = vlog2.f32 %v7006_v33  ;;  %v6914_v60 = vadd.f32 %v15288_v61, %v16826_v62  ;;  %v7009_v24 = vmax.f32 %v6977_v49, 1e-06  ;;  %v15412_v21 = vpop.f32.mrb[231].mxu0 }
 0x6e6   : > { %v15403_v46 = vpop.eup %11162  ;;  %11180 = vpow2.f32 %v7141_v37  ;;  %v6980_v6 = vmax.f32 %v6922_v17, 0.0  ;;  %v6935_v8 = vadd.f32 %v15303_v52, %v16643_v56  ;;  %v7098_v33 = vmul.f32 %v7048_v36, %v13758_v23  ;;  %v16828_v17 = vld [vmem:[#allocation126_spill] sm:$0xff] }
 0x6e7   : > { %16827 = vst [vmem:[#allocation113_spill] sm:$0xff] %v15403_v46  ;;  %v11165_v47 = vpop.eup %11164  ;;  %v7147_v39 = vmul.f32 1.442695, %v7100_v35  ;;  %11182 = vlog2.f32 %v7011_v58  ;;  %v6978_v5 = vmax.f32 %v6914_v60, 0.0  ;;  %v16829_v46 = vld [vmem:[#allocation111_spill] sm:$0xff]  ;;  %v16831_v60 = vld [vmem:[#allocation134_spill] sm:$0xff] }
 0x6e8   : > { %v7058_v61 = vmul.f32 0.6931472, %v11165_v47  ;;  %11184 = vlog2.f32 %v7009_v24  ;;  %v7012_v3 = vmax.f32 %v6980_v6, 1e-06  ;;  %v6983_v1 = vmax.f32 %v6935_v8, 0.0  ;;  %v16832_v47 = vld [vmem:[#allocation139_spill] sm:$0xff] }
 0x6e9   : > { %v15414_v37 = vpop.eup %11166  ;;  %11186 = vpow2.f32 %v7147_v39  ;;  %v7143_v52 = vmul.f32 1.442695, %v7098_v33  ;;  %v7010_v49 = vmax.f32 %v6978_v5, 1e-06  ;;  %v10191_v35 = vpack.c.bf16 %v16829_v46, %v16828_v17  ;;  %v16833_v46 = vld [vmem:[#allocation135_spill] sm:$0xff] }
 0x6ea   : > { %v15418_v56 = vpop.eup %11168  ;;  %v7103_v58 = vmul.f32 %v7058_v61, %v13758_v23  ;;  %11188 = vlog2.f32 %v7012_v3  ;;  %v7015_v36 = vmax.f32 %v6983_v1, 1e-06  ;;  %v6927_v24 = vadd.f32 %v15308_v0, %v16831_v60  ;;  %v16835_v1 = vld [vmem:[#allocation146_spill] sm:$0xff] }
 0x6eb   : > { %16830 = vst [vmem:[#allocation128_spill] sm:$0xff] %v15418_v56  ;;  %v15423_v6 = vpop.eup %11170  ;;  %11190 = vpow2.f32 %v7143_v52  ;;  %10192 = vmatpush3.bf16.xpose.msra.mxu1 %v10191_v35  ;;  %v10193_v8 = vpack.c.bf16 %v15323_v22, %v15305_v27  ;;  %v6938_v39 = vadd.f32 %v15314_v18, %v16832_v47  ;;  %v6930_v33 = vadd.f32 %v15317_v16, %v16833_v46  ;;  %v16836_v27 = vld [vmem:[#allocation133_spill] sm:$0xff]  ;;  %v16837_v22 = vld [vmem:[#allocation150_spill] sm:$0xff]  ;;  %v15437_v18 = vpop.f32.mrb[232].mxu0 }
 0x6ec   : > { %v15431_v5 = vpop.eup %11172  ;;  %v7153_v61 = vmul.f32 1.442695, %v7103_v58  ;;  %11192 = vlog2.f32 %v7010_v49  ;;  %v6981_v3 = vmax.f32 %v6927_v24, 0.0  ;;  %v6951_v0 = vadd.f32 %v15337_v41, %v16835_v1  ;;  %v15439_v49 = vpop.f32.mrb[233].mxu0 }
 0x6ed   : > { %16834 = vst [vmem:[#allocation129_spill] sm:$0xff] %v15431_v5  ;;  %v11175_v17 = vpop.eup %11174  ;;  %11194 = vlog2.f32 %v7015_v36  ;;  %10194 = vmatprep.subr.bf16.mxu1 %v10193_v8  ;;  %v6984_v52 = vmax.f32 %v6938_v39, 0.0  ;;  %v6982_v35 = vmax.f32 %v6930_v33, 0.0  ;;  %v10195_v60 = vpack.c.bf16 %v16837_v22, %v16836_v27  ;;  %v16838_v36 = vld [vmem:[#allocation142_spill] sm:$0xff] }
 0x6ee   : > { %v11177_v47 = vpop.eup %11176  ;;  %11196 = vpow2.f32 %v7153_v61  ;;  %v7054_v16 = vmul.f32 0.6931472, %v11175_v17  ;;  %v7013_v5 = vmax.f32 %v6981_v3, 1e-06  ;;  %v6987_v58 = vmax.f32 %v6951_v0, 0.0  ;;  %v15446_v61 = vpop.f32.mrb[234].mxu0 }
 0x6ef   : > { %v11179_v24 = vpop.eup %11178  ;;  %v7060_v46 = vmul.f32 0.6931472, %v11177_v47  ;;  %v7016_v41 = vmax.f32 %v6984_v52, 1e-06  ;;  %v7014_v1 = vmax.f32 %v6982_v35, 1e-06  ;;  %v6943_v8 = vadd.f32 %v15346_v30, %v16838_v36 }
 0x6f0   : > { %v15443_v39 = vpop.eup %11180  ;;  %v7101_v33 = vmul.f32 %v7054_v16, %v13758_v23  ;;  %v7056_v27 = vmul.f32 0.6931472, %v11179_v24  ;;  %11198 = vlog2.f32 %v7013_v5  ;;  %v7019_v22 = vmax.f32 %v6987_v58, 1e-06  ;;  %v15451_v52 = vpop.f32.mrb[235].mxu0 }
 0x6f1   : > { %16839 = vst [vmem:[#allocation140_spill] sm:$0xff] %v15443_v39  ;;  %v11183_v3 = vpop.eup %11182  ;;  %v7104_v0 = vmul.f32 %v7060_v46, %v13758_v23  ;;  %11200 = vlog2.f32 %v7016_v41  ;;  %v6985_v17 = vmax.f32 %v6943_v8, 0.0  ;;  %v10197_v47 = vpack.c.bf16 %v15319_v2, %v15295_v28  ;;  %v16841_v2 = vld [vmem:[#allocation147_spill] sm:$0xff] }
 0x6f2   : > { %v11185_v30 = vpop.eup %11184  ;;  %v7149_v35 = vmul.f32 1.442695, %v7101_v33  ;;  %v7102_v36 = vmul.f32 %v7056_v27, %v13758_v23  ;;  %v7066_v16 = vmul.f32 0.6931472, %v11183_v3  ;;  %11202 = vlog2.f32 %v7014_v1  ;;  %v16843_v3 = vld [vmem:[#allocation143_spill] sm:$0xff] }
 0x6f3   : > { %v15454_v5 = vpop.eup %11186  ;;  %v7155_v58 = vmul.f32 1.442695, %v7104_v0  ;;  %v7062_v24 = vmul.f32 0.6931472, %v11185_v30  ;;  %11204 = vlog2.f32 %v7019_v22  ;;  %10196 = vmatpush3.bf16.xpose.msra.mxu1 %v10195_v60  ;;  %v7017_v46 = vmax.f32 %v6985_v17, 1e-06 }
 0x6f4   : > { %16840 = vst [vmem:[#allocation136_spill] sm:$0xff] %v15454_v5  ;;  %v11189_v41 = vpop.eup %11188  ;;  %11206 = vpow2.f32 %v7149_v35  ;;  %v7151_v8 = vmul.f32 1.442695, %v7102_v36  ;;  %v7107_v28 = vmul.f32 %v7066_v16, %v13758_v23  ;;  %10198 = vmatprep.subr.bf16.mxu1 %v10197_v47  ;;  %v6954_v33 = vadd.f32 %v15353_v54, %v16841_v2  ;;  %v15464_v60 = vpop.f32.mrb[236].mxu0 }
 0x6f5   : > { %v15459_v39 = vpop.eup %11190  ;;  %11208 = vpow2.f32 %v7155_v58  ;;  %v7105_v1 = vmul.f32 %v7062_v24, %v13758_v23  ;;  %v7068_v27 = vmul.f32 0.6931472, %v11189_v41  ;;  %v6946_v22 = vadd.f32 %v15357_v51, %v16843_v3  ;;  %v15468_v30 = vpop.f32.mrb[237].mxu0  ;;  %v16845_v3 = vld [vmem:[#allocation153_spill] sm:$0xff] }
 0x6f6   : > { %16842 = vst [vmem:[#allocation141_spill] sm:$0xff] %v15459_v39  ;;  %v11193_v0 = vpop.eup %11192  ;;  %11210 = vpow2.f32 %v7151_v8  ;;  %v7161_v36 = vmul.f32 1.442695, %v7107_v28  ;;  %v6988_v17 = vmax.f32 %v6954_v33, 0.0  ;;  %v7301_v47 = vadd.f32 %v15368_v42, %v16813_v26  ;;  %v15471_v24 = vpop.f32.mrb[238].mxu0 }
 0x6f7   : > { %v11195_v54 = vpop.eup %11194  ;;  %v7157_v35 = vmul.f32 1.442695, %v7105_v1  ;;  %v7108_v16 = vmul.f32 %v7068_v27, %v13758_v23  ;;  %v7064_v58 = vmul.f32 0.6931472, %v11193_v0  ;;  %11212 = vlog2.f32 %v7017_v46  ;;  %v15475_v33 = vpop.f32.mrb[239].mxu0  ;;  %v16844_v0 = vld [vmem:[#allocation112_spill] sm:$0xff] }
 0x6f8   : > { %v15473_v51 = vpop.eup %11196  ;;  %11214 = vpow2.f32 %v7161_v36  ;;  %v7074_v41 = vmul.f32 0.6931472, %v11195_v54  ;;  %v7020_v8 = vmax.f32 %v6988_v17, 1e-06  ;;  %v6986_v28 = vmax.f32 %v6946_v22, 0.0 }
 0x6f9   : > { %11216 = vpow2.f32 %v7157_v35  ;;  %v7163_v26 = vmul.f32 1.442695, %v7108_v16  ;;  %v7106_v42 = vmul.f32 %v7064_v58, %v13758_v23  ;;  %v7421_v5 = vmax.f32 %v7301_v47, 0.0  ;;  %v16846_v16 = vld [vmem:[#allocation119_spill] sm:$0xff] }
 0x6fa   : > { %v11199_v1 = vpop.eup %11198  ;;  %v7111_v27 = vmul.f32 %v7074_v41, %v13758_v23  ;;  %11218 = vlog2.f32 %v7020_v8  ;;  %v7018_v46 = vmax.f32 %v6986_v28, 1e-06  ;;  %v10199_v2 = vpack.c.bf16 %v16845_v3, %v16844_v0  ;;  %v16847_v28 = vld [vmem:[#allocation125_spill] sm:$0xff] }
 0x6fb   : > { %v11201_v39 = vpop.eup %11200  ;;  %11220 = vpow2.f32 %v7163_v26  ;;  %v7159_v36 = vmul.f32 1.442695, %v7106_v42  ;;  %v7070_v17 = vmul.f32 0.6931472, %v11199_v1  ;;  %v7453_v22 = vmax.f32 %v7421_v5, 1e-06 }
 0x6fc   : > { %v11203_v54 = vpop.eup %11202  ;;  %v7169_v56 = vmul.f32 1.442695, %v7111_v27  ;;  %v7076_v35 = vmul.f32 0.6931472, %v11201_v39  ;;  %11222 = vlog2.f32 %v7018_v46  ;;  %10200 = vmatpush3.bf16.xpose.msra.mxu1 %v10199_v2  ;;  %v7293_v47 = vadd.f32 %v15375_v34, %v16846_v16  ;;  %v15486_v26 = vpop.f32.mrb[240].mxu0 }
 0x6fd   : > { %v11205_v58 = vpop.eup %11204  ;;  %11224 = vpow2.f32 %v7159_v36  ;;  %v7109_v41 = vmul.f32 %v7070_v17, %v13758_v23  ;;  %v7072_v8 = vmul.f32 0.6931472, %v11203_v54  ;;  %v7304_v3 = vadd.f32 %v15379_v12, %v16847_v28  ;;  %v15489_v2 = vpop.f32.mrb[241].mxu0 }
 0x6fe   : > { %v11207_v42 = vpop.eup %11206  ;;  %11226 = vpow2.f32 %v7169_v56  ;;  %v7112_v5 = vmul.f32 %v7076_v35, %v13758_v23  ;;  %v7082_v39 = vmul.f32 0.6931472, %v11205_v58  ;;  %v7419_v1 = vmax.f32 %v7293_v47, 0.0  ;;  %v15492_v36 = vpop.f32.mrb[242].mxu0  ;;  %v16848_v56 = vld [vmem:[#allocation121_spill] sm:$0xff] }
 0x6ff   : > { %v11209_v27 = vpop.eup %11208  ;;  %v7165_v34 = vmul.f32 1.442695, %v7109_v41  ;;  %v7110_v46 = vmul.f32 %v7072_v8, %v13758_v23  ;;  %11228 = vlog2.f32 %v7453_v22  ;;  %v7422_v0 = vmax.f32 %v7304_v3, 0.0  ;;  %v15497_v58 = vpop.f32.mrb[243].mxu0 }
 0x700   : > { %v11211_v17 = vpop.eup %11210  ;;  %v7171_v12 = vmul.f32 1.442695, %v7112_v5  ;;  %v7115_v54 = vmul.f32 %v7082_v39, %v13758_v23  ;;  %v7451_v16 = vmax.f32 %v7419_v1, 1e-06  ;;  %v7296_v35 = vadd.f32 %v15383_v4, %v16848_v56 }
 0x701   : > { %v11213_v47 = vpop.eup %11212  ;;  %11230 = vpow2.f32 %v7165_v34  ;;  %v7167_v28 = vmul.f32 1.442695, %v7110_v46  ;;  %v7454_v41 = vmax.f32 %v7422_v0, 1e-06  ;;  %v10201_v62 = vpack.c.bf16 %v11211_v17, %v11207_v42 }
 0x702   : > { %v15499_v8 = vpop.eup %11214  ;;  %11232 = vpow2.f32 %v7171_v12  ;;  %v7177_v22 = vmul.f32 1.442695, %v7115_v54  ;;  %v7078_v3 = vmul.f32 0.6931472, %v11213_v47  ;;  %v7420_v48 = vmax.f32 %v7296_v35, 0.0 }
 0x703   : > { %v15501_v5 = vpop.eup %11216  ;;  %11234 = vpow2.f32 %v7167_v28  ;;  %9106 = vmatmul.mubr.f32.vlgmr.msra.gmra.mrb[10].mxu1 %v16762_v20  ;;  %10202 = vmatprep.subr.bf16.mxu1 %v10201_v62  ;;  %v7317_v4 = vadd.f32 %v15401_v10, %v16710_v31  ;;  %v10203_v39 = vpack.c.bf16 %v15362_v13, %v15335_v43  ;;  %v7309_v42 = vadd.f32 %v15407_v44, %v16760_v40  ;;  %v15515_v43 = vpop.f32.mrb[244].mxu0 }
 0x704   : > { %v11219_v1 = vpop.eup %11218  ;;  %11236 = vpow2.f32 %v7177_v22  ;;  %v7113_v34 = vmul.f32 %v7078_v3, %v13758_v23  ;;  %v7452_v46 = vmax.f32 %v7420_v48, 1e-06  ;;  %v10205_v0 = vpack.c.bf16 %v11209_v27, %v15473_v51  ;;  %9156 = vmatprep.mubr.f32.mxu1 %v16762_v20  ;;  %v15521_v51 = vpop.f32.mrb[245].mxu0 }
 0x705   : > { %v15513_v17 = vpop.eup %11220  ;;  %v7084_v62 = vmul.f32 0.6931472, %v11219_v1  ;;  %11238 = vlog2.f32 %v7451_v16  ;;  %v7425_v31 = vmax.f32 %v7317_v4, 0.0  ;;  %10204 = vmatpush3.bf16.xpose.msra.mxu1 %v10203_v39  ;;  %v7423_v10 = vmax.f32 %v7309_v42, 0.0  ;;  %v15524_v56 = vpop.f32.mrb[246].mxu0 }
 0x706   : > { %v11223_v13 = vpop.eup %11222  ;;  %v7173_v40 = vmul.f32 1.442695, %v7113_v34  ;;  %11240 = vlog2.f32 %v7454_v41  ;;  %10206 = vmatprep.subr.bf16.mxu1 %v10205_v0  ;;  %v7320_v48 = vadd.f32 %v15410_v45, %v16656_v29  ;;  %v7312_v44 = vadd.f32 %v15412_v21, %v16761_v55  ;;  %v15528_v29 = vpop.f32.mrb[247].mxu0 }
 0x707   : > { %v11225_v27 = vpop.eup %11224  ;;  %v7116_v12 = vmul.f32 %v7084_v62, %v13758_v23  ;;  %v7080_v54 = vmul.f32 0.6931472, %v11223_v13  ;;  %11242 = vlog2.f32 %v7452_v46  ;;  %v7457_v16 = vmax.f32 %v7425_v31, 1e-06 }
 0x708   : > { %v15526_v35 = vpop.eup %11226  ;;  %11244 = vpow2.f32 %v7173_v40  ;;  %v7455_v47 = vmax.f32 %v7423_v10, 1e-06  ;;  %v7426_v28 = vmax.f32 %v7320_v48, 0.0  ;;  %v7424_v41 = vmax.f32 %v7312_v44, 0.0 }
 0x709   : > { %v11229_v45 = vpop.eup %11228  ;;  %v7179_v55 = vmul.f32 1.442695, %v7116_v12  ;;  %v7114_v21 = vmul.f32 %v7080_v54, %v13758_v23  ;;  %11246 = vlog2.f32 %v7457_v16  ;;  %v7333_v22 = vadd.f32 %v15437_v18, %v16763_v15 }
 0x70a   : > { %v7488_v3 = vmul.f32 0.6931472, %v11229_v45  ;;  %11248 = vlog2.f32 %v7455_v47  ;;  %v7458_v4 = vmax.f32 %v7426_v28, 1e-06  ;;  %v7456_v39 = vmax.f32 %v7424_v41, 1e-06 }
 0x70b   : > { %v15533_v42 = vpop.eup %11230  ;;  %11250 = vpow2.f32 %v7179_v55  ;;  %v7175_v1 = vmul.f32 1.442695, %v7114_v21  ;;  %v7429_v34 = vmax.f32 %v7333_v22, 0.0  ;;  %v10207_v46 = vpack.c.bf16 %v15339_v59, %v15326_v63  ;;  %v15549_v59 = vpop.f32.mrb[248].mxu0  ;;  %v16850_v21 = vld [vmem:[#allocation144_spill] sm:$0xff] }
 0x70c   : > { %v15537_v0 = vpop.eup %11232  ;;  %v7549_v62 = vmul.f32 %v7488_v3, %v13758_v23  ;;  %11252 = vlog2.f32 %v7458_v4  ;;  %v7325_v15 = vadd.f32 %v15439_v49, %v16764_v11  ;;  %v10209_v18 = vpack.c.bf16 %v11225_v27, %v15501_v5  ;;  %v16849_v49 = vld [vmem:[#allocation148_spill] sm:$0xff]  ;;  %v15555_v44 = vpop.f32.mrb[249].mxu0 }
 0x70d   : > { %v15543_v31 = vpop.eup %11234  ;;  %11254 = vpow2.f32 %v7175_v1  ;;  %v7461_v10 = vmax.f32 %v7429_v34, 1e-06  ;;  %10208 = vmatpush3.bf16.xpose.msra.mxu1 %v10207_v46  ;;  %v7336_v13 = vadd.f32 %v15446_v61, %v16765_v19  ;;  %v7328_v63 = vadd.f32 %v15451_v52, %v16789_v57  ;;  %v15559_v61 = vpop.f32.mrb[250].mxu0 }
 0x70e   : > { %v15551_v40 = vpop.eup %11236  ;;  %v7583_v48 = vmul.f32 1.442695, %v7549_v62  ;;  %11256 = vlog2.f32 %v7456_v39  ;;  %v7427_v11 = vmax.f32 %v7325_v15, 0.0  ;;  %10210 = vmatprep.subr.bf16.mxu1 %v10209_v18  ;;  %v7349_v5 = vadd.f32 %v15464_v60, %v16849_v49  ;;  %v15568_v1 = vpop.f32.mrb[251].mxu0 }
 0x70f   : > { %v11239_v27 = vpop.eup %11238  ;;  %11258 = vlog2.f32 %v7461_v10  ;;  %v7430_v12 = vmax.f32 %v7336_v13, 0.0  ;;  %v7428_v19 = vmax.f32 %v7328_v63, 0.0  ;;  %v10211_v57 = vpack.c.bf16 %v15396_v53, %v15381_v14 }
 0x710   : > { %v11241_v52 = vpop.eup %11240  ;;  %11260 = vpow2.f32 %v7583_v48  ;;  %v7484_v54 = vmul.f32 0.6931472, %v11239_v27  ;;  %v7459_v16 = vmax.f32 %v7427_v11, 1e-06  ;;  %v7433_v47 = vmax.f32 %v7349_v5, 0.0  ;;  %v5399_v28 = vpop.f32.mrb[4].mxu1 }
 0x711   : > { %v11243_v41 = vpop.eup %11242  ;;  %v7490_v45 = vmul.f32 0.6931472, %v11241_v52  ;;  %v7462_v60 = vmax.f32 %v7430_v12, 1e-06  ;;  %v7460_v55 = vmax.f32 %v7428_v19, 1e-06  ;;  %v7341_v22 = vadd.f32 %v15468_v30, %v16850_v21 }
 0x712   : > { %v15563_v3 = vpop.eup %11244  ;;  %v7547_v4 = vmul.f32 %v7484_v54, %v13758_v23  ;;  %v7486_v14 = vmul.f32 0.6931472, %v11243_v41  ;;  %11262 = vlog2.f32 %v7459_v16  ;;  %v7465_v53 = vmax.f32 %v7433_v47, 1e-06  ;;  %v15566_v39 = vpop.f32.mrb[5].mxu1 }
 0x713   : > { %v11247_v34 = vpop.eup %11246  ;;  %v7550_v46 = vmul.f32 %v7490_v45, %v13758_v23  ;;  %11264 = vlog2.f32 %v7462_v60  ;;  %v7431_v62 = vmax.f32 %v7341_v22, 0.0  ;;  %v10213_v15 = vpack.c.bf16 %v15513_v17, %v15499_v8  ;;  %v16851_v8 = vld [vmem:[#allocation149_spill] sm:$0xff]  ;;  %v15579_v19 = vpop.f32.mrb[252].mxu0 }
 0x714   : > { %v11249_v30 = vpop.eup %11248  ;;  %v7579_v18 = vmul.f32 1.442695, %v7547_v4  ;;  %v7548_v10 = vmul.f32 %v7486_v14, %v13758_v23  ;;  %v7496_v13 = vmul.f32 0.6931472, %v11247_v34  ;;  %11266 = vlog2.f32 %v7460_v55  ;;  %v16852_v55 = vld [vmem:[#allocation145_spill] sm:$0xff] }
 0x715   : > { %v15574_v63 = vpop.eup %11250  ;;  %v7585_v48 = vmul.f32 1.442695, %v7550_v46  ;;  %v7492_v11 = vmul.f32 0.6931472, %v11249_v30  ;;  %11268 = vlog2.f32 %v7465_v53  ;;  %10212 = vmatpush3.bf16.xpose.msra.mxu1 %v10211_v57  ;;  %v7463_v49 = vmax.f32 %v7431_v62, 1e-06 }
 0x716   : > { %v11253_v5 = vpop.eup %11252  ;;  %11270 = vpow2.f32 %v7579_v18  ;;  %v7581_v27 = vmul.f32 1.442695, %v7548_v10  ;;  %v7553_v12 = vmul.f32 %v7496_v13, %v13758_v23  ;;  %10214 = vmatprep.subr.bf16.mxu1 %v10213_v15  ;;  %v7352_v17 = vadd.f32 %v15471_v24, %v16851_v8  ;;  %v15584_v57 = vpop.f32.mrb[253].mxu0  ;;  %v16853_v15 = vld [vmem:[#allocation116_spill] sm:$0xff] }
 0x717   : > { %v15581_v52 = vpop.eup %11254  ;;  %11272 = vpow2.f32 %v7585_v48  ;;  %v7551_v54 = vmul.f32 %v7492_v11, %v13758_v23  ;;  %v7498_v16 = vmul.f32 0.6931472, %v11253_v5  ;;  %v7724_v47 = vrot.slane %v5399_v28, 6  ;;  %v15588_v22 = vpop.f32.mrb[254].mxu0 }
 0x718   : > { %v11257_v41 = vpop.eup %11256  ;;  %11274 = vpow2.f32 %v7581_v27  ;;  %v7591_v45 = vmul.f32 1.442695, %v7553_v12  ;;  %v7434_v60 = vmax.f32 %v7352_v17, 0.0  ;;  %v7344_v21 = vadd.f32 %v15475_v33, %v16852_v55  ;;  %v15591_v34 = vpop.f32.mrb[255].mxu0 }
 0x719   : > { %v11259_v24 = vpop.eup %11258  ;;  %v7587_v4 = vmul.f32 1.442695, %v7551_v54  ;;  %v7554_v14 = vmul.f32 %v7498_v16, %v13758_v23  ;;  %v7494_v53 = vmul.f32 0.6931472, %v11257_v41  ;;  %11276 = vlog2.f32 %v7463_v49  ;;  %v16854_v49 = vld [vmem:[#allocation122_spill] sm:$0xff] }
 0x71a   : > { %v15593_v28 = vpop.eup %11260  ;;  %11278 = vpow2.f32 %v7591_v45  ;;  %v7504_v46 = vmul.f32 0.6931472, %v11259_v24  ;;  %v7466_v62 = vmax.f32 %v7434_v60, 1e-06  ;;  %v15597_v30 = vsel %vm4019_vm8, %v16853_v15, %v7724_v47 }
 0x71b   : > { %11280 = vpow2.f32 %v7587_v4  ;;  %v7593_v33 = vmul.f32 1.442695, %v7554_v14  ;;  %v7552_v18 = vmul.f32 %v7494_v53, %v13758_v23  ;;  %v7432_v10 = vmax.f32 %v7344_v21, 0.0 }
 0x71c   : > { %v11263_v13 = vpop.eup %11262  ;;  %v7557_v48 = vmul.f32 %v7504_v46, %v13758_v23  ;;  %11282 = vlog2.f32 %v7466_v62  ;;  %v7725_v11 = vrot.slane %v15566_v39, 6  ;;  %v7365_v5 = vadd.f32 %v15486_v26, %v16854_v49  ;;  %v16855_v62 = vld [vmem:[#allocation118_spill] sm:$0xff] }
 0x71d   : > { %v11265_v27 = vpop.eup %11264  ;;  %11284 = vpow2.f32 %v7593_v33  ;;  %v7589_v12 = vmul.f32 1.442695, %v7552_v18  ;;  %v7500_v8 = vmul.f32 0.6931472, %v11263_v13  ;;  %v7464_v17 = vmax.f32 %v7432_v10, 1e-06 }
 0x71e   : > { %v11267_v54 = vpop.eup %11266  ;;  %v7599_v16 = vmul.f32 1.442695, %v7557_v48  ;;  %v7506_v47 = vmul.f32 0.6931472, %v11265_v27  ;;  %v15606_v41 = vsel %vm4019_vm8, %v15351_v9, %v7725_v11  ;;  %v7437_v45 = vmax.f32 %v7365_v5, 0.0 }
 0x71f   : > { %v11269_v60 = vpop.eup %11268  ;;  %11286 = vpow2.f32 %v7589_v12  ;;  %v7555_v39 = vmul.f32 %v7500_v8, %v13758_v23  ;;  %v7502_v55 = vmul.f32 0.6931472, %v11267_v54  ;;  %v10215_v26 = vpack.c.bf16 %v15385_v7, %v15370_v38  ;;  %v16856_v8 = vld [vmem:[#allocation130_spill] sm:$0xff] }
 0x720   : > { %v15611_v21 = vpop.eup %11270  ;;  %11288 = vpow2.f32 %v7599_v16  ;;  %v7558_v24 = vmul.f32 %v7506_v47, %v13758_v23  ;;  %v7512_v4 = vmul.f32 0.6931472, %v11269_v60  ;;  %v7469_v14 = vmax.f32 %v7437_v45, 1e-06 }
 0x721   : > { %v15614_v53 = vpop.eup %11272  ;;  %v7595_v9 = vmul.f32 1.442695, %v7555_v39  ;;  %v7556_v46 = vmul.f32 %v7502_v55, %v13758_v23  ;;  %11290 = vlog2.f32 %v7464_v17  ;;  %10216 = vmatpush3.bf16.xpose.msra.mxu1 %v10215_v26  ;;  %v7357_v15 = vadd.f32 %v15489_v2, %v16855_v62 }
 0x722   : > { %v15619_v33 = vpop.eup %11274  ;;  %v7601_v38 = vmul.f32 1.442695, %v7558_v24  ;;  %v7561_v7 = vmul.f32 %v7512_v4, %v13758_v23  ;;  %11292 = vlog2.f32 %v7469_v14  ;;  %v10217_v18 = vpack.c.bf16 %v15543_v31, %v15533_v42 }
 0x723   : > { %v11277_v10 = vpop.eup %11276  ;;  %11294 = vpow2.f32 %v7595_v9  ;;  %v7597_v13 = vmul.f32 1.442695, %v7556_v46  ;;  %v7435_v48 = vmax.f32 %v7357_v15, 0.0  ;;  %v7368_v11 = vadd.f32 %v15492_v36, %v16797_v25  ;;  %v16858_v46 = vld [vmem:[#allocation127_spill] sm:$0xff] }
 0x724   : > { %v15626_v49 = vpop.eup %11278  ;;  %11296 = vpow2.f32 %v7601_v38  ;;  %v7607_v2 = vmul.f32 1.442695, %v7561_v7  ;;  %v7508_v5 = vmul.f32 0.6931472, %v11277_v10  ;;  %10218 = vmatprep.subr.bf16.mxu1 %v10217_v18  ;;  %v7360_v27 = vadd.f32 %v15497_v58, %v16733_v50  ;;  %v16860_v38 = vld [vmem:[#allocation113_spill] sm:$0xff]  ;;  %v16861_v7 = vld [vmem:[#allocation128_spill] sm:$0xff] }
 0x725   : > { %v15630_v12 = vpop.eup %11280  ;;  %11298 = vpow2.f32 %v7597_v13  ;;  %v7467_v42 = vmax.f32 %v7435_v48, 1e-06  ;;  %v7438_v31 = vmax.f32 %v7368_v11, 0.0  ;;  %v7381_v17 = vadd.f32 %v15515_v43, %v16856_v8 }
 0x726   : > { %v11283_v54 = vpop.eup %11282  ;;  %11300 = vpow2.f32 %v7607_v2  ;;  %v7559_v25 = vmul.f32 %v7508_v5, %v13758_v23  ;;  %v7436_v36 = vmax.f32 %v7360_v27, 0.0  ;;  %v10219_v16 = vpack.c.bf16 %v15423_v6, %v15414_v37  ;;  %v16857_v6 = vld [vmem:[#allocation131_spill] sm:$0xff] }
 0x727   : > { %v15637_v47 = vpop.eup %11284  ;;  %v7514_v45 = vmul.f32 0.6931472, %v11283_v54  ;;  %11302 = vlog2.f32 %v7467_v42  ;;  %v7470_v50 = vmax.f32 %v7438_v31, 1e-06  ;;  %v7441_v58 = vmax.f32 %v7381_v17, 0.0  ;;  %v16862_v31 = vld [vmem:[#allocation134_spill] sm:$0xff] }
 0x728   : > { %v7603_v60 = vmul.f32 1.442695, %v7559_v25  ;;  %v7468_v39 = vmax.f32 %v7436_v36, 1e-06  ;;  %v7373_v55 = vadd.f32 %v15521_v51, %v16735_v32  ;;  %v10221_v43 = vpack.c.bf16 %v15537_v0, %v15526_v35  ;;  %v16859_v51 = vld [vmem:[#allocation138_spill] sm:$0xff] }
 0x729   : > { %v15643_v26 = vpop.eup %11286  ;;  %v7562_v24 = vmul.f32 %v7514_v45, %v13758_v23  ;;  %11304 = vlog2.f32 %v7470_v50  ;;  %v7473_v37 = vmax.f32 %v7441_v58, 1e-06  ;;  %10220 = vmatpush3.bf16.xpose.msra.mxu1 %v10219_v16  ;;  %v7384_v4 = vadd.f32 %v15524_v56, %v16857_v6  ;;  %v16863_v58 = vld [vmem:[#allocation139_spill] sm:$0xff] }
 0x72a   : > { %v15648_v14 = vpop.eup %11288  ;;  %11306 = vpow2.f32 %v7603_v60  ;;  %v7439_v9 = vmax.f32 %v7373_v55, 0.0  ;;  %10222 = vmatprep.subr.bf16.mxu1 %v10221_v43  ;;  %v7376_v32 = vadd.f32 %v15528_v29, %v16858_v46  ;;  %v7397_v35 = vadd.f32 %v15549_v59, %v16859_v51 }
 0x72b   : > { %v11291_v0 = vpop.eup %11290  ;;  %v7609_v62 = vmul.f32 1.442695, %v7562_v24  ;;  %11308 = vlog2.f32 %v7468_v39  ;;  %v7442_v15 = vmax.f32 %v7384_v4, 0.0  ;;  %v10223_v18 = vpack.c.bf16 %v16861_v7, %v16860_v38  ;;  %v16865_v24 = vld [vmem:[#allocation146_spill] sm:$0xff] }
 0x72c   : > { %v11293_v10 = vpop.eup %11292  ;;  %v7510_v56 = vmul.f32 0.6931472, %v11291_v0  ;;  %11310 = vlog2.f32 %v7473_v37  ;;  %v7471_v13 = vmax.f32 %v7439_v9, 1e-06  ;;  %v7440_v48 = vmax.f32 %v7376_v32, 0.0  ;;  %v16867_v32 = vld [vmem:[#allocation141_spill] sm:$0xff] }
 0x72d   : > { %v15656_v11 = vpop.eup %11294  ;;  %11312 = vpow2.f32 %v7609_v62  ;;  %v7520_v2 = vmul.f32 0.6931472, %v11293_v10  ;;  %v7474_v29 = vmax.f32 %v7442_v15, 1e-06  ;;  %v7445_v5 = vmax.f32 %v7397_v35, 0.0  ;;  %v16868_v7 = vld [vmem:[#allocation142_spill] sm:$0xff] }
 0x72e   : > { %v15658_v27 = vpop.eup %11296  ;;  %v7560_v59 = vmul.f32 %v7510_v56, %v13758_v23  ;;  %11314 = vlog2.f32 %v7471_v13  ;;  %v7472_v42 = vmax.f32 %v7440_v48, 1e-06  ;;  %v7389_v8 = vadd.f32 %v15555_v44, %v16862_v31  ;;  %v16864_v44 = vld [vmem:[#allocation135_spill] sm:$0xff] }
 0x72f   : > { %v15663_v17 = vpop.eup %11298  ;;  %v7565_v54 = vmul.f32 %v7520_v2, %v13758_v23  ;;  %11316 = vlog2.f32 %v7474_v29  ;;  %v7477_v25 = vmax.f32 %v7445_v5, 1e-06  ;;  %v10225_v36 = vpack.c.bf16 %v15581_v52, %v15563_v3 }
 0x730   : > { %v15668_v16 = vpop.eup %11300  ;;  %v7605_v45 = vmul.f32 1.442695, %v7560_v59  ;;  %11318 = vlog2.f32 %v7472_v42  ;;  %v7443_v50 = vmax.f32 %v7389_v8, 0.0  ;;  %v7400_v60 = vadd.f32 %v15559_v61, %v16863_v58  ;;  %v16866_v61 = vld [vmem:[#allocation140_spill] sm:$0xff]  ;;  %v16869_v42 = vld [vmem:[#allocation147_spill] sm:$0xff] }
 0x731   : > { %v11303_v39 = vpop.eup %11302  ;;  %v7615_v55 = vmul.f32 1.442695, %v7565_v54  ;;  %11320 = vlog2.f32 %v7477_v25  ;;  %10224 = vmatpush3.bf16.xpose.msra.mxu1 %v10223_v18  ;;  %v7392_v43 = vadd.f32 %v15568_v1, %v16864_v44  ;;  %v7413_v37 = vadd.f32 %v15579_v19, %v16865_v24 }
 0x732   : > { %11322 = vpow2.f32 %v7605_v45  ;;  %v7516_v3 = vmul.f32 0.6931472, %v11303_v39  ;;  %v7475_v52 = vmax.f32 %v7443_v50, 1e-06  ;;  %10226 = vmatprep.subr.bf16.mxu1 %v10225_v36  ;;  %v7446_v6 = vmax.f32 %v7400_v60, 0.0 }
 0x733   : > { %v11305_v4 = vpop.eup %11304  ;;  %11324 = vpow2.f32 %v7615_v55  ;;  %v7444_v9 = vmax.f32 %v7392_v43, 0.0  ;;  %v7449_v46 = vmax.f32 %v7413_v37, 0.0  ;;  %v10227_v51 = vpack.c.bf16 %v16867_v32, %v16866_v61 }
 0x734   : > { %v15678_v35 = vpop.eup %11306  ;;  %v7563_v0 = vmul.f32 %v7516_v3, %v13758_v23  ;;  %v7522_v1 = vmul.f32 0.6931472, %v11305_v4  ;;  %11326 = vlog2.f32 %v7475_v52  ;;  %v7478_v62 = vmax.f32 %v7446_v6, 1e-06 }
 0x735   : > { %v11309_v19 = vpop.eup %11308  ;;  %v7476_v15 = vmax.f32 %v7444_v9, 1e-06  ;;  %v7481_v38 = vmax.f32 %v7449_v46, 1e-06  ;;  %v7405_v18 = vadd.f32 %v15584_v57, %v16868_v7  ;;  %v10229_v10 = vpack.c.bf16 %v15574_v63, %v15551_v40  ;;  %v16870_v40 = vld [vmem:[#allocation143_spill] sm:$0xff] }
 0x736   : > { %v11311_v56 = vpop.eup %11310  ;;  %v7611_v13 = vmul.f32 1.442695, %v7563_v0  ;;  %v7566_v48 = vmul.f32 %v7522_v1, %v13758_v23  ;;  %v7518_v2 = vmul.f32 0.6931472, %v11309_v19  ;;  %11328 = vlog2.f32 %v7478_v62  ;;  %v16871_v0 = vld [vmem:[#allocation129_spill] sm:$0xff]  ;;  %v16872_v1 = vld [vmem:[#allocation136_spill] sm:$0xff] }
 0x737   : > { %v15686_v29 = vpop.eup %11312  ;;  %v7528_v5 = vmul.f32 0.6931472, %v11311_v56  ;;  %11330 = vlog2.f32 %v7476_v15  ;;  %v7447_v59 = vmax.f32 %v7405_v18, 0.0  ;;  %v7416_v31 = vadd.f32 %v15588_v22, %v16869_v42 }
 0x738   : > { %v11315_v8 = vpop.eup %11314  ;;  %11332 = vpow2.f32 %v7611_v13  ;;  %v7617_v57 = vmul.f32 1.442695, %v7566_v48  ;;  %v7564_v54 = vmul.f32 %v7518_v2, %v13758_v23  ;;  %v7408_v63 = vadd.f32 %v15591_v34, %v16870_v40 }
 0x739   : > { %v11317_v25 = vpop.eup %11316  ;;  %v7569_v36 = vmul.f32 %v7528_v5, %v13758_v23  ;;  %v7524_v45 = vmul.f32 0.6931472, %v11315_v8  ;;  %11334 = vlog2.f32 %v7481_v38  ;;  %10228 = vmatpush3.bf16.xpose.msra.mxu1 %v10227_v51  ;;  %v7479_v50 = vmax.f32 %v7447_v59, 1e-06 }
 0x73a   : > { %v11319_v58 = vpop.eup %11318  ;;  %11336 = vpow2.f32 %v7617_v57  ;;  %v7613_v60 = vmul.f32 1.442695, %v7564_v54  ;;  %v7530_v39 = vmul.f32 0.6931472, %v11317_v25  ;;  %10230 = vmatprep.subr.bf16.mxu1 %v10229_v10  ;;  %v7450_v22 = vmax.f32 %v7416_v31, 0.0 }
 0x73b   : > { %v11321_v55 = vpop.eup %11320  ;;  %v7623_v44 = vmul.f32 1.442695, %v7569_v36  ;;  %v7567_v43 = vmul.f32 %v7524_v45, %v13758_v23  ;;  %v7526_v24 = vmul.f32 0.6931472, %v11319_v58  ;;  %11338 = vlog2.f32 %v7479_v50 }
 0x73c   : > { %v15695_v34 = vpop.eup %11322  ;;  %11340 = vpow2.f32 %v7613_v60  ;;  %v7570_v37 = vmul.f32 %v7530_v39, %v13758_v23  ;;  %v7536_v3 = vmul.f32 0.6931472, %v11321_v55  ;;  %v7482_v52 = vmax.f32 %v7450_v22, 1e-06 }
 0x73d   : > { %v15698_v6 = vpop.eup %11324  ;;  %11342 = vpow2.f32 %v7623_v44  ;;  %v7619_v4 = vmul.f32 1.442695, %v7567_v43  ;;  %v7568_v9 = vmul.f32 %v7526_v24, %v13758_v23  ;;  %v7448_v46 = vmax.f32 %v7408_v63, 0.0 }
 0x73e   : > { %v11327_v61 = vpop.eup %11326  ;;  %v7625_v32 = vmul.f32 1.442695, %v7570_v37  ;;  %v7573_v51 = vmul.f32 %v7536_v3, %v13758_v23  ;;  %11344 = vlog2.f32 %v7482_v52  ;;  %v10231_v62 = vpack.c.bf16 %v16872_v1, %v16871_v0 }
 0x73f   : > { %11346 = vpow2.f32 %v7619_v4  ;;  %v7621_v19 = vmul.f32 1.442695, %v7568_v9  ;;  %v7532_v15 = vmul.f32 0.6931472, %v11327_v61  ;;  %v7480_v38 = vmax.f32 %v7448_v46, 1e-06 }
 0x740   : > { %v11329_v7 = vpop.eup %11328  ;;  %11348 = vpow2.f32 %v7625_v32  ;;  %v7631_v18 = vmul.f32 1.442695, %v7573_v51  ;;  %v10235_v10 = vpack.c.bf16 %v15619_v33, %v15611_v21  ;;  %v10239_v56 = vpack.c.bf16 %v15614_v53, %v15593_v28 }
 0x741   : > { %v11331_v13 = vpop.eup %11330  ;;  %11350 = vpow2.f32 %v7621_v19  ;;  %v7571_v48 = vmul.f32 %v7532_v15, %v13758_v23  ;;  %v7538_v2 = vmul.f32 0.6931472, %v11329_v7  ;;  %10232 = vmatpush3.bf16.xpose.msra.mxu1 %v10231_v62  ;;  %v10243_v5 = vpack.c.bf16 %v15643_v26, %v15630_v12 }
 0x742   : > { %v11333_v59 = vpop.eup %11332  ;;  %v7534_v42 = vmul.f32 0.6931472, %v11331_v13  ;;  %v10247_v31 = vpack.c.bf16 %v15637_v47, %v15626_v49  ;;  %11352 = vlog2.f32 %v7480_v38  ;;  %v10251_v33 = vpack.c.bf16 %v15663_v17, %v15656_v11 }
 0x743   : > { %v11335_v8 = vpop.eup %11334  ;;  %v7627_v57 = vmul.f32 1.442695, %v7571_v48  ;;  %v7574_v21 = vmul.f32 %v7538_v2, %v13758_v23  ;;  %v10255_v25 = vpack.c.bf16 %v15658_v27, %v15648_v14  ;;  %v10259_v36 = vpack.c.bf16 %v15695_v34, %v15678_v35 }
 0x744   : > { %v11337_v54 = vpop.eup %11336  ;;  %v7572_v40 = vmul.f32 %v7534_v42, %v13758_v23  ;;  %v7544_v63 = vmul.f32 0.6931472, %v11335_v8  ;;  %11354 = vpow2.f32 %v7631_v18  ;;  %v10263_v60 = vpack.c.bf16 %v15686_v29, %v15668_v16 }
 0x745   : > { %v11339_v45 = vpop.eup %11338  ;;  %v7633_v50 = vmul.f32 1.442695, %v7574_v21  ;;  %v10237_v58 = vpack.c.bf16 %v11337_v54, %v15698_v6  ;;  %11356 = vpow2.f32 %v7627_v57 }
 0x746   : > { %v11341_v39 = vpop.eup %11340  ;;  %v7629_v22 = vmul.f32 1.442695, %v7572_v40  ;;  %v7577_v55 = vmul.f32 %v7544_v63, %v13758_v23  ;;  %v7540_v43 = vmul.f32 0.6931472, %v11339_v45 }
 0x747   : > { %v11343_v44 = vpop.eup %11342  ;;  %11358 = vpow2.f32 %v7633_v50  ;;  %v10233_v24 = vpack.c.bf16 %v11341_v39, %v11333_v59 }
 0x748   : > { %v11345_v37 = vpop.eup %11344  ;;  %11360 = vpow2.f32 %v7629_v22  ;;  %9157 = vmatmul.mubr.f32.vlgmr.msra.gmra.mrb[12].mxu1 %v16762_v20  ;;  %v7639_v4 = vmul.f32 1.442695, %v7577_v55  ;;  %v7575_v46 = vmul.f32 %v7540_v43, %v13758_v23 }
 0x749   : > { %v11347_v3 = vpop.eup %11346  ;;  %v7546_v52 = vmul.f32 0.6931472, %v11345_v37  ;;  %10234 = vmatprep.subr.bf16.mxu1 %v10233_v24  ;;  %9207 = vmatprep.mubr.f32.mxu1 %v16762_v20 }
 0x74a   : > { %v11349_v6 = vpop.eup %11348  ;;  %10236 = vmatpush3.bf16.xpose.msra.mxu1 %v10235_v10  ;;  %11362 = vpow2.f32 %v7639_v4  ;;  %v7635_v15 = vmul.f32 1.442695, %v7575_v46 }
 0x74b   : > { %v11351_v9 = vpop.eup %11350  ;;  %v7578_v61 = vmul.f32 %v7546_v52, %v13758_v23  ;;  %10238 = vmatprep.subr.bf16.mxu1 %v10237_v58  ;;  %v10245_v32 = vpack.c.bf16 %v11349_v6, %v11343_v44  ;;  %v7715_v58 = vld [vmem:[#allocation2 + $0x8] sm:$0xff] }
 0x74c   : > { %v10241_v51 = vpack.c.bf16 %v11351_v9, %v11347_v3  ;;  %v11353_v0 = vpop.eup %11352 }
 0x74d   : > { %v7641_v1 = vmul.f32 1.442695, %v7578_v61  ;;  %v7542_v62 = vmul.f32 0.6931472, %v11353_v0 }
 0x74e   : > { %v11355_v19 = vpop.eup %11354 }
 0x74f   : > { %11364 = vpow2.f32 %v7641_v1  ;;  %v11357_v38 = vpop.eup %11356  ;;  %v7576_v7 = vmul.f32 %v7542_v62, %v13758_v23 }
 0x750   : > { %v5861_v18 = vpop.f32.mrb[6].mxu1  ;;  %11366 = vpow2.f32 %v7635_v15 }
 0x751   : > { %v11359_v10 = vpop.eup %11358  ;;  %v7730_v13 = vrot.slane %v5861_v18, 5  ;;  %v5863_v48 = vpop.f32.mrb[7].mxu1  ;;  %v7637_v59 = vmul.f32 1.442695, %v7576_v7 }
 0x752   : > { %v11361_v2 = vpop.eup %11360  ;;  %10240 = vmatpush3.bf16.xpose.msra.mxu1 %v10239_v56  ;;  %v7731_v42 = vrot.slane %v5863_v48, 5  ;;  %v10253_v8 = vpack.c.bf16 %v11359_v10, %v11355_v19 }
 0x753   : > { %10242 = vmatprep.subr.bf16.mxu1 %v10241_v51  ;;  %v7764_v57 = vsel %vm7763_vm11, %v15597_v30, %v7730_v13  ;;  %v10249_v21 = vpack.c.bf16 %v11361_v2, %v11357_v38  ;;  %11368 = vpow2.f32 %v7637_v59 }
 0x754   : > { %v7765_v23 = vsel %vm7763_vm11, %v15606_v41, %v7731_v42  ;;  %v11363_v54 = vpop.eup %11362 }
 0x759   : > { %v11365_v40 = vpop.eup %11364 }
 0x75a   : > { %10244 = vmatpush3.bf16.xpose.msra.mxu1 %v10243_v5  ;;  %v10261_v63 = vpack.c.bf16 %v11365_v40, %v11363_v54  ;;  %v11367_v28 = vpop.eup %11366 }
 0x75b   : > { %10246 = vmatprep.subr.bf16.mxu1 %v10245_v32 }
 0x75d   : > { %v11369_v53 = vpop.eup %11368 }
 0x75e   : > { %v10257_v56 = vpack.c.bf16 %v11369_v53, %v11367_v28 }
 0x762   : > { %10248 = vmatpush3.bf16.xpose.msra.mxu1 %v10247_v31 }
 0x763   : > { %10250 = vmatprep.subr.bf16.mxu1 %v10249_v21 }
 0x76a   : > { %10252 = vmatpush3.bf16.xpose.msra.mxu1 %v10251_v33 }
 0x76b   : > { %10254 = vmatprep.subr.bf16.mxu1 %v10253_v8 }
 0x772   : > { %10256 = vmatpush3.bf16.xpose.msra.mxu1 %v10255_v25 }
 0x773   : > { %10258 = vmatprep.subr.bf16.mxu1 %v10257_v56 }
 0x77a   : > { %10260 = vmatpush3.bf16.xpose.msra.mxu1 %v10259_v36  ;;  %v7714_v36 = vld [vmem:[#allocation2] sm:$0xff] }
 0x77b   : > { %10262 = vmatprep.subr.bf16.mxu1 %v10261_v63 }
 0x782   : > { %10264 = vmatpush3.bf16.xpose.msra.mxu1 %v10263_v60 }
 0x789   : > { %9208 = vmatmul.mubr.f32.vlgmr.msra.gmra.mrb[14].mxu1 %v16762_v20 }
 0x790   : > { %v6323_v30 = vpop.f32.mrb[8].mxu1 }
 0x791   : > { %v7736_v41 = vrot.slane %v6323_v30, 4  ;;  %v6325_v49 = vpop.f32.mrb[9].mxu1 }
 0x792   : > { %v7737_v12 = vrot.slane %v6325_v49, 4 }
 0x793   : > { %v7767_v47 = vsel %vm7766_vm12, %v7764_v57, %v7736_v41 }
 0x794   : > { %v7768_v26 = vsel %vm7766_vm12, %v7765_v23, %v7737_v12 }
 0x7d6   : > { %v6785_v14 = vpop.f32.mrb[10].mxu1 }
 0x7d7   : > { %v7742_v11 = vrot.slane %v6785_v14, 3  ;;  %v6787_v27 = vpop.f32.mrb[11].mxu1 }
 0x7d8   : > { %v7743_v17 = vrot.slane %v6787_v27, 3 }
 0x7d9   : > { %v7770_v35 = vsel %vm7769_vm13, %v7767_v47, %v7742_v11 }
 0x7da   : > { %v7771_v34 = vsel %vm7769_vm13, %v7768_v26, %v7743_v17 }
 0x81b   : > { %v7247_v5 = vpop.f32.mrb[12].mxu1 }
 0x81c   : > { %v7748_v16 = vrot.slane %v7247_v5, 2  ;;  %v7249_v29 = vpop.f32.mrb[13].mxu1 }
 0x81d   : > { %v7749_v31 = vrot.slane %v7249_v29, 2 }
 0x81e   : > { %v7773_v20 = vsel %vm7772_vm14, %v7770_v35, %v7748_v16 }
 0x81f   : > { %v7774_v33 = vsel %vm7772_vm14, %v7771_v34, %v7749_v31 }
 0x85c   : > { %v7709_v25 = vpop.f32.mrb[14].mxu1 }
 0x85d   : > { %v7754_v45 = vrot.slane %v7709_v25, 1  ;;  %v7711_v50 = vpop.f32.mrb[15].mxu1 }
 0x85e   : > { %v7755_v60 = vrot.slane %v7711_v50, 1 }
 0x85f   : > { %v7776_v39 = vsel %vm7775_vm15, %v7773_v20, %v7754_v45 }
 0x860   : > { %v7778_v22 = vadd.f32 %v7776_v39, %v7714_v36  ;;  %v7777_v55 = vsel %vm7775_vm15, %v7774_v33, %v7755_v60 }
 0x861   : > { %v7779_v44 = vadd.f32 %v7777_v55, %v7715_v58 }
 0x862   : > { %7780 = vst [vmem:[#allocation2] sm:$0xff] %v7778_v22 }
 0x863   : > { %7781 = vst [vmem:[#allocation2 + $0x8] sm:$0xff] %v7779_v44 }
 0x864 PF: > { %p8369_p11 = scmp.ne.s32.totalorder %s11498_s28, 1 }
 0x865   : > { %v7794_v43 = vstv (!%p8369_p11), %s11608_s22  ;;  %v11370_v24 = vld [vmem:[%s15883_s4 + $0x4] ss:$8 sps:$4 sm:$0xff] (!%p8369_p11)   ;;  %v11372_v37 = vld [vmem:[%s15883_s4] ss:$8 sps:$4 sm:$0xff] (!%p8369_p11)   ;;  %v11373_v3 = vld [vmem:[%s15883_s4 + $0x14] ss:$8 sps:$4 sm:$0xff] (!%p8369_p11)  }
 0x866   : > { %7785 = sbr.rel (%p8369_p11) target bundleno = 2622 (0xa3e), region = 101  ;;  %11394 = vrcp.f32 (!%p8369_p11), %v7794_v43  ;;  %7909 = vmatprep.subr.bf16.mxu0 (!%p8369_p11), %v11370_v24  ;;  %v11375_v52 = vld [vmem:[%s15883_s4 + $0x10] ss:$8 sps:$4 sm:$0xff] (!%p8369_p11)   ;;  %v11376_v6 = vld [vmem:[%s15883_s4 + $0x24] ss:$8 sps:$4 sm:$0xff] (!%p8369_p11)  }
 0x867   : > { %7910 = vmatpush1.bf16.xpose.msra.mxu0 (!%p8369_p11), %v11372_v37  ;;  %v11378_v9 = vld [vmem:[%s15883_s4 + $0x20] ss:$8 sps:$4 sm:$0xff] (!%p8369_p11)   ;;  %v11379_v46 = vld [vmem:[%s15883_s4 + $0x34] ss:$8 sps:$4 sm:$0xff] (!%p8369_p11)   ;;  %v11381_v61 = vld [vmem:[%s15883_s4 + $0x30] ss:$8 sps:$4 sm:$0xff] (!%p8369_p11)  }
 0x868   : > { %7911 = vmatprep.subr.bf16.mxu0 (!%p8369_p11), %v11373_v3  ;;  %v11382_v32 = vld [vmem:[%s15883_s4 + $0x44] ss:$8 sps:$4 sm:$0xff] (!%p8369_p11)   ;;  %v11384_v51 = vld [vmem:[%s15883_s4 + $0x40] ss:$8 sps:$4 sm:$0xff] (!%p8369_p11)   ;;  %v11385_v0 = vld [vmem:[%s15883_s4 + $0x54] ss:$8 sps:$4 sm:$0xff] (!%p8369_p11)  }
 0x869   : > { %v7786_v1 = vld [vmem:[#allocation2] sm:$0xff] (!%p8369_p11)  ;;  %v11387_v62 = vld [vmem:[%s15883_s4 + $0x50] ss:$8 sps:$4 sm:$0xff] (!%p8369_p11)   ;;  %v11391_v10 = vld [vmem:[%s15883_s4 + $0x74] ss:$8 sps:$4 sm:$0xff] (!%p8369_p11)  }
 0x86a   : > { %v7787_v19 = vld [vmem:[#allocation2 + $0x8] sm:$0xff] (!%p8369_p11)  ;;  %v7788_v38 = vmul.f32 (!%p8369_p11), 0.00390625, %v7786_v1  ;;  %v11393_v48 = vld [vmem:[%s15883_s4 + $0x70] ss:$8 sps:$4 sm:$0xff] (!%p8369_p11)   ;;  %v8370_v56 = vld [vmem:[%s15884_s5] ss:$0 sm:$0xff] (!%p8369_p11) }
 0x86b   : > { %v11388_v15 = vld [vmem:[%s15883_s4 + $0x64] ss:$8 sps:$4 sm:$0xff] (!%p8369_p11)   ;;  %v7789_v7 = vmul.f32 (!%p8369_p11), 0.00390625, %v7787_v19  ;;  %v11390_v18 = vld [vmem:[%s15883_s4 + $0x60] ss:$8 sps:$4 sm:$0xff] (!%p8369_p11)  }
 0x86c   : > { %11396 = vlog2.f32 (!%p8369_p11), %v7788_v38 }
 0x86d   : > { %11398 = vlog2.f32 %v7789_v7 }
 0x86f   : > { %7912 = vmatpush1.bf16.xpose.msra.mxu0 %v11375_v52 }
 0x870   : > { %v11395_v4 = vpop.eup %11394  ;;  %7913 = vmatprep.subr.bf16.mxu0 %v11376_v6 }
 0x871   : > { %10281 = vpush %v11395_v4 }
 0x876   : > { %v11397_v13 = vpop.eup %11396 }
 0x877   : > { %7914 = vmatpush1.bf16.xpose.msra.mxu0 %v11378_v9  ;;  %v11399_v2 = vpop.eup %11398  ;;  %v7791_v59 = vmul.f32 0.6931472, %v11397_v13 }
 0x878   : > { %7915 = vmatprep.subr.bf16.mxu0 %v11379_v46  ;;  %v7793_v42 = vmul.f32 0.6931472, %v11399_v2 }
 0x87f   : > { %7916 = vmatpush1.bf16.xpose.msra.mxu0 %v11381_v61 }
 0x880   : > { %7917 = vmatprep.subr.bf16.mxu0 %v11382_v32 }
 0x887   : > { %7918 = vmatpush1.bf16.xpose.msra.mxu0 %v11384_v51 }
 0x888   : > { %7919 = vmatprep.subr.bf16.mxu0 %v11385_v0 }
 0x88f   : > { %7920 = vmatpush1.bf16.xpose.msra.mxu0 %v11387_v62 }
 0x890   : > { %7921 = vmatprep.subr.bf16.mxu0 %v11388_v15 }
 0x897   : > { %7922 = vmatpush1.bf16.xpose.msra.mxu0 %v11390_v18 }
 0x898   : > { %7923 = vmatprep.subr.bf16.mxu0 %v11391_v10 }
 0x89f   : > { %7924 = vmatpush1.bf16.xpose.msra.mxu0 %v11393_v48 }
 0x8a2   : > { %s10282_s17 = spop %10281 }
 0x8a3   : > { %v7797_v8 = vstv %s10282_s17 }
 0x8a4   : > { %v7798_v57 = vmul.f32 %v7797_v8, %v7791_v59  ;;  %v7799_v21 = vmul.f32 %v7797_v8, %v7793_v42 }
 0x8a6   : > { %v7800_v23 = vmul.f32 1.442695, %v7798_v57  ;;  %v7802_v54 = vmul.f32 1.442695, %v7799_v21 }
 0x8a8   : > { %11400 = vpow2.f32 %v7800_v23 }
 0x8a9   : > { %11402 = vpow2.f32 %v7802_v54 }
 0x8b2   : > { %v11401_v40 = vpop.eup %11400 }
 0x8b3   : > { %v11403_v63 = vpop.eup %11402  ;;  %v7804_v28 = vpack.c.bf16 %v11401_v40, %v11401_v40 }
 0x8b4   : > { %v7805_v53 = vpack.c.bf16 %v11403_v63, %v11403_v63 }
 0x8b6   : > { %7941 = vmatprep.mubr.bf16.mxu0 %v7805_v53 }
 0x8b7   : > { %7942 = vmatmul.mubr.bf16.vlgmr.msra.gmra.mrb[0].mxu0 %v7804_v28 }
 0x98a   : > { %v7943_v30 = vpop.f32.mrb[0].mxu0 }
 0x98b   : > { %v7944_v41 = vadd.f32 %v8370_v56, %v7943_v30  ;;  %v7945_v49 = vpop.f32.mrb[1].mxu0 }
 0x98c   : > { %v7946_v12 = vpop.f32.mrb[2].mxu0 }
 0x98d   : > { %7962 = vst [vmem:[#allocation5] sm:$0xff] %v7944_v41  ;;  %v7947_v47 = vpop.f32.mrb[3].mxu0  ;;  %v7949_v26 = vmul.f32 %v7944_v41, %v7944_v41 }
 0x98f   : > { %7950 = vadd.xlane.f32.xlu0 %v7949_v26 }
 0xa1c   : > { %v7951_v14 = vpop.xlane.xlu0 %7950 }
 0xa1d   : > { %11404 = vrsqrt.f32 %v7951_v14  ;;  %vm7954_vm0 = vcmp.eq.f32.partialorder %v7951_v14, inf  ;;  %v7957_v17 = vand.u32 2147483648, %v7951_v14  ;;  %vm7956_vm1 = vcmp.eq.f32.partialorder %v7951_v14, 0.0 }
 0xa27   : > { %v11405_v11 = vpop.eup %11404 }
 0xa28   : > { %v7953_v27 = vmul.f32 %v11405_v11, %v7951_v14 }
 0xa2a   : > { %v7955_v35 = vsel %vm7954_vm0, %v7951_v14, %v7953_v27 }
 0xa2b   : > { %v7958_v34 = vsel %vm7956_vm1, %v7957_v17, %v7955_v35 }
 0xa2c   : > { %v7959_v5 = vmax.f32 %v7958_v34, 1e-12 }
 0xa2e   : > { %11406 = vrcp.f32 %v7959_v5 }
 0xa38   : > { %v11407_v16 = vpop.eup %11406 }
 0xa39   : > { %v7961_v29 = vmul.f32 %v11407_v16, %v7944_v41 }
 0xa3b   : > { %v7963_v31 = vpack.c.bf16 %v7961_v29, %v7961_v29 }
 0xa3d   : > { %7964 = vst [vmem:[#allocation7] sm:$0xf] %v7963_v31 }
 0xa3e PF: > { %p15809_p12 = scmp.eq.s32.totalorder %s8058_s0, 1  ;;  %s11513_s21 = smov [#allocation5]  }
 0xa3f   : > { %s7974_s25 = sshll.u32 %s11513_s21, 4  ;;  %s11514_s23 = smov [#allocation7]   ;;  %s7975_s25 = int_to_ptr.vmem [resolvable:$true] %s7974_s25 }
 0xa40   : > { %s7987_s24 = sshll.u32 %s11514_s23, 4  ;;  %s11408_s9 = scalar_lea.vmem %s7975_s25, 128  ;;  %s15813_s24 = int_to_ptr.vmem [resolvable:$true] %s7987_s24 }
 0xa41   : > { %p11409_p13 = scmp.ne.s32.totalorder %s7975_s25, %s11408_s9  ;;  %p11415_p2 = scmp.lt.s32.totalorder %s7975_s25, %s7975_s25 }
 0xa42   : > { %p11416_p3 = scmp.lt.s32.totalorder %s11408_s9, %s11408_s9 }
 0xa43   : > { %p11410_p0 = pnand %p11409_p13, %p15809_p12 }
 0xa44   : > { %p11417_p4 = por %p11416_p3, %p11415_p2 }
 0xa45   : > { %p11411_p1 = pneg %p11410_p0 }
 0xa47   : > { %p11418_p5 = pnand %p11417_p4, %p11411_p1 }
 0xa49   : > { %11421 = shalt.err (!%p11418_p5)
}
 0xa4a   : > { %s11422_s28 = scalar_lea.hbm %s15885_s6, 128 }
 0xa4b   : > { %p11423_p6 = scmp.ne.s32.totalorder %s15885_s6, %s11422_s28  ;;  %p11428_p9 = scmp.lt.u32.totalorder %s11422_s28, %s15885_s6 }
 0xa4d   : > { %p11424_p7 = pnand %p11423_p6, %p15809_p12 }
 0xa4f   : > { %p11425_p8 = pneg %p11424_p7 }
 0xa51   : > { %p11430_p10 = pnand %p11428_p9, %p11425_p8 }
 0xa53   : > { %11433 = shalt.err (!%p11430_p10)
}
 0xa54   : > { %10284 = dma.vmem_to_hbm [thread:$0]  (%p15809_p12), %s7975_s25, 128, %s15885_s6, [#allocation6]  }
 0xa55   : > { %s11434_s26 = scalar_lea.vmem %s15813_s24, 64  ;;  %p11441_p1 = scmp.lt.s32.totalorder %s15813_s24, %s15813_s24 }
 0xa56   : > { %p11435_p11 = scmp.ne.s32.totalorder %s15813_s24, %s11434_s26  ;;  %p11442_p2 = scmp.lt.s32.totalorder %s11434_s26, %s11434_s26 }
 0xa58   : > { %p11436_p13 = pnand %p11435_p11, %p15809_p12  ;;  %p11443_p3 = por %p11442_p2, %p11441_p1 }
 0xa5a   : > { %p11437_p0 = pneg %p11436_p13 }
 0xa5c   : > { %p11444_p4 = pnand %p11443_p3, %p11437_p0 }
 0xa5e   : > { %11447 = shalt.err (!%p11444_p4)
}
 0xa5f   : > { %s11448_s19 = scalar_lea.hbm %s15886_s7, 64 }
 0xa60   : > { %p11449_p5 = scmp.ne.s32.totalorder %s15886_s7, %s11448_s19  ;;  %p11454_p8 = scmp.lt.u32.totalorder %s11448_s19, %s15886_s7 }
 0xa62   : > { %p11450_p6 = pnand %p11449_p5, %p15809_p12 }
 0xa64   : > { %p11451_p7 = pneg %p11450_p6 }
 0xa66   : > { %p11456_p9 = pnand %p11454_p8, %p11451_p7 }
 0xa68   : > { %11459 = shalt.err (!%p11456_p9)
}
 0xa69   : > { %10286 = dma.vmem_to_hbm [thread:$0]  (%p15809_p12), %s15813_s24, 64, %s15886_s7, [#allocation8]  }
 0xa6a   : > { %11481 = dma.done.wait (%p15809_p12), [#allocation6], 128  }
 0xa6b   : > { %11483 = vsyncadd (%p15809_p12), [#allocation6], 4294967168 }
 0xa6c   : > { %11485 = dma.done.wait (%p15809_p12), [#allocation8], 64  }
 0xa6d   : > { %11487 = vsyncadd (%p15809_p12), [#allocation8], 4294967232 }
 0xa6e PF: > { %s21_s30 = sadd.s32 1, %s11506_s30   ;;  %s16874_s26 = smov %s11494_s27 }
 0xa6f   : > { %p18_p10 = scmp.ge.s32.totalorder %s21_s30, 4   ;;  %s16875_s27 = smov %s11594_s11 }
 0xa70   : > { %s16876_s28 = smov %s11502_s29  ;;  %s16877_s29 = smov %s16879_s8 }
 0xa71   :  { %20 = sbr.rel (!%p18_p10) target bundleno = 6 (0x6), region = 157 }
 0xa78   :  { %8004 = vsyncpa [#allocation6], 1 }
 0xa79   :  { %8006 = vsyncpa [#allocation6 + $0x1], 1 }
 0xa7a   :  { %8007 = vsyncpa [#allocation8], 1 }

</bundles_post_ra>
